<compile_context>
chip_gen: v6e
topology: v6e:2x2x1
jax: 0.10.0
libtpu: 0.0.40
codegen_flags: <defaults>
</compile_context>

<pallas_src>
import jax
import jax.numpy as jnp
from jax.experimental import pallas as pl
from jax.experimental.pallas import tpu as pltpu


# ----------------------------- Pallas kernels ------------------------------

def _conv3x3_im2col(x, w_ref, pad_ref, col_ref):
    """3x3 same-padded conv of one image as a single im2col MXU matmul.

    x:       (H, W, Cin) f32 activation (any BN/ReLU epilogue already applied)
    w_ref:   (9*Cin, Cout) weights, tap-major (dy, dx, cin) ordering
    pad_ref: VMEM scratch (H+2, W+2, Cin) -- in-kernel zero padding (no HBM pad)
    col_ref: VMEM scratch (H*W, 9*Cin)    -- im2col patch matrix
    returns: (H*W, Cout) f32 conv output
    """
    H, W, Cin = x.shape
    # Zero-padded copy of the activation, built in VMEM (no padded HBM copy).
    pad_ref[...] = jnp.zeros_like(pad_ref)
    pad_ref[1:H + 1, 1:W + 1, :] = x
    # Build the (H*W, 9*Cin) patch matrix in VMEM scratch.
    for dy in range(3):
        for dx in range(3):
            k = dy * 3 + dx
            col_ref[:, k * Cin:(k + 1) * Cin] = (
                pad_ref[dy:dy + H, dx:dx + W, :].reshape(H * W, Cin))
    # Single matmul with K = 9*Cin instead of nine tiny K=Cin MXU pushes.
    return jnp.dot(col_ref[...], w_ref[...], preferred_element_type=jnp.float32)


def conv_stats_kernel(x_ref, w_ref, y_ref, sum_ref, ssq_ref, pad_ref, col_ref):
    """y = conv3x3(x); also emits per-block sum / sum-of-squares for BatchNorm."""
    _, H, W, Cout = y_ref.shape
    y = _conv3x3_im2col(x_ref[0], w_ref, pad_ref, col_ref)        # (H*W, Cout)
    y_ref[...] = y.reshape(1, H, W, Cout)
    sum_ref[...] = jnp.sum(y, axis=0, keepdims=True).reshape(1, 1, Cout)
    ssq_ref[...] = jnp.sum(y * y, axis=0, keepdims=True).reshape(1, 1, Cout)


def bn_relu_conv_stats_kernel(x_ref, scale_ref, shift_ref, w_ref,
                              y_ref, sum_ref, ssq_ref, pad_ref, col_ref):
    """a = relu(x*scale + shift) (previous layer's BN+ReLU, fused in);
    y = conv3x3(a); also emits BN partial stats for this layer."""
    _, H, W, Cout = y_ref.shape
    Cin = x_ref.shape[3]
    scale = scale_ref[...].reshape(1, 1, Cin)
    shift = shift_ref[...].reshape(1, 1, Cin)
    a = jnp.maximum(x_ref[0] * scale + shift, 0.0)                # (H, W, Cin)
    y = _conv3x3_im2col(a, w_ref, pad_ref, col_ref)               # (H*W, Cout)
    y_ref[...] = y.reshape(1, H, W, Cout)
    sum_ref[...] = jnp.sum(y, axis=0, keepdims=True).reshape(1, 1, Cout)
    ssq_ref[...] = jnp.sum(y * y, axis=0, keepdims=True).reshape(1, 1, Cout)


def bn_relu_pool_kernel(y_ref, scale_ref, shift_ref, level_ref, pool_ref):
    """Final BN+ReLU epilogue fused with the DownConv 2x2/stride-2 max pool."""
    _, H, W, C = y_ref.shape
    scale = scale_ref[...].reshape(1, 1, C)
    shift = shift_ref[...].reshape(1, 1, C)
    a = jnp.maximum(y_ref[0] * scale + shift, 0.0)                # (H, W, C)
    level_ref[...] = a.reshape(1, H, W, C)
    # 2x2 max pool: pair rows, then pair columns (last dim C stays lane-minor).
    a4 = a.reshape(H // 2, 2, W, C)
    r = jnp.maximum(a4[:, 0], a4[:, 1])                           # (H//2, W, C)
    r4 = r.reshape(H // 2, W // 2, 2, C)
    p = jnp.maximum(r4[:, :, 0], r4[:, :, 1])                     # (H//2, W//2, C)
    pool_ref[...] = p.reshape(1, H // 2, W // 2, C)


# ------------------------------ wrappers ------------------------------------

def _conv_stats_pallas(x_nhwc, w_mat):
    N, H, W, Cin = x_nhwc.shape
    Cout = w_mat.shape[-1]
    return pl.pallas_call(
        conv_stats_kernel,
        out_shape=(
            jax.ShapeDtypeStruct((N, H, W, Cout), jnp.float32),
            jax.ShapeDtypeStruct((N, 1, Cout), jnp.float32),
            jax.ShapeDtypeStruct((N, 1, Cout), jnp.float32),
        ),
        grid_spec=pltpu.PrefetchScalarGridSpec(
            num_scalar_prefetch=0,
            grid=(N,),
            in_specs=[
                pl.BlockSpec((1, H, W, Cin), lambda n: (n, 0, 0, 0)),
                pl.BlockSpec((9 * Cin, Cout), lambda n: (0, 0)),
            ],
            out_specs=[
                pl.BlockSpec((1, H, W, Cout), lambda n: (n, 0, 0, 0)),
                pl.BlockSpec((1, 1, Cout), lambda n: (n, 0, 0)),
                pl.BlockSpec((1, 1, Cout), lambda n: (n, 0, 0)),
            ],
            scratch_shapes=[
                pltpu.VMEM((H + 2, W + 2, Cin), jnp.float32),
                pltpu.VMEM((H * W, 9 * Cin), jnp.float32),
            ],
        ),
        compiler_params=pltpu.CompilerParams(
            dimension_semantics=("parallel",)),
    )(x_nhwc, w_mat)


def _bn_relu_conv_stats_pallas(x_nhwc, scale, shift, w_mat):
    N, H, W, Cin = x_nhwc.shape
    Cout = w_mat.shape[-1]
    return pl.pallas_call(
        bn_relu_conv_stats_kernel,
        out_shape=(
            jax.ShapeDtypeStruct((N, H, W, Cout), jnp.float32),
            jax.ShapeDtypeStruct((N, 1, Cout), jnp.float32),
            jax.ShapeDtypeStruct((N, 1, Cout), jnp.float32),
        ),
        grid_spec=pltpu.PrefetchScalarGridSpec(
            num_scalar_prefetch=0,
            grid=(N,),
            in_specs=[
                pl.BlockSpec((1, H, W, Cin), lambda n: (n, 0, 0, 0)),
                pl.BlockSpec((1, Cin), lambda n: (0, 0)),
                pl.BlockSpec((1, Cin), lambda n: (0, 0)),
                pl.BlockSpec((9 * Cin, Cout), lambda n: (0, 0)),
            ],
            out_specs=[
                pl.BlockSpec((1, H, W, Cout), lambda n: (n, 0, 0, 0)),
                pl.BlockSpec((1, 1, Cout), lambda n: (n, 0, 0)),
                pl.BlockSpec((1, 1, Cout), lambda n: (n, 0, 0)),
            ],
            scratch_shapes=[
                pltpu.VMEM((H + 2, W + 2, Cin), jnp.float32),
                pltpu.VMEM((H * W, 9 * Cin), jnp.float32),
            ],
        ),
        compiler_params=pltpu.CompilerParams(
            dimension_semantics=("parallel",)),
    )(x_nhwc, scale, shift, w_mat)


def _bn_relu_pool_pallas(y_nhwc, scale, shift):
    N, H, W, C = y_nhwc.shape
    return pl.pallas_call(
        bn_relu_pool_kernel,
        out_shape=(
            jax.ShapeDtypeStruct((N, H, W, C), jnp.float32),
            jax.ShapeDtypeStruct((N, H // 2, W // 2, C), jnp.float32),
        ),
        grid_spec=pltpu.PrefetchScalarGridSpec(
            num_scalar_prefetch=0,
            grid=(N,),
            in_specs=[
                pl.BlockSpec((1, H, W, C), lambda n: (n, 0, 0, 0)),
                pl.BlockSpec((1, C), lambda n: (0, 0)),
                pl.BlockSpec((1, C), lambda n: (0, 0)),
            ],
            out_specs=[
                pl.BlockSpec((1, H, W, C), lambda n: (n, 0, 0, 0)),
                pl.BlockSpec((1, H // 2, W // 2, C), lambda n: (n, 0, 0, 0)),
            ],
        ),
        compiler_params=pltpu.CompilerParams(
            dimension_semantics=("parallel",)),
    )(y_nhwc, scale, shift)


def _bn_affine(sums, ssqs, gamma, beta, count, eps):
    """Reduce per-block partial stats -> training-mode BN scale/shift (biased var)."""
    total = jnp.sum(sums, axis=(0, 1))                  # (C,)
    total_sq = jnp.sum(ssqs, axis=(0, 1))               # (C,)
    mean = total / count
    var = total_sq / count - mean * mean                # biased variance
    scale = gamma * jax.lax.rsqrt(var + eps)
    shift = beta - mean * scale
    return scale.reshape(1, -1), shift.reshape(1, -1)


def downconv_forward(x_nchw, params, eps=1e-5):
    """DownConv forward: (level_result, maxpool2x2(level_result)), both NCHW."""
    x = jnp.transpose(x_nchw, (0, 2, 3, 1))             # NCHW -> NHWC
    N, H, W, Cin = x.shape
    Cout = params["w1"].shape[-1]
    w1 = params["w1"].reshape(9 * Cin, Cout)            # (3,3,Cin,Cout) -> (9Cin,Cout)
    w2 = params["w2"].reshape(9 * Cout, Cout)

    # Layer 1: conv + BN1 partial stats (conv bias folded away -- it cancels
    # exactly under training-mode BatchNorm mean subtraction).
    y1, s1, q1 = _conv_stats_pallas(x, w1)
    scale1, shift1 = _bn_affine(s1, q1, params["gamma1"], params["beta1"],
                                N * H * W, eps)

    # Layer 2: BN1+ReLU epilogue fused into conv2 + BN2 partial stats.
    y2, s2, q2 = _bn_relu_conv_stats_pallas(y1, scale1, shift1, w2)
    scale2, shift2 = _bn_affine(s2, q2, params["gamma2"], params["beta2"],
                                N * H * W, eps)

    # BN2+ReLU epilogue fused with the DownConv 2x2 max pool.
    level, pooled = _bn_relu_pool_pallas(y2, scale2, shift2)

    return (jnp.transpose(level, (0, 3, 1, 2)),
            jnp.transpose(pooled, (0, 3, 1, 2)))


# ------------------------------ reference -----------------------------------

def _conv_ref(x, w, b):
    out = jax.lax.conv_general_dilated(
        x, w, window_strides=(1, 1), padding=((1, 1), (1, 1)),
        dimension_numbers=("NHWC", "HWIO", "NHWC"))
    return out + b[None, None, None, :]


def _block_ref(x, w, b, gamma, beta, eps=1e-5):
    y = _conv_ref(x, w, b)
    mean = jnp.mean(y, axis=(0, 1, 2))
    var = jnp.mean((y - mean) ** 2, axis=(0, 1, 2))
    yhat = (y - mean) / jnp.sqrt(var + eps)
    return jnp.maximum(yhat * gamma + beta, 0.0)


def downconv_ref(x_nchw, params, eps=1e-5):
    x = jnp.transpose(x_nchw, (0, 2, 3, 1))
    x = _block_ref(x, params["w1"], params["b1"], params["gamma1"],
                   params["beta1"], eps)
    x = _block_ref(x, params["w2"], params["b2"], params["gamma2"],
                   params["beta2"], eps)
    pooled = jax.lax.reduce_window(x, -jnp.inf, jax.lax.max,
                                   (1, 2, 2, 1), (1, 2, 2, 1), "VALID")
    return (jnp.transpose(x, (0, 3, 1, 2)),
            jnp.transpose(pooled, (0, 3, 1, 2)))


# -------------------------------- main ---------------------------------------

if __name__ == "__main__":
    key = jax.random.PRNGKey(0)
    N, Cin, Cout, H, W = 2, 4, 8, 16, 16

    keys = jax.random.split(key, 9)
    x_nchw = jax.random.normal(keys[0], (N, Cin, H, W), jnp.float32)

    # Deterministic parameters; biases are present for PyTorch fidelity but are
    # mathematically inert in the forward pass (cancelled by training-mode BN).
    params = {
        "w1": jax.random.normal(keys[1], (3, 3, Cin, Cout), jnp.float32) * 0.1,
        "b1": jax.random.normal(keys[2], (Cout,), jnp.float32) * 0.1,
        "gamma1": 1.0 + 0.1 * jax.random.normal(keys[3], (Cout,), jnp.float32),
        "beta1": 0.1 * jax.random.normal(keys[4], (Cout,), jnp.float32),
        "w2": jax.random.normal(keys[5], (3, 3, Cout, Cout), jnp.float32) * 0.1,
        "b2": jax.random.normal(keys[6], (Cout,), jnp.float32) * 0.1,
        "gamma2": 1.0 + 0.1 * jax.random.normal(keys[7], (Cout,), jnp.float32),
        "beta2": 0.1 * jax.random.normal(keys[8], (Cout,), jnp.float32),
    }

    level, pooled = jax.jit(downconv_forward)(x_nchw, params)
    level = jax.block_until_ready(level)
    pooled = jax.block_until_ready(pooled)

    ref_level, ref_pooled = downconv_ref(x_nchw, params)
    ref_level = jax.block_until_ready(ref_level)
    ref_pooled = jax.block_until_ready(ref_pooled)

    assert level.shape == (N, Cout, H, W), level.shape
    assert pooled.shape == (N, Cout, H // 2, W // 2), pooled.shape
    assert jnp.allclose(level, ref_level, rtol=2e-3, atol=2e-3), \
        float(jnp.max(jnp.abs(level - ref_level)))
    assert jnp.allclose(pooled, ref_pooled, rtol=2e-3, atol=2e-3), \
        float(jnp.max(jnp.abs(pooled - ref_pooled)))

    print("KERNEL_OK")
</pallas_src>

<mosaic_0001>
module attributes {stable_mosaic.version = 11 : i64} {
  func.func @conv_stats_kernel(%arg0: i32, %arg1: memref<1x16x16x4xf32, #tpu.memory_space<vmem>>, %arg2: memref<36x8xf32, #tpu.memory_space<vmem>>, %arg3: memref<1x16x16x8xf32, #tpu.memory_space<vmem>>, %arg4: memref<1x1x8xf32, #tpu.memory_space<vmem>>, %arg5: memref<1x1x8xf32, #tpu.memory_space<vmem>>, %arg6: memref<18x18x4xf32, #tpu.memory_space<vmem>>, %arg7: memref<256x36xf32, #tpu.memory_space<vmem>>) attributes {dimension_semantics = [#tpu.dimension_semantics<parallel>], iteration_bounds = array<i64: 2>, scalar_prefetch = 0 : i64, scratch_operands = 2 : i64, tpu.core_type = #tpu.core_type<tc>, window_params = [{transform_indices = @transform_0, window_bounds = array<i64: 1, 16, 16, 4>}, {pipeline_mode = #tpu.pipeline_mode<synchronous>, transform_indices = @transform_1, window_bounds = array<i64: 36, 8>}, {transform_indices = @transform_2, window_bounds = array<i64: 1, 16, 16, 8>}, {transform_indices = @transform_3, window_bounds = array<i64: 1, 1, 8>}, {transform_indices = @transform_4, window_bounds = array<i64: 1, 1, 8>}]} {
    %c0 = arith.constant 0 : index
    %c0_0 = arith.constant 0 : index
    %c0_1 = arith.constant 0 : index
    %c0_2 = arith.constant 0 : index
    %0 = vector.load %arg1[%c0, %c0_0, %c0_1, %c0_2] : memref<1x16x16x4xf32, #tpu.memory_space<vmem>>, vector<1x16x16x4xf32>
    %1 = vector.shape_cast %0 : vector<1x16x16x4xf32> to vector<16x16x4xf32>
    %cst = arith.constant 0.000000e+00 : f32
    %2 = vector.broadcast %cst : f32 to vector<18x18x4xf32>
    %c0_3 = arith.constant 0 : index
    %c0_4 = arith.constant 0 : index
    %c0_5 = arith.constant 0 : index
    %3 = vector.load %arg6[%c0_3, %c0_4, %c0_5] : memref<18x18x4xf32, #tpu.memory_space<vmem>>, vector<18x18x4xf32>
    tpu.vector_store %arg6[%c0_3, %c0_4, %c0_5], %2 {strides = array<i32>} : memref<18x18x4xf32, #tpu.memory_space<vmem>>, vector<18x18x4xf32>,
    %c1 = arith.constant 1 : index
    %c1_6 = arith.constant 1 : index
    %c0_7 = arith.constant 0 : index
    %4 = vector.load %arg6[%c1, %c1_6, %c0_7] : memref<18x18x4xf32, #tpu.memory_space<vmem>>, vector<16x16x4xf32>
    tpu.vector_store %arg6[%c1, %c1_6, %c0_7], %1 {strides = array<i32>} : memref<18x18x4xf32, #tpu.memory_space<vmem>>, vector<16x16x4xf32>,
    %c0_8 = arith.constant 0 : index
    %c0_9 = arith.constant 0 : index
    %c0_10 = arith.constant 0 : index
    %5 = vector.load %arg6[%c0_8, %c0_9, %c0_10] : memref<18x18x4xf32, #tpu.memory_space<vmem>>, vector<16x16x4xf32>
    %6 = vector.shape_cast %5 : vector<16x16x4xf32> to vector<256x4xf32>
    %c0_11 = arith.constant 0 : index
    %c0_12 = arith.constant 0 : index
    %7 = vector.load %arg7[%c0_11, %c0_12] : memref<256x36xf32, #tpu.memory_space<vmem>>, vector<256x4xf32>
    tpu.vector_store %arg7[%c0_11, %c0_12], %6 {strides = array<i32>} : memref<256x36xf32, #tpu.memory_space<vmem>>, vector<256x4xf32>,
    %c0_13 = arith.constant 0 : index
    %c1_14 = arith.constant 1 : index
    %c0_15 = arith.constant 0 : index
    %8 = vector.load %arg6[%c0_13, %c1_14, %c0_15] : memref<18x18x4xf32, #tpu.memory_space<vmem>>, vector<16x16x4xf32>
    %9 = vector.shape_cast %8 : vector<16x16x4xf32> to vector<256x4xf32>
    %c0_16 = arith.constant 0 : index
    %c4 = arith.constant 4 : index
    %10 = vector.load %arg7[%c0_16, %c4] : memref<256x36xf32, #tpu.memory_space<vmem>>, vector<256x4xf32>
    tpu.vector_store %arg7[%c0_16, %c4], %9 {strides = array<i32>} : memref<256x36xf32, #tpu.memory_space<vmem>>, vector<256x4xf32>,
    %c0_17 = arith.constant 0 : index
    %c2 = arith.constant 2 : index
    %c0_18 = arith.constant 0 : index
    %11 = vector.load %arg6[%c0_17, %c2, %c0_18] : memref<18x18x4xf32, #tpu.memory_space<vmem>>, vector<16x16x4xf32>
    %12 = vector.shape_cast %11 : vector<16x16x4xf32> to vector<256x4xf32>
    %c0_19 = arith.constant 0 : index
    %c8 = arith.constant 8 : index
    %13 = vector.load %arg7[%c0_19, %c8] : memref<256x36xf32, #tpu.memory_space<vmem>>, vector<256x4xf32>
    tpu.vector_store %arg7[%c0_19, %c8], %12 {strides = array<i32>} : memref<256x36xf32, #tpu.memory_space<vmem>>, vector<256x4xf32>,
    %c1_20 = arith.constant 1 : index
    %c0_21 = arith.constant 0 : index
    %c0_22 = arith.constant 0 : index
    %14 = vector.load %arg6[%c1_20, %c0_21, %c0_22] : memref<18x18x4xf32, #tpu.memory_space<vmem>>, vector<16x16x4xf32>
    %15 = vector.shape_cast %14 : vector<16x16x4xf32> to vector<256x4xf32>
    %c0_23 = arith.constant 0 : index
    %c12 = arith.constant 12 : index
    %16 = vector.load %arg7[%c0_23, %c12] : memref<256x36xf32, #tpu.memory_space<vmem>>, vector<256x4xf32>
    tpu.vector_store %arg7[%c0_23, %c12], %15 {strides = array<i32>} : memref<256x36xf32, #tpu.memory_space<vmem>>, vector<256x4xf32>,
    %c1_24 = arith.constant 1 : index
    %c1_25 = arith.constant 1 : index
    %c0_26 = arith.constant 0 : index
    %17 = vector.load %arg6[%c1_24, %c1_25, %c0_26] : memref<18x18x4xf32, #tpu.memory_space<vmem>>, vector<16x16x4xf32>
    %18 = vector.shape_cast %17 : vector<16x16x4xf32> to vector<256x4xf32>
    %c0_27 = arith.constant 0 : index
    %c16 = arith.constant 16 : index
    %19 = vector.load %arg7[%c0_27, %c16] : memref<256x36xf32, #tpu.memory_space<vmem>>, vector<256x4xf32>
    tpu.vector_store %arg7[%c0_27, %c16], %18 {strides = array<i32>} : memref<256x36xf32, #tpu.memory_space<vmem>>, vector<256x4xf32>,
    %c1_28 = arith.constant 1 : index
    %c2_29 = arith.constant 2 : index
    %c0_30 = arith.constant 0 : index
    %20 = vector.load %arg6[%c1_28, %c2_29, %c0_30] : memref<18x18x4xf32, #tpu.memory_space<vmem>>, vector<16x16x4xf32>
    %21 = vector.shape_cast %20 : vector<16x16x4xf32> to vector<256x4xf32>
    %c0_31 = arith.constant 0 : index
    %c20 = arith.constant 20 : index
    %22 = vector.load %arg7[%c0_31, %c20] : memref<256x36xf32, #tpu.memory_space<vmem>>, vector<256x4xf32>
    tpu.vector_store %arg7[%c0_31, %c20], %21 {strides = array<i32>} : memref<256x36xf32, #tpu.memory_space<vmem>>, vector<256x4xf32>,
    %c2_32 = arith.constant 2 : index
    %c0_33 = arith.constant 0 : index
    %c0_34 = arith.constant 0 : index
    %23 = vector.load %arg6[%c2_32, %c0_33, %c0_34] : memref<18x18x4xf32, #tpu.memory_space<vmem>>, vector<16x16x4xf32>
    %24 = vector.shape_cast %23 : vector<16x16x4xf32> to vector<256x4xf32>
    %c0_35 = arith.constant 0 : index
    %c24 = arith.constant 24 : index
    %25 = vector.load %arg7[%c0_35, %c24] : memref<256x36xf32, #tpu.memory_space<vmem>>, vector<256x4xf32>
    tpu.vector_store %arg7[%c0_35, %c24], %24 {strides = array<i32>} : memref<256x36xf32, #tpu.memory_space<vmem>>, vector<256x4xf32>,
    %c2_36 = arith.constant 2 : index
    %c1_37 = arith.constant 1 : index
    %c0_38 = arith.constant 0 : index
    %26 = vector.load %arg6[%c2_36, %c1_37, %c0_38] : memref<18x18x4xf32, #tpu.memory_space<vmem>>, vector<16x16x4xf32>
    %27 = vector.shape_cast %26 : vector<16x16x4xf32> to vector<256x4xf32>
    %c0_39 = arith.constant 0 : index
    %c28 = arith.constant 28 : index
    %28 = vector.load %arg7[%c0_39, %c28] : memref<256x36xf32, #tpu.memory_space<vmem>>, vector<256x4xf32>
    tpu.vector_store %arg7[%c0_39, %c28], %27 {strides = array<i32>} : memref<256x36xf32, #tpu.memory_space<vmem>>, vector<256x4xf32>,
    %c2_40 = arith.constant 2 : index
    %c2_41 = arith.constant 2 : index
    %c0_42 = arith.constant 0 : index
    %29 = vector.load %arg6[%c2_40, %c2_41, %c0_42] : memref<18x18x4xf32, #tpu.memory_space<vmem>>, vector<16x16x4xf32>
    %30 = vector.shape_cast %29 : vector<16x16x4xf32> to vector<256x4xf32>
    %c0_43 = arith.constant 0 : index
    %c32 = arith.constant 32 : index
    %31 = vector.load %arg7[%c0_43, %c32] : memref<256x36xf32, #tpu.memory_space<vmem>>, vector<256x4xf32>
    tpu.vector_store %arg7[%c0_43, %c32], %30 {strides = array<i32>} : memref<256x36xf32, #tpu.memory_space<vmem>>, vector<256x4xf32>,
    %c0_44 = arith.constant 0 : index
    %c0_45 = arith.constant 0 : index
    %32 = vector.load %arg7[%c0_44, %c0_45] : memref<256x36xf32, #tpu.memory_space<vmem>>, vector<256x36xf32>
    %c0_46 = arith.constant 0 : index
    %c0_47 = arith.constant 0 : index
    %33 = vector.load %arg2[%c0_46, %c0_47] : memref<36x8xf32, #tpu.memory_space<vmem>>, vector<36x8xf32>
    %cst_48 = arith.constant dense<0.000000e+00> : vector<256x8xf32>
    %34 = tpu.matmul %32, %33, %cst_48 {dimension_numbers = #tpu.dot_dimension_numbers<[1], [0], [0], [1], [0, 0, 1, 1], [], []>} : vector<256x36xf32>, vector<36x8xf32>, vector<256x8xf32> -> vector<256x8xf32>
    %35 = vector.shape_cast %34 : vector<256x8xf32> to vector<1x16x16x8xf32>
    %c0_49 = arith.constant 0 : index
    %c0_50 = arith.constant 0 : index
    %c0_51 = arith.constant 0 : index
    %c0_52 = arith.constant 0 : index
    %36 = vector.load %arg3[%c0_49, %c0_50, %c0_51, %c0_52] : memref<1x16x16x8xf32, #tpu.memory_space<vmem>>, vector<1x16x16x8xf32>
    tpu.vector_store %arg3[%c0_49, %c0_50, %c0_51, %c0_52], %35 {strides = array<i32>} : memref<1x16x16x8xf32, #tpu.memory_space<vmem>>, vector<1x16x16x8xf32>,
    %cst_53 = arith.constant dense<0.000000e+00> : vector<8xf32>
    %37 = vector.multi_reduction <add>, %34, %cst_53 [0] : vector<256x8xf32> to vector<8xf32>
    %38 = vector.shape_cast %37 : vector<8xf32> to vector<1x8xf32>
    %39 = vector.shape_cast %38 : vector<1x8xf32> to vector<1x1x8xf32>
    %c0_54 = arith.constant 0 : index
    %c0_55 = arith.constant 0 : index
    %c0_56 = arith.constant 0 : index
    %40 = vector.load %arg4[%c0_54, %c0_55, %c0_56] : memref<1x1x8xf32, #tpu.memory_space<vmem>>, vector<1x1x8xf32>
    tpu.vector_store %arg4[%c0_54, %c0_55, %c0_56], %39 {strides = array<i32>} : memref<1x1x8xf32, #tpu.memory_space<vmem>>, vector<1x1x8xf32>,
    %41 = arith.mulf %34, %34 : vector<256x8xf32>
    %cst_57 = arith.constant dense<0.000000e+00> : vector<8xf32>
    %42 = vector.multi_reduction <add>, %41, %cst_57 [0] : vector<256x8xf32> to vector<8xf32>
    %43 = vector.shape_cast %42 : vector<8xf32> to vector<1x8xf32>
    %44 = vector.shape_cast %43 : vector<1x8xf32> to vector<1x1x8xf32>
    %c0_58 = arith.constant 0 : index
    %c0_59 = arith.constant 0 : index
    %c0_60 = arith.constant 0 : index
    %45 = vector.load %arg5[%c0_58, %c0_59, %c0_60] : memref<1x1x8xf32, #tpu.memory_space<vmem>>, vector<1x1x8xf32>
    tpu.vector_store %arg5[%c0_58, %c0_59, %c0_60], %44 {strides = array<i32>} : memref<1x1x8xf32, #tpu.memory_space<vmem>>, vector<1x1x8xf32>,
    return
  }
  func.func @transform_0(%arg0: i32) -> (i32, i32, i32, i32) {
    %c0_i32 = arith.constant 0 : i32
    %c0_i32_0 = arith.constant 0 : i32
    %c0_i32_1 = arith.constant 0 : i32
    %c0_i32_2 = arith.constant 0 : i32
    return %arg0, %c0_i32, %c0_i32_0, %c0_i32_1 : i32, i32, i32, i32
  }
  func.func @transform_1(%arg0: i32) -> (i32, i32) {
    %c0_i32 = arith.constant 0 : i32
    %c0_i32_0 = arith.constant 0 : i32
    %c0_i32_1 = arith.constant 0 : i32
    return %c0_i32, %c0_i32_0 : i32, i32
  }
  func.func @transform_2(%arg0: i32) -> (i32, i32, i32, i32) {
    %c0_i32 = arith.constant 0 : i32
    %c0_i32_0 = arith.constant 0 : i32
    %c0_i32_1 = arith.constant 0 : i32
    %c0_i32_2 = arith.constant 0 : i32
    return %arg0, %c0_i32, %c0_i32_0, %c0_i32_1 : i32, i32, i32, i32
  }
  func.func @transform_3(%arg0: i32) -> (i32, i32, i32) {
    %c0_i32 = arith.constant 0 : i32
    %c0_i32_0 = arith.constant 0 : i32
    %c0_i32_1 = arith.constant 0 : i32
    return %arg0, %c0_i32, %c0_i32_0 : i32, i32, i32
  }
  func.func @transform_4(%arg0: i32) -> (i32, i32, i32) {
    %c0_i32 = arith.constant 0 : i32
    %c0_i32_0 = arith.constant 0 : i32
    %c0_i32_1 = arith.constant 0 : i32
    return %arg0, %c0_i32, %c0_i32_0 : i32, i32, i32
  }
}

module attributes {stable_mosaic.version = 11 : i64} {
  func.func @bn_relu_conv_stats_kernel(%arg0: i32, %arg1: memref<1x16x16x8xf32, #tpu.memory_space<vmem>>, %arg2: memref<1x8xf32, #tpu.memory_space<vmem>>, %arg3: memref<1x8xf32, #tpu.memory_space<vmem>>, %arg4: memref<72x8xf32, #tpu.memory_space<vmem>>, %arg5: memref<1x16x16x8xf32, #tpu.memory_space<vmem>>, %arg6: memref<1x1x8xf32, #tpu.memory_space<vmem>>, %arg7: memref<1x1x8xf32, #tpu.memory_space<vmem>>, %arg8: memref<18x18x8xf32, #tpu.memory_space<vmem>>, %arg9: memref<256x72xf32, #tpu.memory_space<vmem>>) attributes {dimension_semantics = [#tpu.dimension_semantics<parallel>], iteration_bounds = array<i64: 2>, scalar_prefetch = 0 : i64, scratch_operands = 2 : i64, tpu.core_type = #tpu.core_type<tc>, window_params = [{transform_indices = @transform_0, window_bounds = array<i64: 1, 16, 16, 8>}, {pipeline_mode = #tpu.pipeline_mode<synchronous>, transform_indices = @transform_1, window_bounds = array<i64: 1, 8>}, {pipeline_mode = #tpu.pipeline_mode<synchronous>, transform_indices = @transform_2, window_bounds = array<i64: 1, 8>}, {pipeline_mode = #tpu.pipeline_mode<synchronous>, transform_indices = @transform_3, window_bounds = array<i64: 72, 8>}, {transform_indices = @transform_4, window_bounds = array<i64: 1, 16, 16, 8>}, {transform_indices = @transform_5, window_bounds = array<i64: 1, 1, 8>}, {transform_indices = @transform_6, window_bounds = array<i64: 1, 1, 8>}]} {
    %c0 = arith.constant 0 : index
    %c0_0 = arith.constant 0 : index
    %0 = vector.load %arg2[%c0, %c0_0] : memref<1x8xf32, #tpu.memory_space<vmem>>, vector<1x8xf32>
    %1 = vector.shape_cast %0 : vector<1x8xf32> to vector<1x1x8xf32>
    %c0_1 = arith.constant 0 : index
    %c0_2 = arith.constant 0 : index
    %2 = vector.load %arg3[%c0_1, %c0_2] : memref<1x8xf32, #tpu.memory_space<vmem>>, vector<1x8xf32>
    %3 = vector.shape_cast %2 : vector<1x8xf32> to vector<1x1x8xf32>
    %c0_3 = arith.constant 0 : index
    %c0_4 = arith.constant 0 : index
    %c0_5 = arith.constant 0 : index
    %c0_6 = arith.constant 0 : index
    %4 = vector.load %arg1[%c0_3, %c0_4, %c0_5, %c0_6] : memref<1x16x16x8xf32, #tpu.memory_space<vmem>>, vector<1x16x16x8xf32>
    %5 = vector.shape_cast %4 : vector<1x16x16x8xf32> to vector<16x16x8xf32>
    %6 = vector.broadcast %1 : vector<1x1x8xf32> to vector<16x16x8xf32>
    %7 = arith.mulf %5, %6 : vector<16x16x8xf32>
    %8 = vector.broadcast %3 : vector<1x1x8xf32> to vector<16x16x8xf32>
    %9 = arith.addf %7, %8 : vector<16x16x8xf32>
    %cst = arith.constant 0.000000e+00 : f32
    %10 = vector.broadcast %cst : f32 to vector<16x16x8xf32>
    %11 = arith.maximumf %9, %10 : vector<16x16x8xf32>
    %cst_7 = arith.constant 0.000000e+00 : f32
    %12 = vector.broadcast %cst_7 : f32 to vector<18x18x8xf32>
    %c0_8 = arith.constant 0 : index
    %c0_9 = arith.constant 0 : index
    %c0_10 = arith.constant 0 : index
    %13 = vector.load %arg8[%c0_8, %c0_9, %c0_10] : memref<18x18x8xf32, #tpu.memory_space<vmem>>, vector<18x18x8xf32>
    tpu.vector_store %arg8[%c0_8, %c0_9, %c0_10], %12 {strides = array<i32>} : memref<18x18x8xf32, #tpu.memory_space<vmem>>, vector<18x18x8xf32>,
    %c1 = arith.constant 1 : index
    %c1_11 = arith.constant 1 : index
    %c0_12 = arith.constant 0 : index
    %14 = vector.load %arg8[%c1, %c1_11, %c0_12] : memref<18x18x8xf32, #tpu.memory_space<vmem>>, vector<16x16x8xf32>
    tpu.vector_store %arg8[%c1, %c1_11, %c0_12], %11 {strides = array<i32>} : memref<18x18x8xf32, #tpu.memory_space<vmem>>, vector<16x16x8xf32>,
    %c0_13 = arith.constant 0 : index
    %c0_14 = arith.constant 0 : index
    %c0_15 = arith.constant 0 : index
    %15 = vector.load %arg8[%c0_13, %c0_14, %c0_15] : memref<18x18x8xf32, #tpu.memory_space<vmem>>, vector<16x16x8xf32>
    %16 = vector.shape_cast %15 : vector<16x16x8xf32> to vector<256x8xf32>
    %c0_16 = arith.constant 0 : index
    %c0_17 = arith.constant 0 : index
    %17 = vector.load %arg9[%c0_16, %c0_17] : memref<256x72xf32, #tpu.memory_space<vmem>>, vector<256x8xf32>
    tpu.vector_store %arg9[%c0_16, %c0_17], %16 {strides = array<i32>} : memref<256x72xf32, #tpu.memory_space<vmem>>, vector<256x8xf32>,
    %c0_18 = arith.constant 0 : index
    %c1_19 = arith.constant 1 : index
    %c0_20 = arith.constant 0 : index
    %18 = vector.load %arg8[%c0_18, %c1_19, %c0_20] : memref<18x18x8xf32, #tpu.memory_space<vmem>>, vector<16x16x8xf32>
    %19 = vector.shape_cast %18 : vector<16x16x8xf32> to vector<256x8xf32>
    %c0_21 = arith.constant 0 : index
    %c8 = arith.constant 8 : index
    %20 = vector.load %arg9[%c0_21, %c8] : memref<256x72xf32, #tpu.memory_space<vmem>>, vector<256x8xf32>
    tpu.vector_store %arg9[%c0_21, %c8], %19 {strides = array<i32>} : memref<256x72xf32, #tpu.memory_space<vmem>>, vector<256x8xf32>,
    %c0_22 = arith.constant 0 : index
    %c2 = arith.constant 2 : index
    %c0_23 = arith.constant 0 : index
    %21 = vector.load %arg8[%c0_22, %c2, %c0_23] : memref<18x18x8xf32, #tpu.memory_space<vmem>>, vector<16x16x8xf32>
    %22 = vector.shape_cast %21 : vector<16x16x8xf32> to vector<256x8xf32>
    %c0_24 = arith.constant 0 : index
    %c16 = arith.constant 16 : index
    %23 = vector.load %arg9[%c0_24, %c16] : memref<256x72xf32, #tpu.memory_space<vmem>>, vector<256x8xf32>
    tpu.vector_store %arg9[%c0_24, %c16], %22 {strides = array<i32>} : memref<256x72xf32, #tpu.memory_space<vmem>>, vector<256x8xf32>,
    %c1_25 = arith.constant 1 : index
    %c0_26 = arith.constant 0 : index
    %c0_27 = arith.constant 0 : index
    %24 = vector.load %arg8[%c1_25, %c0_26, %c0_27] : memref<18x18x8xf32, #tpu.memory_space<vmem>>, vector<16x16x8xf32>
    %25 = vector.shape_cast %24 : vector<16x16x8xf32> to vector<256x8xf32>
    %c0_28 = arith.constant 0 : index
    %c24 = arith.constant 24 : index
    %26 = vector.load %arg9[%c0_28, %c24] : memref<256x72xf32, #tpu.memory_space<vmem>>, vector<256x8xf32>
    tpu.vector_store %arg9[%c0_28, %c24], %25 {strides = array<i32>} : memref<256x72xf32, #tpu.memory_space<vmem>>, vector<256x8xf32>,
    %c1_29 = arith.constant 1 : index
    %c1_30 = arith.constant 1 : index
    %c0_31 = arith.constant 0 : index
    %27 = vector.load %arg8[%c1_29, %c1_30, %c0_31] : memref<18x18x8xf32, #tpu.memory_space<vmem>>, vector<16x16x8xf32>
    %28 = vector.shape_cast %27 : vector<16x16x8xf32> to vector<256x8xf32>
    %c0_32 = arith.constant 0 : index
    %c32 = arith.constant 32 : index
    %29 = vector.load %arg9[%c0_32, %c32] : memref<256x72xf32, #tpu.memory_space<vmem>>, vector<256x8xf32>
    tpu.vector_store %arg9[%c0_32, %c32], %28 {strides = array<i32>} : memref<256x72xf32, #tpu.memory_space<vmem>>, vector<256x8xf32>,
    %c1_33 = arith.constant 1 : index
    %c2_34 = arith.constant 2 : index
    %c0_35 = arith.constant 0 : index
    %30 = vector.load %arg8[%c1_33, %c2_34, %c0_35] : memref<18x18x8xf32, #tpu.memory_space<vmem>>, vector<16x16x8xf32>
    %31 = vector.shape_cast %30 : vector<16x16x8xf32> to vector<256x8xf32>
    %c0_36 = arith.constant 0 : index
    %c40 = arith.constant 40 : index
    %32 = vector.load %arg9[%c0_36, %c40] : memref<256x72xf32, #tpu.memory_space<vmem>>, vector<256x8xf32>
    tpu.vector_store %arg9[%c0_36, %c40], %31 {strides = array<i32>} : memref<256x72xf32, #tpu.memory_space<vmem>>, vector<256x8xf32>,
    %c2_37 = arith.constant 2 : index
    %c0_38 = arith.constant 0 : index
    %c0_39 = arith.constant 0 : index
    %33 = vector.load %arg8[%c2_37, %c0_38, %c0_39] : memref<18x18x8xf32, #tpu.memory_space<vmem>>, vector<16x16x8xf32>
    %34 = vector.shape_cast %33 : vector<16x16x8xf32> to vector<256x8xf32>
    %c0_40 = arith.constant 0 : index
    %c48 = arith.constant 48 : index
    %35 = vector.load %arg9[%c0_40, %c48] : memref<256x72xf32, #tpu.memory_space<vmem>>, vector<256x8xf32>
    tpu.vector_store %arg9[%c0_40, %c48], %34 {strides = array<i32>} : memref<256x72xf32, #tpu.memory_space<vmem>>, vector<256x8xf32>,
    %c2_41 = arith.constant 2 : index
    %c1_42 = arith.constant 1 : index
    %c0_43 = arith.constant 0 : index
    %36 = vector.load %arg8[%c2_41, %c1_42, %c0_43] : memref<18x18x8xf32, #tpu.memory_space<vmem>>, vector<16x16x8xf32>
    %37 = vector.shape_cast %36 : vector<16x16x8xf32> to vector<256x8xf32>
    %c0_44 = arith.constant 0 : index
    %c56 = arith.constant 56 : index
    %38 = vector.load %arg9[%c0_44, %c56] : memref<256x72xf32, #tpu.memory_space<vmem>>, vector<256x8xf32>
    tpu.vector_store %arg9[%c0_44, %c56], %37 {strides = array<i32>} : memref<256x72xf32, #tpu.memory_space<vmem>>, vector<256x8xf32>,
    %c2_45 = arith.constant 2 : index
    %c2_46 = arith.constant 2 : index
    %c0_47 = arith.constant 0 : index
    %39 = vector.load %arg8[%c2_45, %c2_46, %c0_47] : memref<18x18x8xf32, #tpu.memory_space<vmem>>, vector<16x16x8xf32>
    %40 = vector.shape_cast %39 : vector<16x16x8xf32> to vector<256x8xf32>
    %c0_48 = arith.constant 0 : index
    %c64 = arith.constant 64 : index
    %41 = vector.load %arg9[%c0_48, %c64] : memref<256x72xf32, #tpu.memory_space<vmem>>, vector<256x8xf32>
    tpu.vector_store %arg9[%c0_48, %c64], %40 {strides = array<i32>} : memref<256x72xf32, #tpu.memory_space<vmem>>, vector<256x8xf32>,
    %c0_49 = arith.constant 0 : index
    %c0_50 = arith.constant 0 : index
    %42 = vector.load %arg9[%c0_49, %c0_50] : memref<256x72xf32, #tpu.memory_space<vmem>>, vector<256x72xf32>
    %c0_51 = arith.constant 0 : index
    %c0_52 = arith.constant 0 : index
    %43 = vector.load %arg4[%c0_51, %c0_52] : memref<72x8xf32, #tpu.memory_space<vmem>>, vector<72x8xf32>
    %cst_53 = arith.constant dense<0.000000e+00> : vector<256x8xf32>
    %44 = tpu.matmul %42, %43, %cst_53 {dimension_numbers = #tpu.dot_dimension_numbers<[1], [0], [0], [1], [0, 0, 1, 1], [], []>} : vector<256x72xf32>, vector<72x8xf32>, vector<256x8xf32> -> vector<256x8xf32>
    %45 = vector.shape_cast %44 : vector<256x8xf32> to vector<1x16x16x8xf32>
    %c0_54 = arith.constant 0 : index
    %c0_55 = arith.constant 0 : index
    %c0_56 = arith.constant 0 : index
    %c0_57 = arith.constant 0 : index
    %46 = vector.load %arg5[%c0_54, %c0_55, %c0_56, %c0_57] : memref<1x16x16x8xf32, #tpu.memory_space<vmem>>, vector<1x16x16x8xf32>
    tpu.vector_store %arg5[%c0_54, %c0_55, %c0_56, %c0_57], %45 {strides = array<i32>} : memref<1x16x16x8xf32, #tpu.memory_space<vmem>>, vector<1x16x16x8xf32>,
    %cst_58 = arith.constant dense<0.000000e+00> : vector<8xf32>
    %47 = vector.multi_reduction <add>, %44, %cst_58 [0] : vector<256x8xf32> to vector<8xf32>
    %48 = vector.shape_cast %47 : vector<8xf32> to vector<1x8xf32>
    %49 = vector.shape_cast %48 : vector<1x8xf32> to vector<1x1x8xf32>
    %c0_59 = arith.constant 0 : index
    %c0_60 = arith.constant 0 : index
    %c0_61 = arith.constant 0 : index
    %50 = vector.load %arg6[%c0_59, %c0_60, %c0_61] : memref<1x1x8xf32, #tpu.memory_space<vmem>>, vector<1x1x8xf32>
    tpu.vector_store %arg6[%c0_59, %c0_60, %c0_61], %49 {strides = array<i32>} : memref<1x1x8xf32, #tpu.memory_space<vmem>>, vector<1x1x8xf32>,
    %51 = arith.mulf %44, %44 : vector<256x8xf32>
    %cst_62 = arith.constant dense<0.000000e+00> : vector<8xf32>
    %52 = vector.multi_reduction <add>, %51, %cst_62 [0] : vector<256x8xf32> to vector<8xf32>
    %53 = vector.shape_cast %52 : vector<8xf32> to vector<1x8xf32>
    %54 = vector.shape_cast %53 : vector<1x8xf32> to vector<1x1x8xf32>
    %c0_63 = arith.constant 0 : index
    %c0_64 = arith.constant 0 : index
    %c0_65 = arith.constant 0 : index
    %55 = vector.load %arg7[%c0_63, %c0_64, %c0_65] : memref<1x1x8xf32, #tpu.memory_space<vmem>>, vector<1x1x8xf32>
    tpu.vector_store %arg7[%c0_63, %c0_64, %c0_65], %54 {strides = array<i32>} : memref<1x1x8xf32, #tpu.memory_space<vmem>>, vector<1x1x8xf32>,
    return
  }
  func.func @transform_0(%arg0: i32) -> (i32, i32, i32, i32) {
    %c0_i32 = arith.constant 0 : i32
    %c0_i32_0 = arith.constant 0 : i32
    %c0_i32_1 = arith.constant 0 : i32
    %c0_i32_2 = arith.constant 0 : i32
    return %arg0, %c0_i32, %c0_i32_0, %c0_i32_1 : i32, i32, i32, i32
  }
  func.func @transform_1(%arg0: i32) -> (i32, i32) {
    %c0_i32 = arith.constant 0 : i32
    %c0_i32_0 = arith.constant 0 : i32
    %c0_i32_1 = arith.constant 0 : i32
    return %c0_i32, %c0_i32_0 : i32, i32
  }
  func.func @transform_2(%arg0: i32) -> (i32, i32) {
    %c0_i32 = arith.constant 0 : i32
    %c0_i32_0 = arith.constant 0 : i32
    %c0_i32_1 = arith.constant 0 : i32
    return %c0_i32, %c0_i32_0 : i32, i32
  }
  func.func @transform_3(%arg0: i32) -> (i32, i32) {
    %c0_i32 = arith.constant 0 : i32
    %c0_i32_0 = arith.constant 0 : i32
    %c0_i32_1 = arith.constant 0 : i32
    return %c0_i32, %c0_i32_0 : i32, i32
  }
  func.func @transform_4(%arg0: i32) -> (i32, i32, i32, i32) {
    %c0_i32 = arith.constant 0 : i32
    %c0_i32_0 = arith.constant 0 : i32
    %c0_i32_1 = arith.constant 0 : i32
    %c0_i32_2 = arith.constant 0 : i32
    return %arg0, %c0_i32, %c0_i32_0, %c0_i32_1 : i32, i32, i32, i32
  }
  func.func @transform_5(%arg0: i32) -> (i32, i32, i32) {
    %c0_i32 = arith.constant 0 : i32
    %c0_i32_0 = arith.constant 0 : i32
    %c0_i32_1 = arith.constant 0 : i32
    return %arg0, %c0_i32, %c0_i32_0 : i32, i32, i32
  }
  func.func @transform_6(%arg0: i32) -> (i32, i32, i32) {
    %c0_i32 = arith.constant 0 : i32
    %c0_i32_0 = arith.constant 0 : i32
    %c0_i32_1 = arith.constant 0 : i32
    return %arg0, %c0_i32, %c0_i32_0 : i32, i32, i32
  }
}

module attributes {stable_mosaic.version = 11 : i64} {
  func.func @bn_relu_pool_kernel(%arg0: i32, %arg1: memref<1x16x16x8xf32, #tpu.memory_space<vmem>>, %arg2: memref<1x8xf32, #tpu.memory_space<vmem>>, %arg3: memref<1x8xf32, #tpu.memory_space<vmem>>, %arg4: memref<1x16x16x8xf32, #tpu.memory_space<vmem>>, %arg5: memref<1x8x8x8xf32, #tpu.memory_space<vmem>>) attributes {dimension_semantics = [#tpu.dimension_semantics<parallel>], iteration_bounds = array<i64: 2>, scalar_prefetch = 0 : i64, scratch_operands = 0 : i64, tpu.core_type = #tpu.core_type<tc>, window_params = [{transform_indices = @transform_0, window_bounds = array<i64: 1, 16, 16, 8>}, {pipeline_mode = #tpu.pipeline_mode<synchronous>, transform_indices = @transform_1, window_bounds = array<i64: 1, 8>}, {pipeline_mode = #tpu.pipeline_mode<synchronous>, transform_indices = @transform_2, window_bounds = array<i64: 1, 8>}, {transform_indices = @transform_3, window_bounds = array<i64: 1, 16, 16, 8>}, {transform_indices = @transform_4, window_bounds = array<i64: 1, 8, 8, 8>}]} {
    %c0 = arith.constant 0 : index
    %c0_0 = arith.constant 0 : index
    %0 = vector.load %arg2[%c0, %c0_0] : memref<1x8xf32, #tpu.memory_space<vmem>>, vector<1x8xf32>
    %1 = vector.shape_cast %0 : vector<1x8xf32> to vector<1x1x8xf32>
    %c0_1 = arith.constant 0 : index
    %c0_2 = arith.constant 0 : index
    %2 = vector.load %arg3[%c0_1, %c0_2] : memref<1x8xf32, #tpu.memory_space<vmem>>, vector<1x8xf32>
    %3 = vector.shape_cast %2 : vector<1x8xf32> to vector<1x1x8xf32>
    %c0_3 = arith.constant 0 : index
    %c0_4 = arith.constant 0 : index
    %c0_5 = arith.constant 0 : index
    %c0_6 = arith.constant 0 : index
    %4 = vector.load %arg1[%c0_3, %c0_4, %c0_5, %c0_6] : memref<1x16x16x8xf32, #tpu.memory_space<vmem>>, vector<1x16x16x8xf32>
    %5 = vector.shape_cast %4 : vector<1x16x16x8xf32> to vector<16x16x8xf32>
    %6 = vector.broadcast %1 : vector<1x1x8xf32> to vector<16x16x8xf32>
    %7 = arith.mulf %5, %6 : vector<16x16x8xf32>
    %8 = vector.broadcast %3 : vector<1x1x8xf32> to vector<16x16x8xf32>
    %9 = arith.addf %7, %8 : vector<16x16x8xf32>
    %cst = arith.constant 0.000000e+00 : f32
    %10 = vector.broadcast %cst : f32 to vector<16x16x8xf32>
    %11 = arith.maximumf %9, %10 : vector<16x16x8xf32>
    %12 = vector.shape_cast %11 : vector<16x16x8xf32> to vector<1x16x16x8xf32>
    %c0_7 = arith.constant 0 : index
    %c0_8 = arith.constant 0 : index
    %c0_9 = arith.constant 0 : index
    %c0_10 = arith.constant 0 : index
    %13 = vector.load %arg4[%c0_7, %c0_8, %c0_9, %c0_10] : memref<1x16x16x8xf32, #tpu.memory_space<vmem>>, vector<1x16x16x8xf32>
    tpu.vector_store %arg4[%c0_7, %c0_8, %c0_9, %c0_10], %12 {strides = array<i32>} : memref<1x16x16x8xf32, #tpu.memory_space<vmem>>, vector<1x16x16x8xf32>,
    %14 = vector.shape_cast %11 : vector<16x16x8xf32> to vector<8x2x16x8xf32>
    %15 = vector.extract_strided_slice %14 {offsets = [0, 0, 0, 0], sizes = [8, 1, 16, 8], strides = [1, 1, 1, 1]} : vector<8x2x16x8xf32> to vector<8x1x16x8xf32>
    %16 = vector.shape_cast %15 : vector<8x1x16x8xf32> to vector<8x16x8xf32>
    %17 = vector.extract_strided_slice %14 {offsets = [0, 1, 0, 0], sizes = [8, 1, 16, 8], strides = [1, 1, 1, 1]} : vector<8x2x16x8xf32> to vector<8x1x16x8xf32>
    %18 = vector.shape_cast %17 : vector<8x1x16x8xf32> to vector<8x16x8xf32>
    %19 = arith.maximumf %16, %18 : vector<8x16x8xf32>
    %20 = vector.shape_cast %19 : vector<8x16x8xf32> to vector<8x8x2x8xf32>
    %21 = vector.extract_strided_slice %20 {offsets = [0, 0, 0, 0], sizes = [8, 8, 1, 8], strides = [1, 1, 1, 1]} : vector<8x8x2x8xf32> to vector<8x8x1x8xf32>
    %22 = vector.shape_cast %21 : vector<8x8x1x8xf32> to vector<8x8x8xf32>
    %23 = vector.extract_strided_slice %20 {offsets = [0, 0, 1, 0], sizes = [8, 8, 1, 8], strides = [1, 1, 1, 1]} : vector<8x8x2x8xf32> to vector<8x8x1x8xf32>
    %24 = vector.shape_cast %23 : vector<8x8x1x8xf32> to vector<8x8x8xf32>
    %25 = arith.maximumf %22, %24 : vector<8x8x8xf32>
    %26 = vector.shape_cast %25 : vector<8x8x8xf32> to vector<1x8x8x8xf32>
    %c0_11 = arith.constant 0 : index
    %c0_12 = arith.constant 0 : index
    %c0_13 = arith.constant 0 : index
    %c0_14 = arith.constant 0 : index
    %27 = vector.load %arg5[%c0_11, %c0_12, %c0_13, %c0_14] : memref<1x8x8x8xf32, #tpu.memory_space<vmem>>, vector<1x8x8x8xf32>
    tpu.vector_store %arg5[%c0_11, %c0_12, %c0_13, %c0_14], %26 {strides = array<i32>} : memref<1x8x8x8xf32, #tpu.memory_space<vmem>>, vector<1x8x8x8xf32>,
    return
  }
  func.func @transform_0(%arg0: i32) -> (i32, i32, i32, i32) {
    %c0_i32 = arith.constant 0 : i32
    %c0_i32_0 = arith.constant 0 : i32
    %c0_i32_1 = arith.constant 0 : i32
    %c0_i32_2 = arith.constant 0 : i32
    return %arg0, %c0_i32, %c0_i32_0, %c0_i32_1 : i32, i32, i32, i32
  }
  func.func @transform_1(%arg0: i32) -> (i32, i32) {
    %c0_i32 = arith.constant 0 : i32
    %c0_i32_0 = arith.constant 0 : i32
    %c0_i32_1 = arith.constant 0 : i32
    return %c0_i32, %c0_i32_0 : i32, i32
  }
  func.func @transform_2(%arg0: i32) -> (i32, i32) {
    %c0_i32 = arith.constant 0 : i32
    %c0_i32_0 = arith.constant 0 : i32
    %c0_i32_1 = arith.constant 0 : i32
    return %c0_i32, %c0_i32_0 : i32, i32
  }
  func.func @transform_3(%arg0: i32) -> (i32, i32, i32, i32) {
    %c0_i32 = arith.constant 0 : i32
    %c0_i32_0 = arith.constant 0 : i32
    %c0_i32_1 = arith.constant 0 : i32
    %c0_i32_2 = arith.constant 0 : i32
    return %arg0, %c0_i32, %c0_i32_0, %c0_i32_1 : i32, i32, i32, i32
  }
  func.func @transform_4(%arg0: i32) -> (i32, i32, i32, i32) {
    %c0_i32 = arith.constant 0 : i32
    %c0_i32_0 = arith.constant 0 : i32
    %c0_i32_1 = arith.constant 0 : i32
    %c0_i32_2 = arith.constant 0 : i32
    return %arg0, %c0_i32, %c0_i32_0, %c0_i32_1 : i32, i32, i32, i32
  }
}

</mosaic_0001>

<bundles_post_ra>
// kernel: downconv_forward.5
= control target key start
LH: loop header
LB: loop body
LE: loop exit
PB: predicated region body
PF: predicated region fallthrough
CT: control target
= control target key end

     0   :  { %s1622_s15 = smov 0   ;;  %s2309_s0 = inlined_call_operand.vmem [shape: f32[2,16,16,8], index: 0, kind: input, shape index: {}]   ;;  %s2310_s1 = inlined_call_operand.vmem [shape: f32[1,8], index: 1, kind: input, shape index: {}]   ;;  %s2311_s2 = inlined_call_operand.vmem [shape: f32[1,8], index: 2, kind: input, shape index: {}]   ;;  %s2312_s3 = inlined_call_operand.vmem [shape: f32[2,16,16,8], index: 3, kind: output, shape index: {0}]   ;;  %s2313_s4 = inlined_call_operand.vmem [shape: f32[2,8,8,8], index: 4, kind: output, shape index: {1}]  }
   0x1 LB: > { %s1497_s16 = sadd.s32 4294967295, %s1594_s15   ;;  %p1501_p0 = scmp.ge.s32.totalorder %s1594_s15, 1  ;;  %s1594_s15 = sphi %s1622_s15, %s15_s15  }
   0x2   : > { %p165_p1 = scmp.lt.s32.totalorder %s1594_s15, 3 }
   0x4   : > { %p166_p2 = pnand %p1501_p0, %p165_p1 }
   0x6   : > { %169 = sbr.rel (%p166_p2) target bundleno = 134 (0x86), region = 32 }
   0xb   : > { %p196_p3 = scmp.lt.s32.totalorder %s1497_s16, 1  ;;  %v422_v0 = vlaneseq  ;;  %v1596_v1 = vmov 1983009808   ;;  %v1636_v3 = vld [vmem:[%s2310_s1] ss:$0 sm:$0xff]  ;;  %vm353_vm0 = vcmask 64512  }
   0xc   : > { %v420_v2 = vunpack.c.l.s4 %v1596_v1  ;;  %v1646_v6 = vld [vmem:[%s2311_s2] ss:$0 sm:$0xff]  ;;  %vm1330_vm1 = vcmask 1041409   ;;  %vm1332_vm2 = vcmask 1042434   ;;  %vm1334_vm3 = vcmask 1043459  }
   0xd   : > { %s2363_s16 = smov (!%p196_p3, %s1497_s16), 1  ;;  %v423_v5 = vshrl.u32 %v422_v0, 7  ;;  %vm1336_vm4 = vcmask 1044484   ;;  %vm1338_vm5 = vcmask 1045509   ;;  %vm1340_vm6 = vcmask 1046534  }
   0xe   : > { %s1576_s17 = sshll.u32 %s2363_s16, 8  ;;  %v421_v4 = vunpack.c.0.s8 %v420_v2  ;;  %vm1342_vm7 = vcmask 1047559   ;;  %s1578_s28 = sshll.u32 %s2363_s16, 6 }
   0xf   : > { %s1641_s22 = scalar_lea.vmem %s2309_s0, %s1576_s17  ;;  %v1654_v13 = vsub.s32 0, %v423_v5  ;;  %s1673_s27 = scalar_lea.vmem %s2312_s3, %s1576_s17 }
  0x10   : > { %v213_v7 = vld [vmem:[%s1641_s22] sm:$0xff]  ;;  %v214_v8 = vld [vmem:[%s1641_s22 + $0x8] sm:$0xff]  ;;  %v215_v9 = vld [vmem:[%s1641_s22 + $0x10] sm:$0xff]  ;;  %v1659_v17 = vsub.s32 %v421_v4, %v423_v5  ;;  %s2100_s5 = scalar_lea.vmem %s2313_s4, %s1578_s28 }
  0x11   : > { %v251_v10 = vmul.f32 %v1636_v3, %v213_v7  ;;  %v252_v11 = vmul.f32 %v1636_v3, %v214_v8  ;;  %v253_v12 = vmul.f32 %v1636_v3, %v215_v9  ;;  %v216_v14 = vld [vmem:[%s1641_s22 + $0x18] sm:$0xff]  ;;  %v217_v15 = vld [vmem:[%s1641_s22 + $0x20] sm:$0xff]  ;;  %v218_v16 = vld [vmem:[%s1641_s22 + $0x28] sm:$0xff] }
  0x12   : > { %v254_v18 = vmul.f32 %v1636_v3, %v216_v14  ;;  %v255_v19 = vmul.f32 %v1636_v3, %v217_v15  ;;  %v256_v20 = vmul.f32 %v1636_v3, %v218_v16  ;;  %v219_v21 = vld [vmem:[%s1641_s22 + $0x30] sm:$0xff]  ;;  %v220_v22 = vld [vmem:[%s1641_s22 + $0x38] sm:$0xff]  ;;  %v221_v31 = vld [vmem:[%s1641_s22 + $0x40] sm:$0xff] }
  0x13   : > { %v289_v23 = vadd.f32 %v1646_v6, %v251_v10  ;;  %v290_v24 = vadd.f32 %v1646_v6, %v252_v11  ;;  %v291_v25 = vadd.f32 %v1646_v6, %v253_v12  ;;  %v257_v26 = vmul.f32 %v1636_v3, %v219_v21  ;;  %v222_v32 = vld [vmem:[%s1641_s22 + $0x48] sm:$0xff]  ;;  %v223_v37 = vld [vmem:[%s1641_s22 + $0x50] sm:$0xff]  ;;  %v224_v38 = vld [vmem:[%s1641_s22 + $0x58] sm:$0xff] }
  0x14   : > { %v292_v27 = vadd.f32 %v1646_v6, %v254_v18  ;;  %v293_v28 = vadd.f32 %v1646_v6, %v255_v19  ;;  %v294_v29 = vadd.f32 %v1646_v6, %v256_v20  ;;  %v258_v30 = vmul.f32 %v1636_v3, %v220_v22 }
  0x15   : > { %v321_v33 = vmax.f32 %v289_v23, 0.0  ;;  %v322_v34 = vmax.f32 %v290_v24, 0.0  ;;  %v323_v35 = vmax.f32 %v291_v25, 0.0  ;;  %v295_v36 = vadd.f32 %v1646_v6, %v257_v26 }
  0x16   : > { %v324_v39 = vmax.f32 %v292_v27, 0.0  ;;  %v325_v40 = vmax.f32 %v293_v28, 0.0  ;;  %v326_v41 = vmax.f32 %v294_v29, 0.0  ;;  %v296_v42 = vadd.f32 %v1646_v6, %v258_v30 }
  0x17   : > { %354 = vst.msk [vmem:[%s1673_s27] sm:$0xff] %vm353_vm0, %v321_v33  ;;  %355 = vst.msk [vmem:[%s1673_s27 + $0x8] sm:$0xff] %vm353_vm0, %v322_v34  ;;  %v386_v43 = vmax.f32 %v321_v33, %v323_v35  ;;  %v327_v44 = vmax.f32 %v295_v36, 0.0  ;;  %v259_v45 = vmul.f32 %v1636_v3, %v221_v31  ;;  %v260_v46 = vmul.f32 %v1636_v3, %v222_v32  ;;  %v225_v31 = vld [vmem:[%s1641_s22 + $0x60] sm:$0xff]  ;;  %v226_v36 = vld [vmem:[%s1641_s22 + $0x68] sm:$0xff] }
  0x18   : > { %356 = vst.msk [vmem:[%s1673_s27 + $0x10] sm:$0xff] %vm353_vm0, %v323_v35  ;;  %357 = vst.msk [vmem:[%s1673_s27 + $0x18] sm:$0xff] %vm353_vm0, %v324_v39  ;;  %v387_v47 = vmax.f32 %v322_v34, %v324_v39  ;;  %v328_v48 = vmax.f32 %v296_v42, 0.0  ;;  %v261_v49 = vmul.f32 %v1636_v3, %v223_v37  ;;  %v262_v50 = vmul.f32 %v1636_v3, %v224_v38  ;;  %v227_v37 = vld [vmem:[%s1641_s22 + $0x70] sm:$0xff]  ;;  %v228_v38 = vld [vmem:[%s1641_s22 + $0x78] sm:$0xff] }
  0x19   : > { %358 = vst.msk [vmem:[%s1673_s27 + $0x20] sm:$0xff] %vm353_vm0, %v325_v40  ;;  %359 = vst.msk [vmem:[%s1673_s27 + $0x28] sm:$0xff] %vm353_vm0, %v326_v41  ;;  %v418_v51 = vcombine.high %v386_v43, %v386_v43  ;;  %v425_v52 = vrot.slane %v386_v43, %v1659_v17  ;;  %v388_v53 = vmax.f32 %v325_v40, %v327_v44 }
  0x1a   : > { %360 = vst.msk [vmem:[%s1673_s27 + $0x30] sm:$0xff] %vm353_vm0, %v327_v44  ;;  %v1705_v54 = vadd.f32 %v1646_v6, %v259_v45  ;;  %v435_v55 = vcombine.high %v387_v47, %v387_v47  ;;  %v442_v56 = vrot.slane %v387_v47, %v1659_v17  ;;  %361 = vst.msk [vmem:[%s1673_s27 + $0x38] sm:$0xff] %vm353_vm0, %v328_v48 }
  0x1b   : > { %v389_v57 = vmax.f32 %v326_v41, %v328_v48  ;;  %v1711_v58 = vadd.f32 %v1646_v6, %v260_v46  ;;  %v432_v59 = vrot.slane %v418_v51, %v1659_v17  ;;  %v433_v60 = vcombine.high %v425_v52, %v425_v52 }
  0x1c   : > { %v1510_v61 = vrot.slane %v425_v52, 9  ;;  %v452_v62 = vcombine.high %v388_v53, %v388_v53  ;;  %v1715_v63 = vrot.slane %v435_v55, %v1659_v17  ;;  %v1717_v0 = vcombine.high %v442_v56, %v442_v56 }
  0x1d   : > { %v1514_v1 = vrot.slane %v442_v56, 9  ;;  %v459_v2 = vrot.slane %v388_v53, %v1659_v17  ;;  %v434_v4 = vcombine.high %v432_v59, %v432_v59  ;;  %v1511_v5 = vrot.slane %v433_v60, 9  ;;  %v229_v53 = vld [vmem:[%s1641_s22 + $0x80] sm:$0xff] }
  0x1e   : > { %v1512_v7 = vrot.slane %v432_v59, 9  ;;  %v1720_v8 = vmax.f32 %v425_v52, %v1510_v61  ;;  %v466_v11 = vrot.slane %v452_v62, %v1659_v17  ;;  %v469_v26 = vcombine.high %v389_v57, %v389_v57 }
  0x1f   : > { %v1723_v10 = vmax.f32 %v442_v56, %v1514_v1  ;;  %v467_v12 = vcombine.high %v459_v2, %v459_v2  ;;  %v1513_v14 = vrot.slane %v434_v4, 9  ;;  %v1726_v15 = vmax.f32 %v433_v60, %v1511_v5 }
  0x20   : > { %v1728_v16 = vmax.f32 %v432_v59, %v1512_v7  ;;  %v468_v19 = vcombine.high %v466_v11, %v466_v11  ;;  %v1518_v20 = vrot.slane %v459_v2, 9  ;;  %v1520_v22 = vrot.slane %v466_v11, 9 }
  0x21   : > { %v1519_v21 = vrot.slane %v467_v12, 9  ;;  %v1732_v23 = vmax.f32 %v434_v4, %v1513_v14  ;;  %v476_v32 = vrot.slane %v389_v57, %v1659_v17  ;;  %v1747_v33 = vrot.slane %v469_v26, %v1659_v17 }
  0x22   : > { %v1521_v27 = vrot.slane %v468_v19, 9  ;;  %v1738_v28 = vmax.f32 %v459_v2, %v1518_v20  ;;  %v1742_v30 = vmax.f32 %v466_v11, %v1520_v22  ;;  %v329_v34 = vmax.f32 %v1705_v54, 0.0  ;;  %v230_v54 = vld [vmem:[%s1641_s22 + $0x88] sm:$0xff] }
  0x23   : > { %v1740_v29 = vmax.f32 %v467_v12, %v1519_v21  ;;  %v330_v35 = vmax.f32 %v1711_v58, 0.0  ;;  %v1762_v43 = vcombine.high %v476_v32, %v476_v32  ;;  %v1522_v44 = vrot.slane %v476_v32, 9 }
  0x24   : > { %v1754_v39 = vmax.f32 %v468_v19, %v1521_v27  ;;  %362 = vst.msk [vmem:[%s1673_s27 + $0x40] sm:$0xff] %vm353_vm0, %v329_v34  ;;  %v299_v45 = vadd.f32 %v1646_v6, %v261_v49  ;;  %v300_v46 = vadd.f32 %v1646_v6, %v262_v50  ;;  %v263_v47 = vmul.f32 %v1636_v3, %v225_v31 }
  0x25   : > { %363 = vst.msk [vmem:[%s1673_s27 + $0x48] sm:$0xff] %vm353_vm0, %v330_v35  ;;  %v264_v48 = vmul.f32 %v1636_v3, %v226_v36  ;;  %v265_v51 = vmul.f32 %v1636_v3, %v227_v37  ;;  %v266_v52 = vmul.f32 %v1636_v3, %v228_v38  ;;  %v1777_v56 = vmax.f32 %v476_v32, %v1522_v44 }
  0x26   : > { %v331_v57 = vmax.f32 %v299_v45, 0.0  ;;  %v332_v49 = vmax.f32 %v300_v46, 0.0  ;;  %v301_v58 = vadd.f32 %v1646_v6, %v263_v47  ;;  %v267_v1 = vmul.f32 %v1636_v3, %v229_v53 }
  0x27   : > { %v302_v50 = vadd.f32 %v1646_v6, %v264_v48  ;;  %v303_v59 = vadd.f32 %v1646_v6, %v265_v51  ;;  %v304_v60 = vadd.f32 %v1646_v6, %v266_v52  ;;  %v268_v2 = vmul.f32 %v1636_v3, %v230_v54 }
  0x28   : > { %364 = vst.msk [vmem:[%s1673_s27 + $0x50] sm:$0xff] %vm353_vm0, %v331_v57  ;;  %v390_v61 = vmax.f32 %v329_v34, %v331_v57  ;;  %365 = vst.msk [vmem:[%s1673_s27 + $0x58] sm:$0xff] %vm353_vm0, %v332_v49  ;;  %v391_v62 = vmax.f32 %v330_v35, %v332_v49  ;;  %v333_v4 = vmax.f32 %v301_v58, 0.0  ;;  %v1800_v26 = vadd.f32 %v1646_v6, %v267_v1 }
  0x29   : > { %v334_v5 = vmax.f32 %v302_v50, 0.0  ;;  %v335_v7 = vmax.f32 %v303_v59, 0.0  ;;  %v336_v11 = vmax.f32 %v304_v60, 0.0  ;;  %v1803_v27 = vadd.f32 %v1646_v6, %v268_v2 }
  0x2a   : > { %v486_v12 = vcombine.high %v390_v61, %v390_v61  ;;  %v493_v14 = vrot.slane %v390_v61, %v1659_v17  ;;  %v503_v19 = vcombine.high %v391_v62, %v391_v62  ;;  %v510_v20 = vrot.slane %v391_v62, %v1659_v17  ;;  %366 = vst.msk [vmem:[%s1673_s27 + $0x60] sm:$0xff] %vm353_vm0, %v333_v4 }
  0x2b   : > { %367 = vst.msk [vmem:[%s1673_s27 + $0x68] sm:$0xff] %vm353_vm0, %v334_v5  ;;  %368 = vst.msk [vmem:[%s1673_s27 + $0x70] sm:$0xff] %vm353_vm0, %v335_v7  ;;  %v392_v21 = vmax.f32 %v333_v4, %v335_v7  ;;  %v393_v22 = vmax.f32 %v334_v5, %v336_v11 }
  0x2c   : > { %369 = vst.msk [vmem:[%s1673_s27 + $0x78] sm:$0xff] %vm353_vm0, %v336_v11  ;;  %v500_v31 = vrot.slane %v486_v12, %v1659_v17  ;;  %v501_v32 = vcombine.high %v493_v14, %v493_v14  ;;  %v1526_v34 = vrot.slane %v493_v14, 9  ;;  %v1807_v35 = vrot.slane %v503_v19, %v1659_v17  ;;  %v231_v19 = vld [vmem:[%s1641_s22 + $0x90] sm:$0xff] }
  0x2d   : > { %v1809_v36 = vcombine.high %v510_v20, %v510_v20  ;;  %v1530_v37 = vrot.slane %v510_v20, 9  ;;  %v520_v38 = vcombine.high %v392_v21, %v392_v21  ;;  %v527_v44 = vrot.slane %v392_v21, %v1659_v17  ;;  %v233_v21 = vld [vmem:[%s1641_s22 + $0xa0] sm:$0xff] }
  0x2e   : > { %v502_v45 = vcombine.high %v500_v31, %v500_v31  ;;  %v1527_v46 = vrot.slane %v501_v32, 9  ;;  %v1528_v47 = vrot.slane %v500_v31, 9  ;;  %v1812_v48 = vmax.f32 %v493_v14, %v1526_v34 }
  0x2f   : > { %v1815_v52 = vmax.f32 %v510_v20, %v1530_v37  ;;  %v534_v53 = vrot.slane %v520_v38, %v1659_v17  ;;  %v535_v54 = vcombine.high %v527_v44, %v527_v44  ;;  %v1534_v60 = vrot.slane %v527_v44, 9  ;;  %v232_v20 = vld [vmem:[%s1641_s22 + $0x98] sm:$0xff]  ;;  %v234_v38 = vld [vmem:[%s1641_s22 + $0xa8] sm:$0xff] }
  0x30   : > { %v1529_v57 = vrot.slane %v502_v45, 9  ;;  %v1818_v49 = vmax.f32 %v501_v32, %v1527_v46  ;;  %v1820_v58 = vmax.f32 %v500_v31, %v1528_v47  ;;  %v537_v5 = vcombine.high %v393_v22, %v393_v22 }
  0x31   : > { %v536_v59 = vcombine.high %v534_v53, %v534_v53  ;;  %v1535_v61 = vrot.slane %v535_v54, 9  ;;  %v1536_v62 = vrot.slane %v534_v53, 9  ;;  %v1830_v11 = vmax.f32 %v527_v44, %v1534_v60  ;;  %v235_v44 = vld [vmem:[%s1641_s22 + $0xb0] sm:$0xff] }
  0x32   : > { %v1824_v1 = vmax.f32 %v502_v45, %v1529_v57  ;;  %v544_v31 = vrot.slane %v393_v22, %v1659_v17  ;;  %v1841_v32 = vrot.slane %v537_v5, %v1659_v17  ;;  %v337_v34 = vmax.f32 %v1800_v26, 0.0  ;;  %v236_v45 = vld [vmem:[%s1641_s22 + $0xb8] sm:$0xff]  ;;  %v237_v5 = vld [vmem:[%s1641_s22 + $0xc0] sm:$0xff] }
  0x33   : > { %v1537_v7 = vrot.slane %v536_v59, 9  ;;  %v1832_v12 = vmax.f32 %v535_v54, %v1535_v61  ;;  %v1834_v14 = vmax.f32 %v534_v53, %v1536_v62  ;;  %v338_v37 = vmax.f32 %v1803_v27, 0.0 }
  0x34   : > { %v1856_v54 = vcombine.high %v544_v31, %v544_v31  ;;  %v1538_v26 = vrot.slane %v544_v31, 9  ;;  %370 = vst.msk [vmem:[%s1673_s27 + $0x80] sm:$0xff] %vm353_vm0, %v337_v34  ;;  %v269_v27 = vmul.f32 %v1636_v3, %v231_v19  ;;  %v270_v57 = vmul.f32 %v1636_v3, %v232_v20 }
  0x35   : > { %v1848_v46 = vmax.f32 %v536_v59, %v1537_v7  ;;  %371 = vst.msk [vmem:[%s1673_s27 + $0x88] sm:$0xff] %vm353_vm0, %v338_v37  ;;  %v271_v59 = vmul.f32 %v1636_v3, %v233_v21  ;;  %v272_v60 = vmul.f32 %v1636_v3, %v234_v38  ;;  %v273_v61 = vmul.f32 %v1636_v3, %v235_v44  ;;  %v238_v7 = vld [vmem:[%s1641_s22 + $0xc8] sm:$0xff] }
  0x36   : > { %v274_v62 = vmul.f32 %v1636_v3, %v236_v45  ;;  %v1871_v22 = vmax.f32 %v544_v31, %v1538_v26  ;;  %v307_v19 = vadd.f32 %v1646_v6, %v269_v27  ;;  %v308_v20 = vadd.f32 %v1646_v6, %v270_v57  ;;  %v239_v27 = vld [vmem:[%s1641_s22 + $0xd0] sm:$0xff]  ;;  %v240_v57 = vld [vmem:[%s1641_s22 + $0xd8] sm:$0xff] }
  0x37   : > { %v309_v21 = vadd.f32 %v1646_v6, %v271_v59  ;;  %v310_v38 = vadd.f32 %v1646_v6, %v272_v60  ;;  %v311_v44 = vadd.f32 %v1646_v6, %v273_v61  ;;  %v275_v31 = vmul.f32 %v1636_v3, %v237_v5 }
  0x38   : > { %v312_v45 = vadd.f32 %v1646_v6, %v274_v62  ;;  %v339_v47 = vmax.f32 %v307_v19, 0.0  ;;  %v340_v4 = vmax.f32 %v308_v20, 0.0  ;;  %v276_v26 = vmul.f32 %v1636_v3, %v238_v7 }
  0x39   : > { %v341_v59 = vmax.f32 %v309_v21, 0.0  ;;  %v342_v53 = vmax.f32 %v310_v38, 0.0  ;;  %v343_v2 = vmax.f32 %v311_v44, 0.0  ;;  %v1888_v19 = vadd.f32 %v1646_v6, %v275_v31 }
  0x3a   : > { %v344_v60 = vmax.f32 %v312_v45, 0.0  ;;  %372 = vst.msk [vmem:[%s1673_s27 + $0x90] sm:$0xff] %vm353_vm0, %v339_v47  ;;  %v394_v61 = vmax.f32 %v337_v34, %v339_v47  ;;  %373 = vst.msk [vmem:[%s1673_s27 + $0x98] sm:$0xff] %vm353_vm0, %v340_v4  ;;  %v395_v62 = vmax.f32 %v338_v37, %v340_v4  ;;  %v1891_v5 = vadd.f32 %v1646_v6, %v276_v26 }
  0x3b   : > { %374 = vst.msk [vmem:[%s1673_s27 + $0xa0] sm:$0xff] %vm353_vm0, %v341_v59  ;;  %375 = vst.msk [vmem:[%s1673_s27 + $0xa8] sm:$0xff] %vm353_vm0, %v342_v53  ;;  %v396_v7 = vmax.f32 %v341_v59, %v343_v2  ;;  %v277_v34 = vmul.f32 %v1636_v3, %v239_v27  ;;  %v278_v4 = vmul.f32 %v1636_v3, %v240_v57 }
  0x3c   : > { %376 = vst.msk [vmem:[%s1673_s27 + $0xb0] sm:$0xff] %vm353_vm0, %v343_v2  ;;  %377 = vst.msk [vmem:[%s1673_s27 + $0xb8] sm:$0xff] %vm353_vm0, %v344_v60  ;;  %v397_v20 = vmax.f32 %v342_v53, %v344_v60  ;;  %v554_v37 = vcombine.high %v394_v61, %v394_v61  ;;  %v561_v47 = vrot.slane %v394_v61, %v1659_v17 }
  0x3d   : > { %v571_v21 = vcombine.high %v395_v62, %v395_v62  ;;  %v578_v38 = vrot.slane %v395_v62, %v1659_v17  ;;  %v588_v44 = vcombine.high %v396_v7, %v396_v7  ;;  %v595_v45 = vrot.slane %v396_v7, %v1659_v17 }
  0x3e   : > { %v605_v31 = vcombine.high %v397_v20, %v397_v20  ;;  %v612_v26 = vrot.slane %v397_v20, %v1659_v17  ;;  %v568_v2 = vrot.slane %v554_v37, %v1659_v17  ;;  %v569_v59 = vcombine.high %v561_v47, %v561_v47 }
  0x3f   : > { %v1542_v53 = vrot.slane %v561_v47, 9  ;;  %v1909_v27 = vrot.slane %v571_v21, %v1659_v17  ;;  %v1911_v57 = vcombine.high %v578_v38, %v578_v38  ;;  %v1546_v60 = vrot.slane %v578_v38, 9 }
  0x40   : > { %v602_v61 = vrot.slane %v588_v44, %v1659_v17  ;;  %v603_v50 = vcombine.high %v595_v45, %v595_v45  ;;  %v570_v62 = vcombine.high %v568_v2, %v568_v2  ;;  %v1543_v51 = vrot.slane %v569_v59, 9 }
  0x41   : > { %v1544_v42 = vrot.slane %v568_v2, 9  ;;  %v1914_v7 = vmax.f32 %v561_v47, %v1542_v53  ;;  %v1917_v41 = vmax.f32 %v578_v38, %v1546_v60  ;;  %v1550_v40 = vrot.slane %v595_v45, 9 }
  0x42   : > { %v604_v37 = vcombine.high %v602_v61, %v602_v61  ;;  %v1545_v55 = vrot.slane %v570_v62, 9  ;;  %v1919_v21 = vmax.f32 %v569_v59, %v1543_v51  ;;  %v1551_v24 = vrot.slane %v603_v50, 9 }
  0x43   : > { %v1921_v25 = vmax.f32 %v568_v2, %v1544_v42  ;;  %v1552_v18 = vrot.slane %v602_v61, 9  ;;  %v1925_v53 = vmax.f32 %v595_v45, %v1550_v40  ;;  %v1934_v42 = vrot.slane %v605_v31, %v1659_v17  ;;  %v242_v45 = vld [vmem:[%s1641_s22 + $0xe8] sm:$0xff] }
  0x44   : > { %v1553_v47 = vrot.slane %v604_v37, 9  ;;  %v1927_v38 = vmax.f32 %v570_v62, %v1545_v55  ;;  %v1936_v2 = vmax.f32 %v603_v50, %v1551_v24  ;;  %v241_v55 = vld [vmem:[%s1641_s22 + $0xe0] sm:$0xff]  ;;  %v1946_v62 = vcombine.high %v612_v26, %v612_v26  ;;  %v243_v24 = vld [vmem:[%s1641_s22 + $0xf0] sm:$0xff]  ;;  %v244_v50 = vld [vmem:[%s1641_s22 + $0xf8] sm:$0xff] }
  0x45   : > { %2320 = vst [vmem:[#allocation2_spill] sm:$0xff] %v1925_v53  ;;  %v1938_v59 = vmax.f32 %v602_v61, %v1552_v18  ;;  %v1554_v60 = vrot.slane %v612_v26, 9  ;;  %v345_v51 = vmax.f32 %v1888_v19, 0.0  ;;  %v346_v31 = vmax.f32 %v1891_v5, 0.0 }
  0x46   : > { %2321 = vst [vmem:[#allocation3_spill] sm:$0xff] %v1936_v2  ;;  %v1940_v44 = vmax.f32 %v604_v37, %v1553_v47  ;;  %v315_v37 = vadd.f32 %v1646_v6, %v277_v34  ;;  %v316_v47 = vadd.f32 %v1646_v6, %v278_v4  ;;  %v279_v19 = vmul.f32 %v1636_v3, %v241_v55 }
  0x47   : > { %2322 = vst [vmem:[#allocation4_spill] sm:$0xff] %v1938_v59  ;;  %v1959_v20 = vmax.f32 %v612_v26, %v1554_v60  ;;  %378 = vst.msk [vmem:[%s1673_s27 + $0xc0] sm:$0xff] %vm353_vm0, %v345_v51  ;;  %v280_v5 = vmul.f32 %v1636_v3, %v242_v45  ;;  %v281_v34 = vmul.f32 %v1636_v3, %v243_v24  ;;  %v1516_v60 = vrot.slane %v1715_v63, 9 }
  0x48   : > { %379 = vst.msk [vmem:[%s1673_s27 + $0xc8] sm:$0xff] %vm353_vm0, %v346_v31  ;;  %v347_v18 = vmax.f32 %v315_v37, 0.0  ;;  %v348_v61 = vmax.f32 %v316_v47, 0.0  ;;  %v282_v9 = vmul.f32 %v1636_v3, %v244_v50  ;;  %v317_v4 = vadd.f32 %v1646_v6, %v279_v19 }
  0x49   : > { %v318_v40 = vadd.f32 %v1646_v6, %v280_v5  ;;  %v451_v26 = vcombine.high %v1715_v63, %v1715_v63  ;;  %v319_v24 = vadd.f32 %v1646_v6, %v281_v34  ;;  %v2323_v19 = vrot.slane %v1717_v0, 9 }
  0x4a   : > { %380 = vst.msk [vmem:[%s1673_s27 + $0xd0] sm:$0xff] %vm353_vm0, %v347_v18  ;;  %v398_v55 = vmax.f32 %v345_v51, %v347_v18  ;;  %381 = vst.msk [vmem:[%s1673_s27 + $0xd8] sm:$0xff] %vm353_vm0, %v348_v61  ;;  %v399_v45 = vmax.f32 %v346_v31, %v348_v61  ;;  %v320_v3 = vadd.f32 %v1646_v6, %v282_v9  ;;  %v349_v50 = vmax.f32 %v317_v4, 0.0 }
  0x4b   : > { %v350_v37 = vmax.f32 %v318_v40, 0.0  ;;  %v1517_v47 = vrot.slane %v451_v26, 9  ;;  %v1983_v5 = vmax.f32 %v1717_v0, %v2323_v19  ;;  %v351_v6 = vmax.f32 %v319_v24, 0.0 }
  0x4c   : > { %v622_v59 = vcombine.high %v398_v55, %v398_v55  ;;  %v629_v2 = vrot.slane %v398_v55, %v1659_v17  ;;  %v639_v51 = vcombine.high %v399_v45, %v399_v45  ;;  %v646_v31 = vrot.slane %v399_v45, %v1659_v17  ;;  %382 = vst.msk [vmem:[%s1673_s27 + $0xe0] sm:$0xff] %vm353_vm0, %v349_v50 }
  0x4d   : > { %383 = vst.msk [vmem:[%s1673_s27 + $0xe8] sm:$0xff] %vm353_vm0, %v350_v37  ;;  %v352_v9 = vmax.f32 %v320_v3, 0.0  ;;  %v1992_v40 = vmax.f32 %v1715_v63, %v1516_v60  ;;  %v1994_v18 = vmax.f32 %v451_v26, %v1517_v47  ;;  %384 = vst.msk [vmem:[%s1673_s27 + $0xf0] sm:$0xff] %vm353_vm0, %v351_v6  ;;  %v400_v19 = vmax.f32 %v349_v50, %v351_v6 }
  0x4e   : > { %v636_v0 = vrot.slane %v622_v59, %v1659_v17  ;;  %v637_v61 = vcombine.high %v629_v2, %v629_v2  ;;  %v1558_v34 = vrot.slane %v629_v2, 9  ;;  %v1998_v4 = vrot.slane %v639_v51, %v1659_v17 }
  0x4f   : > { %v2000_v55 = vcombine.high %v646_v31, %v646_v31  ;;  %v1562_v45 = vrot.slane %v646_v31, 9  ;;  %385 = vst.msk [vmem:[%s1673_s27 + $0xf8] sm:$0xff] %vm353_vm0, %v352_v9  ;;  %v401_v24 = vmax.f32 %v350_v37, %v352_v9  ;;  %v656_v51 = vcombine.high %v400_v19, %v400_v19 }
  0x50   : > { %2324 = vst [vmem:[#allocation5_spill] sm:$0xff] %v1998_v4  ;;  %v638_v63 = vcombine.high %v636_v0, %v636_v0  ;;  %v1559_v26 = vrot.slane %v637_v61, 9  ;;  %v1560_v60 = vrot.slane %v636_v0, 9  ;;  %v2006_v3 = vmax.f32 %v629_v2, %v1558_v34 }
  0x51   : > { %v2009_v47 = vmax.f32 %v646_v31, %v1562_v45  ;;  %v663_v4 = vrot.slane %v400_v19, %v1659_v17  ;;  %v670_v2 = vrot.slane %v656_v51, %v1659_v17  ;;  %v673_v59 = vcombine.high %v401_v24, %v401_v24 }
  0x52   : > { %v1561_v53 = vrot.slane %v638_v63, 9  ;;  %v2012_v50 = vmax.f32 %v637_v61, %v1559_v26  ;;  %v2014_v6 = vmax.f32 %v636_v0, %v1560_v60  ;;  %v680_v0 = vrot.slane %v401_v24, %v1659_v17 }
  0x53   : > { %v671_v9 = vcombine.high %v663_v4, %v663_v4  ;;  %v1566_v34 = vrot.slane %v663_v4, 9  ;;  %v672_v19 = vcombine.high %v670_v2, %v670_v2  ;;  %v1568_v60 = vrot.slane %v670_v2, 9 }
  0x54   : > { %2325 = vst [vmem:[#allocation6_spill] sm:$0xff] %v2012_v50  ;;  %2326 = vst [vmem:[#allocation7_spill] sm:$0xff] %v2014_v6  ;;  %v2019_v31 = vmax.f32 %v638_v63, %v1561_v53  ;;  %v2029_v51 = vrot.slane %v673_v59, %v1659_v17  ;;  %v2031_v53 = vcombine.high %v680_v0, %v680_v0  ;;  %v1570_v63 = vrot.slane %v680_v0, 9 }
  0x55   : > { %v1567_v26 = vrot.slane %v671_v9, 9  ;;  %v2026_v37 = vmax.f32 %v663_v4, %v1566_v34  ;;  %v1089_v45 = vrot.slane %v1732_v23, %v1654_v13  ;;  %v1569_v50 = vrot.slane %v672_v19, 9 }
  0x56   : > { %v2037_v24 = vmax.f32 %v670_v2, %v1568_v60  ;;  %v1571_v34 = vrot.slane %v2031_v53, 9  ;;  %v2042_v6 = vmax.f32 %v680_v0, %v1570_v63  ;;  %v1093_v17 = vrot.slane %v1723_v10, %v1654_v13 }
  0x57   : > { %v2035_v61 = vmax.f32 %v671_v9, %v1567_v26  ;;  %v1301_v4 = vrot.slane %v2026_v37, %v1654_v13  ;;  %v1097_v59 = vrot.slane %v1983_v5, %v1654_v13  ;;  %v2048_v23 = vmax.f32 %v672_v19, %v1569_v50 }
  0x58   : > { %v1101_v26 = vrot.slane %v1992_v40, %v1654_v13  ;;  %v1105_v0 = vrot.slane %v1994_v18, %v1654_v13  ;;  %v2327_v10 = vrot.slane %v1720_v8, %v1654_v13  ;;  %v2328_v5 = vrot.slane %v1726_v15, %v1654_v13 }
  0x59   : > { %v485_v19 = vcombine.high %v1747_v33, %v1747_v33  ;;  %v1524_v60 = vrot.slane %v1747_v33, 9  ;;  %v2329_v40 = vrot.slane %v1728_v16, %v1654_v13  ;;  %v2330_v18 = vrot.slane %v1762_v43, 9 }
  0x5a   : > { %v1331_v50 = vsel %vm1330_vm1, %v2328_v5, %v2327_v10  ;;  %v1121_v15 = vrot.slane %v1754_v39, %v1654_v13  ;;  %v1125_v10 = vrot.slane %v1777_v56, %v1654_v13  ;;  %v2331_v16 = vrot.slane %v1738_v28, %v1654_v13 }
  0x5b   : > { %v1333_v63 = vsel %vm1332_vm2, %v2329_v40, %v1331_v50  ;;  %v959_v8 = vmax.f32 %v1762_v43, %v2330_v18  ;;  %v1525_v2 = vrot.slane %v485_v19, 9  ;;  %v960_v9 = vmax.f32 %v1747_v33, %v1524_v60 }
  0x5c   : > { %v1335_v5 = vsel %vm1334_vm3, %v1089_v45, %v1333_v63  ;;  %v2332_v50 = vrot.slane %v1740_v29, %v1654_v13  ;;  %v2333_v56 = vrot.slane %v1742_v30, %v1654_v13  ;;  %v519_v33 = vcombine.high %v1807_v35, %v1807_v35 }
  0x5d   : > { %v1337_v43 = vsel %vm1336_vm4, %v1093_v17, %v1335_v5  ;;  %v1129_v39 = vrot.slane %v959_v8, %v1654_v13  ;;  %v961_v29 = vmax.f32 %v485_v19, %v1525_v2  ;;  %v1133_v17 = vrot.slane %v960_v9, %v1654_v13 }
  0x5e   : > { %v1344_v40 = vsel %vm1330_vm1, %v2332_v50, %v2331_v16  ;;  %v1339_v28 = vsel %vm1338_vm5, %v1097_v59, %v1337_v43  ;;  %v1532_v18 = vrot.slane %v1807_v35, 9  ;;  %v1533_v8 = vrot.slane %v519_v33, 9 }
  0x5f   : > { %v1345_v45 = vsel %vm1332_vm2, %v2333_v56, %v1344_v40  ;;  %v1341_v30 = vsel %vm1340_vm6, %v1101_v26, %v1339_v28  ;;  %v1137_v16 = vrot.slane %v961_v29, %v1654_v13  ;;  %v2334_v59 = vrot.slane %v1809_v36, 9 }
  0x60   : > { %v1346_v60 = vsel %vm1334_vm3, %v1121_v15, %v1345_v45  ;;  %v1343_v5 = vsel %vm1342_vm7, %v1105_v0, %v1341_v30  ;;  %v968_v26 = vmax.f32 %v1807_v35, %v1532_v18  ;;  %v969_v19 = vmax.f32 %v519_v33, %v1533_v8 }
  0x61   : > { %v1347_v63 = vsel %vm1336_vm4, %v1125_v10, %v1346_v60  ;;  %v967_v9 = vmax.f32 %v1809_v36, %v2334_v59  ;;  %1401 = vst.msk [vmem:[%s2100_s5] sm:$0xff] %vm353_vm0, %v1343_v5  ;;  %v1153_v15 = vrot.slane %v1824_v1, %v1654_v13  ;;  %v1157_v10 = vrot.slane %v1815_v52, %v1654_v13 }
  0x62   : > { %v1348_v50 = vsel %vm1338_vm5, %v1129_v39, %v1347_v63  ;;  %v2335_v36 = vrot.slane %v1812_v48, %v1654_v13  ;;  %v2336_v43 = vrot.slane %v1818_v49, %v1654_v13  ;;  %v1165_v35 = vrot.slane %v968_v26, %v1654_v13 }
  0x63   : > { %v1349_v2 = vsel %vm1340_vm6, %v1133_v17, %v1348_v50  ;;  %v1161_v40 = vrot.slane %v967_v9, %v1654_v13  ;;  %v1169_v1 = vrot.slane %v969_v19, %v1654_v13  ;;  %v2337_v56 = vrot.slane %v1820_v58, %v1654_v13 }
  0x64   : > { %v1350_v0 = vsel %vm1342_vm7, %v1137_v16, %v1349_v2  ;;  %v1351_v39 = vsel %vm1330_vm1, %v2336_v43, %v2335_v36  ;;  %v553_v45 = vcombine.high %v1841_v32, %v1841_v32  ;;  %v1540_v49 = vrot.slane %v1841_v32, 9 }
  0x65   : > { %1402 = vst.msk [vmem:[%s2100_s5 + $0x8] sm:$0xff] %vm353_vm0, %v1350_v0  ;;  %v1352_v52 = vsel %vm1332_vm2, %v2337_v56, %v1351_v39  ;;  %v2338_v33 = vrot.slane %v1856_v54, 9  ;;  %v1185_v29 = vrot.slane %v1848_v46, %v1654_v13  ;;  %v1189_v60 = vrot.slane %v1871_v22, %v1654_v13 }
  0x66   : > { %v1353_v48 = vsel %vm1334_vm3, %v1153_v15, %v1352_v52  ;;  %v1541_v58 = vrot.slane %v553_v45, 9  ;;  %v2339_v30 = vrot.slane %v1830_v11, %v1654_v13  ;;  %v2340_v63 = vrot.slane %v1832_v12, %v1654_v13 }
  0x67   : > { %v975_v28 = vmax.f32 %v1856_v54, %v2338_v33  ;;  %v1354_v17 = vsel %vm1336_vm4, %v1157_v10, %v1353_v48  ;;  %v976_v8 = vmax.f32 %v1841_v32, %v1540_v49  ;;  %v2341_v5 = vrot.slane %v1834_v14, %v1654_v13 }
  0x68   : > { %v1358_v18 = vsel %vm1330_vm1, %v2340_v63, %v2339_v30  ;;  %v1355_v54 = vsel %vm1338_vm5, %v1161_v40, %v1354_v17  ;;  %v977_v50 = vmax.f32 %v553_v45, %v1541_v58  ;;  %v587_v12 = vcombine.high %v1909_v27, %v1909_v27  ;;  %v2347_v63 = vld [vmem:[#allocation2_spill] sm:$0xff] }
  0x69   : > { %v1193_v46 = vrot.slane %v975_v28, %v1654_v13  ;;  %v1359_v16 = vsel %vm1332_vm2, %v2341_v5, %v1358_v18  ;;  %v1356_v22 = vsel %vm1340_vm6, %v1165_v35, %v1355_v54  ;;  %v1197_v9 = vrot.slane %v976_v8, %v1654_v13  ;;  %v2351_v8 = vld [vmem:[#allocation5_spill] sm:$0xff] }
  0x6a   : > { %v1360_v11 = vsel %vm1334_vm3, %v1185_v29, %v1359_v16  ;;  %v1357_v59 = vsel %vm1342_vm7, %v1169_v1, %v1356_v22  ;;  %v1548_v2 = vrot.slane %v1909_v27, 9  ;;  %v1201_v14 = vrot.slane %v977_v50, %v1654_v13  ;;  %v2352_v16 = vld [vmem:[#allocation4_spill] sm:$0xff] }
  0x6b   : > { %v1361_v32 = vsel %vm1336_vm4, %v1189_v60, %v1360_v11  ;;  %1403 = vst.msk [vmem:[%s2100_s5 + $0x10] sm:$0xff] %vm353_vm0, %v1357_v59  ;;  %v1549_v19 = vrot.slane %v587_v12, 9  ;;  %v2342_v15 = vrot.slane %v1911_v57, 9  ;;  %v1217_v36 = vrot.slane %v1927_v38, %v1654_v13 }
  0x6c   : > { %v1362_v26 = vsel %vm1338_vm5, %v1193_v46, %v1361_v32  ;;  %v984_v40 = vmax.f32 %v1909_v27, %v1548_v2  ;;  %v1221_v43 = vrot.slane %v1917_v41, %v1654_v13  ;;  %v2343_v56 = vrot.slane %v1914_v7, %v1654_v13 }
  0x6d   : > { %v983_v0 = vmax.f32 %v1911_v57, %v2342_v15  ;;  %v1363_v10 = vsel %vm1340_vm6, %v1197_v9, %v1362_v26  ;;  %v985_v35 = vmax.f32 %v587_v12, %v1549_v19  ;;  %v2344_v57 = vrot.slane %v1919_v21, %v1654_v13 }
  0x6e   : > { %v1364_v39 = vsel %vm1342_vm7, %v1201_v14, %v1363_v10  ;;  %v1229_v27 = vrot.slane %v984_v40, %v1654_v13  ;;  %v2345_v41 = vrot.slane %v1921_v25, %v1654_v13  ;;  %v621_v45 = vcombine.high %v1934_v42, %v1934_v42 }
  0x6f   : > { %v1225_v1 = vrot.slane %v983_v0, %v1654_v13  ;;  %v1365_v52 = vsel %vm1330_vm1, %v2344_v57, %v2343_v56  ;;  %1404 = vst.msk [vmem:[%s2100_s5 + $0x18] sm:$0xff] %vm353_vm0, %v1364_v39  ;;  %v1556_v48 = vrot.slane %v1934_v42, 9  ;;  %v1233_v7 = vrot.slane %v985_v35, %v1654_v13  ;;  %v2356_v35 = vld [vmem:[#allocation6_spill] sm:$0xff] }
  0x70   : > { %v1366_v38 = vsel %vm1332_vm2, %v2345_v41, %v1365_v52  ;;  %v2346_v49 = vrot.slane %v1946_v62, 9  ;;  %v1249_v28 = vrot.slane %v1940_v44, %v1654_v13  ;;  %v1557_v29 = vrot.slane %v621_v45, 9  ;;  %v2358_v52 = vld [vmem:[#allocation7_spill] sm:$0xff] }
  0x71   : > { %v1367_v21 = vsel %vm1334_vm3, %v1217_v36, %v1366_v38  ;;  %v992_v17 = vmax.f32 %v1934_v42, %v1556_v48  ;;  %v1253_v58 = vrot.slane %v1959_v20, %v1654_v13  ;;  %v2348_v18 = vrot.slane %v2347_v63, %v1654_v13 }
  0x72   : > { %v991_v33 = vmax.f32 %v1946_v62, %v2346_v49  ;;  %v1368_v25 = vsel %vm1336_vm4, %v1221_v43, %v1367_v21  ;;  %v2349_v62 = vld [vmem:[#allocation3_spill] sm:$0xff]  ;;  %v655_v46 = vcombine.high %v2351_v8, %v2351_v8  ;;  %v993_v5 = vmax.f32 %v621_v45, %v1557_v29 }
  0x73   : > { %v1369_v60 = vsel %vm1338_vm5, %v1225_v1, %v1368_v25  ;;  %v2350_v54 = vrot.slane %v2349_v62, %v1654_v13  ;;  %v1261_v20 = vrot.slane %v992_v17, %v1654_v13  ;;  %v2353_v22 = vrot.slane %v2352_v16, %v1654_v13 }
  0x74   : > { %v1257_v30 = vrot.slane %v991_v33, %v1654_v13  ;;  %v1370_v42 = vsel %vm1340_vm6, %v1229_v27, %v1369_v60  ;;  %v1564_v59 = vrot.slane %v2351_v8, 9  ;;  %v1565_v9 = vrot.slane %v655_v46, 9 }
  0x75   : > { %v1372_v44 = vsel %vm1330_vm1, %v2350_v54, %v2348_v18  ;;  %v1371_v11 = vsel %vm1342_vm7, %v1233_v7, %v1370_v42  ;;  %v1265_v32 = vrot.slane %v993_v5, %v1654_v13  ;;  %v2354_v14 = vrot.slane %v2000_v55, 9 }
  0x76   : > { %v1373_v50 = vsel %vm1332_vm2, %v2353_v22, %v1372_v44  ;;  %1405 = vst.msk [vmem:[%s2100_s5 + $0x20] sm:$0xff] %vm353_vm0, %v1371_v11  ;;  %v1281_v19 = vrot.slane %v2019_v31, %v1654_v13  ;;  %v1000_v0 = vmax.f32 %v2351_v8, %v1564_v59  ;;  %v1001_v10 = vmax.f32 %v655_v46, %v1565_v9 }
  0x77   : > { %v1374_v12 = vsel %vm1334_vm3, %v1249_v28, %v1373_v50  ;;  %v999_v26 = vmax.f32 %v2000_v55, %v2354_v14  ;;  %v1285_v40 = vrot.slane %v2009_v47, %v1654_v13  ;;  %v2355_v39 = vrot.slane %v2006_v3, %v1654_v13 }
  0x78   : > { %v1375_v2 = vsel %vm1336_vm4, %v1253_v58, %v1374_v12  ;;  %v2357_v55 = vrot.slane %v2356_v35, %v1654_v13  ;;  %v689_v1 = vcombine.high %v2029_v51, %v2029_v51  ;;  %v1293_v57 = vrot.slane %v1000_v0, %v1654_v13 }
  0x79   : > { %v1376_v15 = vsel %vm1338_vm5, %v1257_v30, %v1375_v2  ;;  %v1289_v43 = vrot.slane %v999_v26, %v1654_v13  ;;  %v1297_v47 = vrot.slane %v1001_v10, %v1654_v13  ;;  %v2359_v27 = vrot.slane %v2358_v52, %v1654_v13 }
  0x7a   : > { %v1377_v36 = vsel %vm1340_vm6, %v1261_v20, %v1376_v15  ;;  %v1379_v31 = vsel %vm1330_vm1, %v2357_v55, %v2355_v39  ;;  %v1572_v38 = vrot.slane %v2029_v51, 9  ;;  %v1573_v45 = vrot.slane %v689_v1, 9 }
  0x7b   : > { %v1378_v56 = vsel %vm1342_vm7, %v1265_v32, %v1377_v36  ;;  %v1380_v41 = vsel %vm1332_vm2, %v2359_v27, %v1379_v31  ;;  %v1007_v48 = vmax.f32 %v2031_v53, %v1571_v34  ;;  %v1313_v21 = vrot.slane %v2048_v23, %v1654_v13 }
  0x7c   : > { %1406 = vst.msk [vmem:[%s2100_s5 + $0x28] sm:$0xff] %vm353_vm0, %v1378_v56  ;;  %v1381_v3 = vsel %vm1334_vm3, %v1281_v19, %v1380_v41  ;;  %v1317_v49 = vrot.slane %v2042_v6, %v1654_v13  ;;  %v2360_v33 = vrot.slane %v2035_v61, %v1654_v13  ;;  %v1008_v53 = vmax.f32 %v2029_v51, %v1572_v38 }
  0x7d   : > { %v1382_v7 = vsel %vm1336_vm4, %v1285_v40, %v1381_v3  ;;  %v1009_v34 = vmax.f32 %v689_v1, %v1573_v45  ;;  %v1321_v29 = vrot.slane %v1007_v48, %v1654_v13  ;;  %v2361_v6 = vrot.slane %v2037_v24, %v1654_v13 }
  0x7e   : > { %v1386_v28 = vsel %vm1330_vm1, %v2360_v33, %v1301_v4  ;;  %v1383_v25 = vsel %vm1338_vm5, %v1289_v43, %v1382_v7  ;;  %v1325_v61 = vrot.slane %v1008_v53, %v1654_v13 }
  0x7f   : > { %v1384_v23 = vsel %vm1340_vm6, %v1293_v57, %v1383_v25  ;;  %v1387_v37 = vsel %vm1332_vm2, %v2361_v6, %v1386_v28  ;;  %v1329_v4 = vrot.slane %v1009_v34, %v1654_v13 }
  0x80   : > { %v1385_v17 = vsel %vm1342_vm7, %v1297_v47, %v1384_v23  ;;  %v1388_v58 = vsel %vm1334_vm3, %v1313_v21, %v1387_v37 }
  0x81   : > { %1407 = vst.msk [vmem:[%s2100_s5 + $0x30] sm:$0xff] %vm353_vm0, %v1385_v17  ;;  %v1389_v51 = vsel %vm1336_vm4, %v1317_v49, %v1388_v58 }
  0x82   : > { %v1390_v60 = vsel %vm1338_vm5, %v1321_v29, %v1389_v51 }
  0x83   : > { %v1391_v30 = vsel %vm1340_vm6, %v1325_v61, %v1390_v60 }
  0x84   : > { %v1392_v24 = vsel %vm1342_vm7, %v1329_v4, %v1391_v30 }
  0x85   : > { %1408 = vst.msk [vmem:[%s2100_s5 + $0x38] sm:$0xff] %vm353_vm0, %v1392_v24 }
  0x86 PF: > { %s15_s15 = sadd.s32 1, %s1594_s15  }
  0x87   : > { %p12_p4 = scmp.ge.s32.totalorder %s15_s15, 4  }
  0x89   :  { %14 = sbr.rel (!%p12_p4) target bundleno = 1 (0x1), region = 74 }

// kernel: downconv_forward.3
= control target key start
LH: loop header
LB: loop body
LE: loop exit
PB: predicated region body
PF: predicated region fallthrough
CT: control target
= control target key end

     0   :  { %s2829_s15 = smov 0   ;;  %s3964_s0 = inlined_call_operand.vmem [shape: f32[2,16,16,4], index: 0, kind: input, shape index: {}]   ;;  %s3965_s1 = inlined_call_operand.vmem [shape: f32[36,8], index: 1, kind: input, shape index: {}]   ;;  %s3966_s2 = inlined_call_operand.vmem [shape: f32[2,16,16,8], index: 2, kind: output, shape index: {0}]   ;;  %s3967_s3 = inlined_call_operand.vmem [shape: f32[2,1,8], index: 3, kind: output, shape index: {1}]   ;;  %s3968_s4 = inlined_call_operand.vmem [shape: f32[2,1,8], index: 4, kind: output, shape index: {2}]  }
   0x1 LB: > { %s2619_s16 = sadd.s32 4294967295, %s2793_s15   ;;  %p2623_p0 = scmp.ge.s32.totalorder %s2793_s15, 1  ;;  %s2793_s15 = sphi %s2829_s15, %s15_s15  }
   0x2   : > { %p167_p1 = scmp.lt.s32.totalorder %s2793_s15, 3 }
   0x4   : > { %p168_p2 = pnand %p2623_p0, %p167_p1 }
   0x5   : > { %p2839_p3 = scmp.lt.s32.totalorder (!%p168_p2), %s2619_s16, 1  ;;  %s2796_s22 = smov (!%p168_p2), 4  }
   0x6   : > { %171 = sbr.rel (%p168_p2) target bundleno = 893 (0x37d), region = 28  ;;  %s2797_s23 = smov (!%p168_p2), 8  }
   0x7   : > { %s2798_s24 = smov (!%p168_p2), 12   ;;  %s2799_s25 = smov (!%p168_p2), 16  }
   0x8   : > { %s2800_s26 = smov (!%p168_p2), 20   ;;  %s2801_s27 = smov (!%p168_p2), 24  }
   0x9   : > { %s2802_s30 = smov (!%p168_p2), 28   ;;  %s2803_s13 = smov (!%p168_p2), 32  }
   0xb   : > { %vm247_vm0 = vcmask 31744   ;;  %vm250_vm1 = vcmask 25600   ;;  %v2795_v0 = vmov 0.0   ;;  %s3971_s16 = smov (!%p2839_p3, %s2619_s16), 1  ;;  %vm560_vm2 = vcmask 64544  }
   0xc   : > { %248 = vst.msk [vmem:[#allocation2] sm:$0xff] %vm247_vm0, %v2795_v0  ;;  %249 = vst.msk [vmem:[#allocation2 + $0x8] sm:$0xff] %vm247_vm0, %v2795_v0  ;;  %s2663_s18 = sshll.u32 %s3971_s16, 8  ;;  %vm753_vm3 = vcmask 97344   ;;  %vm2079_vm4 = vcmask 1043456   ;;  %vm946_vm5 = vcmask 130144  }
   0xd   : > { %252 = vst.msk [vmem:[#allocation2 + $0x18] sm:$0xff] %vm247_vm0, %v2795_v0  ;;  %253 = vst.msk [vmem:[#allocation2 + $0x20] sm:$0xff] %vm247_vm0, %v2795_v0  ;;  %s2909_s21 = scalar_lea.vmem %s3964_s0, %s2663_s18  ;;  %vm1139_vm6 = vcmask 162944   ;;  %vm1332_vm7 = vcmask 195744   ;;  %vm1526_vm8 = vcmask 228544   ;;  %vm1719_vm9 = vcmask 261344   ;;  %s3746_s19 = scalar_lea.vmem %s3966_s2, %s2663_s18 }
   0xe   : > { %255 = vst.msk [vmem:[#allocation2 + $0x30] sm:$0xff] %vm247_vm0, %v2795_v0  ;;  %256 = vst.msk [vmem:[#allocation2 + $0x38] sm:$0xff] %vm247_vm0, %v2795_v0  ;;  %v215_v1 = vld [vmem:[%s2909_s21] sm:$0xff]  ;;  %v217_v2 = vld [vmem:[%s2909_s21 + $0x10] sm:$0xff]  ;;  %vm1912_vm10 = vcmask 294144   ;;  %vm1982_vm11 = vcmask 293888  }
   0xf   : > { %258 = vst.msk [vmem:[#allocation2 + $0x48] sm:$0xff] %vm247_vm0, %v2795_v0  ;;  %259 = vst.msk [vmem:[#allocation2 + $0x50] sm:$0xff] %vm247_vm0, %v2795_v0  ;;  %v216_v3 = vld [vmem:[%s2909_s21 + $0x8] sm:$0xff]  ;;  %v219_v4 = vld [vmem:[%s2909_s21 + $0x20] sm:$0xff]  ;;  %vm2308_vm12 = vcmask 64512   ;;  %vm2410_vm13 = vcmask 57344  }
  0x10   : > { %261 = vst.msk [vmem:[#allocation2 + $0x60] sm:$0xff] %vm247_vm0, %v2795_v0  ;;  %262 = vst.msk [vmem:[#allocation2 + $0x68] sm:$0xff] %vm247_vm0, %v2795_v0  ;;  %v218_v5 = vld [vmem:[%s2909_s21 + $0x18] sm:$0xff]  ;;  %v221_v6 = vld [vmem:[%s2909_s21 + $0x30] sm:$0xff] }
  0x11   : > { %264 = vst.msk [vmem:[#allocation2 + $0x78] sm:$0xff] %vm247_vm0, %v2795_v0  ;;  %265 = vst.msk [vmem:[#allocation2 + $0x80] sm:$0xff] %vm247_vm0, %v2795_v0  ;;  %v220_v9 = vld [vmem:[%s2909_s21 + $0x28] sm:$0xff]  ;;  %v223_v10 = vld [vmem:[%s2909_s21 + $0x40] sm:$0xff] }
  0x12   : > { %267 = vst.msk [vmem:[#allocation2 + $0x90] sm:$0xff] %vm247_vm0, %v2795_v0  ;;  %268 = vst.msk [vmem:[#allocation2 + $0x98] sm:$0xff] %vm247_vm0, %v2795_v0  ;;  %v222_v11 = vld [vmem:[%s2909_s21 + $0x38] sm:$0xff]  ;;  %v225_v12 = vld [vmem:[%s2909_s21 + $0x50] sm:$0xff] }
  0x13   : > { %270 = vst.msk [vmem:[#allocation2 + $0xa8] sm:$0xff] %vm247_vm0, %v2795_v0  ;;  %271 = vst.msk [vmem:[#allocation2 + $0xb0] sm:$0xff] %vm247_vm0, %v2795_v0  ;;  %v400_v7 = vld [vmem:[#allocation2 + $0x1] sm:$0xff]  ;;  %v226_v15 = vld [vmem:[%s2909_s21 + $0x58] sm:$0xff] }
  0x14   : > { %273 = vst.msk [vmem:[#allocation2 + $0xc0] sm:$0xff] %vm247_vm0, %v2795_v0  ;;  %274 = vst.msk [vmem:[#allocation2 + $0xc8] sm:$0xff] %vm247_vm0, %v2795_v0  ;;  %464 = vrot.lane.b32.xlu0 %v400_v7, %s2796_s22  ;;  %v224_v13 = vld [vmem:[%s2909_s21 + $0x48] sm:$0xff]  ;;  %v227_v14 = vld [vmem:[%s2909_s21 + $0x60] sm:$0xff] }
  0x15   : > { %276 = vst.msk [vmem:[#allocation2 + $0xd8] sm:$0xff] %vm247_vm0, %v2795_v0  ;;  %277 = vst.msk [vmem:[#allocation2 + $0xe0] sm:$0xff] %vm247_vm0, %v2795_v0  ;;  %v229_v16 = vld [vmem:[%s2909_s21 + $0x70] sm:$0xff]  ;;  %v228_v17 = vld [vmem:[%s2909_s21 + $0x68] sm:$0xff] }
  0x16   : > { %279 = vst.msk [vmem:[#allocation2 + $0xf0] sm:$0xff] %vm247_vm0, %v2795_v0  ;;  %280 = vst.msk [vmem:[#allocation2 + $0xf8] sm:$0xff] %vm247_vm0, %v2795_v0  ;;  %v231_v18 = vld [vmem:[%s2909_s21 + $0x80] sm:$0xff]  ;;  %v230_v19 = vld [vmem:[%s2909_s21 + $0x78] sm:$0xff] }
  0x17   : > { %282 = vst.msk [vmem:[#allocation2 + $0x108] sm:$0xff] %vm247_vm0, %v2795_v0  ;;  %283 = vst.msk [vmem:[#allocation2 + $0x110] sm:$0xff] %vm247_vm0, %v2795_v0  ;;  %v233_v20 = vld [vmem:[%s2909_s21 + $0x90] sm:$0xff]  ;;  %v232_v21 = vld [vmem:[%s2909_s21 + $0x88] sm:$0xff] }
  0x18   : > { %285 = vst.msk [vmem:[#allocation2 + $0x120] sm:$0xff] %vm247_vm0, %v2795_v0  ;;  %286 = vst.msk [vmem:[#allocation2 + $0x128] sm:$0xff] %vm247_vm0, %v2795_v0  ;;  %v235_v22 = vld [vmem:[%s2909_s21 + $0xa0] sm:$0xff]  ;;  %v234_v23 = vld [vmem:[%s2909_s21 + $0x98] sm:$0xff] }
  0x19   : > { %288 = vst.msk [vmem:[#allocation2 + $0x138] sm:$0xff] %vm247_vm0, %v2795_v0  ;;  %289 = vst.msk [vmem:[#allocation2 + $0x140] sm:$0xff] %vm247_vm0, %v2795_v0  ;;  %v237_v24 = vld [vmem:[%s2909_s21 + $0xb0] sm:$0xff]  ;;  %v236_v28 = vld [vmem:[%s2909_s21 + $0xa8] sm:$0xff] }
  0x1a   : > { %291 = vst.msk [vmem:[#allocation2 + $0x150] sm:$0xff] %vm247_vm0, %v2795_v0  ;;  %292 = vst.msk [vmem:[#allocation2 + $0x158] sm:$0xff] %vm247_vm0, %v2795_v0  ;;  %v239_v29 = vld [vmem:[%s2909_s21 + $0xc0] sm:$0xff]  ;;  %v238_v33 = vld [vmem:[%s2909_s21 + $0xb8] sm:$0xff] }
  0x1b   : > { %294 = vst.msk [vmem:[#allocation2 + $0x168] sm:$0xff] %vm247_vm0, %v2795_v0  ;;  %295 = vst.msk [vmem:[#allocation2 + $0x170] sm:$0xff] %vm247_vm0, %v2795_v0  ;;  %v241_v34 = vld [vmem:[%s2909_s21 + $0xd0] sm:$0xff]  ;;  %v240_v35 = vld [vmem:[%s2909_s21 + $0xc8] sm:$0xff] }
  0x1c   : > { %297 = vst.msk [vmem:[#allocation2 + $0x180] sm:$0xff] %vm247_vm0, %v2795_v0  ;;  %298 = vst.msk [vmem:[#allocation2 + $0x188] sm:$0xff] %vm247_vm0, %v2795_v0  ;;  %v243_v36 = vld [vmem:[%s2909_s21 + $0xe0] sm:$0xff]  ;;  %v242_v37 = vld [vmem:[%s2909_s21 + $0xd8] sm:$0xff] }
  0x1d   : > { %300 = vst.msk [vmem:[#allocation2 + $0x198] sm:$0xff] %vm247_vm0, %v2795_v0  ;;  %301 = vst.msk [vmem:[#allocation2 + $0x1a0] sm:$0xff] %vm247_vm0, %v2795_v0  ;;  %v244_v39 = vld [vmem:[%s2909_s21 + $0xe8] sm:$0xff]  ;;  %v336_v45 = vld [vmem:[#allocation2] sm:$0xff] }
  0x1e   : > { %251 = vst.msk [vmem:[#allocation2 + $0x10] sm:$0x3] %vm250_vm1, %v2795_v0  ;;  %254 = vst.msk [vmem:[#allocation2 + $0x28] sm:$0x3] %vm250_vm1, %v2795_v0  ;;  %v337_v46 = vld [vmem:[#allocation2 + $0x8] sm:$0xff] }
  0x1f   : > { %257 = vst.msk [vmem:[#allocation2 + $0x40] sm:$0x3] %vm250_vm1, %v2795_v0  ;;  %260 = vst.msk [vmem:[#allocation2 + $0x58] sm:$0x3] %vm250_vm1, %v2795_v0 }
  0x20   : > { %263 = vst.msk [vmem:[#allocation2 + $0x70] sm:$0x3] %vm250_vm1, %v2795_v0  ;;  %266 = vst.msk [vmem:[#allocation2 + $0x88] sm:$0x3] %vm250_vm1, %v2795_v0 }
  0x21   : > { %269 = vst.msk [vmem:[#allocation2 + $0xa0] sm:$0x3] %vm250_vm1, %v2795_v0  ;;  %272 = vst.msk [vmem:[#allocation2 + $0xb8] sm:$0x3] %vm250_vm1, %v2795_v0 }
  0x22   : > { %275 = vst.msk [vmem:[#allocation2 + $0xd0] sm:$0x3] %vm250_vm1, %v2795_v0  ;;  %278 = vst.msk [vmem:[#allocation2 + $0xe8] sm:$0x3] %vm250_vm1, %v2795_v0 }
  0x23   : > { %281 = vst.msk [vmem:[#allocation2 + $0x100] sm:$0x3] %vm250_vm1, %v2795_v0  ;;  %284 = vst.msk [vmem:[#allocation2 + $0x118] sm:$0x3] %vm250_vm1, %v2795_v0 }
  0x24   : > { %287 = vst.msk [vmem:[#allocation2 + $0x130] sm:$0x3] %vm250_vm1, %v2795_v0  ;;  %290 = vst.msk [vmem:[#allocation2 + $0x148] sm:$0x3] %vm250_vm1, %v2795_v0 }
  0x25   : > { %293 = vst.msk [vmem:[#allocation2 + $0x160] sm:$0x3] %vm250_vm1, %v2795_v0  ;;  %296 = vst.msk [vmem:[#allocation2 + $0x178] sm:$0x3] %vm250_vm1, %v2795_v0  ;;  %v401_v8 = vld [vmem:[#allocation2 + $0x9] sm:$0xff] }
  0x26   : > { %299 = vst.msk [vmem:[#allocation2 + $0x190] sm:$0x3] %vm250_vm1, %v2795_v0  ;;  %302 = vst.msk [vmem:[#allocation2 + $0x1a8] sm:$0x3] %vm250_vm1, %v2795_v0  ;;  %466 = vrot.lane.b32.xlu0 %v401_v8, %s2796_s22 }
  0x27   : > { %304 = vst.msk [vmem:[#allocation2 + $0x19] sm:$0xff] %vm247_vm0, %v215_v1  ;;  %306 = vst.msk [vmem:[#allocation2 + $0x31] sm:$0xff] %vm247_vm0, %v217_v2 }
  0x28   : > { %305 = vst.msk [vmem:[#allocation2 + $0x21] sm:$0xff] %vm247_vm0, %v216_v3  ;;  %308 = vst.msk [vmem:[#allocation2 + $0x49] sm:$0xff] %vm247_vm0, %v219_v4 }
  0x29   : > { %307 = vst.msk [vmem:[#allocation2 + $0x39] sm:$0xff] %vm247_vm0, %v218_v5  ;;  %310 = vst.msk [vmem:[#allocation2 + $0x61] sm:$0xff] %vm247_vm0, %v221_v6 }
  0x2a   : > { %309 = vst.msk [vmem:[#allocation2 + $0x51] sm:$0xff] %vm247_vm0, %v220_v9  ;;  %312 = vst.msk [vmem:[#allocation2 + $0x79] sm:$0xff] %vm247_vm0, %v223_v10 }
  0x2b   : > { %311 = vst.msk [vmem:[#allocation2 + $0x69] sm:$0xff] %vm247_vm0, %v222_v11  ;;  %314 = vst.msk [vmem:[#allocation2 + $0x91] sm:$0xff] %vm247_vm0, %v225_v12 }
  0x2c   : > { %313 = vst.msk [vmem:[#allocation2 + $0x81] sm:$0xff] %vm247_vm0, %v224_v13  ;;  %316 = vst.msk [vmem:[#allocation2 + $0xa9] sm:$0xff] %vm247_vm0, %v227_v14 }
  0x2d   : > { %315 = vst.msk [vmem:[#allocation2 + $0x99] sm:$0xff] %vm247_vm0, %v226_v15  ;;  %318 = vst.msk [vmem:[#allocation2 + $0xc1] sm:$0xff] %vm247_vm0, %v229_v16 }
  0x2e   : > { %317 = vst.msk [vmem:[#allocation2 + $0xb1] sm:$0xff] %vm247_vm0, %v228_v17  ;;  %320 = vst.msk [vmem:[#allocation2 + $0xd9] sm:$0xff] %vm247_vm0, %v231_v18  ;;  %v2954_v25 = vld [vmem:[#allocation2 + $0x19] sm:$0xff]  ;;  %v2956_v26 = vld [vmem:[#allocation2 + $0x31] sm:$0xff] }
  0x2f   : > { %319 = vst.msk [vmem:[#allocation2 + $0xc9] sm:$0xff] %vm247_vm0, %v230_v19  ;;  %322 = vst.msk [vmem:[#allocation2 + $0xf1] sm:$0xff] %vm247_vm0, %v233_v20  ;;  %468 = vrot.lane.b32.xlu1 %v2954_v25, %s2796_s22  ;;  %v2963_v27 = vld [vmem:[#allocation2 + $0x21] sm:$0xff]  ;;  %472 = vrot.lane.b32.xlu0 %v2956_v26, %s2796_s22  ;;  %v2971_v30 = vld [vmem:[#allocation2 + $0x49] sm:$0xff] }
  0x30   : > { %321 = vst.msk [vmem:[#allocation2 + $0xe1] sm:$0xff] %vm247_vm0, %v232_v21  ;;  %324 = vst.msk [vmem:[#allocation2 + $0x109] sm:$0xff] %vm247_vm0, %v235_v22  ;;  %v2975_v31 = vld [vmem:[#allocation2 + $0x39] sm:$0xff]  ;;  %v2979_v32 = vld [vmem:[#allocation2 + $0x61] sm:$0xff] }
  0x31   : > { %323 = vst.msk [vmem:[#allocation2 + $0xf9] sm:$0xff] %vm247_vm0, %v234_v23  ;;  %326 = vst.msk [vmem:[#allocation2 + $0x121] sm:$0xff] %vm247_vm0, %v237_v24  ;;  %v2991_v38 = vld [vmem:[#allocation2 + $0x51] sm:$0xff]  ;;  %v2999_v40 = vld [vmem:[#allocation2 + $0x79] sm:$0xff] }
  0x32   : > { %325 = vst.msk [vmem:[#allocation2 + $0x111] sm:$0xff] %vm247_vm0, %v236_v28  ;;  %328 = vst.msk [vmem:[#allocation2 + $0x139] sm:$0xff] %vm247_vm0, %v239_v29  ;;  %v3003_v41 = vld [vmem:[#allocation2 + $0x69] sm:$0xff]  ;;  %v3007_v42 = vld [vmem:[#allocation2 + $0x91] sm:$0xff] }
  0x33   : > { %470 = vrot.lane.b32.xlu1 %v2963_v27, %s2796_s22  ;;  %476 = vrot.lane.b32.xlu0 %v2971_v30, %s2796_s22  ;;  %327 = vst.msk [vmem:[#allocation2 + $0x129] sm:$0xff] %vm247_vm0, %v238_v33  ;;  %330 = vst.msk [vmem:[#allocation2 + $0x151] sm:$0xff] %vm247_vm0, %v241_v34  ;;  %v3011_v43 = vld [vmem:[#allocation2 + $0x81] sm:$0xff]  ;;  %v414_v44 = vld [vmem:[#allocation2 + $0xa9] sm:$0xff] }
  0x34   : > { %329 = vst.msk [vmem:[#allocation2 + $0x141] sm:$0xff] %vm247_vm0, %v240_v35  ;;  %332 = vst.msk [vmem:[#allocation2 + $0x169] sm:$0xff] %vm247_vm0, %v243_v36  ;;  %v3018_v47 = vld [vmem:[#allocation2 + $0x99] sm:$0xff]  ;;  %v3026_v49 = vld [vmem:[#allocation2 + $0x30] sm:$0xff] }
  0x35   : > { %331 = vst.msk [vmem:[#allocation2 + $0x159] sm:$0xff] %vm247_vm0, %v242_v37  ;;  %333 = vst.msk [vmem:[#allocation2 + $0x171] sm:$0xff] %vm247_vm0, %v244_v39  ;;  %v3021_v48 = vld [vmem:[#allocation2 + $0x18] sm:$0xff]  ;;  %v416_v50 = vld [vmem:[#allocation2 + $0xc1] sm:$0xff] }
  0x36   : > { %368 = vst.msk [vmem:[#allocation3] sm:$0xff] %vm247_vm0, %v336_v45  ;;  %369 = vst.msk [vmem:[#allocation3 + $0x8] sm:$0xff] %vm247_vm0, %v337_v46  ;;  %v3030_v51 = vld [vmem:[#allocation2 + $0x20] sm:$0xff]  ;;  %v3032_v52 = vld [vmem:[#allocation2 + $0x48] sm:$0xff] }
  0x37   : > { %474 = vrot.lane.b32.xlu1 %v2975_v31, %s2796_s22  ;;  %480 = vrot.lane.b32.xlu0 %v2979_v32, %s2796_s22  ;;  %370 = vst.msk [vmem:[#allocation3 + $0x10] sm:$0xff] %vm247_vm0, %v3021_v48  ;;  %372 = vst.msk [vmem:[#allocation3 + $0x20] sm:$0xff] %vm247_vm0, %v3026_v49  ;;  %v415_v53 = vld [vmem:[#allocation2 + $0xb1] sm:$0xff]  ;;  %v3042_v55 = vld [vmem:[#allocation2 + $0x60] sm:$0xff] }
  0x38   : > { %371 = vst.msk [vmem:[#allocation3 + $0x18] sm:$0xff] %vm247_vm0, %v3030_v51  ;;  %374 = vst.msk [vmem:[#allocation3 + $0x30] sm:$0xff] %vm247_vm0, %v3032_v52  ;;  %v3040_v54 = vld [vmem:[#allocation2 + $0x38] sm:$0xff]  ;;  %v3048_v57 = vld [vmem:[#allocation2 + $0x50] sm:$0xff] }
  0x39   : > { %v418_v56 = vld [vmem:[#allocation2 + $0xd9] sm:$0xff]  ;;  %373 = vst.msk [vmem:[#allocation3 + $0x28] sm:$0xff] %vm247_vm0, %v3040_v54  ;;  %376 = vst.msk [vmem:[#allocation3 + $0x40] sm:$0xff] %vm247_vm0, %v3042_v55  ;;  %v3052_v59 = vld [vmem:[#allocation2 + $0x68] sm:$0xff] }
  0x3a   : > { %v3050_v58 = vld [vmem:[#allocation2 + $0x78] sm:$0xff]  ;;  %375 = vst.msk [vmem:[#allocation3 + $0x38] sm:$0xff] %vm247_vm0, %v3048_v57  ;;  %377 = vst.msk [vmem:[#allocation3 + $0x48] sm:$0xff] %vm247_vm0, %v3052_v59  ;;  %v3061_v60 = vld [vmem:[#allocation2 + $0x90] sm:$0xff] }
  0x3b   : > { %478 = vrot.lane.b32.xlu1 %v2991_v38, %s2796_s22  ;;  %484 = vrot.lane.b32.xlu0 %v2999_v40, %s2796_s22  ;;  %378 = vst.msk [vmem:[#allocation3 + $0x50] sm:$0xff] %vm247_vm0, %v3050_v58  ;;  %v3063_v61 = vld [vmem:[#allocation2 + $0x80] sm:$0xff]  ;;  %v3065_v62 = vld [vmem:[#allocation2 + $0xa8] sm:$0xff]  ;;  %380 = vst.msk [vmem:[#allocation3 + $0x60] sm:$0xff] %vm247_vm0, %v3061_v60 }
  0x3c   : > { %v417_v63 = vld [vmem:[#allocation2 + $0xc9] sm:$0xff]  ;;  %379 = vst.msk [vmem:[#allocation3 + $0x58] sm:$0xff] %vm247_vm0, %v3063_v61  ;;  %382 = vst.msk [vmem:[#allocation3 + $0x70] sm:$0xff] %vm247_vm0, %v3065_v62  ;;  %v3073_v0 = vld [vmem:[#allocation2 + $0x98] sm:$0xff] }
  0x3d   : > { %v3075_v1 = vld [vmem:[#allocation2 + $0xc0] sm:$0xff]  ;;  %v3077_v2 = vld [vmem:[#allocation2 + $0xb0] sm:$0xff]  ;;  %381 = vst.msk [vmem:[#allocation3 + $0x68] sm:$0xff] %vm247_vm0, %v3073_v0  ;;  %v3086_v3 = vld [vmem:[#allocation2 + $0xd8] sm:$0xff] }
  0x3e   : > { %384 = vst.msk [vmem:[#allocation3 + $0x80] sm:$0xff] %vm247_vm0, %v3075_v1  ;;  %383 = vst.msk [vmem:[#allocation3 + $0x78] sm:$0xff] %vm247_vm0, %v3077_v2  ;;  %v3088_v4 = vld [vmem:[#allocation2 + $0xc8] sm:$0xff]  ;;  %v3090_v5 = vld [vmem:[#allocation2 + $0xf0] sm:$0xff] }
  0x3f   : > { %482 = vrot.lane.b32.xlu1 %v3003_v41, %s2796_s22  ;;  %488 = vrot.lane.b32.xlu0 %v3007_v42, %s2796_s22  ;;  %386 = vst.msk [vmem:[#allocation3 + $0x90] sm:$0xff] %vm247_vm0, %v3086_v3  ;;  %385 = vst.msk [vmem:[#allocation3 + $0x88] sm:$0xff] %vm247_vm0, %v3088_v4  ;;  %v3098_v6 = vld [vmem:[#allocation2 + $0xe0] sm:$0xff]  ;;  %v3100_v7 = vld [vmem:[#allocation2 + $0x108] sm:$0xff] }
  0x40   : > { %388 = vst.msk [vmem:[#allocation3 + $0xa0] sm:$0xff] %vm247_vm0, %v3090_v5  ;;  %v3102_v8 = vld [vmem:[#allocation2 + $0xf8] sm:$0xff]  ;;  %387 = vst.msk [vmem:[#allocation3 + $0x98] sm:$0xff] %vm247_vm0, %v3098_v6  ;;  %v3111_v9 = vld [vmem:[#allocation2 + $0x120] sm:$0xff] }
  0x41   : > { %390 = vst.msk [vmem:[#allocation3 + $0xb0] sm:$0xff] %vm247_vm0, %v3100_v7  ;;  %389 = vst.msk [vmem:[#allocation3 + $0xa8] sm:$0xff] %vm247_vm0, %v3102_v8  ;;  %v3113_v10 = vld [vmem:[#allocation2 + $0x110] sm:$0xff]  ;;  %v362_v12 = vld [vmem:[#allocation2 + $0x138] sm:$0xff] }
  0x42   : > { %v420_v11 = vld [vmem:[#allocation2 + $0xf1] sm:$0xff]  ;;  %392 = vst.msk [vmem:[#allocation3 + $0xc0] sm:$0xff] %vm247_vm0, %v3111_v9  ;;  %391 = vst.msk [vmem:[#allocation3 + $0xb8] sm:$0xff] %vm247_vm0, %v3113_v10  ;;  %v419_v13 = vld [vmem:[#allocation2 + $0xe1] sm:$0xff] }
  0x43   : > { %486 = vrot.lane.b32.xlu1 %v3011_v43, %s2796_s22  ;;  %492 = vrot.lane.b32.xlu0 %v414_v44, %s2796_s22  ;;  %394 = vst.msk [vmem:[#allocation3 + $0xd0] sm:$0xff] %vm247_vm0, %v362_v12  ;;  %v3121_v14 = vld [vmem:[#allocation2 + $0x128] sm:$0xff]  ;;  %v364_v16 = vld [vmem:[#allocation2 + $0x150] sm:$0xff]  ;;  %v421_v17 = vld [vmem:[#allocation2 + $0xf9] sm:$0xff] }
  0x44   : > { %393 = vst.msk [vmem:[#allocation3 + $0xc8] sm:$0xff] %vm247_vm0, %v3121_v14  ;;  %v422_v15 = vld [vmem:[#allocation2 + $0x109] sm:$0xff]  ;;  %396 = vst.msk [vmem:[#allocation3 + $0xe0] sm:$0xff] %vm247_vm0, %v364_v16  ;;  %v363_v18 = vld [vmem:[#allocation2 + $0x140] sm:$0xff] }
  0x45   : > { %395 = vst.msk [vmem:[#allocation3 + $0xd8] sm:$0xff] %vm247_vm0, %v363_v18  ;;  %v424_v19 = vld [vmem:[#allocation2 + $0x121] sm:$0xff]  ;;  %v423_v21 = vld [vmem:[#allocation2 + $0x111] sm:$0xff]  ;;  %v426_v23 = vld [vmem:[#allocation2 + $0x139] sm:$0xff] }
  0x46   : > { %v366_v20 = vld [vmem:[#allocation2 + $0x168] sm:$0xff]  ;;  %v365_v22 = vld [vmem:[#allocation2 + $0x158] sm:$0xff]  ;;  %v367_v28 = vld [vmem:[#allocation2 + $0x170] sm:$0xff] }
  0x47   : > { %490 = vrot.lane.b32.xlu1 %v3018_v47, %s2796_s22  ;;  %496 = vrot.lane.b32.xlu0 %v416_v50, %s2796_s22  ;;  %398 = vst.msk [vmem:[#allocation3 + $0xf0] sm:$0xff] %vm247_vm0, %v366_v20  ;;  %397 = vst.msk [vmem:[#allocation3 + $0xe8] sm:$0xff] %vm247_vm0, %v365_v22  ;;  %v425_v24 = vld [vmem:[#allocation2 + $0x129] sm:$0xff]  ;;  %v428_v29 = vld [vmem:[#allocation2 + $0x151] sm:$0xff] }
  0x48   : > { %399 = vst.msk [vmem:[#allocation3 + $0xf8] sm:$0xff] %vm247_vm0, %v367_v28  ;;  %v427_v33 = vld [vmem:[#allocation2 + $0x141] sm:$0xff]  ;;  %v430_v34 = vld [vmem:[#allocation2 + $0x169] sm:$0xff]  ;;  %v429_v35 = vld [vmem:[#allocation2 + $0x159] sm:$0xff] }
  0x49   : > { %v593_v36 = vld [vmem:[#allocation2 + $0x2] sm:$0xff]  ;;  %v431_v37 = vld [vmem:[#allocation2 + $0x171] sm:$0xff]  ;;  %v3143_v39 = vld [vmem:[#allocation2 + $0x1a] sm:$0xff] }
  0x4a   : > { %v594_v44 = vld [vmem:[#allocation2 + $0xa] sm:$0xff]  ;;  %v3148_v45 = vld [vmem:[#allocation2 + $0x32] sm:$0xff]  ;;  %v3151_v46 = vld [vmem:[#allocation2 + $0x22] sm:$0xff] }
  0x4b   : > { %494 = vrot.lane.b32.xlu1 %v415_v53, %s2796_s22  ;;  %500 = vrot.lane.b32.xlu0 %v418_v56, %s2796_s22  ;;  %v3155_v50 = vld [vmem:[#allocation2 + $0x4a] sm:$0xff]  ;;  %v3159_v53 = vld [vmem:[#allocation2 + $0x3a] sm:$0xff]  ;;  %v3163_v56 = vld [vmem:[#allocation2 + $0x62] sm:$0xff] }
  0x4c   : > { %v3175_v12 = vld [vmem:[#allocation2 + $0x6a] sm:$0xff]  ;;  %v3195_v18 = vld [vmem:[#allocation2 + $0xc2] sm:$0xff]  ;;  %v611_v20 = vld [vmem:[#allocation2 + $0xda] sm:$0xff] }
  0x4d   : > { %v3187_v16 = vld [vmem:[#allocation2 + $0xaa] sm:$0xff]  ;;  %v613_v22 = vld [vmem:[#allocation2 + $0xf2] sm:$0xff]  ;;  %v614_v28 = vld [vmem:[#allocation2 + $0xfa] sm:$0xff] }
  0x4f   : > { %498 = vrot.lane.b32.xlu1 %v417_v63, %s2796_s22  ;;  %504 = vrot.lane.b32.xlu0 %v420_v11, %s2796_s22  ;;  %v3167_v63 = vld [vmem:[#allocation2 + $0x52] sm:$0xff]  ;;  %v3171_v11 = vld [vmem:[#allocation2 + $0x7a] sm:$0xff] }
  0x53   : > { %502 = vrot.lane.b32.xlu1 %v419_v13, %s2796_s22  ;;  %508 = vrot.lane.b32.xlu0 %v422_v15, %s2796_s22  ;;  %v3179_v13 = vld [vmem:[#allocation2 + $0x92] sm:$0xff]  ;;  %v3183_v15 = vld [vmem:[#allocation2 + $0x82] sm:$0xff] }
  0x57   : > { %506 = vrot.lane.b32.xlu1 %v421_v17, %s2796_s22  ;;  %512 = vrot.lane.b32.xlu0 %v424_v19, %s2796_s22  ;;  %v3191_v17 = vld [vmem:[#allocation2 + $0x9a] sm:$0xff]  ;;  %v3199_v19 = vld [vmem:[#allocation2 + $0xb2] sm:$0xff] }
  0x5b   : > { %510 = vrot.lane.b32.xlu1 %v423_v21, %s2796_s22  ;;  %516 = vrot.lane.b32.xlu0 %v426_v23, %s2796_s22  ;;  %v3205_v21 = vld [vmem:[#allocation2 + $0xca] sm:$0xff]  ;;  %v612_v23 = vld [vmem:[#allocation2 + $0xe2] sm:$0xff] }
  0x5f   : > { %514 = vrot.lane.b32.xlu1 %v425_v24, %s2796_s22  ;;  %520 = vrot.lane.b32.xlu0 %v428_v29, %s2796_s22  ;;  %v615_v24 = vld [vmem:[#allocation2 + $0x10a] sm:$0xff]  ;;  %v617_v29 = vld [vmem:[#allocation2 + $0x122] sm:$0xff] }
  0x63   : > { %518 = vrot.lane.b32.xlu1 %v427_v33, %s2796_s22  ;;  %524 = vrot.lane.b32.xlu0 %v430_v34, %s2796_s22  ;;  %v616_v33 = vld [vmem:[#allocation2 + $0x112] sm:$0xff]  ;;  %v619_v34 = vld [vmem:[#allocation2 + $0x13a] sm:$0xff] }
  0x67   : > { %522 = vrot.lane.b32.xlu1 %v429_v35, %s2796_s22  ;;  %657 = vrot.lane.b32.xlu0 %v593_v36, %s2797_s23  ;;  %v618_v36 = vld [vmem:[#allocation2 + $0x12a] sm:$0xff] }
  0x6b   : > { %526 = vrot.lane.b32.xlu1 %v431_v37, %s2796_s22  ;;  %661 = vrot.lane.b32.xlu0 %v3143_v39, %s2797_s23  ;;  %v621_v37 = vld [vmem:[#allocation2 + $0x152] sm:$0xff] }
  0x6f   : > { %659 = vrot.lane.b32.xlu1 %v594_v44, %s2797_s23  ;;  %665 = vrot.lane.b32.xlu0 %v3148_v45, %s2797_s23 }
  0x73   : > { %663 = vrot.lane.b32.xlu1 %v3151_v46, %s2797_s23  ;;  %669 = vrot.lane.b32.xlu0 %v3155_v50, %s2797_s23 }
  0x77   : > { %667 = vrot.lane.b32.xlu1 %v3159_v53, %s2797_s23  ;;  %673 = vrot.lane.b32.xlu0 %v3163_v56, %s2797_s23 }
  0x7b   : > { %671 = vrot.lane.b32.xlu1 %v3167_v63, %s2797_s23  ;;  %677 = vrot.lane.b32.xlu0 %v3171_v11, %s2797_s23 }
  0x7f   : > { %675 = vrot.lane.b32.xlu1 %v3175_v12, %s2797_s23  ;;  %681 = vrot.lane.b32.xlu0 %v3179_v13, %s2797_s23 }
  0x83   : > { %679 = vrot.lane.b32.xlu1 %v3183_v15, %s2797_s23  ;;  %685 = vrot.lane.b32.xlu0 %v3187_v16, %s2797_s23 }
  0x86   : > { %v465_v35 = vpop.permute.xlu0 %464 }
  0x87   : > { %683 = vrot.lane.b32.xlu1 %v3191_v17, %s2797_s23  ;;  %689 = vrot.lane.b32.xlu0 %v3195_v18, %s2797_s23  ;;  %561 = vst.msk [vmem:[#allocation3] sm:$0xff] %vm560_vm2, %v465_v35 }
  0x8b   : > { %687 = vrot.lane.b32.xlu1 %v3199_v19, %s2797_s23  ;;  %693 = vrot.lane.b32.xlu0 %v611_v20, %s2797_s23  ;;  %v620_v20 = vld [vmem:[#allocation2 + $0x142] sm:$0xff] }
  0x8f   : > { %691 = vrot.lane.b32.xlu1 %v3205_v21, %s2797_s23  ;;  %697 = vrot.lane.b32.xlu0 %v613_v22, %s2797_s23 }
  0x93   : > { %695 = vrot.lane.b32.xlu1 %v612_v23, %s2797_s23  ;;  %701 = vrot.lane.b32.xlu0 %v615_v24, %s2797_s23  ;;  %v623_v23 = vld [vmem:[#allocation2 + $0x16a] sm:$0xff] }
  0x97   : > { %699 = vrot.lane.b32.xlu1 %v614_v28, %s2797_s23  ;;  %705 = vrot.lane.b32.xlu0 %v617_v29, %s2797_s23  ;;  %v622_v28 = vld [vmem:[#allocation2 + $0x15a] sm:$0xff] }
  0x98   : > { %v467_v44 = vpop.permute.xlu0 %466 }
  0x99   : > { %562 = vst.msk [vmem:[#allocation3 + $0x8] sm:$0xff] %vm560_vm2, %v467_v44 }
  0x9b   : > { %703 = vrot.lane.b32.xlu1 %v616_v33, %s2797_s23  ;;  %709 = vrot.lane.b32.xlu0 %v619_v34, %s2797_s23  ;;  %v624_v34 = vld [vmem:[#allocation2 + $0x172] sm:$0xff] }
  0x9f   : > { %707 = vrot.lane.b32.xlu1 %v618_v36, %s2797_s23  ;;  %713 = vrot.lane.b32.xlu0 %v621_v37, %s2797_s23 }
  0xa1   : > { %v469_v22 = vpop.permute.xlu1 %468  ;;  %v473_v24 = vpop.permute.xlu0 %472 }
  0xa2   : > { %563 = vst.msk [vmem:[#allocation3 + $0x10] sm:$0xff] %vm560_vm2, %v469_v22  ;;  %565 = vst.msk [vmem:[#allocation3 + $0x20] sm:$0xff] %vm560_vm2, %v473_v24 }
  0xa3   : > { %711 = vrot.lane.b32.xlu1 %v620_v20, %s2797_s23  ;;  %717 = vrot.lane.b32.xlu0 %v623_v23, %s2797_s23 }
  0xa5   : > { %v471_v29 = vpop.permute.xlu1 %470  ;;  %v477_v33 = vpop.permute.xlu0 %476 }
  0xa6   : > { %564 = vst.msk [vmem:[#allocation3 + $0x18] sm:$0xff] %vm560_vm2, %v471_v29  ;;  %567 = vst.msk [vmem:[#allocation3 + $0x30] sm:$0xff] %vm560_vm2, %v477_v33 }
  0xa7   : > { %715 = vrot.lane.b32.xlu1 %v622_v28, %s2797_s23  ;;  %850 = vrot.lane.b32.xlu0 %v3021_v48, %s2798_s24 }
  0xa9   : > { %v475_v35 = vpop.permute.xlu1 %474  ;;  %v481_v36 = vpop.permute.xlu0 %480 }
  0xaa   : > { %566 = vst.msk [vmem:[#allocation3 + $0x28] sm:$0xff] %vm560_vm2, %v475_v35  ;;  %569 = vst.msk [vmem:[#allocation3 + $0x40] sm:$0xff] %vm560_vm2, %v481_v36 }
  0xab   : > { %719 = vrot.lane.b32.xlu1 %v624_v34, %s2797_s23  ;;  %854 = vrot.lane.b32.xlu0 %v3026_v49, %s2798_s24 }
  0xad   : > { %v479_v37 = vpop.permute.xlu1 %478  ;;  %v485_v44 = vpop.permute.xlu0 %484 }
  0xae   : > { %568 = vst.msk [vmem:[#allocation3 + $0x38] sm:$0xff] %vm560_vm2, %v479_v37  ;;  %571 = vst.msk [vmem:[#allocation3 + $0x50] sm:$0xff] %vm560_vm2, %v485_v44 }
  0xaf   : > { %852 = vrot.lane.b32.xlu1 %v3030_v51, %s2798_s24  ;;  %858 = vrot.lane.b32.xlu0 %v3032_v52, %s2798_s24 }
  0xb1   : > { %v483_v48 = vpop.permute.xlu1 %482  ;;  %v489_v20 = vpop.permute.xlu0 %488 }
  0xb2   : > { %570 = vst.msk [vmem:[#allocation3 + $0x48] sm:$0xff] %vm560_vm2, %v483_v48  ;;  %573 = vst.msk [vmem:[#allocation3 + $0x60] sm:$0xff] %vm560_vm2, %v489_v20 }
  0xb3   : > { %856 = vrot.lane.b32.xlu1 %v3040_v54, %s2798_s24  ;;  %862 = vrot.lane.b32.xlu0 %v3042_v55, %s2798_s24 }
  0xb5   : > { %v487_v22 = vpop.permute.xlu1 %486  ;;  %v493_v51 = vpop.permute.xlu0 %492 }
  0xb6   : > { %572 = vst.msk [vmem:[#allocation3 + $0x58] sm:$0xff] %vm560_vm2, %v487_v22  ;;  %575 = vst.msk [vmem:[#allocation3 + $0x70] sm:$0xff] %vm560_vm2, %v493_v51 }
  0xb7   : > { %860 = vrot.lane.b32.xlu1 %v3048_v57, %s2798_s24  ;;  %866 = vrot.lane.b32.xlu0 %v3050_v58, %s2798_s24 }
  0xb9   : > { %v491_v23 = vpop.permute.xlu1 %490  ;;  %v497_v24 = vpop.permute.xlu0 %496 }
  0xba   : > { %574 = vst.msk [vmem:[#allocation3 + $0x68] sm:$0xff] %vm560_vm2, %v491_v23  ;;  %577 = vst.msk [vmem:[#allocation3 + $0x80] sm:$0xff] %vm560_vm2, %v497_v24 }
  0xbb   : > { %864 = vrot.lane.b32.xlu1 %v3052_v59, %s2798_s24  ;;  %870 = vrot.lane.b32.xlu0 %v3061_v60, %s2798_s24 }
  0xbd   : > { %v495_v28 = vpop.permute.xlu1 %494  ;;  %v501_v29 = vpop.permute.xlu0 %500 }
  0xbe   : > { %576 = vst.msk [vmem:[#allocation3 + $0x78] sm:$0xff] %vm560_vm2, %v495_v28  ;;  %579 = vst.msk [vmem:[#allocation3 + $0x90] sm:$0xff] %vm560_vm2, %v501_v29  ;;  %v1979_v29 = vld [vmem:[%s3965_s1 + $0x10] sm:$0xff] }
  0xbf   : > { %868 = vrot.lane.b32.xlu1 %v3063_v61, %s2798_s24  ;;  %874 = vrot.lane.b32.xlu0 %v3065_v62, %s2798_s24 }
  0xc1   : > { %v499_v33 = vpop.permute.xlu1 %498  ;;  %v505_v34 = vpop.permute.xlu0 %504 }
  0xc2   : > { %578 = vst.msk [vmem:[#allocation3 + $0x88] sm:$0xff] %vm560_vm2, %v499_v33  ;;  %581 = vst.msk [vmem:[#allocation3 + $0xa0] sm:$0xff] %vm560_vm2, %v505_v34 }
  0xc3   : > { %872 = vrot.lane.b32.xlu1 %v3073_v0, %s2798_s24  ;;  %878 = vrot.lane.b32.xlu0 %v3075_v1, %s2798_s24 }
  0xc5   : > { %v503_v35 = vpop.permute.xlu1 %502  ;;  %v509_v36 = vpop.permute.xlu0 %508 }
  0xc6   : > { %580 = vst.msk [vmem:[#allocation3 + $0x98] sm:$0xff] %vm560_vm2, %v503_v35  ;;  %583 = vst.msk [vmem:[#allocation3 + $0xb0] sm:$0xff] %vm560_vm2, %v509_v36  ;;  %v1977_v35 = vld [vmem:[%s3965_s1] sm:$0xff] }
  0xc7   : > { %876 = vrot.lane.b32.xlu1 %v3077_v2, %s2798_s24  ;;  %882 = vrot.lane.b32.xlu0 %v3086_v3, %s2798_s24 }
  0xc9   : > { %v507_v37 = vpop.permute.xlu1 %506  ;;  %v513_v44 = vpop.permute.xlu0 %512 }
  0xca   : > { %582 = vst.msk [vmem:[#allocation3 + $0xa8] sm:$0xff] %vm560_vm2, %v507_v37  ;;  %585 = vst.msk [vmem:[#allocation3 + $0xc0] sm:$0xff] %vm560_vm2, %v513_v44 }
  0xcb   : > { %880 = vrot.lane.b32.xlu1 %v3088_v4, %s2798_s24  ;;  %886 = vrot.lane.b32.xlu0 %v3090_v5, %s2798_s24 }
  0xcd   : > { %v511_v48 = vpop.permute.xlu1 %510  ;;  %v517_v20 = vpop.permute.xlu0 %516 }
  0xce   : > { %584 = vst.msk [vmem:[#allocation3 + $0xb8] sm:$0xff] %vm560_vm2, %v511_v48  ;;  %587 = vst.msk [vmem:[#allocation3 + $0xd0] sm:$0xff] %vm560_vm2, %v517_v20 }
  0xcf   : > { %884 = vrot.lane.b32.xlu1 %v3098_v6, %s2798_s24  ;;  %1043 = vrot.lane.b32.xlu0 %v2954_v25, %s2799_s25 }
  0xd1   : > { %v515_v22 = vpop.permute.xlu1 %514  ;;  %v521_v51 = vpop.permute.xlu0 %520 }
  0xd2   : > { %586 = vst.msk [vmem:[#allocation3 + $0xc8] sm:$0xff] %vm560_vm2, %v515_v22  ;;  %589 = vst.msk [vmem:[#allocation3 + $0xe0] sm:$0xff] %vm560_vm2, %v521_v51 }
  0xd3   : > { %888 = vrot.lane.b32.xlu1 %v3102_v8, %s2798_s24  ;;  %1236 = vrot.lane.b32.xlu0 %v3143_v39, %s2800_s26  ;;  %v1980_v39 = vld [vmem:[%s3965_s1 + $0x18] sm:$0xff] }
  0xd5   : > { %v519_v23 = vpop.permute.xlu1 %518  ;;  %v525_v24 = vpop.permute.xlu0 %524 }
  0xd6   : > { %588 = vst.msk [vmem:[#allocation3 + $0xd8] sm:$0xff] %vm560_vm2, %v519_v23  ;;  %591 = vst.msk [vmem:[#allocation3 + $0xf0] sm:$0xff] %vm560_vm2, %v525_v24 }
  0xd7   : > { %1045 = vrot.lane.b32.xlu1 %v2963_v27, %s2799_s25  ;;  %1430 = vrot.lane.b32.xlu0 %v3026_v49, %s2801_s27  ;;  %v1981_v27 = vld [vmem:[%s3965_s1 + $0x20] sm:$0xf] }
  0xd8   : > { %2702 = vmatprep.subr.msk.mxu0 %vm2079_vm4, %v1981_v27  ;;  %2760 = vmatprep.subr.msk.mxu1 %vm2079_vm4, %v1981_v27 }
  0xd9   : > { %v523_v25 = vpop.permute.xlu1 %522  ;;  %v658_v28 = vpop.permute.xlu0 %657  ;;  %2703 = vmatpush3.msk.msra.mxu0 %vm2079_vm4, %v1981_v27  ;;  %2765 = vmatpush3.msk.msra.mxu1 %vm2079_vm4, %v1981_v27 }
  0xda   : > { %590 = vst.msk [vmem:[#allocation3 + $0xe8] sm:$0xff] %vm560_vm2, %v523_v25  ;;  %2704 = vmatprep.subr.mxu0 %v1980_v39  ;;  %2761 = vmatprep.subr.mxu1 %v1980_v39 }
  0xdb   : > { %1238 = vrot.lane.b32.xlu1 %v3151_v46, %s2800_s26  ;;  %754 = vst.msk [vmem:[#allocation3] sm:$0xff] %vm753_vm3, %v658_v28  ;;  %1623 = vrot.lane.b32.xlu0 %v2956_v26, %s2802_s30 }
  0xdc   : > { %2705 = vmatpush3.msra.mxu0 %v1980_v39  ;;  %2766 = vmatpush3.msra.mxu1 %v1980_v39 }
  0xdd   : > { %v527_v49 = vpop.permute.xlu1 %526  ;;  %v662_v46 = vpop.permute.xlu0 %661  ;;  %2706 = vmatprep.subr.mxu0 %v1979_v29  ;;  %2762 = vmatprep.subr.mxu1 %v1979_v29 }
  0xde   : > { %592 = vst.msk [vmem:[#allocation3 + $0xf8] sm:$0xff] %vm560_vm2, %v527_v49  ;;  %2707 = vmatpush3.msra.mxu0 %v1979_v29  ;;  %2767 = vmatpush3.msra.mxu1 %v1979_v29 }
  0xdf   : > { %1432 = vrot.lane.b32.xlu1 %v3040_v54, %s2801_s27  ;;  %756 = vst.msk [vmem:[#allocation3 + $0x10] sm:$0xff] %vm753_vm3, %v662_v46  ;;  %1625 = vrot.lane.b32.xlu0 %v2975_v31, %s2802_s30  ;;  %v1978_v54 = vld [vmem:[%s3965_s1 + $0x8] sm:$0xff] }
  0xe0   : > { %2708 = vmatprep.subr.mxu0 %v1978_v54  ;;  %2763 = vmatprep.subr.mxu1 %v1978_v54 }
  0xe1   : > { %v660_v33 = vpop.permute.xlu1 %659  ;;  %v666_v34 = vpop.permute.xlu0 %665  ;;  %2709 = vmatpush3.msra.mxu0 %v1978_v54  ;;  %2768 = vmatpush3.msra.mxu1 %v1978_v54 }
  0xe2   : > { %755 = vst.msk [vmem:[#allocation3 + $0x8] sm:$0xff] %vm753_vm3, %v660_v33  ;;  %758 = vst.msk [vmem:[#allocation3 + $0x20] sm:$0xff] %vm753_vm3, %v666_v34  ;;  %2710 = vmatprep.subr.mxu0 %v1977_v35  ;;  %2764 = vmatprep.subr.mxu1 %v1977_v35 }
  0xe3   : > { %1047 = vrot.lane.b32.xlu1 %v2956_v26, %s2799_s25  ;;  %1049 = vrot.lane.b32.xlu0 %v2975_v31, %s2799_s25 }
  0xe4   : > { %2711 = vmatpush3.msra.mxu0 %v1977_v35  ;;  %2769 = vmatpush3.msra.mxu1 %v1977_v35  ;;  %v1569_v35 = vld [vmem:[#allocation2 + $0xa9] sm:$0xff] }
  0xe5   : > { %v664_v36 = vpop.permute.xlu1 %663  ;;  %v670_v37 = vpop.permute.xlu0 %669 }
  0xe6   : > { %757 = vst.msk [vmem:[#allocation3 + $0x18] sm:$0xff] %vm753_vm3, %v664_v36  ;;  %760 = vst.msk [vmem:[#allocation3 + $0x30] sm:$0xff] %vm753_vm3, %v670_v37 }
  0xe7   : > { %1816 = vrot.lane.b32.xlu1 %v3148_v45, %s2803_s13  ;;  %1818 = vrot.lane.b32.xlu0 %v3159_v53, %s2803_s13 }
  0xe9   : > { %v668_v26 = vpop.permute.xlu1 %667  ;;  %v674_v31 = vpop.permute.xlu0 %673 }
  0xea   : > { %759 = vst.msk [vmem:[#allocation3 + $0x28] sm:$0xff] %vm753_vm3, %v668_v26  ;;  %762 = vst.msk [vmem:[#allocation3 + $0x40] sm:$0xff] %vm753_vm3, %v674_v31 }
  0xeb   : > { %1240 = vrot.lane.b32.xlu1 %v3148_v45, %s2800_s26  ;;  %1434 = vrot.lane.b32.xlu0 %v3032_v52, %s2801_s27 }
  0xed   : > { %v672_v44 = vpop.permute.xlu1 %671  ;;  %v678_v48 = vpop.permute.xlu0 %677 }
  0xee   : > { %761 = vst.msk [vmem:[#allocation3 + $0x38] sm:$0xff] %vm753_vm3, %v672_v44  ;;  %764 = vst.msk [vmem:[#allocation3 + $0x50] sm:$0xff] %vm753_vm3, %v678_v48 }
  0xef   : > { %1242 = vrot.lane.b32.xlu1 %v3159_v53, %s2800_s26  ;;  %1627 = vrot.lane.b32.xlu0 %v2971_v30, %s2802_s30 }
  0xf1   : > { %v676_v20 = vpop.permute.xlu1 %675  ;;  %v682_v45 = vpop.permute.xlu0 %681 }
  0xf2   : > { %763 = vst.msk [vmem:[#allocation3 + $0x48] sm:$0xff] %vm753_vm3, %v676_v20  ;;  %766 = vst.msk [vmem:[#allocation3 + $0x60] sm:$0xff] %vm753_vm3, %v682_v45  ;;  %v1571_v45 = vld [vmem:[#allocation2 + $0xc1] sm:$0xff] }
  0xf3   : > { %1436 = vrot.lane.b32.xlu1 %v3048_v57, %s2801_s27  ;;  %1629 = vrot.lane.b32.xlu0 %v2991_v38, %s2802_s30 }
  0xf5   : > { %v680_v52 = vpop.permute.xlu1 %679  ;;  %v686_v53 = vpop.permute.xlu0 %685 }
  0xf6   : > { %765 = vst.msk [vmem:[#allocation3 + $0x58] sm:$0xff] %vm753_vm3, %v680_v52  ;;  %768 = vst.msk [vmem:[#allocation3 + $0x70] sm:$0xff] %vm753_vm3, %v686_v53 }
  0xf7   : > { %1051 = vrot.lane.b32.xlu1 %v2971_v30, %s2799_s25  ;;  %1053 = vrot.lane.b32.xlu0 %v2991_v38, %s2799_s25 }
  0xf9   : > { %v684_v22 = vpop.permute.xlu1 %683  ;;  %v690_v57 = vpop.permute.xlu0 %689 }
  0xfa   : > { %767 = vst.msk [vmem:[#allocation3 + $0x68] sm:$0xff] %vm753_vm3, %v684_v22  ;;  %770 = vst.msk [vmem:[#allocation3 + $0x80] sm:$0xff] %vm753_vm3, %v690_v57 }
  0xfb   : > { %1820 = vrot.lane.b32.xlu1 %v3155_v50, %s2803_s13  ;;  %1822 = vrot.lane.b32.xlu0 %v3167_v63, %s2803_s13 }
  0xfd   : > { %v688_v51 = vpop.permute.xlu1 %687  ;;  %v694_v30 = vpop.permute.xlu0 %693 }
  0xfe   : > { %769 = vst.msk [vmem:[#allocation3 + $0x78] sm:$0xff] %vm753_vm3, %v688_v51  ;;  %772 = vst.msk [vmem:[#allocation3 + $0x90] sm:$0xff] %vm753_vm3, %v694_v30 }
  0xff   : > { %1244 = vrot.lane.b32.xlu1 %v3155_v50, %s2800_s26  ;;  %1438 = vrot.lane.b32.xlu0 %v3042_v55, %s2801_s27 }
 0x101   : > { %v692_v38 = vpop.permute.xlu1 %691  ;;  %v698_v23 = vpop.permute.xlu0 %697 }
 0x102   : > { %771 = vst.msk [vmem:[#allocation3 + $0x88] sm:$0xff] %vm753_vm3, %v692_v38  ;;  %774 = vst.msk [vmem:[#allocation3 + $0xa0] sm:$0xff] %vm753_vm3, %v698_v23 }
 0x103   : > { %1246 = vrot.lane.b32.xlu1 %v3167_v63, %s2800_s26  ;;  %1631 = vrot.lane.b32.xlu0 %v2979_v32, %s2802_s30 }
 0x105   : > { %v696_v24 = vpop.permute.xlu1 %695  ;;  %v702_v50 = vpop.permute.xlu0 %701 }
 0x106   : > { %773 = vst.msk [vmem:[#allocation3 + $0x98] sm:$0xff] %vm753_vm3, %v696_v24  ;;  %776 = vst.msk [vmem:[#allocation3 + $0xb0] sm:$0xff] %vm753_vm3, %v702_v50  ;;  %v1187_v24 = vld [vmem:[#allocation2 + $0xca] sm:$0xff]  ;;  %v1573_v50 = vld [vmem:[#allocation2 + $0xd9] sm:$0xff] }
 0x107   : > { %1440 = vrot.lane.b32.xlu1 %v3052_v59, %s2801_s27  ;;  %1633 = vrot.lane.b32.xlu0 %v3003_v41, %s2802_s30 }
 0x109   : > { %v700_v55 = vpop.permute.xlu1 %699  ;;  %v706_v63 = vpop.permute.xlu0 %705 }
 0x10a   : > { %775 = vst.msk [vmem:[#allocation3 + $0xa8] sm:$0xff] %vm753_vm3, %v700_v55  ;;  %778 = vst.msk [vmem:[#allocation3 + $0xc0] sm:$0xff] %vm753_vm3, %v706_v63  ;;  %v1574_v63 = vld [vmem:[#allocation2 + $0xe1] sm:$0xff] }
 0x10b   : > { %1055 = vrot.lane.b32.xlu1 %v2979_v32, %s2799_s25  ;;  %1057 = vrot.lane.b32.xlu0 %v3003_v41, %s2799_s25 }
 0x10d   : > { %v704_v25 = vpop.permute.xlu1 %703  ;;  %v710_v59 = vpop.permute.xlu0 %709 }
 0x10e   : > { %777 = vst.msk [vmem:[#allocation3 + $0xb8] sm:$0xff] %vm753_vm3, %v704_v25  ;;  %780 = vst.msk [vmem:[#allocation3 + $0xd0] sm:$0xff] %vm753_vm3, %v710_v59 }
 0x10f   : > { %1824 = vrot.lane.b32.xlu1 %v3163_v56, %s2803_s13  ;;  %1826 = vrot.lane.b32.xlu0 %v3175_v12, %s2803_s13 }
 0x111   : > { %v708_v28 = vpop.permute.xlu1 %707  ;;  %v714_v32 = vpop.permute.xlu0 %713 }
 0x112   : > { %779 = vst.msk [vmem:[#allocation3 + $0xc8] sm:$0xff] %vm753_vm3, %v708_v28  ;;  %782 = vst.msk [vmem:[#allocation3 + $0xe0] sm:$0xff] %vm753_vm3, %v714_v32  ;;  %v1766_v28 = vld [vmem:[#allocation2 + $0xda] sm:$0xff] }
 0x113   : > { %1248 = vrot.lane.b32.xlu1 %v3163_v56, %s2800_s26  ;;  %1442 = vrot.lane.b32.xlu0 %v3050_v58, %s2801_s27 }
 0x115   : > { %v712_v41 = vpop.permute.xlu1 %711  ;;  %v718_v27 = vpop.permute.xlu0 %717 }
 0x116   : > { %781 = vst.msk [vmem:[#allocation3 + $0xd8] sm:$0xff] %vm753_vm3, %v712_v41  ;;  %784 = vst.msk [vmem:[#allocation3 + $0xf0] sm:$0xff] %vm753_vm3, %v718_v27  ;;  %v1767_v41 = vld [vmem:[#allocation2 + $0xe2] sm:$0xff] }
 0x117   : > { %1250 = vrot.lane.b32.xlu1 %v3175_v12, %s2800_s26  ;;  %1635 = vrot.lane.b32.xlu0 %v2999_v40, %s2802_s30 }
 0x119   : > { %v716_v49 = vpop.permute.xlu1 %715  ;;  %v851_v56 = vpop.permute.xlu0 %850 }
 0x11a   : > { %783 = vst.msk [vmem:[#allocation3 + $0xe8] sm:$0xff] %vm753_vm3, %v716_v49 }
 0x11b   : > { %1444 = vrot.lane.b32.xlu1 %v3063_v61, %s2801_s27  ;;  %947 = vst.msk [vmem:[#allocation3] sm:$0xff] %vm946_vm5, %v851_v56  ;;  %1637 = vrot.lane.b32.xlu0 %v3011_v43, %s2802_s30 }
 0x11d   : > { %v720_v58 = vpop.permute.xlu1 %719  ;;  %v855_v12 = vpop.permute.xlu0 %854 }
 0x11e   : > { %785 = vst.msk [vmem:[#allocation3 + $0xf8] sm:$0xff] %vm753_vm3, %v720_v58 }
 0x11f   : > { %1059 = vrot.lane.b32.xlu1 %v2999_v40, %s2799_s25  ;;  %949 = vst.msk [vmem:[#allocation3 + $0x10] sm:$0xff] %vm946_vm5, %v855_v12  ;;  %1061 = vrot.lane.b32.xlu0 %v3011_v43, %s2799_s25 }
 0x121   : > { %v853_v39 = vpop.permute.xlu1 %852  ;;  %v859_v61 = vpop.permute.xlu0 %858 }
 0x122   : > { %948 = vst.msk [vmem:[#allocation3 + $0x8] sm:$0xff] %vm946_vm5, %v853_v39  ;;  %951 = vst.msk [vmem:[#allocation3 + $0x20] sm:$0xff] %vm946_vm5, %v859_v61  ;;  %v1575_v39 = vld [vmem:[#allocation2 + $0xf1] sm:$0xff] }
 0x123   : > { %1828 = vrot.lane.b32.xlu1 %v3171_v11, %s2803_s13  ;;  %1830 = vrot.lane.b32.xlu0 %v3183_v15, %s2803_s13 }
 0x125   : > { %v857_v46 = vpop.permute.xlu1 %856  ;;  %v863_v40 = vpop.permute.xlu0 %862 }
 0x126   : > { %950 = vst.msk [vmem:[#allocation3 + $0x18] sm:$0xff] %vm946_vm5, %v857_v46  ;;  %953 = vst.msk [vmem:[#allocation3 + $0x30] sm:$0xff] %vm946_vm5, %v863_v40  ;;  %v245_v46 = vld [vmem:[%s2909_s21 + $0xf0] sm:$0xff] }
 0x127   : > { %1252 = vrot.lane.b32.xlu1 %v3171_v11, %s2800_s26  ;;  %1446 = vrot.lane.b32.xlu0 %v3061_v60, %s2801_s27  ;;  %334 = vst.msk [vmem:[#allocation2 + $0x181] sm:$0xff] %vm247_vm0, %v245_v46 }
 0x129   : > { %v861_v43 = vpop.permute.xlu1 %860  ;;  %v867_v29 = vpop.permute.xlu0 %866 }
 0x12a   : > { %952 = vst.msk [vmem:[#allocation3 + $0x28] sm:$0xff] %vm946_vm5, %v861_v43  ;;  %955 = vst.msk [vmem:[#allocation3 + $0x40] sm:$0xff] %vm946_vm5, %v867_v29  ;;  %v1576_v43 = vld [vmem:[#allocation2 + $0xf9] sm:$0xff] }
 0x12b   : > { %1254 = vrot.lane.b32.xlu1 %v3183_v15, %s2800_s26  ;;  %1639 = vrot.lane.b32.xlu0 %v3007_v42, %s2802_s30  ;;  %v246_v29 = vld [vmem:[%s2909_s21 + $0xf8] sm:$0xff]  ;;  %s211_s21 = scalar_lea.vmem %s3967_s3, %s3971_s16 }
 0x12c   : > { %335 = vst.msk [vmem:[#allocation2 + $0x189] sm:$0xff] %vm247_vm0, %v246_v29  ;;  %v1775_v29 = vld [vmem:[#allocation2 + $0x142] sm:$0xff] }
 0x12d   : > { %v865_v33 = vpop.permute.xlu1 %864  ;;  %v871_v11 = vpop.permute.xlu0 %870 }
 0x12e   : > { %954 = vst.msk [vmem:[#allocation3 + $0x38] sm:$0xff] %vm946_vm5, %v865_v33  ;;  %957 = vst.msk [vmem:[#allocation3 + $0x50] sm:$0xff] %vm946_vm5, %v871_v11 }
 0x12f   : > { %1448 = vrot.lane.b32.xlu1 %v3073_v0, %s2801_s27  ;;  %1641 = vrot.lane.b32.xlu0 %v3018_v47, %s2802_s30 }
 0x131   : > { %v869_v60 = vpop.permute.xlu1 %868  ;;  %v875_v15 = vpop.permute.xlu0 %874 }
 0x132   : > { %956 = vst.msk [vmem:[#allocation3 + $0x48] sm:$0xff] %vm946_vm5, %v869_v60  ;;  %959 = vst.msk [vmem:[#allocation3 + $0x60] sm:$0xff] %vm946_vm5, %v875_v15  ;;  %v1768_v60 = vld [vmem:[#allocation2 + $0xf2] sm:$0xff] }
 0x133   : > { %1063 = vrot.lane.b32.xlu1 %v3007_v42, %s2799_s25  ;;  %1065 = vrot.lane.b32.xlu0 %v3018_v47, %s2799_s25 }
 0x135   : > { %v873_v54 = vpop.permute.xlu1 %872  ;;  %v879_v0 = vpop.permute.xlu0 %878 }
 0x136   : > { %958 = vst.msk [vmem:[#allocation3 + $0x58] sm:$0xff] %vm946_vm5, %v873_v54  ;;  %961 = vst.msk [vmem:[#allocation3 + $0x70] sm:$0xff] %vm946_vm5, %v879_v0 }
 0x137   : > { %1832 = vrot.lane.b32.xlu1 %v3179_v13, %s2803_s13  ;;  %1834 = vrot.lane.b32.xlu0 %v3191_v17, %s2803_s13 }
 0x139   : > { %v877_v34 = vpop.permute.xlu1 %876  ;;  %v883_v42 = vpop.permute.xlu0 %882 }
 0x13a   : > { %960 = vst.msk [vmem:[#allocation3 + $0x68] sm:$0xff] %vm946_vm5, %v877_v34  ;;  %963 = vst.msk [vmem:[#allocation3 + $0x80] sm:$0xff] %vm946_vm5, %v883_v42 }
 0x13b   : > { %1256 = vrot.lane.b32.xlu1 %v3179_v13, %s2800_s26  ;;  %1450 = vrot.lane.b32.xlu0 %v3065_v62, %s2801_s27  ;;  %v1570_v13 = vld [vmem:[#allocation2 + $0xb1] sm:$0xff] }
 0x13d   : > { %v881_v47 = vpop.permute.xlu1 %880  ;;  %v887_v36 = vpop.permute.xlu0 %886 }
 0x13e   : > { %962 = vst.msk [vmem:[#allocation3 + $0x78] sm:$0xff] %vm946_vm5, %v881_v47  ;;  %965 = vst.msk [vmem:[#allocation3 + $0x90] sm:$0xff] %vm946_vm5, %v887_v36 }
 0x13f   : > { %1258 = vrot.lane.b32.xlu1 %v3191_v17, %s2800_s26  ;;  %1643 = vrot.lane.b32.xlu0 %v1569_v35, %s2802_s30 }
 0x141   : > { %v885_v37 = vpop.permute.xlu1 %884  ;;  %v1044_v26 = vpop.permute.xlu0 %1043 }
 0x142   : > { %964 = vst.msk [vmem:[#allocation3 + $0x88] sm:$0xff] %vm946_vm5, %v885_v37 }
 0x143   : > { %1452 = vrot.lane.b32.xlu1 %v3077_v2, %s2801_s27  ;;  %1140 = vst.msk [vmem:[#allocation3] sm:$0xff] %vm1139_vm6, %v1044_v26  ;;  %1645 = vrot.lane.b32.xlu0 %v1570_v13, %s2802_s30  ;;  %v1577_v26 = vld [vmem:[#allocation2 + $0x109] sm:$0xff] }
 0x145   : > { %v889_v62 = vpop.permute.xlu1 %888  ;;  %v1237_v17 = vpop.permute.xlu0 %1236 }
 0x146   : > { %966 = vst.msk [vmem:[#allocation3 + $0x98] sm:$0xff] %vm946_vm5, %v889_v62 }
 0x147   : > { %1067 = vrot.lane.b32.xlu1 %v1569_v35, %s2799_s25  ;;  %1333 = vst.msk [vmem:[#allocation3] sm:$0xff] %vm1332_vm7, %v1237_v17  ;;  %1069 = vrot.lane.b32.xlu0 %v1570_v13, %s2799_s25  ;;  %v1578_v17 = vld [vmem:[#allocation2 + $0x111] sm:$0xff] }
 0x149   : > { %v1046_v31 = vpop.permute.xlu1 %1045  ;;  %v1431_v2 = vpop.permute.xlu0 %1430 }
 0x14a   : > { %1141 = vst.msk [vmem:[#allocation3 + $0x8] sm:$0xff] %vm1139_vm6, %v1046_v31 }
 0x14b   : > { %1836 = vrot.lane.b32.xlu1 %v3187_v16, %s2803_s13  ;;  %1527 = vst.msk [vmem:[#allocation3] sm:$0xff] %vm1526_vm8, %v1431_v2  ;;  %1838 = vrot.lane.b32.xlu0 %v3199_v19, %s2803_s13 }
 0x14d   : > { %v1239_v44 = vpop.permute.xlu1 %1238  ;;  %v1624_v48 = vpop.permute.xlu0 %1623 }
 0x14e   : > { %1334 = vst.msk [vmem:[#allocation3 + $0x8] sm:$0xff] %vm1332_vm7, %v1239_v44 }
 0x14f   : > { %1260 = vrot.lane.b32.xlu1 %v3187_v16, %s2800_s26  ;;  %1720 = vst.msk [vmem:[#allocation3] sm:$0xff] %vm1719_vm9, %v1624_v48  ;;  %1454 = vrot.lane.b32.xlu0 %v3075_v1, %s2801_s27  ;;  %v1572_v16 = vld [vmem:[#allocation2 + $0xc9] sm:$0xff] }
 0x151   : > { %v1433_v20 = vpop.permute.xlu1 %1432  ;;  %v1626_v52 = vpop.permute.xlu0 %1625 }
 0x152   : > { %1528 = vst.msk [vmem:[#allocation3 + $0x8] sm:$0xff] %vm1526_vm8, %v1433_v20  ;;  %v1771_v20 = vld [vmem:[#allocation2 + $0x112] sm:$0xff] }
 0x153   : > { %1262 = vrot.lane.b32.xlu1 %v3199_v19, %s2800_s26  ;;  %1721 = vst.msk [vmem:[#allocation3 + $0x8] sm:$0xff] %vm1719_vm9, %v1626_v52  ;;  %1647 = vrot.lane.b32.xlu0 %v1571_v45, %s2802_s30 }
 0x155   : > { %v1048_v53 = vpop.permute.xlu1 %1047  ;;  %v1050_v22 = vpop.permute.xlu0 %1049 }
 0x156   : > { %1142 = vst.msk [vmem:[#allocation3 + $0x10] sm:$0xff] %vm1139_vm6, %v1048_v53  ;;  %1143 = vst.msk [vmem:[#allocation3 + $0x18] sm:$0xff] %vm1139_vm6, %v1050_v22 }
 0x157   : > { %1456 = vrot.lane.b32.xlu1 %v3088_v4, %s2801_s27  ;;  %1649 = vrot.lane.b32.xlu0 %v1572_v16, %s2802_s30 }
 0x159   : > { %v1817_v1 = vpop.permute.xlu1 %1816  ;;  %v1819_v19 = vpop.permute.xlu0 %1818 }
 0x15a   : > { %1913 = vst.msk [vmem:[#allocation3] sm:$0xff] %vm1912_vm10, %v1817_v1  ;;  %1914 = vst.msk [vmem:[#allocation3 + $0x8] sm:$0xff] %vm1912_vm10, %v1819_v19  ;;  %v808_v19 = vld [vmem:[#allocation2 + $0x120] sm:$0xff] }
 0x15b   : > { %1071 = vrot.lane.b32.xlu1 %v1571_v45, %s2799_s25  ;;  %1073 = vrot.lane.b32.xlu0 %v1572_v16, %s2799_s25 }
 0x15d   : > { %v1241_v57 = vpop.permute.xlu1 %1240  ;;  %v1435_v51 = vpop.permute.xlu0 %1434 }
 0x15e   : > { %1335 = vst.msk [vmem:[#allocation3 + $0x10] sm:$0xff] %vm1332_vm7, %v1241_v57 }
 0x15f   : > { %1840 = vrot.lane.b32.xlu1 %v3195_v18, %s2803_s13  ;;  %1529 = vst.msk [vmem:[#allocation3 + $0x10] sm:$0xff] %vm1526_vm8, %v1435_v51  ;;  %1842 = vrot.lane.b32.xlu0 %v3205_v21, %s2803_s13 }
 0x161   : > { %v1243_v4 = vpop.permute.xlu1 %1242  ;;  %v1945_v30 = vld [vmem:[#allocation3] sm:$0xff]  ;;  %v1628_v38 = vpop.permute.xlu0 %1627  ;;  %v1946_v23 = vld [vmem:[#allocation3 + $0x8] sm:$0xff] }
 0x162   : > { %1336 = vst.msk [vmem:[#allocation3 + $0x18] sm:$0xff] %vm1332_vm7, %v1243_v4  ;;  %2712 = vmatprep.mubr.msk.f32.mxu0 %vm1982_vm11, %v1945_v30  ;;  %v1580_v30 = vld [vmem:[#allocation2 + $0x129] sm:$0xff] }
 0x163   : > { %1264 = vrot.lane.b32.xlu1 %v3195_v18, %s2800_s26  ;;  %1722 = vst.msk [vmem:[#allocation3 + $0x10] sm:$0xff] %vm1719_vm9, %v1628_v38  ;;  %2713 = vmatmul.mubr.msk.f32.vlgmr.msra.gmra.mxu0 %vm1982_vm11, %v1946_v23 }
 0x164   : > { %1458 = vrot.lane.b32.xlu0 %v3086_v3, %s2801_s27 }
 0x165   : > { %v1437_v21 = vpop.permute.xlu1 %1436  ;;  %v1630_v55 = vpop.permute.xlu0 %1629 }
 0x166   : > { %1530 = vst.msk [vmem:[#allocation3 + $0x18] sm:$0xff] %vm1526_vm8, %v1437_v21 }
 0x167   : > { %1266 = vrot.lane.b32.xlu1 %v1187_v24, %s2800_s26  ;;  %1723 = vst.msk [vmem:[#allocation3 + $0x18] sm:$0xff] %vm1719_vm9, %v1630_v55 }
 0x168   : > { %1651 = vrot.lane.b32.xlu0 %v1573_v50, %s2802_s30 }
 0x169   : > { %v1052_v18 = vpop.permute.xlu1 %1051  ;;  %v1054_v25 = vpop.permute.xlu0 %1053 }
 0x16a   : > { %1144 = vst.msk [vmem:[#allocation3 + $0x20] sm:$0xff] %vm1139_vm6, %v1052_v18  ;;  %1145 = vst.msk [vmem:[#allocation3 + $0x28] sm:$0xff] %vm1139_vm6, %v1054_v25  ;;  %v1773_v18 = vld [vmem:[#allocation2 + $0x12a] sm:$0xff] }
 0x16b   : > { %1460 = vrot.lane.b32.xlu1 %v3098_v6, %s2801_s27 }
 0x16c   : > { %1653 = vrot.lane.b32.xlu0 %v1574_v63, %s2802_s30 }
 0x16d   : > { %v1821_v3 = vpop.permute.xlu1 %1820  ;;  %v1823_v59 = vpop.permute.xlu0 %1822 }
 0x16e   : > { %1915 = vst.msk [vmem:[#allocation3 + $0x10] sm:$0xff] %vm1912_vm10, %v1821_v3  ;;  %1916 = vst.msk [vmem:[#allocation3 + $0x18] sm:$0xff] %vm1912_vm10, %v1823_v59  ;;  %v1388_v3 = vld [vmem:[#allocation2 + $0x138] sm:$0xff] }
 0x16f   : > { %1075 = vrot.lane.b32.xlu1 %v1573_v50, %s2799_s25  ;;  %v1772_v50 = vld [vmem:[#allocation2 + $0x122] sm:$0xff] }
 0x170   : > { %1077 = vrot.lane.b32.xlu0 %v1574_v63, %s2799_s25 }
 0x171   : > { %v1245_v32 = vpop.permute.xlu1 %1244  ;;  %v1439_v6 = vpop.permute.xlu0 %1438 }
 0x172   : > { %1337 = vst.msk [vmem:[#allocation3 + $0x20] sm:$0xff] %vm1332_vm7, %v1245_v32  ;;  %v1389_v32 = vld [vmem:[#allocation2 + $0x140] sm:$0xff] }
 0x173   : > { %1844 = vrot.lane.b32.xlu1 %v1766_v28, %s2803_s13  ;;  %1531 = vst.msk [vmem:[#allocation3 + $0x20] sm:$0xff] %vm1526_vm8, %v1439_v6 }
 0x174   : > { %1846 = vrot.lane.b32.xlu0 %v1767_v41, %s2803_s13 }
 0x175   : > { %v1247_v27 = vpop.permute.xlu1 %1246  ;;  %v1947_v49 = vld [vmem:[#allocation3 + $0x10] sm:$0xff]  ;;  %v1632_v56 = vpop.permute.xlu0 %1631  ;;  %v1948_v58 = vld [vmem:[#allocation3 + $0x18] sm:$0xff] }
 0x176   : > { %1338 = vst.msk [vmem:[#allocation3 + $0x28] sm:$0xff] %vm1332_vm7, %v1247_v27  ;;  %2715 = vmatprep.mubr.msk.f32.mxu0 %vm1982_vm11, %v1947_v49  ;;  %v1581_v49 = vld [vmem:[#allocation2 + $0x139] sm:$0xff] }
 0x177   : > { %1268 = vrot.lane.b32.xlu1 %v1766_v28, %s2800_s26  ;;  %1724 = vst.msk [vmem:[#allocation3 + $0x20] sm:$0xff] %vm1719_vm9, %v1632_v56  ;;  %2716 = vmatmul.mubr.msk.f32.gmra.mxu0 %vm1982_vm11, %v1948_v58 }
 0x178   : > { %1462 = vrot.lane.b32.xlu0 %v3090_v5, %s2801_s27 }
 0x179   : > { %v1441_v12 = vpop.permute.xlu1 %1440  ;;  %v1634_v61 = vpop.permute.xlu0 %1633 }
 0x17a   : > { %1532 = vst.msk [vmem:[#allocation3 + $0x28] sm:$0xff] %vm1526_vm8, %v1441_v12  ;;  %v1582_v12 = vld [vmem:[#allocation2 + $0x141] sm:$0xff] }
 0x17b   : > { %1270 = vrot.lane.b32.xlu1 %v1767_v41, %s2800_s26  ;;  %1725 = vst.msk [vmem:[#allocation3 + $0x28] sm:$0xff] %vm1719_vm9, %v1634_v61 }
 0x17c   : > { %1655 = vrot.lane.b32.xlu0 %v1575_v39, %s2802_s30 }
 0x17d   : > { %v1056_v40 = vpop.permute.xlu1 %1055  ;;  %v1058_v5 = vpop.permute.xlu0 %1057 }
 0x17e   : > { %1146 = vst.msk [vmem:[#allocation3 + $0x30] sm:$0xff] %vm1139_vm6, %v1056_v40  ;;  %1147 = vst.msk [vmem:[#allocation3 + $0x38] sm:$0xff] %vm1139_vm6, %v1058_v5 }
 0x17f   : > { %1464 = vrot.lane.b32.xlu1 %v3102_v8, %s2801_s27  ;;  %v1769_v8 = vld [vmem:[#allocation2 + $0xfa] sm:$0xff] }
 0x180   : > { %1657 = vrot.lane.b32.xlu0 %v1576_v43, %s2802_s30 }
 0x181   : > { %v1825_v33 = vpop.permute.xlu1 %1824  ;;  %v1827_v11 = vpop.permute.xlu0 %1826 }
 0x182   : > { %1917 = vst.msk [vmem:[#allocation3 + $0x20] sm:$0xff] %vm1912_vm10, %v1825_v33  ;;  %1918 = vst.msk [vmem:[#allocation3 + $0x28] sm:$0xff] %vm1912_vm10, %v1827_v11 }
 0x183   : > { %1079 = vrot.lane.b32.xlu1 %v1575_v39, %s2799_s25 }
 0x184   : > { %1081 = vrot.lane.b32.xlu0 %v1576_v43, %s2799_s25  ;;  %v1774_v43 = vld [vmem:[#allocation2 + $0x13a] sm:$0xff] }
 0x185   : > { %v1249_v15 = vpop.permute.xlu1 %1248  ;;  %v1443_v54 = vpop.permute.xlu0 %1442 }
 0x186   : > { %1339 = vst.msk [vmem:[#allocation3 + $0x30] sm:$0xff] %vm1332_vm7, %v1249_v15 }
 0x187   : > { %1848 = vrot.lane.b32.xlu1 %v1768_v60, %s2803_s13  ;;  %1533 = vst.msk [vmem:[#allocation3 + $0x30] sm:$0xff] %vm1526_vm8, %v1443_v54  ;;  %v1391_v54 = vld [vmem:[#allocation2 + $0x158] sm:$0xff] }
 0x188   : > { %1850 = vrot.lane.b32.xlu0 %v1769_v8, %s2803_s13 }
 0x189   : > { %v1251_v0 = vpop.permute.xlu1 %1250  ;;  %v1949_v34 = vld [vmem:[#allocation3 + $0x20] sm:$0xff]  ;;  %v1636_v42 = vpop.permute.xlu0 %1635  ;;  %v1950_v47 = vld [vmem:[#allocation3 + $0x28] sm:$0xff] }
 0x18a   : > { %1340 = vst.msk [vmem:[#allocation3 + $0x38] sm:$0xff] %vm1332_vm7, %v1251_v0  ;;  %2718 = vmatprep.mubr.msk.f32.mxu0 %vm1982_vm11, %v1949_v34 }
 0x18b   : > { %1272 = vrot.lane.b32.xlu1 %v1768_v60, %s2800_s26  ;;  %1726 = vst.msk [vmem:[#allocation3 + $0x30] sm:$0xff] %vm1719_vm9, %v1636_v42  ;;  %2719 = vmatmul.mubr.msk.f32.gmra.mxu0 %vm1982_vm11, %v1950_v47  ;;  %v1390_v60 = vld [vmem:[#allocation2 + $0x150] sm:$0xff] }
 0x18c   : > { %1466 = vrot.lane.b32.xlu0 %v3100_v7, %s2801_s27 }
 0x18d   : > { %v1445_v35 = vpop.permute.xlu1 %1444  ;;  %v1638_v36 = vpop.permute.xlu0 %1637 }
 0x18e   : > { %1534 = vst.msk [vmem:[#allocation3 + $0x38] sm:$0xff] %vm1526_vm8, %v1445_v35 }
 0x18f   : > { %1274 = vrot.lane.b32.xlu1 %v1769_v8, %s2800_s26  ;;  %1727 = vst.msk [vmem:[#allocation3 + $0x38] sm:$0xff] %vm1719_vm9, %v1638_v36  ;;  %v1583_v36 = vld [vmem:[#allocation2 + $0x151] sm:$0xff] }
 0x190   : > { %1468 = vrot.lane.b32.xlu0 %v3113_v10, %s2801_s27 }
 0x191   : > { %v1060_v37 = vpop.permute.xlu1 %1059  ;;  %v1062_v13 = vpop.permute.xlu0 %1061 }
 0x192   : > { %1148 = vst.msk [vmem:[#allocation3 + $0x40] sm:$0xff] %vm1139_vm6, %v1060_v37  ;;  %1149 = vst.msk [vmem:[#allocation3 + $0x48] sm:$0xff] %vm1139_vm6, %v1062_v13  ;;  %v1584_v13 = vld [vmem:[#allocation2 + $0x159] sm:$0xff] }
 0x193   : > { %890 = vrot.lane.b32.xlu1 %v3100_v7, %s2798_s24 }
 0x194   : > { %892 = vrot.lane.b32.xlu0 %v3113_v10, %s2798_s24  ;;  %v1770_v10 = vld [vmem:[#allocation2 + $0x10a] sm:$0xff] }
 0x195   : > { %v1829_v62 = vpop.permute.xlu1 %1828  ;;  %v1831_v31 = vpop.permute.xlu0 %1830 }
 0x196   : > { %1919 = vst.msk [vmem:[#allocation3 + $0x30] sm:$0xff] %vm1912_vm10, %v1829_v62  ;;  %1920 = vst.msk [vmem:[#allocation3 + $0x38] sm:$0xff] %vm1912_vm10, %v1831_v31  ;;  %v1776_v31 = vld [vmem:[#allocation2 + $0x152] sm:$0xff] }
 0x197   : > { %1659 = vrot.lane.b32.xlu1 %v1577_v26, %s2802_s30 }
 0x198   : > { %1661 = vrot.lane.b32.xlu0 %v1578_v17, %s2802_s30 }
 0x199   : > { %v1253_v2 = vpop.permute.xlu1 %1252  ;;  %v1447_v7 = vpop.permute.xlu0 %1446 }
 0x19a   : > { %1341 = vst.msk [vmem:[#allocation3 + $0x40] sm:$0xff] %vm1332_vm7, %v1253_v2 }
 0x19b   : > { %1083 = vrot.lane.b32.xlu1 %v1577_v26, %s2799_s25  ;;  %1535 = vst.msk [vmem:[#allocation3 + $0x40] sm:$0xff] %vm1526_vm8, %v1447_v7  ;;  %v1777_v7 = vld [vmem:[#allocation2 + $0x15a] sm:$0xff] }
 0x19c   : > { %1085 = vrot.lane.b32.xlu0 %v1578_v17, %s2799_s25 }
 0x19d   : > { %v1255_v44 = vpop.permute.xlu1 %1254  ;;  %v1951_v48 = vld [vmem:[#allocation3 + $0x30] sm:$0xff]  ;;  %v1640_v45 = vpop.permute.xlu0 %1639  ;;  %v1952_v52 = vld [vmem:[#allocation3 + $0x38] sm:$0xff] }
 0x19e   : > { %1342 = vst.msk [vmem:[#allocation3 + $0x48] sm:$0xff] %vm1332_vm7, %v1255_v44  ;;  %2721 = vmatprep.mubr.msk.f32.mxu0 %vm1982_vm11, %v1951_v48  ;;  %v1392_v48 = vld [vmem:[#allocation2 + $0x168] sm:$0xff] }
 0x19f   : > { %1852 = vrot.lane.b32.xlu1 %v1770_v10, %s2803_s13  ;;  %1728 = vst.msk [vmem:[#allocation3 + $0x40] sm:$0xff] %vm1719_vm9, %v1640_v45  ;;  %2722 = vmatmul.mubr.msk.f32.gmra.mxu0 %vm1982_vm11, %v1952_v52 }
 0x1a0   : > { %1854 = vrot.lane.b32.xlu0 %v1771_v20, %s2803_s13 }
 0x1a1   : > { %v1449_v53 = vpop.permute.xlu1 %1448  ;;  %v1642_v16 = vpop.permute.xlu0 %1641 }
 0x1a2   : > { %1536 = vst.msk [vmem:[#allocation3 + $0x48] sm:$0xff] %vm1526_vm8, %v1449_v53  ;;  %v1393_v53 = vld [vmem:[#allocation2 + $0x170] sm:$0xff] }
 0x1a3   : > { %1276 = vrot.lane.b32.xlu1 %v1770_v10, %s2800_s26  ;;  %1729 = vst.msk [vmem:[#allocation3 + $0x48] sm:$0xff] %vm1719_vm9, %v1642_v16 }
 0x1a4   : > { %1470 = vrot.lane.b32.xlu0 %v3111_v9, %s2801_s27  ;;  %v1579_v9 = vld [vmem:[#allocation2 + $0x121] sm:$0xff] }
 0x1a5   : > { %v1064_v22 = vpop.permute.xlu1 %1063  ;;  %v1066_v1 = vpop.permute.xlu0 %1065 }
 0x1a6   : > { %1150 = vst.msk [vmem:[#allocation3 + $0x50] sm:$0xff] %vm1139_vm6, %v1064_v22  ;;  %1151 = vst.msk [vmem:[#allocation3 + $0x58] sm:$0xff] %vm1139_vm6, %v1066_v1 }
 0x1a7   : > { %1278 = vrot.lane.b32.xlu1 %v1771_v20, %s2800_s26 }
 0x1a8   : > { %1472 = vrot.lane.b32.xlu0 %v3121_v14, %s2801_s27 }
 0x1a9   : > { %v1833_v57 = vpop.permute.xlu1 %1832  ;;  %v1835_v51 = vpop.permute.xlu0 %1834 }
 0x1aa   : > { %1921 = vst.msk [vmem:[#allocation3 + $0x40] sm:$0xff] %vm1912_vm10, %v1833_v57  ;;  %1922 = vst.msk [vmem:[#allocation3 + $0x48] sm:$0xff] %vm1912_vm10, %v1835_v51  ;;  %v1585_v57 = vld [vmem:[#allocation2 + $0x169] sm:$0xff] }
 0x1ab   : > { %894 = vrot.lane.b32.xlu1 %v808_v19, %s2798_s24 }
 0x1ac   : > { %896 = vrot.lane.b32.xlu0 %v3121_v14, %s2798_s24 }
 0x1ad   : > { %v1257_v4 = vpop.permute.xlu1 %1256  ;;  %v1451_v38 = vpop.permute.xlu0 %1450 }
 0x1ae   : > { %1343 = vst.msk [vmem:[#allocation3 + $0x50] sm:$0xff] %vm1332_vm7, %v1257_v4 }
 0x1af   : > { %1663 = vrot.lane.b32.xlu1 %v1579_v9, %s2802_s30  ;;  %1537 = vst.msk [vmem:[#allocation3 + $0x50] sm:$0xff] %vm1526_vm8, %v1451_v38 }
 0x1b0   : > { %1665 = vrot.lane.b32.xlu0 %v1580_v30, %s2802_s30 }
 0x1b1   : > { %v1259_v23 = vpop.permute.xlu1 %1258  ;;  %v1953_v24 = vld [vmem:[#allocation3 + $0x40] sm:$0xff]  ;;  %v1644_v21 = vpop.permute.xlu0 %1643  ;;  %v1954_v14 = vld [vmem:[#allocation3 + $0x48] sm:$0xff] }
 0x1b2   : > { %1344 = vst.msk [vmem:[#allocation3 + $0x58] sm:$0xff] %vm1332_vm7, %v1259_v23  ;;  %2724 = vmatprep.mubr.msk.f32.mxu0 %vm1982_vm11, %v1953_v24  ;;  %v1778_v23 = vld [vmem:[#allocation2 + $0x16a] sm:$0xff] }
 0x1b3   : > { %1087 = vrot.lane.b32.xlu1 %v1579_v9, %s2799_s25  ;;  %1730 = vst.msk [vmem:[#allocation3 + $0x50] sm:$0xff] %vm1719_vm9, %v1644_v21  ;;  %2725 = vmatmul.mubr.msk.f32.gmra.mxu0 %vm1982_vm11, %v1954_v14  ;;  %v1586_v9 = vld [vmem:[#allocation2 + $0x171] sm:$0xff] }
 0x1b4   : > { %1089 = vrot.lane.b32.xlu0 %v1580_v30, %s2799_s25  ;;  %v1779_v21 = vld [vmem:[#allocation2 + $0x172] sm:$0xff] }
 0x1b5   : > { %v1453_v55 = vpop.permute.xlu1 %1452  ;;  %v1646_v63 = vpop.permute.xlu0 %1645 }
 0x1b6   : > { %1538 = vst.msk [vmem:[#allocation3 + $0x58] sm:$0xff] %vm1526_vm8, %v1453_v55 }
 0x1b7   : > { %1856 = vrot.lane.b32.xlu1 %v1772_v50, %s2803_s13  ;;  %1731 = vst.msk [vmem:[#allocation3 + $0x58] sm:$0xff] %vm1719_vm9, %v1646_v63 }
 0x1b8   : > { %1858 = vrot.lane.b32.xlu0 %v1773_v18, %s2803_s13 }
 0x1b9   : > { %v1068_v25 = vpop.permute.xlu1 %1067  ;;  %v1070_v59 = vpop.permute.xlu0 %1069 }
 0x1ba   : > { %1152 = vst.msk [vmem:[#allocation3 + $0x60] sm:$0xff] %vm1139_vm6, %v1068_v25  ;;  %1153 = vst.msk [vmem:[#allocation3 + $0x68] sm:$0xff] %vm1139_vm6, %v1070_v59  ;;  %v1395_v59 = vld [vmem:[#allocation2 + $0x188] sm:$0xff] }
 0x1bb   : > { %1280 = vrot.lane.b32.xlu1 %v1772_v50, %s2800_s26 }
 0x1bc   : > { %1474 = vrot.lane.b32.xlu0 %v1388_v3, %s2801_s27 }
 0x1bd   : > { %v1837_v28 = vpop.permute.xlu1 %1836  ;;  %v1839_v41 = vpop.permute.xlu0 %1838 }
 0x1be   : > { %1923 = vst.msk [vmem:[#allocation3 + $0x50] sm:$0xff] %vm1912_vm10, %v1837_v28  ;;  %1924 = vst.msk [vmem:[#allocation3 + $0x58] sm:$0xff] %vm1912_vm10, %v1839_v41 }
 0x1bf   : > { %1282 = vrot.lane.b32.xlu1 %v1773_v18, %s2800_s26  ;;  %v1394_v18 = vld [vmem:[#allocation2 + $0x180] sm:$0xff] }
 0x1c0   : > { %1476 = vrot.lane.b32.xlu0 %v1389_v32, %s2801_s27 }
 0x1c1   : > { %v1261_v6 = vpop.permute.xlu1 %1260  ;;  %v1455_v27 = vpop.permute.xlu0 %1454 }
 0x1c2   : > { %1345 = vst.msk [vmem:[#allocation3 + $0x60] sm:$0xff] %vm1332_vm7, %v1261_v6  ;;  %v1587_v6 = vld [vmem:[#allocation2 + $0x181] sm:$0xff] }
 0x1c3   : > { %898 = vrot.lane.b32.xlu1 %v1388_v3, %s2798_s24  ;;  %1539 = vst.msk [vmem:[#allocation3 + $0x60] sm:$0xff] %vm1526_vm8, %v1455_v27 }
 0x1c4   : > { %900 = vrot.lane.b32.xlu0 %v1389_v32, %s2798_s24 }
 0x1c5   : > { %v1263_v56 = vpop.permute.xlu1 %1262  ;;  %v1955_v58 = vld [vmem:[#allocation3 + $0x50] sm:$0xff]  ;;  %v1648_v39 = vpop.permute.xlu0 %1647  ;;  %v1956_v61 = vld [vmem:[#allocation3 + $0x58] sm:$0xff] }
 0x1c6   : > { %1346 = vst.msk [vmem:[#allocation3 + $0x68] sm:$0xff] %vm1332_vm7, %v1263_v56  ;;  %2727 = vmatprep.mubr.msk.f32.mxu0 %vm1982_vm11, %v1955_v58 }
 0x1c7   : > { %1667 = vrot.lane.b32.xlu1 %v1581_v49, %s2802_s30  ;;  %1732 = vst.msk [vmem:[#allocation3 + $0x60] sm:$0xff] %vm1719_vm9, %v1648_v39  ;;  %2728 = vmatmul.mubr.msk.f32.gmra.mxu0 %vm1982_vm11, %v1956_v61  ;;  %v1780_v39 = vld [vmem:[#allocation2 + $0x182] sm:$0xff] }
 0x1c8   : > { %1669 = vrot.lane.b32.xlu0 %v1582_v12, %s2802_s30 }
 0x1c9   : > { %v1457_v46 = vpop.permute.xlu1 %1456  ;;  %v1650_v40 = vpop.permute.xlu0 %1649 }
 0x1ca   : > { %1540 = vst.msk [vmem:[#allocation3 + $0x68] sm:$0xff] %vm1526_vm8, %v1457_v46  ;;  %v1781_v46 = vld [vmem:[#allocation2 + $0x18a] sm:$0xff] }
 0x1cb   : > { %1091 = vrot.lane.b32.xlu1 %v1581_v49, %s2799_s25  ;;  %1733 = vst.msk [vmem:[#allocation3 + $0x68] sm:$0xff] %vm1719_vm9, %v1650_v40  ;;  %v1588_v49 = vld [vmem:[#allocation2 + $0x189] sm:$0xff] }
 0x1cc   : > { %1093 = vrot.lane.b32.xlu0 %v1582_v12, %s2799_s25 }
 0x1cd   : > { %v1072_v5 = vpop.permute.xlu1 %1071  ;;  %v1074_v33 = vpop.permute.xlu0 %1073 }
 0x1ce   : > { %1154 = vst.msk [vmem:[#allocation3 + $0x70] sm:$0xff] %vm1139_vm6, %v1072_v5  ;;  %1155 = vst.msk [vmem:[#allocation3 + $0x78] sm:$0xff] %vm1139_vm6, %v1074_v33 }
 0x1cf   : > { %1860 = vrot.lane.b32.xlu1 %v1774_v43, %s2803_s13 }
 0x1d0   : > { %1862 = vrot.lane.b32.xlu0 %v1775_v29, %s2803_s13 }
 0x1d1   : > { %v1841_v11 = vpop.permute.xlu1 %1840  ;;  %v1843_v15 = vpop.permute.xlu0 %1842 }
 0x1d2   : > { %1925 = vst.msk [vmem:[#allocation3 + $0x60] sm:$0xff] %vm1912_vm10, %v1841_v11  ;;  %1926 = vst.msk [vmem:[#allocation3 + $0x68] sm:$0xff] %vm1912_vm10, %v1843_v15  ;;  %v1589_v15 = vld [vmem:[#allocation2 + $0x199] sm:$0xff] }
 0x1d3   : > { %1284 = vrot.lane.b32.xlu1 %v1774_v43, %s2800_s26 }
 0x1d4   : > { %1478 = vrot.lane.b32.xlu0 %v1390_v60, %s2801_s27 }
 0x1d5   : > { %v1265_v8 = vpop.permute.xlu1 %1264 }
 0x1d6   : > { %1347 = vst.msk [vmem:[#allocation3 + $0x70] sm:$0xff] %vm1332_vm7, %v1265_v8  ;;  %v1459_v0 = vpop.permute.xlu0 %1458 }
 0x1d7   : > { %1286 = vrot.lane.b32.xlu1 %v1775_v29, %s2800_s26  ;;  %1541 = vst.msk [vmem:[#allocation3 + $0x70] sm:$0xff] %vm1526_vm8, %v1459_v0  ;;  %v1396_v29 = vld [vmem:[#allocation2 + $0x198] sm:$0xff] }
 0x1d8   : > { %1480 = vrot.lane.b32.xlu0 %v1391_v54, %s2801_s27 }
 0x1d9   : > { %v1267_v34 = vpop.permute.xlu1 %1266  ;;  %v1957_v42 = vld [vmem:[#allocation3 + $0x60] sm:$0xff]  ;;  %v1958_v35 = vld [vmem:[#allocation3 + $0x68] sm:$0xff] }
 0x1da   : > { %1348 = vst.msk [vmem:[#allocation3 + $0x78] sm:$0xff] %vm1332_vm7, %v1267_v34  ;;  %2730 = vmatprep.mubr.msk.f32.mxu0 %vm1982_vm11, %v1957_v42  ;;  %v1652_v47 = vpop.permute.xlu0 %1651  ;;  %v1782_v34 = vld [vmem:[#allocation2 + $0x19a] sm:$0xff] }
 0x1db   : > { %902 = vrot.lane.b32.xlu1 %v1390_v60, %s2798_s24  ;;  %1734 = vst.msk [vmem:[#allocation3 + $0x70] sm:$0xff] %vm1719_vm9, %v1652_v47  ;;  %2731 = vmatmul.mubr.msk.f32.gmra.mxu0 %vm1982_vm11, %v1958_v35  ;;  %v1590_v35 = vld [vmem:[#allocation2 + $0x1a1] sm:$0xff] }
 0x1dc   : > { %904 = vrot.lane.b32.xlu0 %v1391_v54, %s2798_s24  ;;  %v1397_v54 = vld [vmem:[#allocation2 + $0x1a0] sm:$0xff] }
 0x1dd   : > { %v1461_v37 = vpop.permute.xlu1 %1460 }
 0x1de   : > { %1542 = vst.msk [vmem:[#allocation3 + $0x78] sm:$0xff] %vm1526_vm8, %v1461_v37  ;;  %v1654_v26 = vpop.permute.xlu0 %1653 }
 0x1df   : > { %1671 = vrot.lane.b32.xlu1 %v1583_v36, %s2802_s30  ;;  %1735 = vst.msk [vmem:[#allocation3 + $0x78] sm:$0xff] %vm1719_vm9, %v1654_v26 }
 0x1e0   : > { %1673 = vrot.lane.b32.xlu0 %v1584_v13, %s2802_s30 }
 0x1e1   : > { %v1076_v62 = vpop.permute.xlu1 %1075 }
 0x1e2   : > { %1156 = vst.msk [vmem:[#allocation3 + $0x80] sm:$0xff] %vm1139_vm6, %v1076_v62  ;;  %v1078_v17 = vpop.permute.xlu0 %1077 }
 0x1e3   : > { %1095 = vrot.lane.b32.xlu1 %v1583_v36, %s2799_s25  ;;  %1157 = vst.msk [vmem:[#allocation3 + $0x88] sm:$0xff] %vm1139_vm6, %v1078_v17 }
 0x1e4   : > { %1097 = vrot.lane.b32.xlu0 %v1584_v13, %s2799_s25 }
 0x1e5   : > { %v1845_v2 = vpop.permute.xlu1 %1844 }
 0x1e6   : > { %1927 = vst.msk [vmem:[#allocation3 + $0x70] sm:$0xff] %vm1912_vm10, %v1845_v2  ;;  %v1847_v10 = vpop.permute.xlu0 %1846 }
 0x1e7   : > { %1864 = vrot.lane.b32.xlu1 %v1776_v31, %s2803_s13  ;;  %1928 = vst.msk [vmem:[#allocation3 + $0x78] sm:$0xff] %vm1912_vm10, %v1847_v10  ;;  %v1783_v10 = vld [vmem:[#allocation2 + $0x1a2] sm:$0xff] }
 0x1e8   : > { %1866 = vrot.lane.b32.xlu0 %v1777_v7, %s2803_s13 }
 0x1e9   : > { %v1269_v44 = vpop.permute.xlu1 %1268 }
 0x1ea   : > { %1349 = vst.msk [vmem:[#allocation3 + $0x80] sm:$0xff] %vm1332_vm7, %v1269_v44  ;;  %v1463_v20 = vpop.permute.xlu0 %1462 }
 0x1eb   : > { %1288 = vrot.lane.b32.xlu1 %v1776_v31, %s2800_s26  ;;  %1543 = vst.msk [vmem:[#allocation3 + $0x80] sm:$0xff] %vm1526_vm8, %v1463_v20 }
 0x1ec   : > { %1482 = vrot.lane.b32.xlu0 %v1392_v48, %s2801_s27 }
 0x1ed   : > { %v1271_v45 = vpop.permute.xlu1 %1270  ;;  %v1959_v52 = vld [vmem:[#allocation3 + $0x70] sm:$0xff] }
 0x1ee   : > { %1350 = vst.msk [vmem:[#allocation3 + $0x88] sm:$0xff] %vm1332_vm7, %v1271_v45  ;;  %2733 = vmatprep.mubr.msk.f32.mxu0 %vm1982_vm11, %v1959_v52  ;;  %v1656_v16 = vpop.permute.xlu0 %1655  ;;  %v1960_v22 = vld [vmem:[#allocation3 + $0x78] sm:$0xff] }
 0x1ef   : > { %1290 = vrot.lane.b32.xlu1 %v1777_v7, %s2800_s26  ;;  %1736 = vst.msk [vmem:[#allocation3 + $0x80] sm:$0xff] %vm1719_vm9, %v1656_v16  ;;  %2734 = vmatmul.mubr.msk.f32.gmra.mxu0 %vm1982_vm11, %v1960_v22 }
 0x1f0   : > { %1484 = vrot.lane.b32.xlu0 %v1393_v53, %s2801_s27 }
 0x1f1   : > { %v1465_v1 = vpop.permute.xlu1 %1464 }
 0x1f2   : > { %1544 = vst.msk [vmem:[#allocation3 + $0x88] sm:$0xff] %vm1526_vm8, %v1465_v1  ;;  %v1658_v19 = vpop.permute.xlu0 %1657 }
 0x1f3   : > { %906 = vrot.lane.b32.xlu1 %v1392_v48, %s2798_s24  ;;  %1737 = vst.msk [vmem:[#allocation3 + $0x88] sm:$0xff] %vm1719_vm9, %v1658_v19 }
 0x1f4   : > { %908 = vrot.lane.b32.xlu0 %v1393_v53, %s2798_s24 }
 0x1f5   : > { %v1080_v51 = vpop.permute.xlu1 %1079 }
 0x1f6   : > { %1158 = vst.msk [vmem:[#allocation3 + $0x90] sm:$0xff] %vm1139_vm6, %v1080_v51  ;;  %v1082_v4 = vpop.permute.xlu0 %1081 }
 0x1f7   : > { %1675 = vrot.lane.b32.xlu1 %v1585_v57, %s2802_s30  ;;  %1159 = vst.msk [vmem:[#allocation3 + $0x98] sm:$0xff] %vm1139_vm6, %v1082_v4 }
 0x1f8   : > { %1677 = vrot.lane.b32.xlu0 %v1586_v9, %s2802_s30 }
 0x1f9   : > { %v1849_v30 = vpop.permute.xlu1 %1848 }
 0x1fa   : > { %1929 = vst.msk [vmem:[#allocation3 + $0x80] sm:$0xff] %vm1912_vm10, %v1849_v30  ;;  %v1851_v38 = vpop.permute.xlu0 %1850 }
 0x1fb   : > { %1099 = vrot.lane.b32.xlu1 %v1585_v57, %s2799_s25  ;;  %1930 = vst.msk [vmem:[#allocation3 + $0x88] sm:$0xff] %vm1912_vm10, %v1851_v38 }
 0x1fc   : > { %1101 = vrot.lane.b32.xlu0 %v1586_v9, %s2799_s25 }
 0x1fd   : > { %v1273_v24 = vpop.permute.xlu1 %1272 }
 0x1fe   : > { %1351 = vst.msk [vmem:[#allocation3 + $0x90] sm:$0xff] %vm1332_vm7, %v1273_v24  ;;  %v1467_v14 = vpop.permute.xlu0 %1466 }
 0x1ff   : > { %1868 = vrot.lane.b32.xlu1 %v1778_v23, %s2803_s13  ;;  %1545 = vst.msk [vmem:[#allocation3 + $0x90] sm:$0xff] %vm1526_vm8, %v1467_v14 }
 0x200   : > { %1870 = vrot.lane.b32.xlu0 %v1779_v21, %s2803_s13 }
 0x201   : > { %v1275_v50 = vpop.permute.xlu1 %1274  ;;  %v1961_v55 = vld [vmem:[#allocation3 + $0x80] sm:$0xff] }
 0x202   : > { %1352 = vst.msk [vmem:[#allocation3 + $0x98] sm:$0xff] %vm1332_vm7, %v1275_v50  ;;  %2736 = vmatprep.mubr.msk.f32.mxu1 %vm1982_vm11, %v1961_v55  ;;  %v1469_v63 = vpop.permute.xlu0 %1468  ;;  %v1962_v25 = vld [vmem:[#allocation3 + $0x88] sm:$0xff] }
 0x203   : > { %1292 = vrot.lane.b32.xlu1 %v1778_v23, %s2800_s26  ;;  %1546 = vst.msk [vmem:[#allocation3 + $0x98] sm:$0xff] %vm1526_vm8, %v1469_v63  ;;  %2737 = vmatmul.mubr.msk.f32.vlgmr.msra.gmra.mxu1 %vm1982_vm11, %v1962_v25 }
 0x204   : > { %1486 = vrot.lane.b32.xlu0 %v1394_v18, %s2801_s27 }
 0x205   : > { %v891_v3 = vpop.permute.xlu1 %890 }
 0x206   : > { %967 = vst.msk [vmem:[#allocation3 + $0xa0] sm:$0xff] %vm946_vm5, %v891_v3  ;;  %v893_v28 = vpop.permute.xlu0 %892 }
 0x207   : > { %1294 = vrot.lane.b32.xlu1 %v1779_v21, %s2800_s26  ;;  %968 = vst.msk [vmem:[#allocation3 + $0xa8] sm:$0xff] %vm946_vm5, %v893_v28 }
 0x208   : > { %1488 = vrot.lane.b32.xlu0 %v1395_v59, %s2801_s27 }
 0x209   : > { %v1660_v32 = vpop.permute.xlu1 %1659 }
 0x20a   : > { %1738 = vst.msk [vmem:[#allocation3 + $0x90] sm:$0xff] %vm1719_vm9, %v1660_v32  ;;  %v1662_v41 = vpop.permute.xlu0 %1661 }
 0x20b   : > { %910 = vrot.lane.b32.xlu1 %v1394_v18, %s2798_s24  ;;  %1739 = vst.msk [vmem:[#allocation3 + $0x98] sm:$0xff] %vm1719_vm9, %v1662_v41 }
 0x20c   : > { %912 = vrot.lane.b32.xlu0 %v1395_v59, %s2798_s24  ;;  %s214_s24 = scalar_lea.vmem %s3968_s4, %s3971_s16 }
 0x20d   : > { %v1084_v27 = vpop.permute.xlu1 %1083 }
 0x20e   : > { %1160 = vst.msk [vmem:[#allocation3 + $0xa0] sm:$0xff] %vm1139_vm6, %v1084_v27  ;;  %v1086_v56 = vpop.permute.xlu0 %1085 }
 0x20f   : > { %1679 = vrot.lane.b32.xlu1 %v1587_v6, %s2802_s30  ;;  %1161 = vst.msk [vmem:[#allocation3 + $0xa8] sm:$0xff] %vm1139_vm6, %v1086_v56 }
 0x210   : > { %1681 = vrot.lane.b32.xlu0 %v1588_v49, %s2802_s30 }
 0x211   : > { %v1853_v58 = vpop.permute.xlu1 %1852 }
 0x212   : > { %1931 = vst.msk [vmem:[#allocation3 + $0x90] sm:$0xff] %vm1912_vm10, %v1853_v58  ;;  %v1855_v12 = vpop.permute.xlu0 %1854 }
 0x213   : > { %1103 = vrot.lane.b32.xlu1 %v1587_v6, %s2799_s25  ;;  %1932 = vst.msk [vmem:[#allocation3 + $0x98] sm:$0xff] %vm1912_vm10, %v1855_v12 }
 0x214   : > { %1105 = vrot.lane.b32.xlu0 %v1588_v49, %s2799_s25 }
 0x215   : > { %v1277_v61 = vpop.permute.xlu1 %1276 }
 0x216   : > { %1353 = vst.msk [vmem:[#allocation3 + $0xa0] sm:$0xff] %vm1332_vm7, %v1277_v61  ;;  %v1471_v40 = vpop.permute.xlu0 %1470 }
 0x217   : > { %1872 = vrot.lane.b32.xlu1 %v1780_v39, %s2803_s13  ;;  %1547 = vst.msk [vmem:[#allocation3 + $0xa0] sm:$0xff] %vm1526_vm8, %v1471_v40 }
 0x218   : > { %1874 = vrot.lane.b32.xlu0 %v1781_v46, %s2803_s13 }
 0x219   : > { %v1279_v43 = vpop.permute.xlu1 %1278  ;;  %v1963_v5 = vld [vmem:[#allocation3 + $0x90] sm:$0xff] }
 0x21a   : > { %1354 = vst.msk [vmem:[#allocation3 + $0xa8] sm:$0xff] %vm1332_vm7, %v1279_v43  ;;  %2739 = vmatprep.mubr.msk.f32.mxu1 %vm1982_vm11, %v1963_v5  ;;  %v1473_v33 = vpop.permute.xlu0 %1472  ;;  %v1964_v11 = vld [vmem:[#allocation3 + $0x98] sm:$0xff] }
 0x21b   : > { %1296 = vrot.lane.b32.xlu1 %v1780_v39, %s2800_s26  ;;  %1548 = vst.msk [vmem:[#allocation3 + $0xa8] sm:$0xff] %vm1526_vm8, %v1473_v33  ;;  %2740 = vmatmul.mubr.msk.f32.gmra.mxu1 %vm1982_vm11, %v1964_v11 }
 0x21c   : > { %1490 = vrot.lane.b32.xlu0 %v1396_v29, %s2801_s27 }
 0x21d   : > { %v895_v60 = vpop.permute.xlu1 %894 }
 0x21e   : > { %969 = vst.msk [vmem:[#allocation3 + $0xb0] sm:$0xff] %vm946_vm5, %v895_v60  ;;  %v897_v8 = vpop.permute.xlu0 %896 }
 0x21f   : > { %1298 = vrot.lane.b32.xlu1 %v1781_v46, %s2800_s26  ;;  %970 = vst.msk [vmem:[#allocation3 + $0xb8] sm:$0xff] %vm946_vm5, %v897_v8 }
 0x220   : > { %1683 = vrot.lane.b32.xlu0 %v1589_v15, %s2802_s30 }
 0x221   : > { %v1664_v0 = vpop.permute.xlu1 %1663 }
 0x222   : > { %1740 = vst.msk [vmem:[#allocation3 + $0xa0] sm:$0xff] %vm1719_vm9, %v1664_v0  ;;  %v1666_v42 = vpop.permute.xlu0 %1665 }
 0x223   : > { %1492 = vrot.lane.b32.xlu1 %v1397_v54, %s2801_s27  ;;  %1741 = vst.msk [vmem:[#allocation3 + $0xa8] sm:$0xff] %vm1719_vm9, %v1666_v42  ;;  %v2714_v47 = vpop.f32.mrf.mxu0 }
 0x224   : > { %2310 = vst.msk [vmem:[%s3746_s19 + $0x8] sm:$0xff] %vm2308_vm12, %v2714_v47  ;;  %v2342_v37 = vsel %vm2308_vm12, %v2714_v47, 0.0  ;;  %v2413_v13 = vmul.f32 %v2714_v47, %v2714_v47  ;;  %1876 = vrot.lane.b32.xlu0 %v1782_v34, %s2803_s13 }
 0x225   : > { %v1088_v36 = vpop.permute.xlu1 %1087  ;;  %v2149_v26 = vpop.f32.mrf.mxu0 }
 0x226   : > { %1162 = vst.msk [vmem:[#allocation3 + $0xb0] sm:$0xff] %vm1139_vm6, %v1088_v36  ;;  %v1090_v62 = vpop.permute.xlu0 %1089  ;;  %v2445_v17 = vsel %vm2308_vm12, %v2413_v13, 0.0  ;;  %v2341_v31 = vsel %vm2308_vm12, %v2149_v26, 0.0  ;;  %v2412_v2 = vmul.f32 %v2149_v26, %v2149_v26 }
 0x227   : > { %1685 = vrot.lane.b32.xlu1 %v1590_v35, %s2802_s30  ;;  %2309 = vst.msk [vmem:[%s3746_s19] sm:$0xff] %vm2308_vm12, %v2149_v26  ;;  %v2343_v7 = vadd.f32 %v2342_v37, %v2341_v31 }
 0x228   : > { %1163 = vst.msk [vmem:[#allocation3 + $0xb8] sm:$0xff] %vm1139_vm6, %v1090_v62  ;;  %v2444_v44 = vsel %vm2308_vm12, %v2412_v2, 0.0 }
 0x229   : > { %v1857_v48 = vpop.permute.xlu1 %1856  ;;  %v2446_v20 = vadd.f32 %v2445_v17, %v2444_v44 }
 0x22a   : > { %1933 = vst.msk [vmem:[#allocation3 + $0xa0] sm:$0xff] %vm1912_vm10, %v1857_v48  ;;  %v1859_v45 = vpop.permute.xlu0 %1858 }
 0x22b   : > { %1878 = vrot.lane.b32.xlu1 %v1783_v10, %s2803_s13  ;;  %1934 = vst.msk [vmem:[#allocation3 + $0xa8] sm:$0xff] %vm1912_vm10, %v1859_v45 }
 0x22d   : > { %v1281_v52 = vpop.permute.xlu1 %1280 }
 0x22e   : > { %1355 = vst.msk [vmem:[#allocation3 + $0xb0] sm:$0xff] %vm1332_vm7, %v1281_v52  ;;  %v1475_v53 = vpop.permute.xlu0 %1474 }
 0x22f   : > { %1549 = vst.msk [vmem:[#allocation3 + $0xb0] sm:$0xff] %vm1526_vm8, %v1475_v53 }
 0x231   : > { %v1283_v16 = vpop.permute.xlu1 %1282  ;;  %v1965_v22 = vld [vmem:[#allocation3 + $0xa0] sm:$0xff] }
 0x232   : > { %1356 = vst.msk [vmem:[#allocation3 + $0xb8] sm:$0xff] %vm1332_vm7, %v1283_v16  ;;  %2742 = vmatprep.mubr.msk.f32.mxu1 %vm1982_vm11, %v1965_v22  ;;  %v1477_v1 = vpop.permute.xlu0 %1476  ;;  %v1966_v19 = vld [vmem:[#allocation3 + $0xa8] sm:$0xff] }
 0x233   : > { %1550 = vst.msk [vmem:[#allocation3 + $0xb8] sm:$0xff] %vm1526_vm8, %v1477_v1  ;;  %2743 = vmatmul.mubr.msk.f32.gmra.mxu1 %vm1982_vm11, %v1966_v19 }
 0x235   : > { %v899_v57 = vpop.permute.xlu1 %898 }
 0x236   : > { %971 = vst.msk [vmem:[#allocation3 + $0xc0] sm:$0xff] %vm946_vm5, %v899_v57  ;;  %v901_v51 = vpop.permute.xlu0 %900 }
 0x237   : > { %972 = vst.msk [vmem:[#allocation3 + $0xc8] sm:$0xff] %vm946_vm5, %v901_v51  ;;  %v2717_v9 = vpop.f32.mrf.mxu0 }
 0x238   : > { %2312 = vst.msk [vmem:[%s3746_s19 + $0x18] sm:$0xff] %vm2308_vm12, %v2717_v9  ;;  %v2415_v4 = vmul.f32 %v2717_v9, %v2717_v9  ;;  %v2346_v23 = vsel %vm2308_vm12, %v2717_v9, 0.0 }
 0x239   : > { %v1668_v30 = vpop.permute.xlu1 %1667  ;;  %v2159_v38 = vpop.f32.mrf.mxu0 }
 0x23a   : > { %1742 = vst.msk [vmem:[#allocation3 + $0xb0] sm:$0xff] %vm1719_vm9, %v1668_v30  ;;  %v2344_v24 = vsel %vm2308_vm12, %v2159_v38, 0.0  ;;  %v2414_v21 = vmul.f32 %v2159_v38, %v2159_v38  ;;  %v1670_v14 = vpop.permute.xlu0 %1669  ;;  %v2449_v55 = vsel %vm2308_vm12, %v2415_v4, 0.0 }
 0x23b   : > { %2311 = vst.msk [vmem:[%s3746_s19 + $0x10] sm:$0xff] %vm2308_vm12, %v2159_v38  ;;  %v2345_v50 = vadd.f32 %v2344_v24, %v2343_v7 }
 0x23c   : > { %1743 = vst.msk [vmem:[#allocation3 + $0xb8] sm:$0xff] %vm1719_vm9, %v1670_v14  ;;  %v2447_v18 = vsel %vm2308_vm12, %v2414_v21, 0.0 }
 0x23d   : > { %v1092_v63 = vpop.permute.xlu1 %1091  ;;  %v2448_v25 = vadd.f32 %v2447_v18, %v2446_v20  ;;  %v2347_v3 = vadd.f32 %v2346_v23, %v2345_v50 }
 0x23e   : > { %1164 = vst.msk [vmem:[#allocation3 + $0xc0] sm:$0xff] %vm1139_vm6, %v1092_v63  ;;  %v1094_v59 = vpop.permute.xlu0 %1093 }
 0x23f   : > { %1165 = vst.msk [vmem:[#allocation3 + $0xc8] sm:$0xff] %vm1139_vm6, %v1094_v59  ;;  %v2450_v28 = vadd.f32 %v2449_v55, %v2448_v25 }
 0x241   : > { %v1861_v32 = vpop.permute.xlu1 %1860 }
 0x242   : > { %1935 = vst.msk [vmem:[#allocation3 + $0xb0] sm:$0xff] %vm1912_vm10, %v1861_v32  ;;  %v1863_v41 = vpop.permute.xlu0 %1862 }
 0x243   : > { %1936 = vst.msk [vmem:[#allocation3 + $0xb8] sm:$0xff] %vm1912_vm10, %v1863_v41 }
 0x245   : > { %v1285_v6 = vpop.permute.xlu1 %1284 }
 0x246   : > { %1357 = vst.msk [vmem:[#allocation3 + $0xc0] sm:$0xff] %vm1332_vm7, %v1285_v6  ;;  %v1479_v27 = vpop.permute.xlu0 %1478 }
 0x247   : > { %1551 = vst.msk [vmem:[#allocation3 + $0xc0] sm:$0xff] %vm1526_vm8, %v1479_v27 }
 0x249   : > { %v1287_v49 = vpop.permute.xlu1 %1286  ;;  %v1967_v56 = vld [vmem:[#allocation3 + $0xb0] sm:$0xff] }
 0x24a   : > { %1358 = vst.msk [vmem:[#allocation3 + $0xc8] sm:$0xff] %vm1332_vm7, %v1287_v49  ;;  %2745 = vmatprep.mubr.msk.f32.mxu1 %vm1982_vm11, %v1967_v56  ;;  %v1481_v58 = vpop.permute.xlu0 %1480  ;;  %v1968_v12 = vld [vmem:[#allocation3 + $0xb8] sm:$0xff] }
 0x24b   : > { %1552 = vst.msk [vmem:[#allocation3 + $0xc8] sm:$0xff] %vm1526_vm8, %v1481_v58  ;;  %v2720_v39 = vpop.f32.mrf.mxu0  ;;  %2746 = vmatmul.mubr.msk.f32.gmra.mxu1 %vm1982_vm11, %v1968_v12 }
 0x24c   : > { %2314 = vst.msk [vmem:[%s3746_s19 + $0x28] sm:$0xff] %vm2308_vm12, %v2720_v39  ;;  %v2417_v61 = vmul.f32 %v2720_v39, %v2720_v39  ;;  %v2350_v43 = vsel %vm2308_vm12, %v2720_v39, 0.0 }
 0x24d   : > { %v903_v46 = vpop.permute.xlu1 %902  ;;  %v2169_v40 = vpop.f32.mrf.mxu0 }
 0x24e   : > { %973 = vst.msk [vmem:[#allocation3 + $0xd0] sm:$0xff] %vm946_vm5, %v903_v46  ;;  %v2348_v5 = vsel %vm2308_vm12, %v2169_v40, 0.0  ;;  %v2416_v29 = vmul.f32 %v2169_v40, %v2169_v40  ;;  %v905_v33 = vpop.permute.xlu0 %904  ;;  %v2453_v60 = vsel %vm2308_vm12, %v2417_v61, 0.0 }
 0x24f   : > { %2313 = vst.msk [vmem:[%s3746_s19 + $0x20] sm:$0xff] %vm2308_vm12, %v2169_v40  ;;  %v2349_v11 = vadd.f32 %v2348_v5, %v2347_v3 }
 0x250   : > { %974 = vst.msk [vmem:[#allocation3 + $0xd8] sm:$0xff] %vm946_vm5, %v905_v33  ;;  %v2451_v15 = vsel %vm2308_vm12, %v2416_v29, 0.0 }
 0x251   : > { %v1672_v8 = vpop.permute.xlu1 %1671  ;;  %v2452_v54 = vadd.f32 %v2451_v15, %v2450_v28  ;;  %v2351_v0 = vadd.f32 %v2350_v43, %v2349_v11 }
 0x252   : > { %1744 = vst.msk [vmem:[#allocation3 + $0xc0] sm:$0xff] %vm1719_vm9, %v1672_v8  ;;  %v1674_v34 = vpop.permute.xlu0 %1673 }
 0x253   : > { %1745 = vst.msk [vmem:[#allocation3 + $0xc8] sm:$0xff] %vm1719_vm9, %v1674_v34  ;;  %v2454_v42 = vadd.f32 %v2453_v60, %v2452_v54 }
 0x255   : > { %v1096_v47 = vpop.permute.xlu1 %1095 }
 0x256   : > { %1166 = vst.msk [vmem:[#allocation3 + $0xd0] sm:$0xff] %vm1139_vm6, %v1096_v47  ;;  %v1098_v35 = vpop.permute.xlu0 %1097 }
 0x257   : > { %1167 = vst.msk [vmem:[#allocation3 + $0xd8] sm:$0xff] %vm1139_vm6, %v1098_v35 }
 0x259   : > { %v1865_v36 = vpop.permute.xlu1 %1864 }
 0x25a   : > { %1937 = vst.msk [vmem:[#allocation3 + $0xc0] sm:$0xff] %vm1912_vm10, %v1865_v36  ;;  %v1867_v37 = vpop.permute.xlu0 %1866 }
 0x25b   : > { %1938 = vst.msk [vmem:[#allocation3 + $0xc8] sm:$0xff] %vm1912_vm10, %v1867_v37 }
 0x25d   : > { %v1289_v13 = vpop.permute.xlu1 %1288 }
 0x25e   : > { %1359 = vst.msk [vmem:[#allocation3 + $0xd0] sm:$0xff] %vm1332_vm7, %v1289_v13  ;;  %v1483_v26 = vpop.permute.xlu0 %1482 }
 0x25f   : > { %1553 = vst.msk [vmem:[#allocation3 + $0xd0] sm:$0xff] %vm1526_vm8, %v1483_v26  ;;  %v2723_v62 = vpop.f32.mrf.mxu0 }
 0x260   : > { %2316 = vst.msk [vmem:[%s3746_s19 + $0x38] sm:$0xff] %vm2308_vm12, %v2723_v62  ;;  %v2419_v17 = vmul.f32 %v2723_v62, %v2723_v62  ;;  %v2354_v10 = vsel %vm2308_vm12, %v2723_v62, 0.0 }
 0x261   : > { %v1291_v31 = vpop.permute.xlu1 %1290  ;;  %v1969_v2 = vld [vmem:[#allocation3 + $0xc0] sm:$0xff]  ;;  %v2179_v7 = vpop.f32.mrf.mxu0 }
 0x262   : > { %1360 = vst.msk [vmem:[#allocation3 + $0xd8] sm:$0xff] %vm1332_vm7, %v1291_v31  ;;  %2748 = vmatprep.mubr.msk.f32.mxu1 %vm1982_vm11, %v1969_v2  ;;  %v2352_v44 = vsel %vm2308_vm12, %v2179_v7, 0.0  ;;  %v2418_v48 = vmul.f32 %v2179_v7, %v2179_v7  ;;  %v1485_v20 = vpop.permute.xlu0 %1484  ;;  %v1970_v45 = vld [vmem:[#allocation3 + $0xc8] sm:$0xff]  ;;  %v2457_v53 = vsel %vm2308_vm12, %v2419_v17, 0.0 }
 0x263   : > { %2315 = vst.msk [vmem:[%s3746_s19 + $0x30] sm:$0xff] %vm2308_vm12, %v2179_v7  ;;  %v2353_v52 = vadd.f32 %v2352_v44, %v2351_v0  ;;  %2749 = vmatmul.mubr.msk.f32.gmra.mxu1 %vm1982_vm11, %v1970_v45 }
 0x264   : > { %1554 = vst.msk [vmem:[#allocation3 + $0xd8] sm:$0xff] %vm1526_vm8, %v1485_v20  ;;  %v2455_v16 = vsel %vm2308_vm12, %v2418_v48, 0.0 }
 0x265   : > { %v907_v22 = vpop.permute.xlu1 %906  ;;  %v2456_v1 = vadd.f32 %v2455_v16, %v2454_v42  ;;  %v2355_v19 = vadd.f32 %v2354_v10, %v2353_v52 }
 0x266   : > { %975 = vst.msk [vmem:[#allocation3 + $0xe0] sm:$0xff] %vm946_vm5, %v907_v22  ;;  %v909_v57 = vpop.permute.xlu0 %908 }
 0x267   : > { %976 = vst.msk [vmem:[#allocation3 + $0xe8] sm:$0xff] %vm946_vm5, %v909_v57  ;;  %v2458_v51 = vadd.f32 %v2457_v53, %v2456_v1 }
 0x269   : > { %v1676_v9 = vpop.permute.xlu1 %1675 }
 0x26a   : > { %1746 = vst.msk [vmem:[#allocation3 + $0xd0] sm:$0xff] %vm1719_vm9, %v1676_v9  ;;  %v1678_v4 = vpop.permute.xlu0 %1677 }
 0x26b   : > { %1747 = vst.msk [vmem:[#allocation3 + $0xd8] sm:$0xff] %vm1719_vm9, %v1678_v4 }
 0x26d   : > { %v1100_v30 = vpop.permute.xlu1 %1099 }
 0x26e   : > { %1168 = vst.msk [vmem:[#allocation3 + $0xe0] sm:$0xff] %vm1139_vm6, %v1100_v30  ;;  %v1102_v38 = vpop.permute.xlu0 %1101 }
 0x26f   : > { %1169 = vst.msk [vmem:[#allocation3 + $0xe8] sm:$0xff] %vm1139_vm6, %v1102_v38 }
 0x271   : > { %v1869_v23 = vpop.permute.xlu1 %1868 }
 0x272   : > { %1939 = vst.msk [vmem:[#allocation3 + $0xd0] sm:$0xff] %vm1912_vm10, %v1869_v23  ;;  %v1871_v24 = vpop.permute.xlu0 %1870 }
 0x273   : > { %1940 = vst.msk [vmem:[#allocation3 + $0xd8] sm:$0xff] %vm1912_vm10, %v1871_v24  ;;  %v2726_v21 = vpop.f32.mrf.mxu0 }
 0x274   : > { %2318 = vst.msk [vmem:[%s3746_s19 + $0x48] sm:$0xff] %vm2308_vm12, %v2726_v21  ;;  %v2421_v14 = vmul.f32 %v2726_v21, %v2726_v21  ;;  %v2358_v18 = vsel %vm2308_vm12, %v2726_v21, 0.0 }
 0x275   : > { %v1293_v50 = vpop.permute.xlu1 %1292  ;;  %v2189_v55 = vpop.f32.mrf.mxu0 }
 0x276   : > { %1361 = vst.msk [vmem:[#allocation3 + $0xe0] sm:$0xff] %vm1332_vm7, %v1293_v50  ;;  %v2356_v63 = vsel %vm2308_vm12, %v2189_v55, 0.0  ;;  %v2420_v25 = vmul.f32 %v2189_v55, %v2189_v55  ;;  %v1487_v3 = vpop.permute.xlu0 %1486  ;;  %v2461_v28 = vsel %vm2308_vm12, %v2421_v14, 0.0 }
 0x277   : > { %2317 = vst.msk [vmem:[%s3746_s19 + $0x40] sm:$0xff] %vm2308_vm12, %v2189_v55  ;;  %v2357_v59 = vadd.f32 %v2356_v63, %v2355_v19 }
 0x278   : > { %1555 = vst.msk [vmem:[#allocation3 + $0xe0] sm:$0xff] %vm1526_vm8, %v1487_v3  ;;  %v2459_v32 = vsel %vm2308_vm12, %v2420_v25, 0.0 }
 0x279   : > { %v1295_v41 = vpop.permute.xlu1 %1294  ;;  %v1971_v6 = vld [vmem:[#allocation3 + $0xd0] sm:$0xff]  ;;  %v2460_v27 = vadd.f32 %v2459_v32, %v2458_v51  ;;  %v2359_v49 = vadd.f32 %v2358_v18, %v2357_v59 }
 0x27a   : > { %1362 = vst.msk [vmem:[#allocation3 + $0xe8] sm:$0xff] %vm1332_vm7, %v1295_v41  ;;  %2751 = vmatprep.mubr.msk.f32.mxu1 %vm1982_vm11, %v1971_v6  ;;  %v1489_v56 = vpop.permute.xlu0 %1488  ;;  %v1972_v58 = vld [vmem:[#allocation3 + $0xd8] sm:$0xff] }
 0x27b   : > { %1556 = vst.msk [vmem:[#allocation3 + $0xe8] sm:$0xff] %vm1526_vm8, %v1489_v56  ;;  %2752 = vmatmul.mubr.msk.f32.gmra.mxu1 %vm1982_vm11, %v1972_v58  ;;  %v2462_v12 = vadd.f32 %v2461_v28, %v2460_v27 }
 0x27d   : > { %v911_v39 = vpop.permute.xlu1 %910 }
 0x27e   : > { %977 = vst.msk [vmem:[#allocation3 + $0xf0] sm:$0xff] %vm946_vm5, %v911_v39  ;;  %v913_v61 = vpop.permute.xlu0 %912 }
 0x27f   : > { %978 = vst.msk [vmem:[#allocation3 + $0xf8] sm:$0xff] %vm946_vm5, %v913_v61 }
 0x281   : > { %v1680_v46 = vpop.permute.xlu1 %1679 }
 0x282   : > { %1748 = vst.msk [vmem:[#allocation3 + $0xe0] sm:$0xff] %vm1719_vm9, %v1680_v46  ;;  %v1682_v40 = vpop.permute.xlu0 %1681 }
 0x283   : > { %1749 = vst.msk [vmem:[#allocation3 + $0xe8] sm:$0xff] %vm1719_vm9, %v1682_v40 }
 0x285   : > { %v1104_v43 = vpop.permute.xlu1 %1103 }
 0x286   : > { %1170 = vst.msk [vmem:[#allocation3 + $0xf0] sm:$0xff] %vm1139_vm6, %v1104_v43  ;;  %v1106_v5 = vpop.permute.xlu0 %1105 }
 0x287   : > { %1171 = vst.msk [vmem:[#allocation3 + $0xf8] sm:$0xff] %vm1139_vm6, %v1106_v5  ;;  %v2729_v29 = vpop.f32.mrf.mxu0 }
 0x288   : > { %2320 = vst.msk [vmem:[%s3746_s19 + $0x58] sm:$0xff] %vm2308_vm12, %v2729_v29  ;;  %v2423_v33 = vmul.f32 %v2729_v29, %v2729_v29  ;;  %v2362_v15 = vsel %vm2308_vm12, %v2729_v29, 0.0 }
 0x289   : > { %v1873_v11 = vpop.permute.xlu1 %1872  ;;  %v2199_v60 = vpop.f32.mrf.mxu0 }
 0x28a   : > { %1941 = vst.msk [vmem:[#allocation3 + $0xe0] sm:$0xff] %vm1912_vm10, %v1873_v11  ;;  %v2360_v8 = vsel %vm2308_vm12, %v2199_v60, 0.0  ;;  %v2422_v54 = vmul.f32 %v2199_v60, %v2199_v60  ;;  %v1875_v0 = vpop.permute.xlu0 %1874  ;;  %v2465_v42 = vsel %vm2308_vm12, %v2423_v33, 0.0 }
 0x28b   : > { %2319 = vst.msk [vmem:[%s3746_s19 + $0x50] sm:$0xff] %vm2308_vm12, %v2199_v60  ;;  %v2361_v34 = vadd.f32 %v2360_v8, %v2359_v49 }
 0x28c   : > { %1942 = vst.msk [vmem:[#allocation3 + $0xe8] sm:$0xff] %vm1912_vm10, %v1875_v0  ;;  %v2463_v47 = vsel %vm2308_vm12, %v2422_v54, 0.0 }
 0x28d   : > { %v1297_v35 = vpop.permute.xlu1 %1296  ;;  %v2464_v36 = vadd.f32 %v2463_v47, %v2462_v12  ;;  %v2363_v37 = vadd.f32 %v2362_v15, %v2361_v34 }
 0x28e   : > { %1363 = vst.msk [vmem:[#allocation3 + $0xf0] sm:$0xff] %vm1332_vm7, %v1297_v35  ;;  %v1491_v13 = vpop.permute.xlu0 %1490 }
 0x28f   : > { %1557 = vst.msk [vmem:[#allocation3 + $0xf0] sm:$0xff] %vm1526_vm8, %v1491_v13  ;;  %v2466_v26 = vadd.f32 %v2465_v42, %v2464_v36 }
 0x291   : > { %v1299_v62 = vpop.permute.xlu1 %1298  ;;  %v1973_v17 = vld [vmem:[#allocation3 + $0xe0] sm:$0xff] }
 0x292   : > { %1364 = vst.msk [vmem:[#allocation3 + $0xf8] sm:$0xff] %vm1332_vm7, %v1299_v62  ;;  %2754 = vmatprep.mubr.msk.f32.mxu1 %vm1982_vm11, %v1973_v17  ;;  %v1684_v2 = vpop.permute.xlu0 %1683 }
 0x293   : > { %v1974_v31 = vld [vmem:[#allocation3 + $0xe8] sm:$0xff]  ;;  %1750 = vst.msk [vmem:[#allocation3 + $0xf0] sm:$0xff] %vm1719_vm9, %v1684_v2 }
 0x294   : > { %2755 = vmatmul.mubr.msk.f32.gmra.mxu1 %vm1982_vm11, %v1974_v31 }
 0x295   : > { %v1493_v7 = vpop.permute.xlu1 %1492 }
 0x296   : > { %1558 = vst.msk [vmem:[#allocation3 + $0xf8] sm:$0xff] %vm1526_vm8, %v1493_v7  ;;  %v1877_v10 = vpop.permute.xlu0 %1876 }
 0x297   : > { %1943 = vst.msk [vmem:[#allocation3 + $0xf0] sm:$0xff] %vm1912_vm10, %v1877_v10 }
 0x299   : > { %v1686_v44 = vpop.permute.xlu1 %1685 }
 0x29a   : > { %1751 = vst.msk [vmem:[#allocation3 + $0xf8] sm:$0xff] %vm1719_vm9, %v1686_v44 }
 0x29b   : > { %v2732_v48 = vpop.f32.mrf.mxu0 }
 0x29c   : > { %2322 = vst.msk [vmem:[%s3746_s19 + $0x68] sm:$0xff] %vm2308_vm12, %v2732_v48  ;;  %v2425_v20 = vmul.f32 %v2732_v48, %v2732_v48  ;;  %v2366_v53 = vsel %vm2308_vm12, %v2732_v48, 0.0 }
 0x29d   : > { %v1879_v45 = vpop.permute.xlu1 %1878  ;;  %v2209_v52 = vpop.f32.mrf.mxu0 }
 0x29e   : > { %1944 = vst.msk [vmem:[#allocation3 + $0xf8] sm:$0xff] %vm1912_vm10, %v1879_v45  ;;  %v2364_v16 = vsel %vm2308_vm12, %v2209_v52, 0.0  ;;  %v2424_v22 = vmul.f32 %v2209_v52, %v2209_v52  ;;  %v1975_v1 = vld [vmem:[#allocation3 + $0xf0] sm:$0xff]  ;;  %v2469_v57 = vsel %vm2308_vm12, %v2425_v20, 0.0 }
 0x29f   : > { %2321 = vst.msk [vmem:[%s3746_s19 + $0x60] sm:$0xff] %vm2308_vm12, %v2209_v52  ;;  %v2365_v19 = vadd.f32 %v2364_v16, %v2363_v37  ;;  %2757 = vmatprep.mubr.msk.f32.mxu1 %vm1982_vm11, %v1975_v1 }
 0x2a0   : > { %v2467_v51 = vsel %vm2308_vm12, %v2424_v22, 0.0 }
 0x2a1   : > { %v2468_v9 = vadd.f32 %v2467_v51, %v2466_v26  ;;  %v2367_v4 = vadd.f32 %v2366_v53, %v2365_v19 }
 0x2a3   : > { %v2470_v30 = vadd.f32 %v2469_v57, %v2468_v9 }
 0x2a5   : > { %v1976_v38 = vld [vmem:[#allocation3 + $0xf8] sm:$0xff] }
 0x2a6   : > { %2758 = vmatmul.mubr.msk.f32.gmra.mxu1 %vm1982_vm11, %v1976_v38 }
 0x2af   : > { %v2735_v23 = vpop.f32.mrf.mxu0 }
 0x2b0   : > { %2324 = vst.msk [vmem:[%s3746_s19 + $0x78] sm:$0xff] %vm2308_vm12, %v2735_v23  ;;  %v2427_v24 = vmul.f32 %v2735_v23, %v2735_v23  ;;  %v2370_v14 = vsel %vm2308_vm12, %v2735_v23, 0.0 }
 0x2b1   : > { %v2219_v21 = vpop.f32.mrf.mxu0 }
 0x2b2   : > { %2323 = vst.msk [vmem:[%s3746_s19 + $0x70] sm:$0xff] %vm2308_vm12, %v2219_v21  ;;  %v2368_v50 = vsel %vm2308_vm12, %v2219_v21, 0.0  ;;  %v2426_v55 = vmul.f32 %v2219_v21, %v2219_v21  ;;  %v2473_v63 = vsel %vm2308_vm12, %v2427_v24, 0.0 }
 0x2b3   : > { %v2369_v18 = vadd.f32 %v2368_v50, %v2367_v4 }
 0x2b4   : > { %v2471_v25 = vsel %vm2308_vm12, %v2426_v55, 0.0 }
 0x2b5   : > { %v2371_v3 = vadd.f32 %v2370_v14, %v2369_v18  ;;  %v2472_v59 = vadd.f32 %v2471_v25, %v2470_v30 }
 0x2b7   : > { %v2474_v28 = vadd.f32 %v2473_v63, %v2472_v59 }
 0x2c3   : > { %v2738_v32 = vpop.f32.mrf.mxu1 }
 0x2c4   : > { %2326 = vst.msk [vmem:[%s3746_s19 + $0x88] sm:$0xff] %vm2308_vm12, %v2738_v32  ;;  %v2429_v41 = vmul.f32 %v2738_v32, %v2738_v32  ;;  %v2374_v27 = vsel %vm2308_vm12, %v2738_v32, 0.0 }
 0x2c5   : > { %v2229_v6 = vpop.f32.mrf.mxu1 }
 0x2c6   : > { %2325 = vst.msk [vmem:[%s3746_s19 + $0x80] sm:$0xff] %vm2308_vm12, %v2229_v6  ;;  %v2372_v49 = vsel %vm2308_vm12, %v2229_v6, 0.0  ;;  %v2428_v56 = vmul.f32 %v2229_v6, %v2229_v6  ;;  %v2477_v12 = vsel %vm2308_vm12, %v2429_v41, 0.0 }
 0x2c7   : > { %v2373_v58 = vadd.f32 %v2372_v49, %v2371_v3 }
 0x2c8   : > { %v2475_v39 = vsel %vm2308_vm12, %v2428_v56, 0.0 }
 0x2c9   : > { %v2476_v61 = vadd.f32 %v2475_v39, %v2474_v28  ;;  %v2375_v46 = vadd.f32 %v2374_v27, %v2373_v58 }
 0x2cb   : > { %v2478_v40 = vadd.f32 %v2477_v12, %v2476_v61 }
 0x2db   : > { %v2741_v43 = vpop.f32.mrf.mxu1 }
 0x2dc   : > { %2328 = vst.msk [vmem:[%s3746_s19 + $0x98] sm:$0xff] %vm2308_vm12, %v2741_v43  ;;  %v2431_v5 = vmul.f32 %v2741_v43, %v2741_v43  ;;  %v2378_v33 = vsel %vm2308_vm12, %v2741_v43, 0.0 }
 0x2dd   : > { %v2239_v29 = vpop.f32.mrf.mxu1 }
 0x2de   : > { %2327 = vst.msk [vmem:[%s3746_s19 + $0x90] sm:$0xff] %vm2308_vm12, %v2239_v29  ;;  %v2376_v11 = vsel %vm2308_vm12, %v2239_v29, 0.0  ;;  %v2430_v60 = vmul.f32 %v2239_v29, %v2239_v29  ;;  %v2481_v8 = vsel %vm2308_vm12, %v2431_v5, 0.0 }
 0x2df   : > { %v2377_v15 = vadd.f32 %v2376_v11, %v2375_v46 }
 0x2e0   : > { %v2479_v54 = vsel %vm2308_vm12, %v2430_v60, 0.0 }
 0x2e1   : > { %v2480_v0 = vadd.f32 %v2479_v54, %v2478_v40  ;;  %v2379_v34 = vadd.f32 %v2378_v33, %v2377_v15 }
 0x2e3   : > { %v2482_v42 = vadd.f32 %v2481_v8, %v2480_v0 }
 0x2f3   : > { %v2744_v47 = vpop.f32.mrf.mxu1 }
 0x2f4   : > { %2330 = vst.msk [vmem:[%s3746_s19 + $0xa8] sm:$0xff] %vm2308_vm12, %v2744_v47  ;;  %v2433_v35 = vmul.f32 %v2744_v47, %v2744_v47  ;;  %v2382_v37 = vsel %vm2308_vm12, %v2744_v47, 0.0 }
 0x2f5   : > { %v2249_v36 = vpop.f32.mrf.mxu1 }
 0x2f6   : > { %2329 = vst.msk [vmem:[%s3746_s19 + $0xa0] sm:$0xff] %vm2308_vm12, %v2249_v36  ;;  %v2380_v13 = vsel %vm2308_vm12, %v2249_v36, 0.0  ;;  %v2432_v26 = vmul.f32 %v2249_v36, %v2249_v36  ;;  %v2485_v17 = vsel %vm2308_vm12, %v2433_v35, 0.0 }
 0x2f7   : > { %v2381_v62 = vadd.f32 %v2380_v13, %v2379_v34 }
 0x2f8   : > { %v2483_v31 = vsel %vm2308_vm12, %v2432_v26, 0.0 }
 0x2f9   : > { %v2484_v2 = vadd.f32 %v2483_v31, %v2482_v42  ;;  %v2383_v7 = vadd.f32 %v2382_v37, %v2381_v62 }
 0x2fb   : > { %v2486_v10 = vadd.f32 %v2485_v17, %v2484_v2 }
 0x30b   : > { %v2747_v44 = vpop.f32.mrf.mxu1 }
 0x30c   : > { %2332 = vst.msk [vmem:[%s3746_s19 + $0xb8] sm:$0xff] %vm2308_vm12, %v2747_v44  ;;  %v2435_v48 = vmul.f32 %v2747_v44, %v2747_v44  ;;  %v2386_v45 = vsel %vm2308_vm12, %v2747_v44, 0.0 }
 0x30d   : > { %v2259_v20 = vpop.f32.mrf.mxu1 }
 0x30e   : > { %2331 = vst.msk [vmem:[%s3746_s19 + $0xb0] sm:$0xff] %vm2308_vm12, %v2259_v20  ;;  %v2384_v52 = vsel %vm2308_vm12, %v2259_v20, 0.0  ;;  %v2434_v53 = vmul.f32 %v2259_v20, %v2259_v20  ;;  %v2489_v22 = vsel %vm2308_vm12, %v2435_v48, 0.0 }
 0x30f   : > { %v2385_v16 = vadd.f32 %v2384_v52, %v2383_v7 }
 0x310   : > { %v2487_v1 = vsel %vm2308_vm12, %v2434_v53, 0.0 }
 0x311   : > { %v2488_v19 = vadd.f32 %v2487_v1, %v2486_v10  ;;  %v2387_v57 = vadd.f32 %v2386_v45, %v2385_v16 }
 0x313   : > { %v2490_v51 = vadd.f32 %v2489_v22, %v2488_v19 }
 0x323   : > { %v2750_v9 = vpop.f32.mrf.mxu1 }
 0x324   : > { %2334 = vst.msk [vmem:[%s3746_s19 + $0xc8] sm:$0xff] %vm2308_vm12, %v2750_v9  ;;  %v2437_v50 = vmul.f32 %v2750_v9, %v2750_v9  ;;  %v2390_v63 = vsel %vm2308_vm12, %v2750_v9, 0.0 }
 0x325   : > { %v2269_v4 = vpop.f32.mrf.mxu1 }
 0x326   : > { %2333 = vst.msk [vmem:[%s3746_s19 + $0xc0] sm:$0xff] %vm2308_vm12, %v2269_v4  ;;  %v2436_v23 = vmul.f32 %v2269_v4, %v2269_v4  ;;  %v2388_v21 = vsel %vm2308_vm12, %v2269_v4, 0.0  ;;  %v2493_v59 = vsel %vm2308_vm12, %v2437_v50, 0.0 }
 0x327   : > { %v2389_v18 = vadd.f32 %v2388_v21, %v2387_v57 }
 0x328   : > { %v2491_v55 = vsel %vm2308_vm12, %v2436_v23, 0.0 }
 0x329   : > { %v2492_v3 = vadd.f32 %v2491_v55, %v2490_v51  ;;  %v2391_v32 = vadd.f32 %v2390_v63, %v2389_v18 }
 0x32b   : > { %v2494_v49 = vadd.f32 %v2493_v59, %v2492_v3 }
 0x33b   : > { %v2753_v30 = vpop.f32.mrf.mxu1 }
 0x33c   : > { %2336 = vst.msk [vmem:[%s3746_s19 + $0xd8] sm:$0xff] %vm2308_vm12, %v2753_v30  ;;  %v2439_v41 = vmul.f32 %v2753_v30, %v2753_v30  ;;  %v2394_v56 = vsel %vm2308_vm12, %v2753_v30, 0.0 }
 0x33d   : > { %v2279_v38 = vpop.f32.mrf.mxu1 }
 0x33e   : > { %2335 = vst.msk [vmem:[%s3746_s19 + $0xd0] sm:$0xff] %vm2308_vm12, %v2279_v38  ;;  %v2438_v25 = vmul.f32 %v2279_v38, %v2279_v38  ;;  %v2392_v28 = vsel %vm2308_vm12, %v2279_v38, 0.0  ;;  %v2497_v39 = vsel %vm2308_vm12, %v2439_v41, 0.0 }
 0x33f   : > { %v2393_v27 = vadd.f32 %v2392_v28, %v2391_v32 }
 0x340   : > { %v2495_v6 = vsel %vm2308_vm12, %v2438_v25, 0.0 }
 0x341   : > { %v2496_v12 = vadd.f32 %v2495_v6, %v2494_v49  ;;  %v2395_v46 = vadd.f32 %v2394_v56, %v2393_v27 }
 0x343   : > { %v2498_v29 = vadd.f32 %v2497_v39, %v2496_v12 }
 0x354   : > { %v2756_v24 = vpop.f32.mrf.mxu1 }
 0x355   : > { %2338 = vst.msk [vmem:[%s3746_s19 + $0xe8] sm:$0xff] %vm2308_vm12, %v2756_v24  ;;  %v2441_v40 = vmul.f32 %v2756_v24, %v2756_v24  ;;  %v2398_v33 = vsel %vm2308_vm12, %v2756_v24, 0.0 }
 0x356   : > { %v2289_v14 = vpop.f32.mrf.mxu1 }
 0x357   : > { %2337 = vst.msk [vmem:[%s3746_s19 + $0xe0] sm:$0xff] %vm2308_vm12, %v2289_v14  ;;  %v2440_v58 = vmul.f32 %v2289_v14, %v2289_v14  ;;  %v2396_v61 = vsel %vm2308_vm12, %v2289_v14, 0.0  ;;  %v2501_v15 = vsel %vm2308_vm12, %v2441_v40, 0.0 }
 0x358   : > { %v2397_v5 = vadd.f32 %v2396_v61, %v2395_v46 }
 0x359   : > { %v2499_v43 = vsel %vm2308_vm12, %v2440_v58, 0.0 }
 0x35a   : > { %v2500_v11 = vadd.f32 %v2499_v43, %v2498_v29  ;;  %v2399_v54 = vadd.f32 %v2398_v33, %v2397_v5 }
 0x35c   : > { %v2502_v35 = vadd.f32 %v2501_v15, %v2500_v11 }
 0x366   : > { %v2759_v60 = vpop.f32.mrf.mxu1 }
 0x367   : > { %2340 = vst.msk [vmem:[%s3746_s19 + $0xf8] sm:$0xff] %vm2308_vm12, %v2759_v60  ;;  %v2443_v0 = vmul.f32 %v2759_v60, %v2759_v60  ;;  %v2402_v36 = vsel %vm2308_vm12, %v2759_v60, 0.0 }
 0x368   : > { %v2299_v8 = vpop.f32.mrf.mxu1 }
 0x369   : > { %2339 = vst.msk [vmem:[%s3746_s19 + $0xf0] sm:$0xff] %vm2308_vm12, %v2299_v8  ;;  %v2400_v34 = vsel %vm2308_vm12, %v2299_v8, 0.0  ;;  %v2442_v42 = vmul.f32 %v2299_v8, %v2299_v8  ;;  %v2505_v62 = vsel %vm2308_vm12, %v2443_v0, 0.0 }
 0x36a   : > { %v2401_v47 = vadd.f32 %v2400_v34, %v2399_v54 }
 0x36b   : > { %v2503_v37 = vsel %vm2308_vm12, %v2442_v42, 0.0 }
 0x36c   : > { %v2403_v13 = vadd.f32 %v2402_v36, %v2401_v47  ;;  %v2504_v26 = vadd.f32 %v2503_v37, %v2502_v35 }
 0x36e   : > { %v2404_v17 = vrot.slane %v2403_v13, 4  ;;  %v2506_v31 = vadd.f32 %v2505_v62, %v2504_v26 }
 0x370   : > { %v2405_v2 = vadd.f32 %v2404_v17, %v2403_v13  ;;  %v2507_v7 = vrot.slane %v2506_v31, 4 }
 0x372   : > { %v2406_v10 = vrot.slane %v2405_v2, 2  ;;  %v2508_v44 = vadd.f32 %v2507_v7, %v2506_v31 }
 0x374   : > { %v2407_v48 = vadd.f32 %v2406_v10, %v2405_v2  ;;  %v2509_v20 = vrot.slane %v2508_v44, 2 }
 0x376   : > { %v2408_v45 = vrot.slane %v2407_v48, 1  ;;  %v2510_v52 = vadd.f32 %v2509_v20, %v2508_v44 }
 0x378   : > { %v2409_v53 = vadd.f32 %v2408_v45, %v2407_v48  ;;  %v2511_v16 = vrot.slane %v2510_v52, 1 }
 0x37a   : > { %2411 = vst.msk [vmem:[%s211_s21] sm:$0x1] %vm2410_vm13, %v2409_v53  ;;  %v2512_v22 = vadd.f32 %v2511_v16, %v2510_v52 }
 0x37c   : > { %2513 = vst.msk [vmem:[%s214_s24] sm:$0x1] %vm2410_vm13, %v2512_v22 }
 0x37d PF: > { %s15_s15 = sadd.s32 1, %s2793_s15  }
 0x37e   : > { %p12_p4 = scmp.ge.s32.totalorder %s15_s15, 4  }
 0x380   :  { %14 = sbr.rel (!%p12_p4) target bundleno = 1 (0x1), region = 84 }

// kernel: downconv_forward.4
= control target key start
LH: loop header
LB: loop body
LE: loop exit
PB: predicated region body
PF: predicated region fallthrough
CT: control target
= control target key end

     0   :  { %s3025_s21 = smov 0   ;;  %s4226_s0 = inlined_call_operand.vmem [shape: f32[2,16,16,8], index: 0, kind: input, shape index: {}]   ;;  %s4227_s1 = inlined_call_operand.vmem [shape: f32[1,8], index: 1, kind: input, shape index: {}]   ;;  %s4228_s2 = inlined_call_operand.vmem [shape: f32[1,8], index: 2, kind: input, shape index: {}]   ;;  %s4229_s3 = inlined_call_operand.vmem [shape: f32[72,8], index: 3, kind: input, shape index: {}]   ;;  %s4230_s4 = inlined_call_operand.vmem [shape: f32[2,16,16,8], index: 4, kind: output, shape index: {0}]   ;;  %s4231_s5 = inlined_call_operand.vmem [shape: f32[2,1,8], index: 5, kind: output, shape index: {1}]   ;;  %s4232_s6 = inlined_call_operand.vmem [shape: f32[2,1,8], index: 6, kind: output, shape index: {2}]  }
   0x1 LB: > { %s2782_s22 = sadd.s32 4294967295, %s2979_s21   ;;  %p2786_p0 = scmp.ge.s32.totalorder %s2979_s21, 1  ;;  %s2979_s21 = sphi %s3025_s21, %s17_s21  }
   0x2   : > { %p217_p1 = scmp.lt.s32.totalorder %s2979_s21, 3 }
   0x4   : > { %p218_p2 = pnand %p2786_p0, %p217_p1 }
   0x5   : > { %p3035_p3 = scmp.lt.s32.totalorder (!%p218_p2), %s2782_s22, 1  ;;  %s2982_s8 = smov (!%p218_p2), 8  }
   0x6   : > { %221 = sbr.rel (%p218_p2) target bundleno = 893 (0x37d), region = 36  ;;  %s2983_s9 = smov (!%p218_p2), 16  }
   0x7   : > { %s2984_s10 = smov (!%p218_p2), 24   ;;  %s2985_s11 = smov (!%p218_p2), 32  }
   0x8   : > { %s2986_s12 = smov (!%p218_p2), 40   ;;  %s2987_s17 = smov (!%p218_p2), 48  }
   0x9   : > { %s2988_s25 = smov (!%p218_p2), 56   ;;  %s2989_s14 = smov (!%p218_p2), 64  }
   0xb   : > { %vm411_vm0 = vcmask 64512   ;;  %vm414_vm1 = vcmask 58368   ;;  %v2981_v0 = vmov 0.0   ;;  %s4235_s22 = smov (!%p3035_p3, %s2782_s22), 1  ;;  %v3103_v1 = vld [vmem:[%s4227_s1] ss:$0 sm:$0xff] }
   0xc   : > { %412 = vst.msk [vmem:[#allocation2] sm:$0xff] %vm411_vm0, %v2981_v0  ;;  %413 = vst.msk [vmem:[#allocation2 + $0x8] sm:$0xff] %vm411_vm0, %v2981_v0  ;;  %s2827_s24 = sshll.u32 %s4235_s22, 8  ;;  %v3115_v2 = vld [vmem:[%s4228_s2] ss:$0 sm:$0xff]  ;;  %vm724_vm2 = vcmask 130112   ;;  %s268_s27 = scalar_lea.vmem %s4232_s6, %s4235_s22 }
   0xd   : > { %416 = vst.msk [vmem:[#allocation2 + $0x18] sm:$0xff] %vm411_vm0, %v2981_v0  ;;  %417 = vst.msk [vmem:[#allocation2 + $0x20] sm:$0xff] %vm411_vm0, %v2981_v0  ;;  %s3110_s29 = scalar_lea.vmem %s4226_s0, %s2827_s24  ;;  %vm917_vm3 = vcmask 195712   ;;  %vm1110_vm4 = vcmask 261312   ;;  %vm1303_vm5 = vcmask 326912   ;;  %vm1496_vm6 = vcmask 392512  }
   0xe   : > { %419 = vst.msk [vmem:[#allocation2 + $0x30] sm:$0xff] %vm411_vm0, %v2981_v0  ;;  %420 = vst.msk [vmem:[#allocation2 + $0x38] sm:$0xff] %vm411_vm0, %v2981_v0  ;;  %v271_v3 = vld [vmem:[%s3110_s29] sm:$0xff]  ;;  %v273_v4 = vld [vmem:[%s3110_s29 + $0x10] sm:$0xff]  ;;  %vm1690_vm7 = vcmask 458112   ;;  %vm1883_vm8 = vcmask 523712  }
   0xf   : > { %422 = vst.msk [vmem:[#allocation2 + $0x48] sm:$0xff] %vm411_vm0, %v2981_v0  ;;  %423 = vst.msk [vmem:[#allocation2 + $0x50] sm:$0xff] %vm411_vm0, %v2981_v0  ;;  %v272_v5 = vld [vmem:[%s3110_s29 + $0x8] sm:$0xff]  ;;  %v309_v6 = vmul.f32 %v3103_v1, %v271_v3  ;;  %v311_v7 = vmul.f32 %v3103_v1, %v273_v4  ;;  %v275_v9 = vld [vmem:[%s3110_s29 + $0x20] sm:$0xff]  ;;  %vm2076_vm9 = vcmask 589312   ;;  %vm2150_vm10 = vcmask 588800  }
  0x10   : > { %425 = vst.msk [vmem:[#allocation2 + $0x60] sm:$0xff] %vm411_vm0, %v2981_v0  ;;  %426 = vst.msk [vmem:[#allocation2 + $0x68] sm:$0xff] %vm411_vm0, %v2981_v0  ;;  %v310_v8 = vmul.f32 %v3103_v1, %v272_v5  ;;  %v274_v10 = vld [vmem:[%s3110_s29 + $0x18] sm:$0xff]  ;;  %v277_v11 = vld [vmem:[%s3110_s29 + $0x30] sm:$0xff]  ;;  %v313_v13 = vmul.f32 %v3103_v1, %v275_v9  ;;  %vm2573_vm11 = vcmask 57344  }
  0x11   : > { %428 = vst.msk [vmem:[#allocation2 + $0x78] sm:$0xff] %vm411_vm0, %v2981_v0  ;;  %429 = vst.msk [vmem:[#allocation2 + $0x80] sm:$0xff] %vm411_vm0, %v2981_v0  ;;  %v312_v14 = vmul.f32 %v3103_v1, %v274_v10  ;;  %v315_v15 = vmul.f32 %v3103_v1, %v277_v11  ;;  %v276_v16 = vld [vmem:[%s3110_s29 + $0x28] sm:$0xff]  ;;  %v347_v18 = vadd.f32 %v3115_v2, %v309_v6  ;;  %v279_v22 = vld [vmem:[%s3110_s29 + $0x40] sm:$0xff] }
  0x12   : > { %431 = vst.msk [vmem:[#allocation2 + $0x90] sm:$0xff] %vm411_vm0, %v2981_v0  ;;  %432 = vst.msk [vmem:[#allocation2 + $0x98] sm:$0xff] %vm411_vm0, %v2981_v0  ;;  %v349_v19 = vadd.f32 %v3115_v2, %v311_v7  ;;  %v348_v20 = vadd.f32 %v3115_v2, %v310_v8  ;;  %v314_v21 = vmul.f32 %v3103_v1, %v276_v16  ;;  %v278_v27 = vld [vmem:[%s3110_s29 + $0x38] sm:$0xff]  ;;  %v281_v28 = vld [vmem:[%s3110_s29 + $0x50] sm:$0xff] }
  0x13   : > { %434 = vst.msk [vmem:[#allocation2 + $0xa8] sm:$0xff] %vm411_vm0, %v2981_v0  ;;  %435 = vst.msk [vmem:[#allocation2 + $0xb0] sm:$0xff] %vm411_vm0, %v2981_v0  ;;  %v564_v12 = vld [vmem:[#allocation2 + $0x1] sm:$0xff]  ;;  %v351_v23 = vadd.f32 %v3115_v2, %v313_v13  ;;  %v350_v24 = vadd.f32 %v3115_v2, %v312_v14  ;;  %v353_v25 = vadd.f32 %v3115_v2, %v315_v15  ;;  %v379_v30 = vmax.f32 %v347_v18, 0.0  ;;  %v282_v35 = vld [vmem:[%s3110_s29 + $0x58] sm:$0xff] }
  0x14   : > { %437 = vst.msk [vmem:[#allocation2 + $0xc0] sm:$0xff] %vm411_vm0, %v2981_v0  ;;  %438 = vst.msk [vmem:[#allocation2 + $0xc8] sm:$0xff] %vm411_vm0, %v2981_v0  ;;  %628 = vrot.lane.b32.xlu0 %v564_v12, %s2982_s8  ;;  %v317_v26 = vmul.f32 %v3103_v1, %v279_v22  ;;  %v280_v29 = vld [vmem:[%s3110_s29 + $0x48] sm:$0xff]  ;;  %v381_v31 = vmax.f32 %v349_v19, 0.0  ;;  %v380_v32 = vmax.f32 %v348_v20, 0.0  ;;  %v352_v33 = vadd.f32 %v3115_v2, %v314_v21  ;;  %v283_v34 = vld [vmem:[%s3110_s29 + $0x60] sm:$0xff] }
  0x15   : > { %440 = vst.msk [vmem:[#allocation2 + $0xd8] sm:$0xff] %vm411_vm0, %v2981_v0  ;;  %441 = vst.msk [vmem:[#allocation2 + $0xe0] sm:$0xff] %vm411_vm0, %v2981_v0  ;;  %v285_v36 = vld [vmem:[%s3110_s29 + $0x70] sm:$0xff]  ;;  %v383_v37 = vmax.f32 %v351_v23, 0.0  ;;  %v382_v38 = vmax.f32 %v350_v24, 0.0  ;;  %v385_v39 = vmax.f32 %v353_v25, 0.0  ;;  %v316_v43 = vmul.f32 %v3103_v1, %v278_v27 }
  0x16   : > { %443 = vst.msk [vmem:[#allocation2 + $0xf0] sm:$0xff] %vm411_vm0, %v2981_v0  ;;  %444 = vst.msk [vmem:[#allocation2 + $0xf8] sm:$0xff] %vm411_vm0, %v2981_v0  ;;  %v355_v40 = vadd.f32 %v3115_v2, %v317_v26  ;;  %v284_v41 = vld [vmem:[%s3110_s29 + $0x68] sm:$0xff]  ;;  %v384_v42 = vmax.f32 %v352_v33, 0.0  ;;  %v319_v44 = vmul.f32 %v3103_v1, %v281_v28  ;;  %v318_v45 = vmul.f32 %v3103_v1, %v280_v29  ;;  %v287_v46 = vld [vmem:[%s3110_s29 + $0x80] sm:$0xff] }
  0x17   : > { %446 = vst.msk [vmem:[#allocation2 + $0x108] sm:$0xff] %vm411_vm0, %v2981_v0  ;;  %447 = vst.msk [vmem:[#allocation2 + $0x110] sm:$0xff] %vm411_vm0, %v2981_v0  ;;  %v321_v48 = vmul.f32 %v3103_v1, %v283_v34  ;;  %v320_v49 = vmul.f32 %v3103_v1, %v282_v35  ;;  %v323_v50 = vmul.f32 %v3103_v1, %v285_v36  ;;  %v286_v55 = vld [vmem:[%s3110_s29 + $0x78] sm:$0xff]  ;;  %v289_v56 = vld [vmem:[%s3110_s29 + $0x90] sm:$0xff] }
  0x18   : > { %449 = vst.msk [vmem:[#allocation2 + $0x120] sm:$0xff] %vm411_vm0, %v2981_v0  ;;  %450 = vst.msk [vmem:[#allocation2 + $0x128] sm:$0xff] %vm411_vm0, %v2981_v0  ;;  %v387_v47 = vmax.f32 %v355_v40, 0.0  ;;  %v354_v51 = vadd.f32 %v3115_v2, %v316_v43  ;;  %v357_v52 = vadd.f32 %v3115_v2, %v319_v44  ;;  %v356_v53 = vadd.f32 %v3115_v2, %v318_v45  ;;  %v288_v61 = vld [vmem:[%s3110_s29 + $0x88] sm:$0xff]  ;;  %v291_v62 = vld [vmem:[%s3110_s29 + $0xa0] sm:$0xff] }
  0x19   : > { %452 = vst.msk [vmem:[#allocation2 + $0x138] sm:$0xff] %vm411_vm0, %v2981_v0  ;;  %453 = vst.msk [vmem:[#allocation2 + $0x140] sm:$0xff] %vm411_vm0, %v2981_v0  ;;  %v322_v54 = vmul.f32 %v3103_v1, %v284_v41  ;;  %v359_v57 = vadd.f32 %v3115_v2, %v321_v48  ;;  %v358_v58 = vadd.f32 %v3115_v2, %v320_v49  ;;  %v290_v63 = vld [vmem:[%s3110_s29 + $0x98] sm:$0xff]  ;;  %v293_v6 = vld [vmem:[%s3110_s29 + $0xb0] sm:$0xff] }
  0x1a   : > { %455 = vst.msk [vmem:[#allocation2 + $0x150] sm:$0xff] %vm411_vm0, %v2981_v0  ;;  %456 = vst.msk [vmem:[#allocation2 + $0x158] sm:$0xff] %vm411_vm0, %v2981_v0  ;;  %v361_v59 = vadd.f32 %v3115_v2, %v323_v50  ;;  %v325_v60 = vmul.f32 %v3103_v1, %v287_v46  ;;  %v389_v3 = vmax.f32 %v357_v52, 0.0  ;;  %v388_v4 = vmax.f32 %v356_v53, 0.0  ;;  %v500_v7 = vld [vmem:[#allocation2] sm:$0xff]  ;;  %v501_v8 = vld [vmem:[#allocation2 + $0x8] sm:$0xff] }
  0x1b   : > { %458 = vst.msk [vmem:[#allocation2 + $0x168] sm:$0xff] %vm411_vm0, %v2981_v0  ;;  %459 = vst.msk [vmem:[#allocation2 + $0x170] sm:$0xff] %vm411_vm0, %v2981_v0  ;;  %v360_v5 = vadd.f32 %v3115_v2, %v322_v54  ;;  %v391_v9 = vmax.f32 %v359_v57, 0.0  ;;  %v390_v10 = vmax.f32 %v358_v58, 0.0  ;;  %v324_v14 = vmul.f32 %v3103_v1, %v286_v55  ;;  %v295_v24 = vld [vmem:[%s3110_s29 + $0xc0] sm:$0xff]  ;;  %v294_v28 = vld [vmem:[%s3110_s29 + $0xb8] sm:$0xff] }
  0x1c   : > { %461 = vst.msk [vmem:[#allocation2 + $0x180] sm:$0xff] %vm411_vm0, %v2981_v0  ;;  %462 = vst.msk [vmem:[#allocation2 + $0x188] sm:$0xff] %vm411_vm0, %v2981_v0  ;;  %v393_v11 = vmax.f32 %v361_v59, 0.0  ;;  %v363_v12 = vadd.f32 %v3115_v2, %v325_v60  ;;  %v327_v15 = vmul.f32 %v3103_v1, %v289_v56  ;;  %v326_v16 = vmul.f32 %v3103_v1, %v288_v61  ;;  %v297_v35 = vld [vmem:[%s3110_s29 + $0xd0] sm:$0xff]  ;;  %v296_v40 = vld [vmem:[%s3110_s29 + $0xc8] sm:$0xff] }
  0x1d   : > { %464 = vst.msk [vmem:[#allocation2 + $0x198] sm:$0xff] %vm411_vm0, %v2981_v0  ;;  %465 = vst.msk [vmem:[#allocation2 + $0x1a0] sm:$0xff] %vm411_vm0, %v2981_v0  ;;  %v392_v13 = vmax.f32 %v360_v5, 0.0  ;;  %v329_v21 = vmul.f32 %v3103_v1, %v291_v62  ;;  %v328_v22 = vmul.f32 %v3103_v1, %v290_v63  ;;  %v331_v23 = vmul.f32 %v3103_v1, %v293_v6  ;;  %v299_v41 = vld [vmem:[%s3110_s29 + $0xe0] sm:$0xff] }
  0x1e   : > { %415 = vst.msk [vmem:[#allocation2 + $0x10] sm:$0x3] %vm414_vm1, %v2981_v0  ;;  %418 = vst.msk [vmem:[#allocation2 + $0x28] sm:$0x3] %vm414_vm1, %v2981_v0  ;;  %v395_v20 = vmax.f32 %v363_v12, 0.0  ;;  %v362_v25 = vadd.f32 %v3115_v2, %v324_v14  ;;  %v365_v26 = vadd.f32 %v3115_v2, %v327_v15  ;;  %v364_v27 = vadd.f32 %v3115_v2, %v326_v16 }
  0x1f   : > { %421 = vst.msk [vmem:[#allocation2 + $0x40] sm:$0x3] %vm414_vm1, %v2981_v0  ;;  %424 = vst.msk [vmem:[#allocation2 + $0x58] sm:$0x3] %vm414_vm1, %v2981_v0  ;;  %v369_v33 = vadd.f32 %v3115_v2, %v331_v23  ;;  %v332_v50 = vmul.f32 %v3103_v1, %v294_v28  ;;  %v334_v58 = vmul.f32 %v3103_v1, %v296_v40 }
  0x20   : > { %427 = vst.msk [vmem:[#allocation2 + $0x70] sm:$0x3] %vm414_vm1, %v2981_v0  ;;  %430 = vst.msk [vmem:[#allocation2 + $0x88] sm:$0x3] %vm414_vm1, %v2981_v0  ;;  %v394_v36 = vmax.f32 %v362_v25, 0.0  ;;  %v337_v59 = vmul.f32 %v3103_v1, %v299_v41 }
  0x21   : > { %433 = vst.msk [vmem:[#allocation2 + $0xa0] sm:$0x3] %vm414_vm1, %v2981_v0  ;;  %436 = vst.msk [vmem:[#allocation2 + $0xb8] sm:$0x3] %vm414_vm1, %v2981_v0  ;;  %v401_v45 = vmax.f32 %v369_v33, 0.0  ;;  %v370_v62 = vadd.f32 %v3115_v2, %v332_v50 }
  0x22   : > { %439 = vst.msk [vmem:[#allocation2 + $0xd0] sm:$0x3] %vm414_vm1, %v2981_v0  ;;  %442 = vst.msk [vmem:[#allocation2 + $0xe8] sm:$0x3] %vm414_vm1, %v2981_v0 }
  0x23   : > { %445 = vst.msk [vmem:[#allocation2 + $0x100] sm:$0x3] %vm414_vm1, %v2981_v0  ;;  %448 = vst.msk [vmem:[#allocation2 + $0x118] sm:$0x3] %vm414_vm1, %v2981_v0  ;;  %v402_v6 = vmax.f32 %v370_v62, 0.0 }
  0x24   : > { %451 = vst.msk [vmem:[#allocation2 + $0x130] sm:$0x3] %vm414_vm1, %v2981_v0  ;;  %454 = vst.msk [vmem:[#allocation2 + $0x148] sm:$0x3] %vm414_vm1, %v2981_v0 }
  0x25   : > { %457 = vst.msk [vmem:[#allocation2 + $0x160] sm:$0x3] %vm414_vm1, %v2981_v0  ;;  %460 = vst.msk [vmem:[#allocation2 + $0x178] sm:$0x3] %vm414_vm1, %v2981_v0  ;;  %v565_v17 = vld [vmem:[#allocation2 + $0x9] sm:$0xff] }
  0x26   : > { %463 = vst.msk [vmem:[#allocation2 + $0x190] sm:$0x3] %vm414_vm1, %v2981_v0  ;;  %466 = vst.msk [vmem:[#allocation2 + $0x1a8] sm:$0x3] %vm414_vm1, %v2981_v0  ;;  %630 = vrot.lane.b32.xlu0 %v565_v17, %s2982_s8  ;;  %v386_v0 = vmax.f32 %v354_v51, 0.0  ;;  %v292_v17 = vld [vmem:[%s3110_s29 + $0xa8] sm:$0xff]  ;;  %v335_v51 = vmul.f32 %v3103_v1, %v297_v35 }
  0x27   : > { %468 = vst.msk [vmem:[#allocation2 + $0x19] sm:$0xff] %vm411_vm0, %v379_v30  ;;  %470 = vst.msk [vmem:[#allocation2 + $0x31] sm:$0xff] %vm411_vm0, %v381_v31  ;;  %v367_v31 = vadd.f32 %v3115_v2, %v329_v21  ;;  %v330_v34 = vmul.f32 %v3103_v1, %v292_v17 }
  0x28   : > { %469 = vst.msk [vmem:[#allocation2 + $0x21] sm:$0xff] %vm411_vm0, %v380_v32  ;;  %472 = vst.msk [vmem:[#allocation2 + $0x49] sm:$0xff] %vm411_vm0, %v383_v37  ;;  %v366_v32 = vadd.f32 %v3115_v2, %v328_v22  ;;  %v397_v37 = vmax.f32 %v365_v26, 0.0  ;;  %v373_v63 = vadd.f32 %v3115_v2, %v335_v51 }
  0x29   : > { %471 = vst.msk [vmem:[#allocation2 + $0x39] sm:$0xff] %vm411_vm0, %v382_v38  ;;  %474 = vst.msk [vmem:[#allocation2 + $0x61] sm:$0xff] %vm411_vm0, %v385_v39  ;;  %v396_v38 = vmax.f32 %v364_v27, 0.0  ;;  %v333_v39 = vmul.f32 %v3103_v1, %v295_v24  ;;  %v399_v43 = vmax.f32 %v367_v31, 0.0  ;;  %v368_v46 = vadd.f32 %v3115_v2, %v330_v34 }
  0x2a   : > { %473 = vst.msk [vmem:[#allocation2 + $0x51] sm:$0xff] %vm411_vm0, %v384_v42  ;;  %476 = vst.msk [vmem:[#allocation2 + $0x79] sm:$0xff] %vm411_vm0, %v387_v47  ;;  %v298_v42 = vld [vmem:[%s3110_s29 + $0xd8] sm:$0xff]  ;;  %v398_v44 = vmax.f32 %v366_v32, 0.0  ;;  %v300_v47 = vld [vmem:[%s3110_s29 + $0xe8] sm:$0xff] }
  0x2b   : > { %532 = vst.msk [vmem:[#allocation3] sm:$0xff] %vm411_vm0, %v500_v7  ;;  %533 = vst.msk [vmem:[#allocation3 + $0x8] sm:$0xff] %vm411_vm0, %v501_v8  ;;  %v371_v49 = vadd.f32 %v3115_v2, %v333_v39  ;;  %v400_v57 = vmax.f32 %v368_v46, 0.0  ;;  %v336_v60 = vmul.f32 %v3103_v1, %v298_v42  ;;  %v405_v7 = vmax.f32 %v373_v63, 0.0 }
  0x2c   : > { %475 = vst.msk [vmem:[#allocation2 + $0x69] sm:$0xff] %vm411_vm0, %v386_v0  ;;  %478 = vst.msk [vmem:[#allocation2 + $0x91] sm:$0xff] %vm411_vm0, %v389_v3  ;;  %v338_v0 = vmul.f32 %v3103_v1, %v300_v47  ;;  %v372_v3 = vadd.f32 %v3115_v2, %v334_v58 }
  0x2d   : > { %477 = vst.msk [vmem:[#allocation2 + $0x81] sm:$0xff] %vm411_vm0, %v388_v4  ;;  %480 = vst.msk [vmem:[#allocation2 + $0xa9] sm:$0xff] %vm411_vm0, %v391_v9  ;;  %v403_v61 = vmax.f32 %v371_v49, 0.0  ;;  %v375_v4 = vadd.f32 %v3115_v2, %v337_v59  ;;  %v374_v5 = vadd.f32 %v3115_v2, %v336_v60 }
  0x2e   : > { %v3190_v18 = vld [vmem:[#allocation2 + $0x19] sm:$0xff]  ;;  %v3192_v19 = vld [vmem:[#allocation2 + $0x31] sm:$0xff]  ;;  %479 = vst.msk [vmem:[#allocation2 + $0x99] sm:$0xff] %vm411_vm0, %v390_v10  ;;  %482 = vst.msk [vmem:[#allocation2 + $0xc1] sm:$0xff] %vm411_vm0, %v393_v11  ;;  %v376_v1 = vadd.f32 %v3115_v2, %v338_v0  ;;  %v404_v10 = vmax.f32 %v372_v3, 0.0 }
  0x2f   : > { %632 = vrot.lane.b32.xlu1 %v3190_v18, %s2982_s8  ;;  %636 = vrot.lane.b32.xlu0 %v3192_v19, %s2982_s8  ;;  %481 = vst.msk [vmem:[#allocation2 + $0xb1] sm:$0xff] %vm411_vm0, %v392_v13  ;;  %v3210_v29 = vld [vmem:[#allocation2 + $0x21] sm:$0xff]  ;;  %v3212_v30 = vld [vmem:[#allocation2 + $0x49] sm:$0xff]  ;;  %484 = vst.msk [vmem:[#allocation2 + $0xd9] sm:$0xff] %vm411_vm0, %v395_v20  ;;  %v407_v11 = vmax.f32 %v375_v4, 0.0  ;;  %v406_v12 = vmax.f32 %v374_v5, 0.0 }
  0x30   : > { %v3226_v48 = vld [vmem:[#allocation2 + $0x18] sm:$0xff]  ;;  %483 = vst.msk [vmem:[#allocation2 + $0xc9] sm:$0xff] %vm411_vm0, %v394_v36  ;;  %486 = vst.msk [vmem:[#allocation2 + $0xf1] sm:$0xff] %vm411_vm0, %v397_v37  ;;  %v3240_v52 = vld [vmem:[#allocation2 + $0x30] sm:$0xff]  ;;  %v408_v13 = vmax.f32 %v376_v1, 0.0 }
  0x31   : > { %485 = vst.msk [vmem:[#allocation2 + $0xe1] sm:$0xff] %vm411_vm0, %v396_v38  ;;  %534 = vst.msk [vmem:[#allocation3 + $0x10] sm:$0xff] %vm411_vm0, %v3226_v48  ;;  %v3242_v53 = vld [vmem:[#allocation2 + $0x20] sm:$0xff]  ;;  %v3244_v54 = vld [vmem:[#allocation2 + $0x48] sm:$0xff] }
  0x32   : > { %v3246_v55 = vld [vmem:[#allocation2 + $0x39] sm:$0xff]  ;;  %v3248_v56 = vld [vmem:[#allocation2 + $0x61] sm:$0xff]  ;;  %488 = vst.msk [vmem:[#allocation2 + $0x109] sm:$0xff] %vm411_vm0, %v399_v43  ;;  %487 = vst.msk [vmem:[#allocation2 + $0xf9] sm:$0xff] %vm411_vm0, %v398_v44 }
  0x33   : > { %634 = vrot.lane.b32.xlu1 %v3210_v29, %s2982_s8  ;;  %640 = vrot.lane.b32.xlu0 %v3212_v30, %s2982_s8  ;;  %490 = vst.msk [vmem:[#allocation2 + $0x121] sm:$0xff] %vm411_vm0, %v401_v45  ;;  %536 = vst.msk [vmem:[#allocation3 + $0x20] sm:$0xff] %vm411_vm0, %v3240_v52  ;;  %v3275_v8 = vld [vmem:[#allocation2 + $0x51] sm:$0xff]  ;;  %v574_v9 = vld [vmem:[#allocation2 + $0x79] sm:$0xff] }
  0x34   : > { %535 = vst.msk [vmem:[#allocation3 + $0x18] sm:$0xff] %vm411_vm0, %v3242_v53  ;;  %538 = vst.msk [vmem:[#allocation3 + $0x30] sm:$0xff] %vm411_vm0, %v3244_v54  ;;  %v3279_v14 = vld [vmem:[#allocation2 + $0x38] sm:$0xff]  ;;  %v3281_v15 = vld [vmem:[#allocation2 + $0x60] sm:$0xff] }
  0x35   : > { %489 = vst.msk [vmem:[#allocation2 + $0x111] sm:$0xff] %vm411_vm0, %v400_v57  ;;  %492 = vst.msk [vmem:[#allocation2 + $0x139] sm:$0xff] %vm411_vm0, %v403_v61  ;;  %v3294_v2 = vld [vmem:[#allocation2 + $0x69] sm:$0xff]  ;;  %v576_v16 = vld [vmem:[#allocation2 + $0x91] sm:$0xff] }
  0x36   : > { %491 = vst.msk [vmem:[#allocation2 + $0x129] sm:$0xff] %vm411_vm0, %v402_v6  ;;  %494 = vst.msk [vmem:[#allocation2 + $0x151] sm:$0xff] %vm411_vm0, %v405_v7  ;;  %v3299_v17 = vld [vmem:[#allocation2 + $0x50] sm:$0xff]  ;;  %v3301_v20 = vld [vmem:[#allocation2 + $0x78] sm:$0xff] }
  0x37   : > { %638 = vrot.lane.b32.xlu1 %v3246_v55, %s2982_s8  ;;  %644 = vrot.lane.b32.xlu0 %v3248_v56, %s2982_s8  ;;  %493 = vst.msk [vmem:[#allocation2 + $0x141] sm:$0xff] %vm411_vm0, %v404_v10  ;;  %496 = vst.msk [vmem:[#allocation2 + $0x169] sm:$0xff] %vm411_vm0, %v407_v11  ;;  %v575_v21 = vld [vmem:[#allocation2 + $0x81] sm:$0xff]  ;;  %v578_v22 = vld [vmem:[#allocation2 + $0xa9] sm:$0xff] }
  0x38   : > { %495 = vst.msk [vmem:[#allocation2 + $0x159] sm:$0xff] %vm411_vm0, %v406_v12  ;;  %537 = vst.msk [vmem:[#allocation3 + $0x28] sm:$0xff] %vm411_vm0, %v3279_v14  ;;  %v577_v23 = vld [vmem:[#allocation2 + $0x99] sm:$0xff]  ;;  %v580_v24 = vld [vmem:[#allocation2 + $0xc1] sm:$0xff] }
  0x39   : > { %540 = vst.msk [vmem:[#allocation3 + $0x40] sm:$0xff] %vm411_vm0, %v3281_v15  ;;  %497 = vst.msk [vmem:[#allocation2 + $0x171] sm:$0xff] %vm411_vm0, %v408_v13  ;;  %v3309_v25 = vld [vmem:[#allocation2 + $0x68] sm:$0xff]  ;;  %v3313_v26 = vld [vmem:[#allocation2 + $0x90] sm:$0xff] }
  0x3a   : > { %539 = vst.msk [vmem:[#allocation3 + $0x38] sm:$0xff] %vm411_vm0, %v3299_v17  ;;  %542 = vst.msk [vmem:[#allocation3 + $0x50] sm:$0xff] %vm411_vm0, %v3301_v20  ;;  %v3315_v27 = vld [vmem:[#allocation2 + $0x80] sm:$0xff]  ;;  %v3317_v28 = vld [vmem:[#allocation2 + $0xa8] sm:$0xff] }
  0x3b   : > { %642 = vrot.lane.b32.xlu1 %v3275_v8, %s2982_s8  ;;  %648 = vrot.lane.b32.xlu0 %v574_v9, %s2982_s8  ;;  %541 = vst.msk [vmem:[#allocation3 + $0x48] sm:$0xff] %vm411_vm0, %v3309_v25  ;;  %v579_v31 = vld [vmem:[#allocation2 + $0xb1] sm:$0xff]  ;;  %v582_v32 = vld [vmem:[#allocation2 + $0xd9] sm:$0xff]  ;;  %544 = vst.msk [vmem:[#allocation3 + $0x60] sm:$0xff] %vm411_vm0, %v3313_v26 }
  0x3c   : > { %543 = vst.msk [vmem:[#allocation3 + $0x58] sm:$0xff] %vm411_vm0, %v3315_v27  ;;  %546 = vst.msk [vmem:[#allocation3 + $0x70] sm:$0xff] %vm411_vm0, %v3317_v28  ;;  %v3325_v33 = vld [vmem:[#allocation2 + $0x98] sm:$0xff]  ;;  %v3327_v34 = vld [vmem:[#allocation2 + $0xc0] sm:$0xff] }
  0x3d   : > { %v3329_v35 = vld [vmem:[#allocation2 + $0xb0] sm:$0xff]  ;;  %545 = vst.msk [vmem:[#allocation3 + $0x68] sm:$0xff] %vm411_vm0, %v3325_v33  ;;  %548 = vst.msk [vmem:[#allocation3 + $0x80] sm:$0xff] %vm411_vm0, %v3327_v34  ;;  %v3339_v36 = vld [vmem:[#allocation2 + $0xd8] sm:$0xff] }
  0x3e   : > { %547 = vst.msk [vmem:[#allocation3 + $0x78] sm:$0xff] %vm411_vm0, %v3329_v35  ;;  %v3341_v37 = vld [vmem:[#allocation2 + $0xc8] sm:$0xff]  ;;  %v3343_v38 = vld [vmem:[#allocation2 + $0xf0] sm:$0xff]  ;;  %550 = vst.msk [vmem:[#allocation3 + $0x90] sm:$0xff] %vm411_vm0, %v3339_v36 }
  0x3f   : > { %646 = vrot.lane.b32.xlu1 %v3294_v2, %s2982_s8  ;;  %652 = vrot.lane.b32.xlu0 %v576_v16, %s2982_s8  ;;  %549 = vst.msk [vmem:[#allocation3 + $0x88] sm:$0xff] %vm411_vm0, %v3341_v37  ;;  %552 = vst.msk [vmem:[#allocation3 + $0xa0] sm:$0xff] %vm411_vm0, %v3343_v38  ;;  %v3351_v39 = vld [vmem:[#allocation2 + $0xe0] sm:$0xff]  ;;  %v3353_v40 = vld [vmem:[#allocation2 + $0x108] sm:$0xff] }
  0x40   : > { %v3355_v41 = vld [vmem:[#allocation2 + $0xf8] sm:$0xff]  ;;  %551 = vst.msk [vmem:[#allocation3 + $0x98] sm:$0xff] %vm411_vm0, %v3351_v39  ;;  %554 = vst.msk [vmem:[#allocation3 + $0xb0] sm:$0xff] %vm411_vm0, %v3353_v40  ;;  %v3363_v42 = vld [vmem:[#allocation2 + $0x120] sm:$0xff] }
  0x41   : > { %553 = vst.msk [vmem:[#allocation3 + $0xa8] sm:$0xff] %vm411_vm0, %v3355_v41  ;;  %556 = vst.msk [vmem:[#allocation3 + $0xc0] sm:$0xff] %vm411_vm0, %v3363_v42  ;;  %v3369_v43 = vld [vmem:[#allocation2 + $0x110] sm:$0xff]  ;;  %v526_v46 = vld [vmem:[#allocation2 + $0x138] sm:$0xff] }
  0x42   : > { %v581_v44 = vld [vmem:[#allocation2 + $0xc9] sm:$0xff]  ;;  %v584_v45 = vld [vmem:[#allocation2 + $0xf1] sm:$0xff]  ;;  %555 = vst.msk [vmem:[#allocation3 + $0xb8] sm:$0xff] %vm411_vm0, %v3369_v43  ;;  %558 = vst.msk [vmem:[#allocation3 + $0xd0] sm:$0xff] %vm411_vm0, %v526_v46 }
  0x43   : > { %650 = vrot.lane.b32.xlu1 %v575_v21, %s2982_s8  ;;  %656 = vrot.lane.b32.xlu0 %v578_v22, %s2982_s8  ;;  %v3376_v47 = vld [vmem:[#allocation2 + $0x128] sm:$0xff]  ;;  %v528_v51 = vld [vmem:[#allocation2 + $0x150] sm:$0xff]  ;;  %v527_v57 = vld [vmem:[#allocation2 + $0x140] sm:$0xff] }
  0x44   : > { %v583_v49 = vld [vmem:[#allocation2 + $0xe1] sm:$0xff]  ;;  %v586_v50 = vld [vmem:[#allocation2 + $0x109] sm:$0xff]  ;;  %557 = vst.msk [vmem:[#allocation3 + $0xc8] sm:$0xff] %vm411_vm0, %v3376_v47  ;;  %560 = vst.msk [vmem:[#allocation3 + $0xe0] sm:$0xff] %vm411_vm0, %v528_v51 }
  0x45   : > { %v585_v58 = vld [vmem:[#allocation2 + $0xf9] sm:$0xff]  ;;  %v588_v59 = vld [vmem:[#allocation2 + $0x121] sm:$0xff]  ;;  %559 = vst.msk [vmem:[#allocation3 + $0xd8] sm:$0xff] %vm411_vm0, %v527_v57  ;;  %v587_v62 = vld [vmem:[#allocation2 + $0x111] sm:$0xff] }
  0x46   : > { %v530_v60 = vld [vmem:[#allocation2 + $0x168] sm:$0xff]  ;;  %v529_v61 = vld [vmem:[#allocation2 + $0x158] sm:$0xff]  ;;  %v531_v0 = vld [vmem:[#allocation2 + $0x170] sm:$0xff] }
  0x47   : > { %654 = vrot.lane.b32.xlu1 %v577_v23, %s2982_s8  ;;  %660 = vrot.lane.b32.xlu0 %v580_v24, %s2982_s8  ;;  %562 = vst.msk [vmem:[#allocation3 + $0xf0] sm:$0xff] %vm411_vm0, %v530_v60  ;;  %v590_v63 = vld [vmem:[#allocation2 + $0x139] sm:$0xff]  ;;  %561 = vst.msk [vmem:[#allocation3 + $0xe8] sm:$0xff] %vm411_vm0, %v529_v61  ;;  %v589_v3 = vld [vmem:[#allocation2 + $0x129] sm:$0xff] }
  0x48   : > { %v592_v4 = vld [vmem:[#allocation2 + $0x151] sm:$0xff]  ;;  %563 = vst.msk [vmem:[#allocation3 + $0xf8] sm:$0xff] %vm411_vm0, %v531_v0  ;;  %v591_v5 = vld [vmem:[#allocation2 + $0x141] sm:$0xff]  ;;  %v594_v6 = vld [vmem:[#allocation2 + $0x169] sm:$0xff] }
  0x49   : > { %v593_v7 = vld [vmem:[#allocation2 + $0x159] sm:$0xff]  ;;  %v757_v1 = vld [vmem:[#allocation2 + $0x2] sm:$0xff]  ;;  %v595_v9 = vld [vmem:[#allocation2 + $0x171] sm:$0xff] }
  0x4a   : > { %v3397_v10 = vld [vmem:[#allocation2 + $0x1a] sm:$0xff]  ;;  %v758_v11 = vld [vmem:[#allocation2 + $0xa] sm:$0xff]  ;;  %v3402_v12 = vld [vmem:[#allocation2 + $0x32] sm:$0xff] }
  0x4b   : > { %658 = vrot.lane.b32.xlu1 %v579_v31, %s2982_s8  ;;  %664 = vrot.lane.b32.xlu0 %v582_v32, %s2982_s8  ;;  %v3407_v13 = vld [vmem:[#allocation2 + $0x22] sm:$0xff]  ;;  %v3409_v16 = vld [vmem:[#allocation2 + $0x4a] sm:$0xff]  ;;  %v3415_v21 = vld [vmem:[#allocation2 + $0x3a] sm:$0xff] }
  0x4c   : > { %v3417_v22 = vld [vmem:[#allocation2 + $0x62] sm:$0xff]  ;;  %v3423_v23 = vld [vmem:[#allocation2 + $0x52] sm:$0xff]  ;;  %v3425_v24 = vld [vmem:[#allocation2 + $0x7a] sm:$0xff] }
  0x4d   : > { %v3431_v31 = vld [vmem:[#allocation2 + $0x6a] sm:$0xff]  ;;  %v3433_v32 = vld [vmem:[#allocation2 + $0x92] sm:$0xff]  ;;  %v3447_v46 = vld [vmem:[#allocation2 + $0x9a] sm:$0xff] }
  0x4e   : > { %v775_v51 = vld [vmem:[#allocation2 + $0xda] sm:$0xff]  ;;  %v3460_v57 = vld [vmem:[#allocation2 + $0xca] sm:$0xff]  ;;  %v780_v0 = vld [vmem:[#allocation2 + $0x112] sm:$0xff] }
  0x4f   : > { %662 = vrot.lane.b32.xlu1 %v581_v44, %s2982_s8  ;;  %668 = vrot.lane.b32.xlu0 %v584_v45, %s2982_s8  ;;  %v3439_v44 = vld [vmem:[#allocation2 + $0x82] sm:$0xff]  ;;  %v3441_v45 = vld [vmem:[#allocation2 + $0xaa] sm:$0xff]  ;;  %v778_v61 = vld [vmem:[#allocation2 + $0xfa] sm:$0xff] }
  0x50   : > { %v779_v60 = vld [vmem:[#allocation2 + $0x10a] sm:$0xff] }
  0x53   : > { %666 = vrot.lane.b32.xlu1 %v583_v49, %s2982_s8  ;;  %672 = vrot.lane.b32.xlu0 %v586_v50, %s2982_s8  ;;  %v3449_v49 = vld [vmem:[#allocation2 + $0xc2] sm:$0xff]  ;;  %v3455_v50 = vld [vmem:[#allocation2 + $0xb2] sm:$0xff] }
  0x57   : > { %670 = vrot.lane.b32.xlu1 %v585_v58, %s2982_s8  ;;  %676 = vrot.lane.b32.xlu0 %v588_v59, %s2982_s8  ;;  %v777_v58 = vld [vmem:[#allocation2 + $0xf2] sm:$0xff]  ;;  %v776_v59 = vld [vmem:[#allocation2 + $0xe2] sm:$0xff] }
  0x5b   : > { %674 = vrot.lane.b32.xlu1 %v587_v62, %s2982_s8  ;;  %680 = vrot.lane.b32.xlu0 %v590_v63, %s2982_s8  ;;  %v781_v62 = vld [vmem:[#allocation2 + $0x122] sm:$0xff] }
  0x5f   : > { %678 = vrot.lane.b32.xlu1 %v589_v3, %s2982_s8  ;;  %684 = vrot.lane.b32.xlu0 %v592_v4, %s2982_s8  ;;  %v783_v3 = vld [vmem:[#allocation2 + $0x13a] sm:$0xff] }
  0x63   : > { %682 = vrot.lane.b32.xlu1 %v591_v5, %s2982_s8  ;;  %688 = vrot.lane.b32.xlu0 %v594_v6, %s2982_s8  ;;  %v782_v5 = vld [vmem:[#allocation2 + $0x12a] sm:$0xff]  ;;  %v785_v6 = vld [vmem:[#allocation2 + $0x152] sm:$0xff] }
  0x67   : > { %686 = vrot.lane.b32.xlu1 %v593_v7, %s2982_s8  ;;  %821 = vrot.lane.b32.xlu0 %v757_v1, %s2983_s9  ;;  %v784_v7 = vld [vmem:[#allocation2 + $0x142] sm:$0xff]  ;;  %v787_v1 = vld [vmem:[#allocation2 + $0x16a] sm:$0xff] }
  0x6b   : > { %690 = vrot.lane.b32.xlu1 %v595_v9, %s2982_s8  ;;  %825 = vrot.lane.b32.xlu0 %v3397_v10, %s2983_s9 }
  0x6f   : > { %823 = vrot.lane.b32.xlu1 %v758_v11, %s2983_s9  ;;  %829 = vrot.lane.b32.xlu0 %v3402_v12, %s2983_s9 }
  0x73   : > { %827 = vrot.lane.b32.xlu1 %v3407_v13, %s2983_s9  ;;  %833 = vrot.lane.b32.xlu0 %v3409_v16, %s2983_s9 }
  0x77   : > { %831 = vrot.lane.b32.xlu1 %v3415_v21, %s2983_s9  ;;  %837 = vrot.lane.b32.xlu0 %v3417_v22, %s2983_s9 }
  0x7b   : > { %835 = vrot.lane.b32.xlu1 %v3423_v23, %s2983_s9  ;;  %841 = vrot.lane.b32.xlu0 %v3425_v24, %s2983_s9 }
  0x7f   : > { %839 = vrot.lane.b32.xlu1 %v3431_v31, %s2983_s9  ;;  %845 = vrot.lane.b32.xlu0 %v3433_v32, %s2983_s9 }
  0x83   : > { %843 = vrot.lane.b32.xlu1 %v3439_v44, %s2983_s9  ;;  %849 = vrot.lane.b32.xlu0 %v3441_v45, %s2983_s9 }
  0x86   : > { %v629_v63 = vpop.permute.xlu0 %628 }
  0x87   : > { %847 = vrot.lane.b32.xlu1 %v3447_v46, %s2983_s9  ;;  %853 = vrot.lane.b32.xlu0 %v3449_v49, %s2983_s9  ;;  %725 = vst.msk [vmem:[#allocation3] sm:$0xff] %vm724_vm2, %v629_v63 }
  0x8b   : > { %851 = vrot.lane.b32.xlu1 %v3455_v50, %s2983_s9  ;;  %857 = vrot.lane.b32.xlu0 %v775_v51, %s2983_s9  ;;  %v786_v51 = vld [vmem:[#allocation2 + $0x15a] sm:$0xff] }
  0x8f   : > { %855 = vrot.lane.b32.xlu1 %v3460_v57, %s2983_s9  ;;  %861 = vrot.lane.b32.xlu0 %v777_v58, %s2983_s9 }
  0x93   : > { %859 = vrot.lane.b32.xlu1 %v776_v59, %s2983_s9  ;;  %865 = vrot.lane.b32.xlu0 %v779_v60, %s2983_s9  ;;  %v788_v60 = vld [vmem:[#allocation2 + $0x172] sm:$0xff] }
  0x97   : > { %863 = vrot.lane.b32.xlu1 %v778_v61, %s2983_s9  ;;  %869 = vrot.lane.b32.xlu0 %v781_v62, %s2983_s9 }
  0x98   : > { %v631_v4 = vpop.permute.xlu0 %630 }
  0x99   : > { %726 = vst.msk [vmem:[#allocation3 + $0x8] sm:$0xff] %vm724_vm2, %v631_v4 }
  0x9b   : > { %867 = vrot.lane.b32.xlu1 %v780_v0, %s2983_s9  ;;  %873 = vrot.lane.b32.xlu0 %v783_v3, %s2983_s9 }
  0x9f   : > { %871 = vrot.lane.b32.xlu1 %v782_v5, %s2983_s9  ;;  %877 = vrot.lane.b32.xlu0 %v785_v6, %s2983_s9 }
  0xa1   : > { %v633_v9 = vpop.permute.xlu1 %632  ;;  %v637_v11 = vpop.permute.xlu0 %636 }
  0xa2   : > { %727 = vst.msk [vmem:[#allocation3 + $0x10] sm:$0xff] %vm724_vm2, %v633_v9  ;;  %729 = vst.msk [vmem:[#allocation3 + $0x20] sm:$0xff] %vm724_vm2, %v637_v11 }
  0xa3   : > { %875 = vrot.lane.b32.xlu1 %v784_v7, %s2983_s9  ;;  %881 = vrot.lane.b32.xlu0 %v787_v1, %s2983_s9 }
  0xa5   : > { %v635_v58 = vpop.permute.xlu1 %634  ;;  %v641_v59 = vpop.permute.xlu0 %640 }
  0xa6   : > { %728 = vst.msk [vmem:[#allocation3 + $0x18] sm:$0xff] %vm724_vm2, %v635_v58  ;;  %731 = vst.msk [vmem:[#allocation3 + $0x30] sm:$0xff] %vm724_vm2, %v641_v59 }
  0xa7   : > { %879 = vrot.lane.b32.xlu1 %v786_v51, %s2983_s9  ;;  %1014 = vrot.lane.b32.xlu0 %v3226_v48, %s2984_s10 }
  0xa9   : > { %v639_v61 = vpop.permute.xlu1 %638  ;;  %v645_v62 = vpop.permute.xlu0 %644 }
  0xaa   : > { %730 = vst.msk [vmem:[#allocation3 + $0x28] sm:$0xff] %vm724_vm2, %v639_v61  ;;  %733 = vst.msk [vmem:[#allocation3 + $0x40] sm:$0xff] %vm724_vm2, %v645_v62 }
  0xab   : > { %883 = vrot.lane.b32.xlu1 %v788_v60, %s2983_s9  ;;  %1018 = vrot.lane.b32.xlu0 %v3240_v52, %s2984_s10 }
  0xad   : > { %v643_v63 = vpop.permute.xlu1 %642  ;;  %v649_v0 = vpop.permute.xlu0 %648 }
  0xae   : > { %732 = vst.msk [vmem:[#allocation3 + $0x38] sm:$0xff] %vm724_vm2, %v643_v63  ;;  %735 = vst.msk [vmem:[#allocation3 + $0x50] sm:$0xff] %vm724_vm2, %v649_v0 }
  0xaf   : > { %1016 = vrot.lane.b32.xlu1 %v3242_v53, %s2984_s10  ;;  %1022 = vrot.lane.b32.xlu0 %v3244_v54, %s2984_s10 }
  0xb1   : > { %v647_v48 = vpop.permute.xlu1 %646  ;;  %v653_v3 = vpop.permute.xlu0 %652 }
  0xb2   : > { %734 = vst.msk [vmem:[#allocation3 + $0x48] sm:$0xff] %vm724_vm2, %v647_v48  ;;  %737 = vst.msk [vmem:[#allocation3 + $0x60] sm:$0xff] %vm724_vm2, %v653_v3  ;;  %v2149_v48 = vld [vmem:[%s4229_s3 + $0x40] sm:$0xff] }
  0xb3   : > { %1020 = vrot.lane.b32.xlu1 %v3279_v14, %s2984_s10  ;;  %1026 = vrot.lane.b32.xlu0 %v3281_v15, %s2984_s10 }
  0xb4   : > { %2870 = vmatprep.subr.mxu0 %v2149_v48  ;;  %2936 = vmatprep.subr.mxu1 %v2149_v48 }
  0xb5   : > { %v651_v4 = vpop.permute.xlu1 %650  ;;  %v657_v5 = vpop.permute.xlu0 %656  ;;  %2871 = vmatpush3.msra.mxu0 %v2149_v48  ;;  %2945 = vmatpush3.msra.mxu1 %v2149_v48 }
  0xb6   : > { %736 = vst.msk [vmem:[#allocation3 + $0x58] sm:$0xff] %vm724_vm2, %v651_v4  ;;  %739 = vst.msk [vmem:[#allocation3 + $0x70] sm:$0xff] %vm724_vm2, %v657_v5  ;;  %v2148_v4 = vld [vmem:[%s4229_s3 + $0x38] sm:$0xff] }
  0xb7   : > { %1024 = vrot.lane.b32.xlu1 %v3299_v17, %s2984_s10  ;;  %1030 = vrot.lane.b32.xlu0 %v3301_v20, %s2984_s10 }
  0xb8   : > { %2872 = vmatprep.subr.mxu0 %v2148_v4  ;;  %2937 = vmatprep.subr.mxu1 %v2148_v4 }
  0xb9   : > { %v655_v53 = vpop.permute.xlu1 %654  ;;  %v661_v6 = vpop.permute.xlu0 %660  ;;  %2873 = vmatpush3.msra.mxu0 %v2148_v4  ;;  %2946 = vmatpush3.msra.mxu1 %v2148_v4 }
  0xba   : > { %738 = vst.msk [vmem:[#allocation3 + $0x68] sm:$0xff] %vm724_vm2, %v655_v53  ;;  %741 = vst.msk [vmem:[#allocation3 + $0x80] sm:$0xff] %vm724_vm2, %v661_v6 }
  0xbb   : > { %1028 = vrot.lane.b32.xlu1 %v3309_v25, %s2984_s10  ;;  %1034 = vrot.lane.b32.xlu0 %v3313_v26, %s2984_s10 }
  0xbd   : > { %v659_v7 = vpop.permute.xlu1 %658  ;;  %v665_v1 = vpop.permute.xlu0 %664 }
  0xbe   : > { %740 = vst.msk [vmem:[#allocation3 + $0x78] sm:$0xff] %vm724_vm2, %v659_v7  ;;  %743 = vst.msk [vmem:[#allocation3 + $0x90] sm:$0xff] %vm724_vm2, %v665_v1  ;;  %v2145_v7 = vld [vmem:[%s4229_s3 + $0x20] sm:$0xff] }
  0xbf   : > { %1032 = vrot.lane.b32.xlu1 %v3315_v27, %s2984_s10  ;;  %1038 = vrot.lane.b32.xlu0 %v3317_v28, %s2984_s10 }
  0xc1   : > { %v663_v9 = vpop.permute.xlu1 %662  ;;  %v669_v11 = vpop.permute.xlu0 %668 }
  0xc2   : > { %742 = vst.msk [vmem:[#allocation3 + $0x88] sm:$0xff] %vm724_vm2, %v663_v9  ;;  %745 = vst.msk [vmem:[#allocation3 + $0xa0] sm:$0xff] %vm724_vm2, %v669_v11 }
  0xc3   : > { %1036 = vrot.lane.b32.xlu1 %v3325_v33, %s2984_s10  ;;  %1042 = vrot.lane.b32.xlu0 %v3327_v34, %s2984_s10 }
  0xc5   : > { %v667_v51 = vpop.permute.xlu1 %666  ;;  %v673_v58 = vpop.permute.xlu0 %672 }
  0xc6   : > { %744 = vst.msk [vmem:[#allocation3 + $0x98] sm:$0xff] %vm724_vm2, %v667_v51  ;;  %747 = vst.msk [vmem:[#allocation3 + $0xb0] sm:$0xff] %vm724_vm2, %v673_v58  ;;  %v2142_v58 = vld [vmem:[%s4229_s3 + $0x8] sm:$0xff] }
  0xc7   : > { %1040 = vrot.lane.b32.xlu1 %v3329_v35, %s2984_s10  ;;  %1046 = vrot.lane.b32.xlu0 %v3339_v36, %s2984_s10 }
  0xc9   : > { %v671_v59 = vpop.permute.xlu1 %670  ;;  %v677_v60 = vpop.permute.xlu0 %676 }
  0xca   : > { %746 = vst.msk [vmem:[#allocation3 + $0xa8] sm:$0xff] %vm724_vm2, %v671_v59  ;;  %749 = vst.msk [vmem:[#allocation3 + $0xc0] sm:$0xff] %vm724_vm2, %v677_v60 }
  0xcb   : > { %1044 = vrot.lane.b32.xlu1 %v3341_v37, %s2984_s10  ;;  %1050 = vrot.lane.b32.xlu0 %v3343_v38, %s2984_s10 }
  0xcd   : > { %v675_v61 = vpop.permute.xlu1 %674  ;;  %v681_v62 = vpop.permute.xlu0 %680 }
  0xce   : > { %748 = vst.msk [vmem:[#allocation3 + $0xb8] sm:$0xff] %vm724_vm2, %v675_v61  ;;  %751 = vst.msk [vmem:[#allocation3 + $0xd0] sm:$0xff] %vm724_vm2, %v681_v62 }
  0xcf   : > { %1048 = vrot.lane.b32.xlu1 %v3351_v39, %s2984_s10  ;;  %1207 = vrot.lane.b32.xlu0 %v3190_v18, %s2985_s11 }
  0xd1   : > { %v679_v63 = vpop.permute.xlu1 %678  ;;  %v685_v0 = vpop.permute.xlu0 %684 }
  0xd2   : > { %750 = vst.msk [vmem:[#allocation3 + $0xc8] sm:$0xff] %vm724_vm2, %v679_v63  ;;  %753 = vst.msk [vmem:[#allocation3 + $0xe0] sm:$0xff] %vm724_vm2, %v685_v0 }
  0xd3   : > { %1052 = vrot.lane.b32.xlu1 %v3355_v41, %s2984_s10  ;;  %1400 = vrot.lane.b32.xlu0 %v3397_v10, %s2986_s12  ;;  %v2147_v10 = vld [vmem:[%s4229_s3 + $0x30] sm:$0xff] }
  0xd4   : > { %2874 = vmatprep.subr.mxu0 %v2147_v10  ;;  %2938 = vmatprep.subr.mxu1 %v2147_v10 }
  0xd5   : > { %v683_v18 = vpop.permute.xlu1 %682  ;;  %v689_v3 = vpop.permute.xlu0 %688  ;;  %2875 = vmatpush3.msra.mxu0 %v2147_v10  ;;  %2947 = vmatpush3.msra.mxu1 %v2147_v10 }
  0xd6   : > { %752 = vst.msk [vmem:[#allocation3 + $0xd8] sm:$0xff] %vm724_vm2, %v683_v18  ;;  %755 = vst.msk [vmem:[#allocation3 + $0xf0] sm:$0xff] %vm724_vm2, %v689_v3 }
  0xd7   : > { %1209 = vrot.lane.b32.xlu1 %v3210_v29, %s2985_s11  ;;  %1594 = vrot.lane.b32.xlu0 %v3240_v52, %s2987_s17  ;;  %v2146_v29 = vld [vmem:[%s4229_s3 + $0x28] sm:$0xff] }
  0xd8   : > { %2876 = vmatprep.subr.mxu0 %v2146_v29  ;;  %2939 = vmatprep.subr.mxu1 %v2146_v29 }
  0xd9   : > { %v687_v5 = vpop.permute.xlu1 %686  ;;  %v822_v53 = vpop.permute.xlu0 %821  ;;  %2877 = vmatpush3.msra.mxu0 %v2146_v29  ;;  %2948 = vmatpush3.msra.mxu1 %v2146_v29  ;;  %v1730_v29 = vld [vmem:[#allocation2 + $0x81] sm:$0xff] }
  0xda   : > { %754 = vst.msk [vmem:[#allocation3 + $0xe8] sm:$0xff] %vm724_vm2, %v687_v5  ;;  %2878 = vmatprep.subr.mxu0 %v2145_v7  ;;  %2940 = vmatprep.subr.mxu1 %v2145_v7 }
  0xdb   : > { %918 = vst.msk [vmem:[#allocation3] sm:$0xff] %vm917_vm3, %v822_v53  ;;  %1402 = vrot.lane.b32.xlu1 %v3407_v13, %s2986_s12  ;;  %1787 = vrot.lane.b32.xlu0 %v3192_v19, %s2988_s25  ;;  %v2144_v13 = vld [vmem:[%s4229_s3 + $0x18] sm:$0xff] }
  0xdc   : > { %2879 = vmatpush3.msra.mxu0 %v2145_v7  ;;  %2949 = vmatpush3.msra.mxu1 %v2145_v7 }
  0xdd   : > { %v691_v52 = vpop.permute.xlu1 %690  ;;  %v826_v6 = vpop.permute.xlu0 %825  ;;  %2880 = vmatprep.subr.mxu0 %v2144_v13  ;;  %2941 = vmatprep.subr.mxu1 %v2144_v13 }
  0xde   : > { %756 = vst.msk [vmem:[#allocation3 + $0xf8] sm:$0xff] %vm724_vm2, %v691_v52  ;;  %2881 = vmatpush3.msra.mxu0 %v2144_v13  ;;  %2950 = vmatpush3.msra.mxu1 %v2144_v13 }
  0xdf   : > { %920 = vst.msk [vmem:[#allocation3 + $0x10] sm:$0xff] %vm917_vm3, %v826_v6  ;;  %1596 = vrot.lane.b32.xlu1 %v3279_v14, %s2987_s17  ;;  %1789 = vrot.lane.b32.xlu0 %v3246_v55, %s2988_s25  ;;  %v2143_v14 = vld [vmem:[%s4229_s3 + $0x10] sm:$0xff] }
  0xe0   : > { %2882 = vmatprep.subr.mxu0 %v2143_v14  ;;  %2942 = vmatprep.subr.mxu1 %v2143_v14 }
  0xe1   : > { %v824_v1 = vpop.permute.xlu1 %823  ;;  %v830_v9 = vpop.permute.xlu0 %829  ;;  %2883 = vmatpush3.msra.mxu0 %v2143_v14  ;;  %2951 = vmatpush3.msra.mxu1 %v2143_v14 }
  0xe2   : > { %919 = vst.msk [vmem:[#allocation3 + $0x8] sm:$0xff] %vm917_vm3, %v824_v1  ;;  %922 = vst.msk [vmem:[#allocation3 + $0x20] sm:$0xff] %vm917_vm3, %v830_v9  ;;  %2884 = vmatprep.subr.mxu0 %v2142_v58  ;;  %2943 = vmatprep.subr.mxu1 %v2142_v58  ;;  %v1731_v1 = vld [vmem:[#allocation2 + $0x91] sm:$0xff] }
  0xe3   : > { %1211 = vrot.lane.b32.xlu1 %v3192_v19, %s2985_s11  ;;  %1213 = vrot.lane.b32.xlu0 %v3246_v55, %s2985_s11  ;;  %v2141_v19 = vld [vmem:[%s4229_s3] sm:$0xff] }
  0xe4   : > { %2885 = vmatpush3.msra.mxu0 %v2142_v58  ;;  %2952 = vmatpush3.msra.mxu1 %v2142_v58 }
  0xe5   : > { %v828_v11 = vpop.permute.xlu1 %827  ;;  %v834_v51 = vpop.permute.xlu0 %833  ;;  %2886 = vmatprep.subr.mxu0 %v2141_v19  ;;  %2944 = vmatprep.subr.mxu1 %v2141_v19 }
  0xe6   : > { %921 = vst.msk [vmem:[#allocation3 + $0x18] sm:$0xff] %vm917_vm3, %v828_v11  ;;  %924 = vst.msk [vmem:[#allocation3 + $0x30] sm:$0xff] %vm917_vm3, %v834_v51  ;;  %2887 = vmatpush3.msra.mxu0 %v2141_v19  ;;  %2953 = vmatpush3.msra.mxu1 %v2141_v19  ;;  %v1732_v11 = vld [vmem:[#allocation2 + $0x99] sm:$0xff] }
  0xe7   : > { %1980 = vrot.lane.b32.xlu1 %v3402_v12, %s2989_s14  ;;  %1982 = vrot.lane.b32.xlu0 %v3415_v21, %s2989_s14 }
  0xe9   : > { %v832_v55 = vpop.permute.xlu1 %831  ;;  %v838_v59 = vpop.permute.xlu0 %837 }
  0xea   : > { %923 = vst.msk [vmem:[#allocation3 + $0x28] sm:$0xff] %vm917_vm3, %v832_v55  ;;  %926 = vst.msk [vmem:[#allocation3 + $0x40] sm:$0xff] %vm917_vm3, %v838_v59  ;;  %v1733_v59 = vld [vmem:[#allocation2 + $0xa9] sm:$0xff] }
  0xeb   : > { %1404 = vrot.lane.b32.xlu1 %v3402_v12, %s2986_s12  ;;  %1598 = vrot.lane.b32.xlu0 %v3244_v54, %s2987_s17 }
  0xed   : > { %v836_v60 = vpop.permute.xlu1 %835  ;;  %v842_v61 = vpop.permute.xlu0 %841 }
  0xee   : > { %925 = vst.msk [vmem:[#allocation3 + $0x38] sm:$0xff] %vm917_vm3, %v836_v60  ;;  %928 = vst.msk [vmem:[#allocation3 + $0x50] sm:$0xff] %vm917_vm3, %v842_v61 }
  0xef   : > { %1406 = vrot.lane.b32.xlu1 %v3415_v21, %s2986_s12  ;;  %1791 = vrot.lane.b32.xlu0 %v3212_v30, %s2988_s25 }
  0xf1   : > { %v840_v62 = vpop.permute.xlu1 %839  ;;  %v846_v63 = vpop.permute.xlu0 %845 }
  0xf2   : > { %927 = vst.msk [vmem:[#allocation3 + $0x48] sm:$0xff] %vm917_vm3, %v840_v62  ;;  %930 = vst.msk [vmem:[#allocation3 + $0x60] sm:$0xff] %vm917_vm3, %v846_v63  ;;  %v1734_v62 = vld [vmem:[#allocation2 + $0xb1] sm:$0xff] }
  0xf3   : > { %1600 = vrot.lane.b32.xlu1 %v3299_v17, %s2987_s17  ;;  %1793 = vrot.lane.b32.xlu0 %v3275_v8, %s2988_s25 }
  0xf5   : > { %v844_v54 = vpop.permute.xlu1 %843  ;;  %v850_v12 = vpop.permute.xlu0 %849 }
  0xf6   : > { %929 = vst.msk [vmem:[#allocation3 + $0x58] sm:$0xff] %vm917_vm3, %v844_v54  ;;  %932 = vst.msk [vmem:[#allocation3 + $0x70] sm:$0xff] %vm917_vm3, %v850_v12 }
  0xf7   : > { %1215 = vrot.lane.b32.xlu1 %v3212_v30, %s2985_s11  ;;  %1217 = vrot.lane.b32.xlu0 %v3275_v8, %s2985_s11 }
  0xf9   : > { %v848_v21 = vpop.permute.xlu1 %847  ;;  %v854_v0 = vpop.permute.xlu0 %853 }
  0xfa   : > { %931 = vst.msk [vmem:[#allocation3 + $0x68] sm:$0xff] %vm917_vm3, %v848_v21  ;;  %934 = vst.msk [vmem:[#allocation3 + $0x80] sm:$0xff] %vm917_vm3, %v854_v0  ;;  %v1735_v0 = vld [vmem:[#allocation2 + $0xc1] sm:$0xff] }
  0xfb   : > { %1984 = vrot.lane.b32.xlu1 %v3409_v16, %s2989_s14  ;;  %1986 = vrot.lane.b32.xlu0 %v3423_v23, %s2989_s14 }
  0xfd   : > { %v852_v17 = vpop.permute.xlu1 %851  ;;  %v858_v48 = vpop.permute.xlu0 %857 }
  0xfe   : > { %933 = vst.msk [vmem:[#allocation3 + $0x78] sm:$0xff] %vm917_vm3, %v852_v17  ;;  %936 = vst.msk [vmem:[#allocation3 + $0x90] sm:$0xff] %vm917_vm3, %v858_v48 }
  0xff   : > { %1408 = vrot.lane.b32.xlu1 %v3409_v16, %s2986_s12  ;;  %1602 = vrot.lane.b32.xlu0 %v3281_v15, %s2987_s17  ;;  %v1149_v15 = vld [vmem:[#allocation2 + $0x61] sm:$0xff] }
 0x101   : > { %v856_v30 = vpop.permute.xlu1 %855  ;;  %v862_v8 = vpop.permute.xlu0 %861 }
 0x102   : > { %935 = vst.msk [vmem:[#allocation3 + $0x88] sm:$0xff] %vm917_vm3, %v856_v30  ;;  %938 = vst.msk [vmem:[#allocation3 + $0xa0] sm:$0xff] %vm917_vm3, %v862_v8  ;;  %v1736_v30 = vld [vmem:[#allocation2 + $0xc9] sm:$0xff] }
 0x103   : > { %1410 = vrot.lane.b32.xlu1 %v3423_v23, %s2986_s12  ;;  %1795 = vrot.lane.b32.xlu0 %v3248_v56, %s2988_s25 }
 0x105   : > { %v860_v18 = vpop.permute.xlu1 %859  ;;  %v866_v3 = vpop.permute.xlu0 %865 }
 0x106   : > { %937 = vst.msk [vmem:[#allocation3 + $0x98] sm:$0xff] %vm917_vm3, %v860_v18  ;;  %940 = vst.msk [vmem:[#allocation3 + $0xb0] sm:$0xff] %vm917_vm3, %v866_v3 }
 0x107   : > { %1604 = vrot.lane.b32.xlu1 %v3309_v25, %s2987_s17  ;;  %1797 = vrot.lane.b32.xlu0 %v3294_v2, %s2988_s25 }
 0x109   : > { %v864_v16 = vpop.permute.xlu1 %863  ;;  %v870_v4 = vpop.permute.xlu0 %869 }
 0x10a   : > { %939 = vst.msk [vmem:[#allocation3 + $0xa8] sm:$0xff] %vm917_vm3, %v864_v16  ;;  %942 = vst.msk [vmem:[#allocation3 + $0xc0] sm:$0xff] %vm917_vm3, %v870_v4 }
 0x10b   : > { %1219 = vrot.lane.b32.xlu1 %v1149_v15, %s2985_s11  ;;  %1221 = vrot.lane.b32.xlu0 %v3294_v2, %s2985_s11  ;;  %v1729_v2 = vld [vmem:[#allocation2 + $0x79] sm:$0xff] }
 0x10d   : > { %v868_v56 = vpop.permute.xlu1 %867  ;;  %v874_v23 = vpop.permute.xlu0 %873 }
 0x10e   : > { %941 = vst.msk [vmem:[#allocation3 + $0xb8] sm:$0xff] %vm917_vm3, %v868_v56  ;;  %944 = vst.msk [vmem:[#allocation3 + $0xd0] sm:$0xff] %vm917_vm3, %v874_v23 }
 0x10f   : > { %1988 = vrot.lane.b32.xlu1 %v3417_v22, %s2989_s14  ;;  %1990 = vrot.lane.b32.xlu0 %v3431_v31, %s2989_s14 }
 0x111   : > { %v872_v25 = vpop.permute.xlu1 %871  ;;  %v878_v10 = vpop.permute.xlu0 %877 }
 0x112   : > { %943 = vst.msk [vmem:[#allocation3 + $0xc8] sm:$0xff] %vm917_vm3, %v872_v25  ;;  %946 = vst.msk [vmem:[#allocation3 + $0xe0] sm:$0xff] %vm917_vm3, %v878_v10  ;;  %v1738_v10 = vld [vmem:[#allocation2 + $0xe1] sm:$0xff] }
 0x113   : > { %1412 = vrot.lane.b32.xlu1 %v3417_v22, %s2986_s12  ;;  %1606 = vrot.lane.b32.xlu0 %v3301_v20, %s2987_s17 }
 0x115   : > { %v876_v5 = vpop.permute.xlu1 %875  ;;  %v882_v53 = vpop.permute.xlu0 %881 }
 0x116   : > { %945 = vst.msk [vmem:[#allocation3 + $0xd8] sm:$0xff] %vm917_vm3, %v876_v5  ;;  %948 = vst.msk [vmem:[#allocation3 + $0xf0] sm:$0xff] %vm917_vm3, %v882_v53 }
 0x117   : > { %1414 = vrot.lane.b32.xlu1 %v3431_v31, %s2986_s12  ;;  %1799 = vrot.lane.b32.xlu0 %v1729_v2, %s2988_s25 }
 0x119   : > { %v880_v52 = vpop.permute.xlu1 %879  ;;  %v1015_v6 = vpop.permute.xlu0 %1014 }
 0x11a   : > { %947 = vst.msk [vmem:[#allocation3 + $0xe8] sm:$0xff] %vm917_vm3, %v880_v52  ;;  %v1931_v52 = vld [vmem:[#allocation2 + $0xe2] sm:$0xff] }
 0x11b   : > { %1111 = vst.msk [vmem:[#allocation3] sm:$0xff] %vm1110_vm4, %v1015_v6  ;;  %1608 = vrot.lane.b32.xlu1 %v3315_v27, %s2987_s17  ;;  %1801 = vrot.lane.b32.xlu0 %v1730_v29, %s2988_s25 }
 0x11d   : > { %v884_v20 = vpop.permute.xlu1 %883  ;;  %v1019_v22 = vpop.permute.xlu0 %1018 }
 0x11e   : > { %949 = vst.msk [vmem:[#allocation3 + $0xf8] sm:$0xff] %vm917_vm3, %v884_v20 }
 0x11f   : > { %1113 = vst.msk [vmem:[#allocation3 + $0x10] sm:$0xff] %vm1110_vm4, %v1019_v22  ;;  %1223 = vrot.lane.b32.xlu1 %v1729_v2, %s2985_s11  ;;  %1225 = vrot.lane.b32.xlu0 %v1730_v29, %s2985_s11  ;;  %v1930_v29 = vld [vmem:[#allocation2 + $0xda] sm:$0xff] }
 0x121   : > { %v1017_v31 = vpop.permute.xlu1 %1016  ;;  %v1023_v7 = vpop.permute.xlu0 %1022 }
 0x122   : > { %1112 = vst.msk [vmem:[#allocation3 + $0x8] sm:$0xff] %vm1110_vm4, %v1017_v31  ;;  %1115 = vst.msk [vmem:[#allocation3 + $0x20] sm:$0xff] %vm1110_vm4, %v1023_v7 }
 0x123   : > { %1992 = vrot.lane.b32.xlu1 %v3425_v24, %s2989_s14  ;;  %1994 = vrot.lane.b32.xlu0 %v3439_v44, %s2989_s14 }
 0x125   : > { %v1021_v27 = vpop.permute.xlu1 %1020  ;;  %v1027_v13 = vpop.permute.xlu0 %1026 }
 0x126   : > { %1114 = vst.msk [vmem:[#allocation3 + $0x18] sm:$0xff] %vm1110_vm4, %v1021_v27  ;;  %1117 = vst.msk [vmem:[#allocation3 + $0x30] sm:$0xff] %vm1110_vm4, %v1027_v13  ;;  %v301_v27 = vld [vmem:[%s3110_s29 + $0xf0] sm:$0xff]  ;;  %v2971_v13 = vld [vmem:[%s4227_s1] ss:$0 sm:$0xff] }
 0x127   : > { %1416 = vrot.lane.b32.xlu1 %v3425_v24, %s2986_s12  ;;  %1610 = vrot.lane.b32.xlu0 %v3313_v26, %s2987_s17 }
 0x129   : > { %v1025_v9 = vpop.permute.xlu1 %1024  ;;  %v1031_v14 = vpop.permute.xlu0 %1030 }
 0x12a   : > { %1116 = vst.msk [vmem:[#allocation3 + $0x28] sm:$0xff] %vm1110_vm4, %v1025_v9  ;;  %1119 = vst.msk [vmem:[#allocation3 + $0x40] sm:$0xff] %vm1110_vm4, %v1031_v14  ;;  %v2972_v9 = vld [vmem:[%s4228_s2] ss:$0 sm:$0xff] }
 0x12b   : > { %1418 = vrot.lane.b32.xlu1 %v3439_v44, %s2986_s12  ;;  %1803 = vrot.lane.b32.xlu0 %v1731_v1, %s2988_s25 }
 0x12d   : > { %v1029_v51 = vpop.permute.xlu1 %1028  ;;  %v1035_v58 = vpop.permute.xlu0 %1034 }
 0x12e   : > { %1118 = vst.msk [vmem:[#allocation3 + $0x38] sm:$0xff] %vm1110_vm4, %v1029_v51  ;;  %1121 = vst.msk [vmem:[#allocation3 + $0x50] sm:$0xff] %vm1110_vm4, %v1035_v58  ;;  %v1739_v58 = vld [vmem:[#allocation2 + $0xf1] sm:$0xff] }
 0x12f   : > { %1612 = vrot.lane.b32.xlu1 %v3325_v33, %s2987_s17  ;;  %1805 = vrot.lane.b32.xlu0 %v1732_v11, %s2988_s25 }
 0x131   : > { %v1033_v26 = vpop.permute.xlu1 %1032  ;;  %v1039_v24 = vpop.permute.xlu0 %1038 }
 0x132   : > { %1120 = vst.msk [vmem:[#allocation3 + $0x48] sm:$0xff] %vm1110_vm4, %v1033_v26  ;;  %1123 = vst.msk [vmem:[#allocation3 + $0x60] sm:$0xff] %vm1110_vm4, %v1039_v24  ;;  %v302_v26 = vld [vmem:[%s3110_s29 + $0xf8] sm:$0xff] }
 0x133   : > { %1227 = vrot.lane.b32.xlu1 %v1731_v1, %s2985_s11  ;;  %1229 = vrot.lane.b32.xlu0 %v1732_v11, %s2985_s11  ;;  %v339_v1 = vmul.f32 %v2971_v13, %v301_v27 }
 0x135   : > { %v1037_v44 = vpop.permute.xlu1 %1036  ;;  %v1043_v19 = vpop.permute.xlu0 %1042  ;;  %v377_v14 = vadd.f32 %v2972_v9, %v339_v1  ;;  %v1553_v1 = vld [vmem:[#allocation2 + $0x140] sm:$0xff] }
 0x136   : > { %1122 = vst.msk [vmem:[#allocation3 + $0x58] sm:$0xff] %vm1110_vm4, %v1037_v44  ;;  %1125 = vst.msk [vmem:[#allocation3 + $0x70] sm:$0xff] %vm1110_vm4, %v1043_v19  ;;  %v340_v44 = vmul.f32 %v2971_v13, %v302_v26 }
 0x137   : > { %1996 = vrot.lane.b32.xlu1 %v3433_v32, %s2989_s14  ;;  %1998 = vrot.lane.b32.xlu0 %v3447_v46, %s2989_s14  ;;  %v409_v24 = vmax.f32 %v377_v14, 0.0 }
 0x139   : > { %v1041_v33 = vpop.permute.xlu1 %1040  ;;  %v1047_v55 = vpop.permute.xlu0 %1046  ;;  %498 = vst.msk [vmem:[#allocation2 + $0x181] sm:$0xff] %vm411_vm0, %v409_v24 }
 0x13a   : > { %1124 = vst.msk [vmem:[#allocation3 + $0x68] sm:$0xff] %vm1110_vm4, %v1041_v33  ;;  %1127 = vst.msk [vmem:[#allocation3 + $0x80] sm:$0xff] %vm1110_vm4, %v1047_v55  ;;  %v1740_v55 = vld [vmem:[#allocation2 + $0xf9] sm:$0xff] }
 0x13b   : > { %1420 = vrot.lane.b32.xlu1 %v3433_v32, %s2986_s12  ;;  %1614 = vrot.lane.b32.xlu0 %v3317_v28, %s2987_s17 }
 0x13d   : > { %v1045_v60 = vpop.permute.xlu1 %1044  ;;  %v1051_v61 = vpop.permute.xlu0 %1050 }
 0x13e   : > { %1126 = vst.msk [vmem:[#allocation3 + $0x78] sm:$0xff] %vm1110_vm4, %v1045_v60  ;;  %1129 = vst.msk [vmem:[#allocation3 + $0x90] sm:$0xff] %vm1110_vm4, %v1051_v61 }
 0x13f   : > { %1422 = vrot.lane.b32.xlu1 %v3447_v46, %s2986_s12  ;;  %1807 = vrot.lane.b32.xlu0 %v1733_v59, %s2988_s25 }
 0x141   : > { %v1049_v63 = vpop.permute.xlu1 %1048  ;;  %v1208_v54 = vpop.permute.xlu0 %1207 }
 0x142   : > { %1128 = vst.msk [vmem:[#allocation3 + $0x88] sm:$0xff] %vm1110_vm4, %v1049_v63 }
 0x143   : > { %1304 = vst.msk [vmem:[#allocation3] sm:$0xff] %vm1303_vm5, %v1208_v54  ;;  %1616 = vrot.lane.b32.xlu1 %v3329_v35, %s2987_s17  ;;  %1809 = vrot.lane.b32.xlu0 %v1734_v62, %s2988_s25 }
 0x145   : > { %v1053_v28 = vpop.permute.xlu1 %1052  ;;  %v1401_v32 = vpop.permute.xlu0 %1400 }
 0x146   : > { %1130 = vst.msk [vmem:[#allocation3 + $0x98] sm:$0xff] %vm1110_vm4, %v1053_v28  ;;  %v1933_v28 = vld [vmem:[#allocation2 + $0xfa] sm:$0xff] }
 0x147   : > { %1497 = vst.msk [vmem:[#allocation3] sm:$0xff] %vm1496_vm6, %v1401_v32  ;;  %1231 = vrot.lane.b32.xlu1 %v1733_v59, %s2985_s11  ;;  %1233 = vrot.lane.b32.xlu0 %v1734_v62, %s2985_s11  ;;  %v1932_v62 = vld [vmem:[#allocation2 + $0xf2] sm:$0xff] }
 0x149   : > { %v1210_v46 = vpop.permute.xlu1 %1209  ;;  %v1595_v12 = vpop.permute.xlu0 %1594 }
 0x14a   : > { %1305 = vst.msk [vmem:[#allocation3 + $0x8] sm:$0xff] %vm1303_vm5, %v1210_v46 }
 0x14b   : > { %1691 = vst.msk [vmem:[#allocation3] sm:$0xff] %vm1690_vm7, %v1595_v12  ;;  %2000 = vrot.lane.b32.xlu1 %v3441_v45, %s2989_s14  ;;  %2002 = vrot.lane.b32.xlu0 %v3455_v50, %s2989_s14 }
 0x14d   : > { %v1403_v35 = vpop.permute.xlu1 %1402  ;;  %v1788_v21 = vpop.permute.xlu0 %1787 }
 0x14e   : > { %1498 = vst.msk [vmem:[#allocation3 + $0x8] sm:$0xff] %vm1496_vm6, %v1403_v35 }
 0x14f   : > { %1884 = vst.msk [vmem:[#allocation3] sm:$0xff] %vm1883_vm8, %v1788_v21  ;;  %1424 = vrot.lane.b32.xlu1 %v3441_v45, %s2986_s12  ;;  %1618 = vrot.lane.b32.xlu0 %v3327_v34, %s2987_s17 }
 0x151   : > { %v1597_v17 = vpop.permute.xlu1 %1596  ;;  %v1790_v48 = vpop.permute.xlu0 %1789 }
 0x152   : > { %1692 = vst.msk [vmem:[#allocation3 + $0x8] sm:$0xff] %vm1690_vm7, %v1597_v17 }
 0x153   : > { %1885 = vst.msk [vmem:[#allocation3 + $0x8] sm:$0xff] %vm1883_vm8, %v1790_v48  ;;  %1426 = vrot.lane.b32.xlu1 %v3455_v50, %s2986_s12  ;;  %1811 = vrot.lane.b32.xlu0 %v1735_v0, %s2988_s25  ;;  %v1741_v48 = vld [vmem:[#allocation2 + $0x109] sm:$0xff] }
 0x155   : > { %v1212_v8 = vpop.permute.xlu1 %1211  ;;  %v1214_v18 = vpop.permute.xlu0 %1213 }
 0x156   : > { %1306 = vst.msk [vmem:[#allocation3 + $0x10] sm:$0xff] %vm1303_vm5, %v1212_v8  ;;  %1307 = vst.msk [vmem:[#allocation3 + $0x18] sm:$0xff] %vm1303_vm5, %v1214_v18  ;;  %v1742_v18 = vld [vmem:[#allocation2 + $0x111] sm:$0xff] }
 0x157   : > { %1620 = vrot.lane.b32.xlu1 %v3341_v37, %s2987_s17  ;;  %1813 = vrot.lane.b32.xlu0 %v1736_v30, %s2988_s25  ;;  %v1350_v37 = vld [vmem:[#allocation2 + $0xc2] sm:$0xff] }
 0x159   : > { %v1981_v34 = vpop.permute.xlu1 %1980  ;;  %v1983_v45 = vpop.permute.xlu0 %1982 }
 0x15a   : > { %2077 = vst.msk [vmem:[#allocation3] sm:$0xff] %vm2076_vm9, %v1981_v34  ;;  %2078 = vst.msk [vmem:[#allocation3 + $0x8] sm:$0xff] %vm2076_vm9, %v1983_v45 }
 0x15b   : > { %1235 = vrot.lane.b32.xlu1 %v1735_v0, %s2985_s11  ;;  %1237 = vrot.lane.b32.xlu0 %v1736_v30, %s2985_s11 }
 0x15d   : > { %v1405_v50 = vpop.permute.xlu1 %1404  ;;  %v1599_v3 = vpop.permute.xlu0 %1598 }
 0x15e   : > { %1499 = vst.msk [vmem:[#allocation3 + $0x10] sm:$0xff] %vm1496_vm6, %v1405_v50 }
 0x15f   : > { %1693 = vst.msk [vmem:[#allocation3 + $0x10] sm:$0xff] %vm1690_vm7, %v1599_v3  ;;  %2004 = vrot.lane.b32.xlu1 %v3449_v49, %s2989_s14  ;;  %2006 = vrot.lane.b32.xlu0 %v3460_v57, %s2989_s14  ;;  %v1351_v49 = vld [vmem:[#allocation2 + $0xca] sm:$0xff]  ;;  %v1737_v57 = vld [vmem:[#allocation2 + $0xd9] sm:$0xff] }
 0x161   : > { %v1407_v15 = vpop.permute.xlu1 %1406  ;;  %v1792_v16 = vpop.permute.xlu0 %1791  ;;  %v2109_v4 = vld [vmem:[#allocation3] sm:$0xff]  ;;  %v2110_v56 = vld [vmem:[#allocation3 + $0x8] sm:$0xff] }
 0x162   : > { %1500 = vst.msk [vmem:[#allocation3 + $0x18] sm:$0xff] %vm1496_vm6, %v1407_v15  ;;  %2888 = vmatprep.mubr.msk.f32.mxu0 %vm2150_vm10, %v2109_v4  ;;  %v1935_v15 = vld [vmem:[#allocation2 + $0x112] sm:$0xff] }
 0x163   : > { %1886 = vst.msk [vmem:[#allocation3 + $0x10] sm:$0xff] %vm1883_vm8, %v1792_v16  ;;  %1428 = vrot.lane.b32.xlu1 %v1350_v37, %s2986_s12  ;;  %1622 = vrot.lane.b32.xlu0 %v3339_v36, %s2987_s17 }
 0x164   : > { %2889 = vmatmul.mubr.msk.f32.vlgmr.msra.gmra.mxu0 %vm2150_vm10, %v2110_v56 }
 0x165   : > { %v1601_v23 = vpop.permute.xlu1 %1600  ;;  %v1794_v25 = vpop.permute.xlu0 %1793 }
 0x166   : > { %1694 = vst.msk [vmem:[#allocation3 + $0x18] sm:$0xff] %vm1690_vm7, %v1601_v23 }
 0x167   : > { %1887 = vst.msk [vmem:[#allocation3 + $0x18] sm:$0xff] %vm1883_vm8, %v1794_v25  ;;  %1430 = vrot.lane.b32.xlu1 %v1351_v49, %s2986_s12  ;;  %1815 = vrot.lane.b32.xlu0 %v1737_v57, %s2988_s25 }
 0x169   : > { %v1216_v2 = vpop.permute.xlu1 %1215  ;;  %v1218_v5 = vpop.permute.xlu0 %1217 }
 0x16a   : > { %1308 = vst.msk [vmem:[#allocation3 + $0x20] sm:$0xff] %vm1303_vm5, %v1216_v2  ;;  %1309 = vst.msk [vmem:[#allocation3 + $0x28] sm:$0xff] %vm1303_vm5, %v1218_v5  ;;  %v1744_v5 = vld [vmem:[#allocation2 + $0x129] sm:$0xff] }
 0x16b   : > { %1624 = vrot.lane.b32.xlu1 %v3351_v39, %s2987_s17  ;;  %1817 = vrot.lane.b32.xlu0 %v1738_v10, %s2988_s25 }
 0x16d   : > { %v1985_v36 = vpop.permute.xlu1 %1984  ;;  %v1987_v53 = vpop.permute.xlu0 %1986 }
 0x16e   : > { %2079 = vst.msk [vmem:[#allocation3 + $0x10] sm:$0xff] %vm2076_vm9, %v1985_v36  ;;  %2080 = vst.msk [vmem:[#allocation3 + $0x18] sm:$0xff] %vm2076_vm9, %v1987_v53 }
 0x16f   : > { %1239 = vrot.lane.b32.xlu1 %v1737_v57, %s2985_s11  ;;  %1241 = vrot.lane.b32.xlu0 %v1738_v10, %s2985_s11  ;;  %v972_v57 = vld [vmem:[#allocation2 + $0x120] sm:$0xff] }
 0x171   : > { %v1409_v6 = vpop.permute.xlu1 %1408  ;;  %v1603_v20 = vpop.permute.xlu0 %1602 }
 0x172   : > { %1501 = vst.msk [vmem:[#allocation3 + $0x20] sm:$0xff] %vm1496_vm6, %v1409_v6 }
 0x173   : > { %1695 = vst.msk [vmem:[#allocation3 + $0x20] sm:$0xff] %vm1690_vm7, %v1603_v20  ;;  %2008 = vrot.lane.b32.xlu1 %v1930_v29, %s2989_s14  ;;  %2010 = vrot.lane.b32.xlu0 %v1931_v52, %s2989_s14 }
 0x175   : > { %v1411_v39 = vpop.permute.xlu1 %1410  ;;  %v1796_v22 = vpop.permute.xlu0 %1795  ;;  %v2111_v31 = vld [vmem:[#allocation3 + $0x10] sm:$0xff]  ;;  %v2112_v7 = vld [vmem:[#allocation3 + $0x18] sm:$0xff] }
 0x176   : > { %1502 = vst.msk [vmem:[#allocation3 + $0x28] sm:$0xff] %vm1496_vm6, %v1411_v39  ;;  %2891 = vmatprep.mubr.msk.f32.mxu0 %vm2150_vm10, %v2111_v31  ;;  %v1937_v39 = vld [vmem:[#allocation2 + $0x12a] sm:$0xff] }
 0x177   : > { %1888 = vst.msk [vmem:[#allocation3 + $0x20] sm:$0xff] %vm1883_vm8, %v1796_v22  ;;  %1432 = vrot.lane.b32.xlu1 %v1930_v29, %s2986_s12  ;;  %2892 = vmatmul.mubr.msk.f32.gmra.mxu0 %vm2150_vm10, %v2112_v7  ;;  %v1552_v7 = vld [vmem:[#allocation2 + $0x138] sm:$0xff] }
 0x178   : > { %1626 = vrot.lane.b32.xlu0 %v3343_v38, %s2987_s17  ;;  %v378_v38 = vadd.f32 %v2972_v9, %v340_v44  ;;  %v1746_v44 = vld [vmem:[#allocation2 + $0x141] sm:$0xff] }
 0x179   : > { %v1605_v11 = vpop.permute.xlu1 %1604  ;;  %v1798_v51 = vpop.permute.xlu0 %1797 }
 0x17a   : > { %1696 = vst.msk [vmem:[#allocation3 + $0x28] sm:$0xff] %vm1690_vm7, %v1605_v11  ;;  %v410_v59 = vmax.f32 %v378_v38, 0.0  ;;  %v1745_v11 = vld [vmem:[#allocation2 + $0x139] sm:$0xff] }
 0x17b   : > { %1889 = vst.msk [vmem:[#allocation3 + $0x28] sm:$0xff] %vm1883_vm8, %v1798_v51  ;;  %1434 = vrot.lane.b32.xlu1 %v1931_v52, %s2986_s12 }
 0x17c   : > { %1819 = vrot.lane.b32.xlu0 %v1739_v58, %s2988_s25  ;;  %499 = vst.msk [vmem:[#allocation2 + $0x189] sm:$0xff] %vm411_vm0, %v410_v59 }
 0x17d   : > { %v1220_v19 = vpop.permute.xlu1 %1219  ;;  %v1222_v33 = vpop.permute.xlu0 %1221 }
 0x17e   : > { %1310 = vst.msk [vmem:[#allocation3 + $0x30] sm:$0xff] %vm1303_vm5, %v1220_v19  ;;  %1311 = vst.msk [vmem:[#allocation3 + $0x38] sm:$0xff] %vm1303_vm5, %v1222_v33  ;;  %v1938_v33 = vld [vmem:[#allocation2 + $0x13a] sm:$0xff] }
 0x17f   : > { %1628 = vrot.lane.b32.xlu1 %v3355_v41, %s2987_s17 }
 0x180   : > { %1821 = vrot.lane.b32.xlu0 %v1740_v55, %s2988_s25 }
 0x181   : > { %v1989_v60 = vpop.permute.xlu1 %1988  ;;  %v1991_v61 = vpop.permute.xlu0 %1990 }
 0x182   : > { %2081 = vst.msk [vmem:[#allocation3 + $0x20] sm:$0xff] %vm2076_vm9, %v1989_v60  ;;  %2082 = vst.msk [vmem:[#allocation3 + $0x28] sm:$0xff] %vm2076_vm9, %v1991_v61  ;;  %v1939_v60 = vld [vmem:[#allocation2 + $0x142] sm:$0xff] }
 0x183   : > { %1243 = vrot.lane.b32.xlu1 %v1739_v58, %s2985_s11 }
 0x184   : > { %1245 = vrot.lane.b32.xlu0 %v1740_v55, %s2985_s11 }
 0x185   : > { %v1413_v63 = vpop.permute.xlu1 %1412  ;;  %v1607_v54 = vpop.permute.xlu0 %1606 }
 0x186   : > { %1503 = vst.msk [vmem:[#allocation3 + $0x30] sm:$0xff] %vm1496_vm6, %v1413_v63  ;;  %v1554_v63 = vld [vmem:[#allocation2 + $0x150] sm:$0xff] }
 0x187   : > { %1697 = vst.msk [vmem:[#allocation3 + $0x30] sm:$0xff] %vm1690_vm7, %v1607_v54  ;;  %2012 = vrot.lane.b32.xlu1 %v1932_v62, %s2989_s14 }
 0x188   : > { %2014 = vrot.lane.b32.xlu0 %v1933_v28, %s2989_s14 }
 0x189   : > { %v1415_v41 = vpop.permute.xlu1 %1414  ;;  %v1800_v32 = vpop.permute.xlu0 %1799  ;;  %v2113_v46 = vld [vmem:[#allocation3 + $0x20] sm:$0xff]  ;;  %v2114_v12 = vld [vmem:[#allocation3 + $0x28] sm:$0xff] }
 0x18a   : > { %1504 = vst.msk [vmem:[#allocation3 + $0x38] sm:$0xff] %vm1496_vm6, %v1415_v41  ;;  %2894 = vmatprep.mubr.msk.f32.mxu0 %vm2150_vm10, %v2113_v46  ;;  %v1555_v41 = vld [vmem:[#allocation2 + $0x158] sm:$0xff] }
 0x18b   : > { %1890 = vst.msk [vmem:[#allocation3 + $0x30] sm:$0xff] %vm1883_vm8, %v1800_v32  ;;  %1436 = vrot.lane.b32.xlu1 %v1932_v62, %s2986_s12  ;;  %2895 = vmatmul.mubr.msk.f32.gmra.mxu0 %vm2150_vm10, %v2114_v12 }
 0x18c   : > { %1630 = vrot.lane.b32.xlu0 %v3353_v40, %s2987_s17 }
 0x18d   : > { %v1609_v35 = vpop.permute.xlu1 %1608  ;;  %v1802_v21 = vpop.permute.xlu0 %1801 }
 0x18e   : > { %1698 = vst.msk [vmem:[#allocation3 + $0x38] sm:$0xff] %vm1690_vm7, %v1609_v35 }
 0x18f   : > { %1891 = vst.msk [vmem:[#allocation3 + $0x38] sm:$0xff] %vm1883_vm8, %v1802_v21  ;;  %1438 = vrot.lane.b32.xlu1 %v1933_v28, %s2986_s12  ;;  %v1747_v21 = vld [vmem:[#allocation2 + $0x151] sm:$0xff] }
 0x190   : > { %1632 = vrot.lane.b32.xlu0 %v3369_v43, %s2987_s17 }
 0x191   : > { %v1224_v0 = vpop.permute.xlu1 %1223  ;;  %v1226_v17 = vpop.permute.xlu0 %1225 }
 0x192   : > { %1312 = vst.msk [vmem:[#allocation3 + $0x40] sm:$0xff] %vm1303_vm5, %v1224_v0  ;;  %1313 = vst.msk [vmem:[#allocation3 + $0x48] sm:$0xff] %vm1303_vm5, %v1226_v17 }
 0x193   : > { %1054 = vrot.lane.b32.xlu1 %v3353_v40, %s2984_s10  ;;  %v1934_v40 = vld [vmem:[#allocation2 + $0x10a] sm:$0xff] }
 0x194   : > { %1056 = vrot.lane.b32.xlu0 %v3369_v43, %s2984_s10 }
 0x195   : > { %v1993_v30 = vpop.permute.xlu1 %1992  ;;  %v1995_v8 = vpop.permute.xlu0 %1994 }
 0x196   : > { %2083 = vst.msk [vmem:[#allocation3 + $0x30] sm:$0xff] %vm2076_vm9, %v1993_v30  ;;  %2084 = vst.msk [vmem:[#allocation3 + $0x38] sm:$0xff] %vm2076_vm9, %v1995_v8 }
 0x197   : > { %1823 = vrot.lane.b32.xlu1 %v1741_v48, %s2988_s25 }
 0x198   : > { %1825 = vrot.lane.b32.xlu0 %v1742_v18, %s2988_s25 }
 0x199   : > { %v1417_v34 = vpop.permute.xlu1 %1416  ;;  %v1611_v45 = vpop.permute.xlu0 %1610 }
 0x19a   : > { %1505 = vst.msk [vmem:[#allocation3 + $0x40] sm:$0xff] %vm1496_vm6, %v1417_v34 }
 0x19b   : > { %1699 = vst.msk [vmem:[#allocation3 + $0x40] sm:$0xff] %vm1690_vm7, %v1611_v45  ;;  %1247 = vrot.lane.b32.xlu1 %v1741_v48, %s2985_s11  ;;  %v1748_v48 = vld [vmem:[#allocation2 + $0x159] sm:$0xff] }
 0x19c   : > { %1249 = vrot.lane.b32.xlu0 %v1742_v18, %s2985_s11  ;;  %v1940_v18 = vld [vmem:[#allocation2 + $0x152] sm:$0xff] }
 0x19d   : > { %v1419_v43 = vpop.permute.xlu1 %1418  ;;  %v1804_v50 = vpop.permute.xlu0 %1803  ;;  %v2115_v3 = vld [vmem:[#allocation3 + $0x30] sm:$0xff]  ;;  %v2116_v37 = vld [vmem:[#allocation3 + $0x38] sm:$0xff] }
 0x19e   : > { %1506 = vst.msk [vmem:[#allocation3 + $0x48] sm:$0xff] %vm1496_vm6, %v1419_v43  ;;  %2897 = vmatprep.mubr.msk.f32.mxu0 %vm2150_vm10, %v2115_v3 }
 0x19f   : > { %1892 = vst.msk [vmem:[#allocation3 + $0x40] sm:$0xff] %vm1883_vm8, %v1804_v50  ;;  %2016 = vrot.lane.b32.xlu1 %v1934_v40, %s2989_s14  ;;  %2898 = vmatmul.mubr.msk.f32.gmra.mxu0 %vm2150_vm10, %v2116_v37  ;;  %v1556_v50 = vld [vmem:[#allocation2 + $0x168] sm:$0xff] }
 0x1a0   : > { %2018 = vrot.lane.b32.xlu0 %v1935_v15, %s2989_s14 }
 0x1a1   : > { %v1613_v16 = vpop.permute.xlu1 %1612  ;;  %v1806_v4 = vpop.permute.xlu0 %1805 }
 0x1a2   : > { %1700 = vst.msk [vmem:[#allocation3 + $0x48] sm:$0xff] %vm1690_vm7, %v1613_v16 }
 0x1a3   : > { %1893 = vst.msk [vmem:[#allocation3 + $0x48] sm:$0xff] %vm1883_vm8, %v1806_v4  ;;  %1440 = vrot.lane.b32.xlu1 %v1934_v40, %s2986_s12  ;;  %v1941_v40 = vld [vmem:[#allocation2 + $0x15a] sm:$0xff]  ;;  %v1557_v4 = vld [vmem:[#allocation2 + $0x170] sm:$0xff] }
 0x1a4   : > { %1634 = vrot.lane.b32.xlu0 %v3363_v42, %s2987_s17  ;;  %v1743_v42 = vld [vmem:[#allocation2 + $0x121] sm:$0xff] }
 0x1a5   : > { %v1228_v56 = vpop.permute.xlu1 %1227  ;;  %v1230_v49 = vpop.permute.xlu0 %1229 }
 0x1a6   : > { %1314 = vst.msk [vmem:[#allocation3 + $0x50] sm:$0xff] %vm1303_vm5, %v1228_v56  ;;  %1315 = vst.msk [vmem:[#allocation3 + $0x58] sm:$0xff] %vm1303_vm5, %v1230_v49 }
 0x1a7   : > { %1442 = vrot.lane.b32.xlu1 %v1935_v15, %s2986_s12 }
 0x1a8   : > { %1636 = vrot.lane.b32.xlu0 %v3376_v47, %s2987_s17 }
 0x1a9   : > { %v1997_v23 = vpop.permute.xlu1 %1996  ;;  %v1999_v25 = vpop.permute.xlu0 %1998 }
 0x1aa   : > { %2085 = vst.msk [vmem:[#allocation3 + $0x40] sm:$0xff] %vm2076_vm9, %v1997_v23  ;;  %2086 = vst.msk [vmem:[#allocation3 + $0x48] sm:$0xff] %vm2076_vm9, %v1999_v25  ;;  %v1749_v23 = vld [vmem:[#allocation2 + $0x169] sm:$0xff] }
 0x1ab   : > { %1058 = vrot.lane.b32.xlu1 %v972_v57, %s2984_s10 }
 0x1ac   : > { %1060 = vrot.lane.b32.xlu0 %v3376_v47, %s2984_s10  ;;  %v1936_v47 = vld [vmem:[#allocation2 + $0x122] sm:$0xff] }
 0x1ad   : > { %v1421_v10 = vpop.permute.xlu1 %1420  ;;  %v1615_v2 = vpop.permute.xlu0 %1614 }
 0x1ae   : > { %1507 = vst.msk [vmem:[#allocation3 + $0x50] sm:$0xff] %vm1496_vm6, %v1421_v10 }
 0x1af   : > { %1701 = vst.msk [vmem:[#allocation3 + $0x50] sm:$0xff] %vm1690_vm7, %v1615_v2  ;;  %1827 = vrot.lane.b32.xlu1 %v1743_v42, %s2988_s25 }
 0x1b0   : > { %1829 = vrot.lane.b32.xlu0 %v1744_v5, %s2988_s25 }
 0x1b1   : > { %v1423_v36 = vpop.permute.xlu1 %1422  ;;  %v1808_v53 = vpop.permute.xlu0 %1807  ;;  %v2117_v29 = vld [vmem:[#allocation3 + $0x40] sm:$0xff]  ;;  %v2118_v52 = vld [vmem:[#allocation3 + $0x48] sm:$0xff] }
 0x1b2   : > { %1508 = vst.msk [vmem:[#allocation3 + $0x58] sm:$0xff] %vm1496_vm6, %v1423_v36  ;;  %2900 = vmatprep.mubr.msk.f32.mxu0 %vm2150_vm10, %v2117_v29  ;;  %v1942_v36 = vld [vmem:[#allocation2 + $0x16a] sm:$0xff]  ;;  %v1943_v29 = vld [vmem:[#allocation2 + $0x172] sm:$0xff] }
 0x1b3   : > { %1894 = vst.msk [vmem:[#allocation3 + $0x50] sm:$0xff] %vm1883_vm8, %v1808_v53  ;;  %1251 = vrot.lane.b32.xlu1 %v1743_v42, %s2985_s11  ;;  %2901 = vmatmul.mubr.msk.f32.gmra.mxu0 %vm2150_vm10, %v2118_v52  ;;  %v1750_v42 = vld [vmem:[#allocation2 + $0x171] sm:$0xff] }
 0x1b4   : > { %1253 = vrot.lane.b32.xlu0 %v1744_v5, %s2985_s11 }
 0x1b5   : > { %v1617_v6 = vpop.permute.xlu1 %1616  ;;  %v1810_v20 = vpop.permute.xlu0 %1809 }
 0x1b6   : > { %1702 = vst.msk [vmem:[#allocation3 + $0x58] sm:$0xff] %vm1690_vm7, %v1617_v6 }
 0x1b7   : > { %1895 = vst.msk [vmem:[#allocation3 + $0x58] sm:$0xff] %vm1883_vm8, %v1810_v20  ;;  %2020 = vrot.lane.b32.xlu1 %v1936_v47, %s2989_s14  ;;  %v1558_v20 = vld [vmem:[#allocation2 + $0x180] sm:$0xff] }
 0x1b8   : > { %2022 = vrot.lane.b32.xlu0 %v1937_v39, %s2989_s14 }
 0x1b9   : > { %v1232_v22 = vpop.permute.xlu1 %1231  ;;  %v1234_v31 = vpop.permute.xlu0 %1233 }
 0x1ba   : > { %1316 = vst.msk [vmem:[#allocation3 + $0x60] sm:$0xff] %vm1303_vm5, %v1232_v22  ;;  %1317 = vst.msk [vmem:[#allocation3 + $0x68] sm:$0xff] %vm1303_vm5, %v1234_v31 }
 0x1bb   : > { %1444 = vrot.lane.b32.xlu1 %v1936_v47, %s2986_s12 }
 0x1bc   : > { %1638 = vrot.lane.b32.xlu0 %v1552_v7, %s2987_s17 }
 0x1bd   : > { %v2001_v27 = vpop.permute.xlu1 %2000  ;;  %v2003_v13 = vpop.permute.xlu0 %2002 }
 0x1be   : > { %2087 = vst.msk [vmem:[#allocation3 + $0x50] sm:$0xff] %vm2076_vm9, %v2001_v27  ;;  %2088 = vst.msk [vmem:[#allocation3 + $0x58] sm:$0xff] %vm2076_vm9, %v2003_v13 }
 0x1bf   : > { %1446 = vrot.lane.b32.xlu1 %v1937_v39, %s2986_s12 }
 0x1c0   : > { %1640 = vrot.lane.b32.xlu0 %v1553_v1, %s2987_s17 }
 0x1c1   : > { %v1425_v9 = vpop.permute.xlu1 %1424  ;;  %v1619_v14 = vpop.permute.xlu0 %1618 }
 0x1c2   : > { %1509 = vst.msk [vmem:[#allocation3 + $0x60] sm:$0xff] %vm1496_vm6, %v1425_v9  ;;  %v1751_v9 = vld [vmem:[#allocation2 + $0x181] sm:$0xff] }
 0x1c3   : > { %1703 = vst.msk [vmem:[#allocation3 + $0x60] sm:$0xff] %vm1690_vm7, %v1619_v14  ;;  %1062 = vrot.lane.b32.xlu1 %v1552_v7, %s2984_s10  ;;  %v1559_v7 = vld [vmem:[#allocation2 + $0x188] sm:$0xff] }
 0x1c4   : > { %1064 = vrot.lane.b32.xlu0 %v1553_v1, %s2984_s10 }
 0x1c5   : > { %v1427_v51 = vpop.permute.xlu1 %1426  ;;  %v1812_v58 = vpop.permute.xlu0 %1811  ;;  %v2119_v26 = vld [vmem:[#allocation3 + $0x50] sm:$0xff]  ;;  %v2120_v24 = vld [vmem:[#allocation3 + $0x58] sm:$0xff] }
 0x1c6   : > { %1510 = vst.msk [vmem:[#allocation3 + $0x68] sm:$0xff] %vm1496_vm6, %v1427_v51  ;;  %2903 = vmatprep.mubr.msk.f32.mxu0 %vm2150_vm10, %v2119_v26 }
 0x1c7   : > { %1896 = vst.msk [vmem:[#allocation3 + $0x60] sm:$0xff] %vm1883_vm8, %v1812_v58  ;;  %1831 = vrot.lane.b32.xlu1 %v1745_v11, %s2988_s25  ;;  %2904 = vmatmul.mubr.msk.f32.gmra.mxu0 %vm2150_vm10, %v2120_v24  ;;  %v1944_v24 = vld [vmem:[#allocation2 + $0x182] sm:$0xff] }
 0x1c8   : > { %1833 = vrot.lane.b32.xlu0 %v1746_v44, %s2988_s25 }
 0x1c9   : > { %v1621_v38 = vpop.permute.xlu1 %1620  ;;  %v1814_v19 = vpop.permute.xlu0 %1813 }
 0x1ca   : > { %1704 = vst.msk [vmem:[#allocation3 + $0x68] sm:$0xff] %vm1690_vm7, %v1621_v38  ;;  %v1945_v38 = vld [vmem:[#allocation2 + $0x18a] sm:$0xff] }
 0x1cb   : > { %1897 = vst.msk [vmem:[#allocation3 + $0x68] sm:$0xff] %vm1883_vm8, %v1814_v19  ;;  %1255 = vrot.lane.b32.xlu1 %v1745_v11, %s2985_s11  ;;  %v1752_v11 = vld [vmem:[#allocation2 + $0x189] sm:$0xff] }
 0x1cc   : > { %1257 = vrot.lane.b32.xlu0 %v1746_v44, %s2985_s11 }
 0x1cd   : > { %v1236_v55 = vpop.permute.xlu1 %1235  ;;  %v1238_v59 = vpop.permute.xlu0 %1237 }
 0x1ce   : > { %1318 = vst.msk [vmem:[#allocation3 + $0x70] sm:$0xff] %vm1303_vm5, %v1236_v55  ;;  %1319 = vst.msk [vmem:[#allocation3 + $0x78] sm:$0xff] %vm1303_vm5, %v1238_v59  ;;  %v1560_v59 = vld [vmem:[#allocation2 + $0x198] sm:$0xff] }
 0x1cf   : > { %2024 = vrot.lane.b32.xlu1 %v1938_v33, %s2989_s14 }
 0x1d0   : > { %2026 = vrot.lane.b32.xlu0 %v1939_v60, %s2989_s14 }
 0x1d1   : > { %v2005_v61 = vpop.permute.xlu1 %2004  ;;  %v2007_v62 = vpop.permute.xlu0 %2006 }
 0x1d2   : > { %2089 = vst.msk [vmem:[#allocation3 + $0x60] sm:$0xff] %vm2076_vm9, %v2005_v61  ;;  %2090 = vst.msk [vmem:[#allocation3 + $0x68] sm:$0xff] %vm2076_vm9, %v2007_v62 }
 0x1d3   : > { %1448 = vrot.lane.b32.xlu1 %v1938_v33, %s2986_s12 }
 0x1d4   : > { %1642 = vrot.lane.b32.xlu0 %v1554_v63, %s2987_s17 }
 0x1d5   : > { %v1429_v54 = vpop.permute.xlu1 %1428  ;;  %v1623_v28 = vpop.permute.xlu0 %1622 }
 0x1d6   : > { %1511 = vst.msk [vmem:[#allocation3 + $0x70] sm:$0xff] %vm1496_vm6, %v1429_v54 }
 0x1d7   : > { %1705 = vst.msk [vmem:[#allocation3 + $0x70] sm:$0xff] %vm1690_vm7, %v1623_v28  ;;  %1450 = vrot.lane.b32.xlu1 %v1939_v60, %s2986_s12  ;;  %v1561_v28 = vld [vmem:[#allocation2 + $0x1a0] sm:$0xff] }
 0x1d8   : > { %1644 = vrot.lane.b32.xlu0 %v1555_v41, %s2987_s17 }
 0x1d9   : > { %v1431_v32 = vpop.permute.xlu1 %1430  ;;  %v1816_v46 = vpop.permute.xlu0 %1815  ;;  %v2121_v12 = vld [vmem:[#allocation3 + $0x60] sm:$0xff]  ;;  %v2122_v35 = vld [vmem:[#allocation3 + $0x68] sm:$0xff] }
 0x1da   : > { %1512 = vst.msk [vmem:[#allocation3 + $0x78] sm:$0xff] %vm1496_vm6, %v1431_v32  ;;  %2906 = vmatprep.mubr.msk.f32.mxu0 %vm2150_vm10, %v2121_v12  ;;  %v1946_v32 = vld [vmem:[#allocation2 + $0x19a] sm:$0xff] }
 0x1db   : > { %1898 = vst.msk [vmem:[#allocation3 + $0x70] sm:$0xff] %vm1883_vm8, %v1816_v46  ;;  %1066 = vrot.lane.b32.xlu1 %v1554_v63, %s2984_s10  ;;  %2907 = vmatmul.mubr.msk.f32.gmra.mxu0 %vm2150_vm10, %v2122_v35  ;;  %v1753_v63 = vld [vmem:[#allocation2 + $0x199] sm:$0xff]  ;;  %v1754_v35 = vld [vmem:[#allocation2 + $0x1a1] sm:$0xff] }
 0x1dc   : > { %1068 = vrot.lane.b32.xlu0 %v1555_v41, %s2984_s10 }
 0x1dd   : > { %v1625_v0 = vpop.permute.xlu1 %1624  ;;  %v1818_v17 = vpop.permute.xlu0 %1817 }
 0x1de   : > { %1706 = vst.msk [vmem:[#allocation3 + $0x78] sm:$0xff] %vm1690_vm7, %v1625_v0 }
 0x1df   : > { %1899 = vst.msk [vmem:[#allocation3 + $0x78] sm:$0xff] %vm1883_vm8, %v1818_v17  ;;  %1835 = vrot.lane.b32.xlu1 %v1747_v21, %s2988_s25 }
 0x1e0   : > { %1837 = vrot.lane.b32.xlu0 %v1748_v48, %s2988_s25 }
 0x1e1   : > { %v1240_v30 = vpop.permute.xlu1 %1239  ;;  %v1242_v8 = vpop.permute.xlu0 %1241 }
 0x1e2   : > { %1320 = vst.msk [vmem:[#allocation3 + $0x80] sm:$0xff] %vm1303_vm5, %v1240_v30  ;;  %1321 = vst.msk [vmem:[#allocation3 + $0x88] sm:$0xff] %vm1303_vm5, %v1242_v8 }
 0x1e3   : > { %1259 = vrot.lane.b32.xlu1 %v1747_v21, %s2985_s11 }
 0x1e4   : > { %1261 = vrot.lane.b32.xlu0 %v1748_v48, %s2985_s11 }
 0x1e5   : > { %v2009_v34 = vpop.permute.xlu1 %2008  ;;  %v2011_v45 = vpop.permute.xlu0 %2010 }
 0x1e6   : > { %2091 = vst.msk [vmem:[#allocation3 + $0x70] sm:$0xff] %vm2076_vm9, %v2009_v34  ;;  %2092 = vst.msk [vmem:[#allocation3 + $0x78] sm:$0xff] %vm2076_vm9, %v2011_v45 }
 0x1e7   : > { %2028 = vrot.lane.b32.xlu1 %v1940_v18, %s2989_s14 }
 0x1e8   : > { %2030 = vrot.lane.b32.xlu0 %v1941_v40, %s2989_s14 }
 0x1e9   : > { %v1433_v43 = vpop.permute.xlu1 %1432 }
 0x1ea   : > { %1513 = vst.msk [vmem:[#allocation3 + $0x80] sm:$0xff] %vm1496_vm6, %v1433_v43  ;;  %v1627_v3 = vpop.permute.xlu0 %1626 }
 0x1eb   : > { %1707 = vst.msk [vmem:[#allocation3 + $0x80] sm:$0xff] %vm1690_vm7, %v1627_v3  ;;  %1452 = vrot.lane.b32.xlu1 %v1940_v18, %s2986_s12 }
 0x1ec   : > { %1646 = vrot.lane.b32.xlu0 %v1556_v50, %s2987_s17 }
 0x1ed   : > { %v1435_v37 = vpop.permute.xlu1 %1434  ;;  %v2123_v15 = vld [vmem:[#allocation3 + $0x70] sm:$0xff]  ;;  %v2124_v16 = vld [vmem:[#allocation3 + $0x78] sm:$0xff] }
 0x1ee   : > { %1514 = vst.msk [vmem:[#allocation3 + $0x88] sm:$0xff] %vm1496_vm6, %v1435_v37  ;;  %v1820_v56 = vpop.permute.xlu0 %1819  ;;  %2909 = vmatprep.mubr.msk.f32.mxu0 %vm2150_vm10, %v2123_v15 }
 0x1ef   : > { %1900 = vst.msk [vmem:[#allocation3 + $0x80] sm:$0xff] %vm1883_vm8, %v1820_v56  ;;  %1454 = vrot.lane.b32.xlu1 %v1941_v40, %s2986_s12  ;;  %2910 = vmatmul.mubr.msk.f32.gmra.mxu0 %vm2150_vm10, %v2124_v16  ;;  %v1947_v40 = vld [vmem:[#allocation2 + $0x1a2] sm:$0xff] }
 0x1f0   : > { %1648 = vrot.lane.b32.xlu0 %v1557_v4, %s2987_s17 }
 0x1f1   : > { %v1629_v49 = vpop.permute.xlu1 %1628 }
 0x1f2   : > { %1708 = vst.msk [vmem:[#allocation3 + $0x88] sm:$0xff] %vm1690_vm7, %v1629_v49  ;;  %v1822_v57 = vpop.permute.xlu0 %1821 }
 0x1f3   : > { %1901 = vst.msk [vmem:[#allocation3 + $0x88] sm:$0xff] %vm1883_vm8, %v1822_v57  ;;  %1070 = vrot.lane.b32.xlu1 %v1556_v50, %s2984_s10 }
 0x1f4   : > { %1072 = vrot.lane.b32.xlu0 %v1557_v4, %s2984_s10 }
 0x1f5   : > { %v1244_v25 = vpop.permute.xlu1 %1243 }
 0x1f6   : > { %1322 = vst.msk [vmem:[#allocation3 + $0x90] sm:$0xff] %vm1303_vm5, %v1244_v25  ;;  %v1246_v10 = vpop.permute.xlu0 %1245 }
 0x1f7   : > { %1323 = vst.msk [vmem:[#allocation3 + $0x98] sm:$0xff] %vm1303_vm5, %v1246_v10  ;;  %1839 = vrot.lane.b32.xlu1 %v1749_v23, %s2988_s25 }
 0x1f8   : > { %1841 = vrot.lane.b32.xlu0 %v1750_v42, %s2988_s25 }
 0x1f9   : > { %v2013_v2 = vpop.permute.xlu1 %2012 }
 0x1fa   : > { %2093 = vst.msk [vmem:[#allocation3 + $0x80] sm:$0xff] %vm2076_vm9, %v2013_v2  ;;  %v2015_v5 = vpop.permute.xlu0 %2014 }
 0x1fb   : > { %2094 = vst.msk [vmem:[#allocation3 + $0x88] sm:$0xff] %vm2076_vm9, %v2015_v5  ;;  %1263 = vrot.lane.b32.xlu1 %v1749_v23, %s2985_s11 }
 0x1fc   : > { %1265 = vrot.lane.b32.xlu0 %v1750_v42, %s2985_s11 }
 0x1fd   : > { %v1437_v53 = vpop.permute.xlu1 %1436 }
 0x1fe   : > { %1515 = vst.msk [vmem:[#allocation3 + $0x90] sm:$0xff] %vm1496_vm6, %v1437_v53  ;;  %v1631_v52 = vpop.permute.xlu0 %1630 }
 0x1ff   : > { %1709 = vst.msk [vmem:[#allocation3 + $0x90] sm:$0xff] %vm1690_vm7, %v1631_v52  ;;  %2032 = vrot.lane.b32.xlu1 %v1942_v36, %s2989_s14 }
 0x200   : > { %2034 = vrot.lane.b32.xlu0 %v1943_v29, %s2989_s14 }
 0x201   : > { %v1439_v47 = vpop.permute.xlu1 %1438  ;;  %v2125_v6 = vld [vmem:[#allocation3 + $0x80] sm:$0xff] }
 0x202   : > { %1516 = vst.msk [vmem:[#allocation3 + $0x98] sm:$0xff] %vm1496_vm6, %v1439_v47  ;;  %v1633_v39 = vpop.permute.xlu0 %1632  ;;  %2912 = vmatprep.mubr.msk.f32.mxu1 %vm2150_vm10, %v2125_v6  ;;  %v2126_v22 = vld [vmem:[#allocation3 + $0x88] sm:$0xff] }
 0x203   : > { %1710 = vst.msk [vmem:[#allocation3 + $0x98] sm:$0xff] %vm1690_vm7, %v1633_v39  ;;  %1456 = vrot.lane.b32.xlu1 %v1942_v36, %s2986_s12  ;;  %2913 = vmatmul.mubr.msk.f32.vlgmr.msra.gmra.mxu1 %vm2150_vm10, %v2126_v22 }
 0x204   : > { %1650 = vrot.lane.b32.xlu0 %v1558_v20, %s2987_s17 }
 0x205   : > { %v1055_v31 = vpop.permute.xlu1 %1054 }
 0x206   : > { %1131 = vst.msk [vmem:[#allocation3 + $0xa0] sm:$0xff] %vm1110_vm4, %v1055_v31  ;;  %v1057_v27 = vpop.permute.xlu0 %1056 }
 0x207   : > { %1132 = vst.msk [vmem:[#allocation3 + $0xa8] sm:$0xff] %vm1110_vm4, %v1057_v27  ;;  %1458 = vrot.lane.b32.xlu1 %v1943_v29, %s2986_s12 }
 0x208   : > { %1652 = vrot.lane.b32.xlu0 %v1559_v7, %s2987_s17 }
 0x209   : > { %v1824_v13 = vpop.permute.xlu1 %1823 }
 0x20a   : > { %1902 = vst.msk [vmem:[#allocation3 + $0x90] sm:$0xff] %vm1883_vm8, %v1824_v13  ;;  %v1826_v1 = vpop.permute.xlu0 %1825 }
 0x20b   : > { %1903 = vst.msk [vmem:[#allocation3 + $0x98] sm:$0xff] %vm1883_vm8, %v1826_v1  ;;  %1074 = vrot.lane.b32.xlu1 %v1558_v20, %s2984_s10 }
 0x20c   : > { %1076 = vrot.lane.b32.xlu0 %v1559_v7, %s2984_s10 }
 0x20d   : > { %v1248_v14 = vpop.permute.xlu1 %1247 }
 0x20e   : > { %1324 = vst.msk [vmem:[#allocation3 + $0xa0] sm:$0xff] %vm1303_vm5, %v1248_v14  ;;  %v1250_v51 = vpop.permute.xlu0 %1249 }
 0x20f   : > { %1325 = vst.msk [vmem:[#allocation3 + $0xa8] sm:$0xff] %vm1303_vm5, %v1250_v51  ;;  %1843 = vrot.lane.b32.xlu1 %v1751_v9, %s2988_s25 }
 0x210   : > { %1845 = vrot.lane.b32.xlu0 %v1752_v11, %s2988_s25 }
 0x211   : > { %v2017_v58 = vpop.permute.xlu1 %2016 }
 0x212   : > { %2095 = vst.msk [vmem:[#allocation3 + $0x90] sm:$0xff] %vm2076_vm9, %v2017_v58  ;;  %v2019_v26 = vpop.permute.xlu0 %2018 }
 0x213   : > { %2096 = vst.msk [vmem:[#allocation3 + $0x98] sm:$0xff] %vm2076_vm9, %v2019_v26  ;;  %1267 = vrot.lane.b32.xlu1 %v1751_v9, %s2985_s11 }
 0x214   : > { %1269 = vrot.lane.b32.xlu0 %v1752_v11, %s2985_s11  ;;  %s4008_s11 = scalar_lea.vmem %s4230_s4, %s2827_s24 }
 0x215   : > { %v1441_v44 = vpop.permute.xlu1 %1440 }
 0x216   : > { %1517 = vst.msk [vmem:[#allocation3 + $0xa0] sm:$0xff] %vm1496_vm6, %v1441_v44  ;;  %v1635_v19 = vpop.permute.xlu0 %1634 }
 0x217   : > { %1711 = vst.msk [vmem:[#allocation3 + $0xa0] sm:$0xff] %vm1690_vm7, %v1635_v19  ;;  %2036 = vrot.lane.b32.xlu1 %v1944_v24, %s2989_s14 }
 0x218   : > { %2038 = vrot.lane.b32.xlu0 %v1945_v38, %s2989_s14 }
 0x219   : > { %v1443_v33 = vpop.permute.xlu1 %1442  ;;  %v2127_v55 = vld [vmem:[#allocation3 + $0x90] sm:$0xff] }
 0x21a   : > { %1518 = vst.msk [vmem:[#allocation3 + $0xa8] sm:$0xff] %vm1496_vm6, %v1443_v33  ;;  %v1637_v60 = vpop.permute.xlu0 %1636  ;;  %2915 = vmatprep.mubr.msk.f32.mxu1 %vm2150_vm10, %v2127_v55  ;;  %v2128_v61 = vld [vmem:[#allocation3 + $0x98] sm:$0xff] }
 0x21b   : > { %1712 = vst.msk [vmem:[#allocation3 + $0xa8] sm:$0xff] %vm1690_vm7, %v1637_v60  ;;  %1460 = vrot.lane.b32.xlu1 %v1944_v24, %s2986_s12  ;;  %2916 = vmatmul.mubr.msk.f32.gmra.mxu1 %vm2150_vm10, %v2128_v61 }
 0x21c   : > { %1654 = vrot.lane.b32.xlu0 %v1560_v59, %s2987_s17 }
 0x21d   : > { %v1059_v62 = vpop.permute.xlu1 %1058 }
 0x21e   : > { %1133 = vst.msk [vmem:[#allocation3 + $0xb0] sm:$0xff] %vm1110_vm4, %v1059_v62  ;;  %v1061_v54 = vpop.permute.xlu0 %1060 }
 0x21f   : > { %1134 = vst.msk [vmem:[#allocation3 + $0xb8] sm:$0xff] %vm1110_vm4, %v1061_v54  ;;  %1462 = vrot.lane.b32.xlu1 %v1945_v38, %s2986_s12 }
 0x220   : > { %1847 = vrot.lane.b32.xlu0 %v1753_v63, %s2988_s25 }
 0x221   : > { %v1828_v41 = vpop.permute.xlu1 %1827 }
 0x222   : > { %1904 = vst.msk [vmem:[#allocation3 + $0xa0] sm:$0xff] %vm1883_vm8, %v1828_v41  ;;  %v1830_v46 = vpop.permute.xlu0 %1829 }
 0x223   : > { %1905 = vst.msk [vmem:[#allocation3 + $0xa8] sm:$0xff] %vm1883_vm8, %v1830_v46  ;;  %1656 = vrot.lane.b32.xlu1 %v1561_v28, %s2987_s17  ;;  %s265_s17 = scalar_lea.vmem %s4231_s5, %s4235_s22 }
 0x224   : > { %v2890_v12 = vpop.f32.mrf.mxu0  ;;  %2040 = vrot.lane.b32.xlu0 %v1946_v32, %s2989_s14 }
 0x225   : > { %v1252_v21 = vpop.permute.xlu1 %1251  ;;  %2473 = vst.msk [vmem:[%s4008_s11 + $0x8] sm:$0xff] %vm411_vm0, %v2890_v12  ;;  %v2505_v0 = vsel %vm411_vm0, %v2890_v12, 0.0  ;;  %v2576_v17 = vmul.f32 %v2890_v12, %v2890_v12 }
 0x226   : > { %1326 = vst.msk [vmem:[#allocation3 + $0xb0] sm:$0xff] %vm1303_vm5, %v1252_v21  ;;  %v1254_v48 = vpop.permute.xlu0 %1253  ;;  %v2313_v30 = vpop.f32.mrf.mxu0 }
 0x227   : > { %1327 = vst.msk [vmem:[#allocation3 + $0xb8] sm:$0xff] %vm1303_vm5, %v1254_v48  ;;  %v2608_v8 = vsel %vm411_vm0, %v2576_v17, 0.0  ;;  %1849 = vrot.lane.b32.xlu1 %v1754_v35, %s2988_s25  ;;  %v2504_v18 = vsel %vm411_vm0, %v2313_v30, 0.0  ;;  %v2575_v34 = vmul.f32 %v2313_v30, %v2313_v30 }
 0x228   : > { %2472 = vst.msk [vmem:[%s4008_s11] sm:$0xff] %vm411_vm0, %v2313_v30  ;;  %v2506_v45 = vadd.f32 %v2505_v0, %v2504_v18 }
 0x229   : > { %v2607_v43 = vsel %vm411_vm0, %v2575_v34, 0.0  ;;  %v2021_v50 = vpop.permute.xlu1 %2020 }
 0x22a   : > { %v2609_v3 = vadd.f32 %v2608_v8, %v2607_v43  ;;  %2097 = vst.msk [vmem:[#allocation3 + $0xa0] sm:$0xff] %vm2076_vm9, %v2021_v50  ;;  %v2023_v37 = vpop.permute.xlu0 %2022 }
 0x22b   : > { %2098 = vst.msk [vmem:[#allocation3 + $0xa8] sm:$0xff] %vm2076_vm9, %v2023_v37  ;;  %2042 = vrot.lane.b32.xlu1 %v1947_v40, %s2989_s14 }
 0x22d   : > { %v1445_v15 = vpop.permute.xlu1 %1444 }
 0x22e   : > { %1519 = vst.msk [vmem:[#allocation3 + $0xb0] sm:$0xff] %vm1496_vm6, %v1445_v15  ;;  %v1639_v16 = vpop.permute.xlu0 %1638 }
 0x22f   : > { %1713 = vst.msk [vmem:[#allocation3 + $0xb0] sm:$0xff] %vm1690_vm7, %v1639_v16 }
 0x231   : > { %v1447_v4 = vpop.permute.xlu1 %1446  ;;  %v2129_v56 = vld [vmem:[#allocation3 + $0xa0] sm:$0xff] }
 0x232   : > { %1520 = vst.msk [vmem:[#allocation3 + $0xb8] sm:$0xff] %vm1496_vm6, %v1447_v4  ;;  %v1641_v49 = vpop.permute.xlu0 %1640  ;;  %2918 = vmatprep.mubr.msk.f32.mxu1 %vm2150_vm10, %v2129_v56  ;;  %v2130_v57 = vld [vmem:[#allocation3 + $0xa8] sm:$0xff] }
 0x233   : > { %1714 = vst.msk [vmem:[#allocation3 + $0xb8] sm:$0xff] %vm1690_vm7, %v1641_v49  ;;  %2919 = vmatmul.mubr.msk.f32.gmra.mxu1 %vm2150_vm10, %v2130_v57 }
 0x235   : > { %v1063_v23 = vpop.permute.xlu1 %1062 }
 0x236   : > { %1135 = vst.msk [vmem:[#allocation3 + $0xc0] sm:$0xff] %vm1110_vm4, %v1063_v23  ;;  %v1065_v25 = vpop.permute.xlu0 %1064 }
 0x237   : > { %1136 = vst.msk [vmem:[#allocation3 + $0xc8] sm:$0xff] %vm1110_vm4, %v1065_v25  ;;  %v2893_v42 = vpop.f32.mrf.mxu0 }
 0x238   : > { %2475 = vst.msk [vmem:[%s4008_s11 + $0x18] sm:$0xff] %vm411_vm0, %v2893_v42  ;;  %v2578_v10 = vmul.f32 %v2893_v42, %v2893_v42  ;;  %v2509_v36 = vsel %vm411_vm0, %v2893_v42, 0.0 }
 0x239   : > { %v1832_v2 = vpop.permute.xlu1 %1831  ;;  %v2323_v5 = vpop.f32.mrf.mxu0 }
 0x23a   : > { %1906 = vst.msk [vmem:[#allocation3 + $0xb0] sm:$0xff] %vm1883_vm8, %v1832_v2  ;;  %v2507_v53 = vsel %vm411_vm0, %v2323_v5, 0.0  ;;  %v2577_v29 = vmul.f32 %v2323_v5, %v2323_v5  ;;  %v1834_v52 = vpop.permute.xlu0 %1833  ;;  %v2612_v6 = vsel %vm411_vm0, %v2578_v10, 0.0 }
 0x23b   : > { %2474 = vst.msk [vmem:[%s4008_s11 + $0x10] sm:$0xff] %vm411_vm0, %v2323_v5  ;;  %v2508_v47 = vadd.f32 %v2507_v53, %v2506_v45 }
 0x23c   : > { %1907 = vst.msk [vmem:[#allocation3 + $0xb8] sm:$0xff] %vm1883_vm8, %v1834_v52  ;;  %v2610_v20 = vsel %vm411_vm0, %v2577_v29, 0.0 }
 0x23d   : > { %v2611_v39 = vadd.f32 %v2610_v20, %v2609_v3  ;;  %v1256_v22 = vpop.permute.xlu1 %1255  ;;  %v2510_v31 = vadd.f32 %v2509_v36, %v2508_v47 }
 0x23e   : > { %1328 = vst.msk [vmem:[#allocation3 + $0xc0] sm:$0xff] %vm1303_vm5, %v1256_v22  ;;  %v1258_v7 = vpop.permute.xlu0 %1257 }
 0x23f   : > { %1329 = vst.msk [vmem:[#allocation3 + $0xc8] sm:$0xff] %vm1303_vm5, %v1258_v7  ;;  %v2613_v27 = vadd.f32 %v2612_v6, %v2611_v39 }
 0x241   : > { %v2025_v13 = vpop.permute.xlu1 %2024 }
 0x242   : > { %2099 = vst.msk [vmem:[#allocation3 + $0xb0] sm:$0xff] %vm2076_vm9, %v2025_v13  ;;  %v2027_v1 = vpop.permute.xlu0 %2026 }
 0x243   : > { %2100 = vst.msk [vmem:[#allocation3 + $0xb8] sm:$0xff] %vm2076_vm9, %v2027_v1 }
 0x245   : > { %v1449_v9 = vpop.permute.xlu1 %1448 }
 0x246   : > { %1521 = vst.msk [vmem:[#allocation3 + $0xc0] sm:$0xff] %vm1496_vm6, %v1449_v9  ;;  %v1643_v14 = vpop.permute.xlu0 %1642 }
 0x247   : > { %1715 = vst.msk [vmem:[#allocation3 + $0xc0] sm:$0xff] %vm1690_vm7, %v1643_v14 }
 0x249   : > { %v1451_v11 = vpop.permute.xlu1 %1450  ;;  %v2131_v51 = vld [vmem:[#allocation3 + $0xb0] sm:$0xff] }
 0x24a   : > { %1522 = vst.msk [vmem:[#allocation3 + $0xc8] sm:$0xff] %vm1496_vm6, %v1451_v11  ;;  %v1645_v58 = vpop.permute.xlu0 %1644  ;;  %2921 = vmatprep.mubr.msk.f32.mxu1 %vm2150_vm10, %v2131_v51  ;;  %v2132_v26 = vld [vmem:[#allocation3 + $0xb8] sm:$0xff] }
 0x24b   : > { %1716 = vst.msk [vmem:[#allocation3 + $0xc8] sm:$0xff] %vm1690_vm7, %v1645_v58  ;;  %v2896_v24 = vpop.f32.mrf.mxu0  ;;  %2922 = vmatmul.mubr.msk.f32.gmra.mxu1 %vm2150_vm10, %v2132_v26 }
 0x24c   : > { %2477 = vst.msk [vmem:[%s4008_s11 + $0x28] sm:$0xff] %vm411_vm0, %v2896_v24  ;;  %v2580_v44 = vmul.f32 %v2896_v24, %v2896_v24  ;;  %v2513_v33 = vsel %vm411_vm0, %v2896_v24, 0.0 }
 0x24d   : > { %v1067_v38 = vpop.permute.xlu1 %1066  ;;  %v2333_v19 = vpop.f32.mrf.mxu0 }
 0x24e   : > { %1137 = vst.msk [vmem:[#allocation3 + $0xd0] sm:$0xff] %vm1110_vm4, %v1067_v38  ;;  %v2511_v55 = vsel %vm411_vm0, %v2333_v19, 0.0  ;;  %v2579_v59 = vmul.f32 %v2333_v19, %v2333_v19  ;;  %v1069_v60 = vpop.permute.xlu0 %1068  ;;  %v2616_v62 = vsel %vm411_vm0, %v2580_v44, 0.0 }
 0x24f   : > { %2476 = vst.msk [vmem:[%s4008_s11 + $0x20] sm:$0xff] %vm411_vm0, %v2333_v19  ;;  %v2512_v61 = vadd.f32 %v2511_v55, %v2510_v31 }
 0x250   : > { %1138 = vst.msk [vmem:[#allocation3 + $0xd8] sm:$0xff] %vm1110_vm4, %v1069_v60  ;;  %v2614_v63 = vsel %vm411_vm0, %v2579_v59, 0.0 }
 0x251   : > { %v2615_v54 = vadd.f32 %v2614_v63, %v2613_v27  ;;  %v1836_v28 = vpop.permute.xlu1 %1835  ;;  %v2514_v41 = vadd.f32 %v2513_v33, %v2512_v61 }
 0x252   : > { %1908 = vst.msk [vmem:[#allocation3 + $0xc0] sm:$0xff] %vm1883_vm8, %v1836_v28  ;;  %v1838_v32 = vpop.permute.xlu0 %1837 }
 0x253   : > { %1909 = vst.msk [vmem:[#allocation3 + $0xc8] sm:$0xff] %vm1883_vm8, %v1838_v32  ;;  %v2617_v46 = vadd.f32 %v2616_v62, %v2615_v54 }
 0x255   : > { %v1260_v12 = vpop.permute.xlu1 %1259 }
 0x256   : > { %1330 = vst.msk [vmem:[#allocation3 + $0xd0] sm:$0xff] %vm1303_vm5, %v1260_v12  ;;  %v1262_v35 = vpop.permute.xlu0 %1261 }
 0x257   : > { %1331 = vst.msk [vmem:[#allocation3 + $0xd8] sm:$0xff] %vm1303_vm5, %v1262_v35 }
 0x259   : > { %v2029_v21 = vpop.permute.xlu1 %2028 }
 0x25a   : > { %2101 = vst.msk [vmem:[#allocation3 + $0xc0] sm:$0xff] %vm2076_vm9, %v2029_v21  ;;  %v2031_v0 = vpop.permute.xlu0 %2030 }
 0x25b   : > { %2102 = vst.msk [vmem:[#allocation3 + $0xc8] sm:$0xff] %vm2076_vm9, %v2031_v0 }
 0x25d   : > { %v1453_v17 = vpop.permute.xlu1 %1452 }
 0x25e   : > { %1523 = vst.msk [vmem:[#allocation3 + $0xd0] sm:$0xff] %vm1496_vm6, %v1453_v17  ;;  %v1647_v48 = vpop.permute.xlu0 %1646 }
 0x25f   : > { %1717 = vst.msk [vmem:[#allocation3 + $0xd0] sm:$0xff] %vm1690_vm7, %v1647_v48  ;;  %v2899_v30 = vpop.f32.mrf.mxu0 }
 0x260   : > { %2479 = vst.msk [vmem:[%s4008_s11 + $0x38] sm:$0xff] %vm411_vm0, %v2899_v30  ;;  %v2582_v8 = vmul.f32 %v2899_v30, %v2899_v30  ;;  %v2517_v40 = vsel %vm411_vm0, %v2899_v30, 0.0 }
 0x261   : > { %v1455_v18 = vpop.permute.xlu1 %1454  ;;  %v2343_v34 = vpop.f32.mrf.mxu0  ;;  %v2133_v45 = vld [vmem:[#allocation3 + $0xc0] sm:$0xff] }
 0x262   : > { %1524 = vst.msk [vmem:[#allocation3 + $0xd8] sm:$0xff] %vm1496_vm6, %v1455_v18  ;;  %v2515_v43 = vsel %vm411_vm0, %v2343_v34, 0.0  ;;  %v2581_v50 = vmul.f32 %v2343_v34, %v2343_v34  ;;  %v1649_v3 = vpop.permute.xlu0 %1648  ;;  %2924 = vmatprep.mubr.msk.f32.mxu1 %vm2150_vm10, %v2133_v45  ;;  %v2134_v37 = vld [vmem:[#allocation3 + $0xc8] sm:$0xff]  ;;  %v2620_v16 = vsel %vm411_vm0, %v2582_v8, 0.0 }
 0x263   : > { %2478 = vst.msk [vmem:[%s4008_s11 + $0x30] sm:$0xff] %vm411_vm0, %v2343_v34  ;;  %v2516_v15 = vadd.f32 %v2515_v43, %v2514_v41  ;;  %2925 = vmatmul.mubr.msk.f32.gmra.mxu1 %vm2150_vm10, %v2134_v37 }
 0x264   : > { %1718 = vst.msk [vmem:[#allocation3 + $0xd8] sm:$0xff] %vm1690_vm7, %v1649_v3  ;;  %v2618_v4 = vsel %vm411_vm0, %v2581_v50, 0.0 }
 0x265   : > { %v2619_v56 = vadd.f32 %v2618_v4, %v2617_v46  ;;  %v1071_v49 = vpop.permute.xlu1 %1070  ;;  %v2518_v57 = vadd.f32 %v2517_v40, %v2516_v15 }
 0x266   : > { %1139 = vst.msk [vmem:[#allocation3 + $0xe0] sm:$0xff] %vm1110_vm4, %v1071_v49  ;;  %v1073_v23 = vpop.permute.xlu0 %1072 }
 0x267   : > { %1140 = vst.msk [vmem:[#allocation3 + $0xe8] sm:$0xff] %vm1110_vm4, %v1073_v23  ;;  %v2621_v25 = vadd.f32 %v2620_v16, %v2619_v56 }
 0x269   : > { %v1840_v42 = vpop.permute.xlu1 %1839 }
 0x26a   : > { %1910 = vst.msk [vmem:[#allocation3 + $0xd0] sm:$0xff] %vm1883_vm8, %v1840_v42  ;;  %v1842_v10 = vpop.permute.xlu0 %1841 }
 0x26b   : > { %1911 = vst.msk [vmem:[#allocation3 + $0xd8] sm:$0xff] %vm1883_vm8, %v1842_v10 }
 0x26d   : > { %v1264_v2 = vpop.permute.xlu1 %1263 }
 0x26e   : > { %1332 = vst.msk [vmem:[#allocation3 + $0xe0] sm:$0xff] %vm1303_vm5, %v1264_v2  ;;  %v1266_v5 = vpop.permute.xlu0 %1265 }
 0x26f   : > { %1333 = vst.msk [vmem:[#allocation3 + $0xe8] sm:$0xff] %vm1303_vm5, %v1266_v5 }
 0x271   : > { %v2033_v36 = vpop.permute.xlu1 %2032 }
 0x272   : > { %2103 = vst.msk [vmem:[#allocation3 + $0xd0] sm:$0xff] %vm2076_vm9, %v2033_v36  ;;  %v2035_v53 = vpop.permute.xlu0 %2034 }
 0x273   : > { %2104 = vst.msk [vmem:[#allocation3 + $0xd8] sm:$0xff] %vm2076_vm9, %v2035_v53  ;;  %v2902_v29 = vpop.f32.mrf.mxu0 }
 0x274   : > { %2481 = vst.msk [vmem:[%s4008_s11 + $0x48] sm:$0xff] %vm411_vm0, %v2902_v29  ;;  %v2584_v52 = vmul.f32 %v2902_v29, %v2902_v29  ;;  %v2521_v20 = vsel %vm411_vm0, %v2902_v29, 0.0 }
 0x275   : > { %v1457_v47 = vpop.permute.xlu1 %1456  ;;  %v2353_v6 = vpop.f32.mrf.mxu0 }
 0x276   : > { %1525 = vst.msk [vmem:[#allocation3 + $0xe0] sm:$0xff] %vm1496_vm6, %v1457_v47  ;;  %v2519_v39 = vsel %vm411_vm0, %v2353_v6, 0.0  ;;  %v2583_v22 = vmul.f32 %v2353_v6, %v2353_v6  ;;  %v1651_v31 = vpop.permute.xlu0 %1650  ;;  %v2624_v27 = vsel %vm411_vm0, %v2584_v52, 0.0 }
 0x277   : > { %2480 = vst.msk [vmem:[%s4008_s11 + $0x40] sm:$0xff] %vm411_vm0, %v2353_v6  ;;  %v2520_v7 = vadd.f32 %v2519_v39, %v2518_v57 }
 0x278   : > { %1719 = vst.msk [vmem:[#allocation3 + $0xe0] sm:$0xff] %vm1690_vm7, %v1651_v31  ;;  %v2622_v13 = vsel %vm411_vm0, %v2583_v22, 0.0 }
 0x279   : > { %v2623_v1 = vadd.f32 %v2622_v13, %v2621_v25  ;;  %v1459_v9 = vpop.permute.xlu1 %1458  ;;  %v2135_v14 = vld [vmem:[#allocation3 + $0xd0] sm:$0xff]  ;;  %v2522_v11 = vadd.f32 %v2521_v20, %v2520_v7 }
 0x27a   : > { %1526 = vst.msk [vmem:[#allocation3 + $0xe8] sm:$0xff] %vm1496_vm6, %v1459_v9  ;;  %v1653_v51 = vpop.permute.xlu0 %1652  ;;  %2927 = vmatprep.mubr.msk.f32.mxu1 %vm2150_vm10, %v2135_v14  ;;  %v2136_v58 = vld [vmem:[#allocation3 + $0xd8] sm:$0xff] }
 0x27b   : > { %1720 = vst.msk [vmem:[#allocation3 + $0xe8] sm:$0xff] %vm1690_vm7, %v1653_v51  ;;  %2928 = vmatmul.mubr.msk.f32.gmra.mxu1 %vm2150_vm10, %v2136_v58  ;;  %v2625_v26 = vadd.f32 %v2624_v27, %v2623_v1 }
 0x27d   : > { %v1075_v24 = vpop.permute.xlu1 %1074 }
 0x27e   : > { %1141 = vst.msk [vmem:[#allocation3 + $0xf0] sm:$0xff] %vm1110_vm4, %v1075_v24  ;;  %v1077_v44 = vpop.permute.xlu0 %1076 }
 0x27f   : > { %1142 = vst.msk [vmem:[#allocation3 + $0xf8] sm:$0xff] %vm1110_vm4, %v1077_v44 }
 0x281   : > { %v1844_v38 = vpop.permute.xlu1 %1843 }
 0x282   : > { %1912 = vst.msk [vmem:[#allocation3 + $0xe0] sm:$0xff] %vm1883_vm8, %v1844_v38  ;;  %v1846_v19 = vpop.permute.xlu0 %1845 }
 0x283   : > { %1913 = vst.msk [vmem:[#allocation3 + $0xe8] sm:$0xff] %vm1883_vm8, %v1846_v19 }
 0x285   : > { %v1268_v33 = vpop.permute.xlu1 %1267 }
 0x286   : > { %1334 = vst.msk [vmem:[#allocation3 + $0xf0] sm:$0xff] %vm1303_vm5, %v1268_v33  ;;  %v1270_v55 = vpop.permute.xlu0 %1269 }
 0x287   : > { %1335 = vst.msk [vmem:[#allocation3 + $0xf8] sm:$0xff] %vm1303_vm5, %v1270_v55  ;;  %v2905_v59 = vpop.f32.mrf.mxu0 }
 0x288   : > { %2483 = vst.msk [vmem:[%s4008_s11 + $0x58] sm:$0xff] %vm411_vm0, %v2905_v59  ;;  %v2586_v60 = vmul.f32 %v2905_v59, %v2905_v59  ;;  %v2525_v63 = vsel %vm411_vm0, %v2905_v59, 0.0 }
 0x289   : > { %v2037_v61 = vpop.permute.xlu1 %2036  ;;  %v2363_v62 = vpop.f32.mrf.mxu0 }
 0x28a   : > { %2105 = vst.msk [vmem:[#allocation3 + $0xe0] sm:$0xff] %vm2076_vm9, %v2037_v61  ;;  %v2523_v54 = vsel %vm411_vm0, %v2363_v62, 0.0  ;;  %v2585_v28 = vmul.f32 %v2363_v62, %v2363_v62  ;;  %v2039_v41 = vpop.permute.xlu0 %2038  ;;  %v2628_v46 = vsel %vm411_vm0, %v2586_v60, 0.0 }
 0x28b   : > { %2482 = vst.msk [vmem:[%s4008_s11 + $0x50] sm:$0xff] %vm411_vm0, %v2363_v62  ;;  %v2524_v32 = vadd.f32 %v2523_v54, %v2522_v11 }
 0x28c   : > { %2106 = vst.msk [vmem:[#allocation3 + $0xe8] sm:$0xff] %vm2076_vm9, %v2039_v41  ;;  %v2626_v12 = vsel %vm411_vm0, %v2585_v28, 0.0 }
 0x28d   : > { %v2627_v35 = vadd.f32 %v2626_v12, %v2625_v26  ;;  %v1461_v21 = vpop.permute.xlu1 %1460  ;;  %v2526_v0 = vadd.f32 %v2525_v63, %v2524_v32 }
 0x28e   : > { %1527 = vst.msk [vmem:[#allocation3 + $0xf0] sm:$0xff] %vm1496_vm6, %v1461_v21  ;;  %v1655_v17 = vpop.permute.xlu0 %1654 }
 0x28f   : > { %1721 = vst.msk [vmem:[#allocation3 + $0xf0] sm:$0xff] %vm1690_vm7, %v1655_v17  ;;  %v2629_v48 = vadd.f32 %v2628_v46, %v2627_v35 }
 0x291   : > { %v1463_v30 = vpop.permute.xlu1 %1462  ;;  %v2137_v8 = vld [vmem:[#allocation3 + $0xe0] sm:$0xff] }
 0x292   : > { %1528 = vst.msk [vmem:[#allocation3 + $0xf8] sm:$0xff] %vm1496_vm6, %v1463_v30  ;;  %2930 = vmatprep.mubr.msk.f32.mxu1 %vm2150_vm10, %v2137_v8  ;;  %v1848_v34 = vpop.permute.xlu0 %1847 }
 0x293   : > { %v2138_v18 = vld [vmem:[#allocation3 + $0xe8] sm:$0xff]  ;;  %1914 = vst.msk [vmem:[#allocation3 + $0xf0] sm:$0xff] %vm1883_vm8, %v1848_v34 }
 0x294   : > { %2931 = vmatmul.mubr.msk.f32.gmra.mxu1 %vm2150_vm10, %v2138_v18 }
 0x295   : > { %v1657_v45 = vpop.permute.xlu1 %1656 }
 0x296   : > { %1722 = vst.msk [vmem:[#allocation3 + $0xf8] sm:$0xff] %vm1690_vm7, %v1657_v45  ;;  %v2041_v40 = vpop.permute.xlu0 %2040 }
 0x297   : > { %2107 = vst.msk [vmem:[#allocation3 + $0xf0] sm:$0xff] %vm2076_vm9, %v2041_v40 }
 0x299   : > { %v1850_v43 = vpop.permute.xlu1 %1849 }
 0x29a   : > { %1915 = vst.msk [vmem:[#allocation3 + $0xf8] sm:$0xff] %vm1883_vm8, %v1850_v43 }
 0x29b   : > { %v2908_v50 = vpop.f32.mrf.mxu0 }
 0x29c   : > { %2485 = vst.msk [vmem:[%s4008_s11 + $0x68] sm:$0xff] %vm411_vm0, %v2908_v50  ;;  %v2588_v3 = vmul.f32 %v2908_v50, %v2908_v50  ;;  %v2529_v16 = vsel %vm411_vm0, %v2908_v50, 0.0 }
 0x29d   : > { %v2043_v37 = vpop.permute.xlu1 %2042  ;;  %v2373_v15 = vpop.f32.mrf.mxu0 }
 0x29e   : > { %2108 = vst.msk [vmem:[#allocation3 + $0xf8] sm:$0xff] %vm2076_vm9, %v2043_v37  ;;  %v2527_v4 = vsel %vm411_vm0, %v2373_v15, 0.0  ;;  %v2587_v56 = vmul.f32 %v2373_v15, %v2373_v15  ;;  %v2139_v49 = vld [vmem:[#allocation3 + $0xf0] sm:$0xff]  ;;  %v2632_v23 = vsel %vm411_vm0, %v2588_v3, 0.0 }
 0x29f   : > { %2484 = vst.msk [vmem:[%s4008_s11 + $0x60] sm:$0xff] %vm411_vm0, %v2373_v15  ;;  %v2528_v57 = vadd.f32 %v2527_v4, %v2526_v0  ;;  %2933 = vmatprep.mubr.msk.f32.mxu1 %vm2150_vm10, %v2139_v49 }
 0x2a0   : > { %v2630_v25 = vsel %vm411_vm0, %v2587_v56, 0.0 }
 0x2a1   : > { %v2631_v42 = vadd.f32 %v2630_v25, %v2629_v48  ;;  %v2530_v10 = vadd.f32 %v2529_v16, %v2528_v57 }
 0x2a3   : > { %v2633_v2 = vadd.f32 %v2632_v23, %v2631_v42 }
 0x2a5   : > { %v2140_v5 = vld [vmem:[#allocation3 + $0xf8] sm:$0xff] }
 0x2a6   : > { %2934 = vmatmul.mubr.msk.f32.gmra.mxu1 %vm2150_vm10, %v2140_v5 }
 0x2af   : > { %v2911_v36 = vpop.f32.mrf.mxu0 }
 0x2b0   : > { %2487 = vst.msk [vmem:[%s4008_s11 + $0x78] sm:$0xff] %vm411_vm0, %v2911_v36  ;;  %v2590_v53 = vmul.f32 %v2911_v36, %v2911_v36  ;;  %v2533_v52 = vsel %vm411_vm0, %v2911_v36, 0.0 }
 0x2b1   : > { %v2383_v29 = vpop.f32.mrf.mxu0 }
 0x2b2   : > { %2486 = vst.msk [vmem:[%s4008_s11 + $0x70] sm:$0xff] %vm411_vm0, %v2383_v29  ;;  %v2531_v47 = vsel %vm411_vm0, %v2383_v29, 0.0  ;;  %v2589_v6 = vmul.f32 %v2383_v29, %v2383_v29  ;;  %v2636_v39 = vsel %vm411_vm0, %v2590_v53, 0.0 }
 0x2b3   : > { %v2532_v20 = vadd.f32 %v2531_v47, %v2530_v10 }
 0x2b4   : > { %v2634_v22 = vsel %vm411_vm0, %v2589_v6, 0.0 }
 0x2b5   : > { %v2534_v31 = vadd.f32 %v2533_v52, %v2532_v20  ;;  %v2635_v7 = vadd.f32 %v2634_v22, %v2633_v2 }
 0x2b7   : > { %v2637_v27 = vadd.f32 %v2636_v39, %v2635_v7 }
 0x2c3   : > { %v2914_v13 = vpop.f32.mrf.mxu1 }
 0x2c4   : > { %2489 = vst.msk [vmem:[%s4008_s11 + $0x88] sm:$0xff] %vm411_vm0, %v2914_v13  ;;  %v2592_v1 = vmul.f32 %v2914_v13, %v2914_v13  ;;  %v2537_v14 = vsel %vm411_vm0, %v2914_v13, 0.0 }
 0x2c5   : > { %v2393_v9 = vpop.f32.mrf.mxu1 }
 0x2c6   : > { %2488 = vst.msk [vmem:[%s4008_s11 + $0x80] sm:$0xff] %vm411_vm0, %v2393_v9  ;;  %v2535_v11 = vsel %vm411_vm0, %v2393_v9, 0.0  ;;  %v2591_v51 = vmul.f32 %v2393_v9, %v2393_v9  ;;  %v2640_v26 = vsel %vm411_vm0, %v2592_v1, 0.0 }
 0x2c7   : > { %v2536_v58 = vadd.f32 %v2535_v11, %v2534_v31 }
 0x2c8   : > { %v2638_v24 = vsel %vm411_vm0, %v2591_v51, 0.0 }
 0x2c9   : > { %v2639_v44 = vadd.f32 %v2638_v24, %v2637_v27  ;;  %v2538_v38 = vadd.f32 %v2537_v14, %v2536_v58 }
 0x2cb   : > { %v2641_v19 = vadd.f32 %v2640_v26, %v2639_v44 }
 0x2db   : > { %v2917_v33 = vpop.f32.mrf.mxu1 }
 0x2dc   : > { %2491 = vst.msk [vmem:[%s4008_s11 + $0x98] sm:$0xff] %vm411_vm0, %v2917_v33  ;;  %v2594_v55 = vmul.f32 %v2917_v33, %v2917_v33  ;;  %v2541_v60 = vsel %vm411_vm0, %v2917_v33, 0.0 }
 0x2dd   : > { %v2403_v59 = vpop.f32.mrf.mxu1 }
 0x2de   : > { %2490 = vst.msk [vmem:[%s4008_s11 + $0x90] sm:$0xff] %vm411_vm0, %v2403_v59  ;;  %v2539_v61 = vsel %vm411_vm0, %v2403_v59, 0.0  ;;  %v2593_v62 = vmul.f32 %v2403_v59, %v2403_v59  ;;  %v2644_v54 = vsel %vm411_vm0, %v2594_v55, 0.0 }
 0x2df   : > { %v2540_v63 = vadd.f32 %v2539_v61, %v2538_v38 }
 0x2e0   : > { %v2642_v28 = vsel %vm411_vm0, %v2593_v62, 0.0 }
 0x2e1   : > { %v2643_v41 = vadd.f32 %v2642_v28, %v2641_v19  ;;  %v2542_v32 = vadd.f32 %v2541_v60, %v2540_v63 }
 0x2e3   : > { %v2645_v46 = vadd.f32 %v2644_v54, %v2643_v41 }
 0x2f3   : > { %v2920_v12 = vpop.f32.mrf.mxu1 }
 0x2f4   : > { %2493 = vst.msk [vmem:[%s4008_s11 + $0xa8] sm:$0xff] %vm411_vm0, %v2920_v12  ;;  %v2596_v35 = vmul.f32 %v2920_v12, %v2920_v12  ;;  %v2545_v0 = vsel %vm411_vm0, %v2920_v12, 0.0 }
 0x2f5   : > { %v2413_v21 = vpop.f32.mrf.mxu1 }
 0x2f6   : > { %2492 = vst.msk [vmem:[%s4008_s11 + $0xa0] sm:$0xff] %vm411_vm0, %v2413_v21  ;;  %v2543_v17 = vsel %vm411_vm0, %v2413_v21, 0.0  ;;  %v2595_v48 = vmul.f32 %v2413_v21, %v2413_v21  ;;  %v2648_v8 = vsel %vm411_vm0, %v2596_v35, 0.0 }
 0x2f7   : > { %v2544_v30 = vadd.f32 %v2543_v17, %v2542_v32 }
 0x2f8   : > { %v2646_v18 = vsel %vm411_vm0, %v2595_v48, 0.0 }
 0x2f9   : > { %v2647_v34 = vadd.f32 %v2646_v18, %v2645_v46  ;;  %v2546_v45 = vadd.f32 %v2545_v0, %v2544_v30 }
 0x2fb   : > { %v2649_v40 = vadd.f32 %v2648_v8, %v2647_v34 }
 0x30b   : > { %v2923_v43 = vpop.f32.mrf.mxu1 }
 0x30c   : > { %2495 = vst.msk [vmem:[%s4008_s11 + $0xb8] sm:$0xff] %vm411_vm0, %v2923_v43  ;;  %v2598_v50 = vmul.f32 %v2923_v43, %v2923_v43  ;;  %v2549_v37 = vsel %vm411_vm0, %v2923_v43, 0.0 }
 0x30d   : > { %v2423_v3 = vpop.f32.mrf.mxu1 }
 0x30e   : > { %2494 = vst.msk [vmem:[%s4008_s11 + $0xb0] sm:$0xff] %vm411_vm0, %v2423_v3  ;;  %v2547_v15 = vsel %vm411_vm0, %v2423_v3, 0.0  ;;  %v2597_v16 = vmul.f32 %v2423_v3, %v2423_v3  ;;  %v2652_v56 = vsel %vm411_vm0, %v2598_v50, 0.0 }
 0x30f   : > { %v2548_v4 = vadd.f32 %v2547_v15, %v2546_v45 }
 0x310   : > { %v2650_v49 = vsel %vm411_vm0, %v2597_v16, 0.0 }
 0x311   : > { %v2651_v57 = vadd.f32 %v2650_v49, %v2649_v40  ;;  %v2550_v23 = vadd.f32 %v2549_v37, %v2548_v4 }
 0x313   : > { %v2653_v25 = vadd.f32 %v2652_v56, %v2651_v57 }
 0x323   : > { %v2926_v42 = vpop.f32.mrf.mxu1 }
 0x324   : > { %2497 = vst.msk [vmem:[%s4008_s11 + $0xc8] sm:$0xff] %vm411_vm0, %v2926_v42  ;;  %v2600_v47 = vmul.f32 %v2926_v42, %v2926_v42  ;;  %v2553_v39 = vsel %vm411_vm0, %v2926_v42, 0.0 }
 0x325   : > { %v2433_v10 = vpop.f32.mrf.mxu1 }
 0x326   : > { %2496 = vst.msk [vmem:[%s4008_s11 + $0xc0] sm:$0xff] %vm411_vm0, %v2433_v10  ;;  %v2599_v36 = vmul.f32 %v2433_v10, %v2433_v10  ;;  %v2551_v29 = vsel %vm411_vm0, %v2433_v10, 0.0  ;;  %v2656_v7 = vsel %vm411_vm0, %v2600_v47, 0.0 }
 0x327   : > { %v2552_v20 = vadd.f32 %v2551_v29, %v2550_v23 }
 0x328   : > { %v2654_v6 = vsel %vm411_vm0, %v2599_v36, 0.0 }
 0x329   : > { %v2655_v31 = vadd.f32 %v2654_v6, %v2653_v25  ;;  %v2554_v13 = vadd.f32 %v2553_v39, %v2552_v20 }
 0x32b   : > { %v2657_v11 = vadd.f32 %v2656_v7, %v2655_v31 }
 0x33b   : > { %v2929_v2 = vpop.f32.mrf.mxu1 }
 0x33c   : > { %2499 = vst.msk [vmem:[%s4008_s11 + $0xd8] sm:$0xff] %vm411_vm0, %v2929_v2  ;;  %v2602_v1 = vmul.f32 %v2929_v2, %v2929_v2  ;;  %v2557_v51 = vsel %vm411_vm0, %v2929_v2, 0.0 }
 0x33d   : > { %v2443_v5 = vpop.f32.mrf.mxu1 }
 0x33e   : > { %2498 = vst.msk [vmem:[%s4008_s11 + $0xd0] sm:$0xff] %vm411_vm0, %v2443_v5  ;;  %v2601_v22 = vmul.f32 %v2443_v5, %v2443_v5  ;;  %v2555_v27 = vsel %vm411_vm0, %v2443_v5, 0.0  ;;  %v2660_v24 = vsel %vm411_vm0, %v2602_v1, 0.0 }
 0x33f   : > { %v2556_v14 = vadd.f32 %v2555_v27, %v2554_v13 }
 0x340   : > { %v2658_v9 = vsel %vm411_vm0, %v2601_v22, 0.0 }
 0x341   : > { %v2659_v26 = vadd.f32 %v2658_v9, %v2657_v11  ;;  %v2558_v38 = vadd.f32 %v2557_v51, %v2556_v14 }
 0x343   : > { %v2661_v59 = vadd.f32 %v2660_v24, %v2659_v26 }
 0x354   : > { %v2932_v53 = vpop.f32.mrf.mxu1 }
 0x355   : > { %2501 = vst.msk [vmem:[%s4008_s11 + $0xe8] sm:$0xff] %vm411_vm0, %v2932_v53  ;;  %v2604_v19 = vmul.f32 %v2932_v53, %v2932_v53  ;;  %v2561_v60 = vsel %vm411_vm0, %v2932_v53, 0.0 }
 0x356   : > { %v2453_v52 = vpop.f32.mrf.mxu1 }
 0x357   : > { %2500 = vst.msk [vmem:[%s4008_s11 + $0xe0] sm:$0xff] %vm411_vm0, %v2453_v52  ;;  %v2603_v58 = vmul.f32 %v2453_v52, %v2453_v52  ;;  %v2559_v44 = vsel %vm411_vm0, %v2453_v52, 0.0  ;;  %v2664_v63 = vsel %vm411_vm0, %v2604_v19, 0.0 }
 0x358   : > { %v2560_v55 = vadd.f32 %v2559_v44, %v2558_v38 }
 0x359   : > { %v2662_v33 = vsel %vm411_vm0, %v2603_v58, 0.0 }
 0x35a   : > { %v2663_v61 = vadd.f32 %v2662_v33, %v2661_v59  ;;  %v2562_v28 = vadd.f32 %v2561_v60, %v2560_v55 }
 0x35c   : > { %v2665_v35 = vadd.f32 %v2664_v63, %v2663_v61 }
 0x366   : > { %v2935_v62 = vpop.f32.mrf.mxu1 }
 0x367   : > { %2503 = vst.msk [vmem:[%s4008_s11 + $0xf8] sm:$0xff] %vm411_vm0, %v2935_v62  ;;  %v2606_v41 = vmul.f32 %v2935_v62, %v2935_v62  ;;  %v2565_v21 = vsel %vm411_vm0, %v2935_v62, 0.0 }
 0x368   : > { %v2463_v54 = vpop.f32.mrf.mxu1 }
 0x369   : > { %2502 = vst.msk [vmem:[%s4008_s11 + $0xf0] sm:$0xff] %vm411_vm0, %v2463_v54  ;;  %v2563_v32 = vsel %vm411_vm0, %v2463_v54, 0.0  ;;  %v2605_v46 = vmul.f32 %v2463_v54, %v2463_v54  ;;  %v2668_v30 = vsel %vm411_vm0, %v2606_v41, 0.0 }
 0x36a   : > { %v2564_v12 = vadd.f32 %v2563_v32, %v2562_v28 }
 0x36b   : > { %v2666_v0 = vsel %vm411_vm0, %v2605_v46, 0.0 }
 0x36c   : > { %v2566_v17 = vadd.f32 %v2565_v21, %v2564_v12  ;;  %v2667_v48 = vadd.f32 %v2666_v0, %v2665_v35 }
 0x36e   : > { %v2567_v8 = vrot.slane %v2566_v17, 4  ;;  %v2669_v18 = vadd.f32 %v2668_v30, %v2667_v48 }
 0x370   : > { %v2568_v34 = vadd.f32 %v2567_v8, %v2566_v17  ;;  %v2670_v45 = vrot.slane %v2669_v18, 4 }
 0x372   : > { %v2569_v40 = vrot.slane %v2568_v34, 2  ;;  %v2671_v43 = vadd.f32 %v2670_v45, %v2669_v18 }
 0x374   : > { %v2570_v50 = vadd.f32 %v2569_v40, %v2568_v34  ;;  %v2672_v3 = vrot.slane %v2671_v43, 2 }
 0x376   : > { %v2571_v37 = vrot.slane %v2570_v50, 1  ;;  %v2673_v15 = vadd.f32 %v2672_v3, %v2671_v43 }
 0x378   : > { %v2572_v16 = vadd.f32 %v2571_v37, %v2570_v50  ;;  %v2674_v4 = vrot.slane %v2673_v15, 1 }
 0x37a   : > { %2574 = vst.msk [vmem:[%s265_s17] sm:$0x1] %vm2573_vm11, %v2572_v16  ;;  %v2675_v56 = vadd.f32 %v2674_v4, %v2673_v15 }
 0x37c   : > { %2676 = vst.msk [vmem:[%s268_s27] sm:$0x1] %vm2573_vm11, %v2675_v56 }
 0x37d PF: > { %s17_s21 = sadd.s32 1, %s2979_s21  }
 0x37e   : > { %p14_p4 = scmp.ge.s32.totalorder %s17_s21, 4  }
 0x380   :  { %16 = sbr.rel (!%p14_p4) target bundleno = 1 (0x1), region = 92 }

</bundles_post_ra>
